<compile_context>
chip_gen: v7x
topology: tpu7x:2x2x1
jax: 0.10.0
libtpu: 0.0.40
codegen_flags: <defaults>
</compile_context>

<pallas_src>
import functools

import jax
import jax.numpy as jnp
from jax import lax
from jax.experimental import pallas as pl
from jax.experimental.pallas import tpu as pltpu


def _round_up(x, m):
    return ((x + m - 1) // m) * m


# --------------------------------------------------------------------------
# Tile selection (K/N chosen once per weight at init; M per call).
# Goal: every matmul gets a multi-step grid (pipelining overlap) and, where
# possible, >=2 "parallel" tiles (megacore sharding on v7x; harmless on
# single-TC chips).
# --------------------------------------------------------------------------

def _pick_tn(Np):
    if Np <= 128:
        return Np
    if Np % 256 == 0 and Np // 256 >= 2:
        return 256
    return 128


def _pick_tk(Kp):
    # Largest 128-aligned tile <= 512 that divides Kp AND leaves >=2 K steps.
    for t in (512, 384, 256, 128):
        if Kp % t == 0 and Kp // t >= 2:
            return t
    return Kp            # only hit for Kp == 128 (single K step)


def _pick_tm(M, n_tiles):
    Mp8 = _round_up(M, 8)
    if Mp8 <= 256:
        # If N contributes only one tile, split M in two so there are at
        # least 2 parallel tiles (v7x 2nd core / extra pipeline overlap).
        if n_tiles == 1 and Mp8 >= 16 and Mp8 % 16 == 0:
            return Mp8 // 2, Mp8
        return Mp8, Mp8
    Mp = _round_up(M, 256)
    return 256, Mp


# --------------------------------------------------------------------------
# Pallas kernels
# --------------------------------------------------------------------------

def _matmul_bias_kernel(*refs, relu, has_res, multi_k):
    """Tiled matmul (bf16 operands, f32 acc), BN-folded bias (+ residual)
    (+ ReLU) epilogue, bf16 store.  multi_k=False skips the VMEM acc."""
    if multi_k:
        if has_res:
            a_ref, b_ref, c_ref, r_ref, o_ref, acc_ref = refs
        else:
            a_ref, b_ref, c_ref, o_ref, acc_ref = refs
            r_ref = None

        @pl.when(pl.program_id(2) == 0)
        def _():
            acc_ref[...] = jnp.zeros_like(acc_ref)

        acc_ref[...] += jnp.dot(a_ref[...], b_ref[...],
                                preferred_element_type=jnp.float32)

        @pl.when(pl.program_id(2) == pl.num_programs(2) - 1)
        def _():
            y = acc_ref[...] + c_ref[...]
            if has_res:
                y = y + r_ref[...].astype(jnp.float32)
            if relu:
                y = jnp.maximum(y, 0.0)
            o_ref[...] = y.astype(o_ref.dtype)
    else:
        if has_res:
            a_ref, b_ref, c_ref, r_ref, o_ref = refs
        else:
            a_ref, b_ref, c_ref, o_ref = refs
            r_ref = None
        y = jnp.dot(a_ref[...], b_ref[...],
                    preferred_element_type=jnp.float32) + c_ref[...]
        if has_res:
            y = y + r_ref[...].astype(jnp.float32)
        if relu:
            y = jnp.maximum(y, 0.0)
        o_ref[...] = y.astype(o_ref.dtype)


def matmul_bn(a, pc, relu, residual=None):
    """(M,K)@(Kp,Np BN-folded bf16 weights) + bias [+ residual] [, ReLU].
    Output is bf16 (activations stay bf16 end-to-end)."""
    M, K = a.shape
    Kp, Np = pc['w'].shape
    N = pc['N']
    tk, tn = pc['tk'], pc['tn']
    n_tiles = Np // tn
    tm, Mp = _pick_tm(M, n_tiles)
    nk = Kp // tk

    a_p = a.astype(jnp.bfloat16)
    if (Mp, Kp) != (M, K):
        a_p = jnp.pad(a_p, ((0, Mp - M), (0, Kp - K)))

    has_res = residual is not None
    inputs = [a_p, pc['w'], pc['bias']]
    if has_res:
        r_p = residual.astype(jnp.bfloat16)     # bf16 residual (halved HBM read)
        if r_p.shape != (Mp, Np):
            r_p = jnp.pad(r_p, ((0, Mp - r_p.shape[0]), (0, Np - r_p.shape[1])))
        inputs.append(r_p)

    if nk > 1:
        in_specs = [
            pl.BlockSpec((tm, tk), lambda i, j, k: (i, k)),
            pl.BlockSpec((tk, tn), lambda i, j, k: (k, j)),
            pl.BlockSpec((1, tn), lambda i, j, k: (0, j)),
        ]
        if has_res:
            in_specs.append(pl.BlockSpec((tm, tn), lambda i, j, k: (i, j)))
        grid = (Mp // tm, Np // tn, nk)
        out_spec = pl.BlockSpec((tm, tn), lambda i, j, k: (i, j))
        scratch = [pltpu.VMEM((tm, tn), jnp.float32)]
        dims = ("parallel", "parallel", "arbitrary")
    else:
        # Single K step: no accumulator, direct store.
        in_specs = [
            pl.BlockSpec((tm, tk), lambda i, j: (i, 0)),
            pl.BlockSpec((tk, tn), lambda i, j: (0, j)),
            pl.BlockSpec((1, tn), lambda i, j: (0, j)),
        ]
        if has_res:
            in_specs.append(pl.BlockSpec((tm, tn), lambda i, j: (i, j)))
        grid = (Mp // tm, Np // tn)
        out_spec = pl.BlockSpec((tm, tn), lambda i, j: (i, j))
        scratch = []
        dims = ("parallel", "parallel")

    out = pl.pallas_call(
        functools.partial(_matmul_bias_kernel, relu=relu, has_res=has_res,
                          multi_k=(nk > 1)),
        out_shape=jax.ShapeDtypeStruct((Mp, Np), jnp.bfloat16),
        grid_spec=pltpu.PrefetchScalarGridSpec(
            num_scalar_prefetch=0,
            grid=grid,
            in_specs=in_specs,
            out_specs=out_spec,
            scratch_shapes=scratch,
        ),
        compiler_params=pltpu.CompilerParams(dimension_semantics=dims),
    )(*inputs)
    if (Mp, Np) != (M, N):
        out = out[:M, :N]
    return out


def _fc_norm_kernel(x_ref, w_ref, b_ref, o_ref):
    y = jnp.dot(x_ref[...], w_ref[...], preferred_element_type=jnp.float32)
    y = y + b_ref[...]
    ss = jnp.sum(y * y, axis=-1, keepdims=True)
    inv = lax.rsqrt(jnp.maximum(ss, 1e-24))   # F.normalize(p=2, eps=1e-12)
    o_ref[...] = (y * inv).astype(o_ref.dtype)


def fc_normalize(x, w_bf16, b):
    """Fused Linear(512,512) + L2 row normalization in one Pallas kernel."""
    M, K = x.shape
    N = w_bf16.shape[1]
    Mp = _round_up(M, 8)
    x_p = x if Mp == M else jnp.pad(x, ((0, Mp - M), (0, 0)))
    x_p = x_p.astype(jnp.bfloat16)
    out = pl.pallas_call(
        _fc_norm_kernel,
        out_shape=jax.ShapeDtypeStruct((Mp, N), jnp.float32),
        grid=(1,),
        in_specs=[pl.BlockSpec((Mp, K), lambda i: (0, 0)),
                  pl.BlockSpec((K, N), lambda i: (0, 0)),
                  pl.BlockSpec((1, N), lambda i: (0, 0))],
        out_specs=pl.BlockSpec((Mp, N), lambda i: (0, 0)),
    )(x_p, w_bf16, b)
    return out[:M] if Mp != M else out


# --------------------------------------------------------------------------
# ResNet18 forward (glue: im2col / maxpool tree / GAP; compute: Pallas above)
# --------------------------------------------------------------------------

def im2col(x, kh, kw, stride, pad):
    N, H, W, C = x.shape
    Ho = (H + 2 * pad - kh) // stride + 1
    Wo = (W + 2 * pad - kw) // stride + 1
    x_p = jnp.pad(x, ((0, 0), (pad, pad), (pad, pad), (0, 0)))
    cols = []
    for i in range(kh):
        for j in range(kw):
            cols.append(x_p[:, i:i + stride * Ho:stride,
                            j:j + stride * Wo:stride, :])
    patches = jnp.concatenate(cols, axis=-1)  # (N, Ho, Wo, kh*kw*C), bf16
    return patches.reshape(N * Ho * Wo, kh * kw * C), Ho, Wo


def maxpool2d(x, k=3, stride=2, pad=1):
    """3x3/s2 max pool as a fused pairwise-max tree (no 9x HBM buffer)."""
    N, H, W, C = x.shape
    Ho = (H + 2 * pad - k) // stride + 1
    Wo = (W + 2 * pad - k) // stride + 1
    x_p = jnp.pad(x, ((0, 0), (pad, pad), (pad, pad), (0, 0)),
                  constant_values=-jnp.inf)
    out = None
    for i in range(k):
        for j in range(k):
            s = x_p[:, i:i + stride * Ho:stride, j:j + stride * Wo:stride, :]
            out = s if out is None else jnp.maximum(out, s)
    return out


def conv_bn(x, pc, relu, residual=None):
    """Conv2d (no bias) + folded eval-mode BN (+ fused residual add) (+ ReLU)."""
    patches, Ho, Wo = im2col(x, pc['kh'], pc['kw'], pc['stride'], pc['pad'])
    res2 = None if residual is None else residual.reshape(-1, pc['N'])
    y = matmul_bn(patches, pc, relu=relu, residual=res2)
    return y.reshape(x.shape[0], Ho, Wo, pc['N'])


def basic_block(x, pb):
    identity = x
    out = conv_bn(x, pb['conv1'], relu=True)
    if 'down' in pb:
        identity = conv_bn(x, pb['down'], relu=False)
    # conv2 + bn2 + residual add + ReLU fused into one matmul epilogue.
    return conv_bn(out, pb['conv2'], relu=True, residual=identity)


def embedder_forward(packed, x_nchw):
    # NCHW -> NHWC, bf16 activations end-to-end (accumulation stays f32).
    x = jnp.transpose(x_nchw, (0, 2, 3, 1)).astype(jnp.bfloat16)
    x = conv_bn(x, packed['stem'], relu=True)
    x = maxpool2d(x)
    for pblocks in packed['layers']:
        for pb in pblocks:
            x = basic_block(x, pb)
    feats = jnp.mean(x.astype(jnp.float32), axis=(1, 2))   # global avg pool
    return fc_normalize(feats, packed['fc_w'], packed['fc_b'])


# --------------------------------------------------------------------------
# Parameter packing: BN fold / reshape / pad / cast weights ONCE at init.
# --------------------------------------------------------------------------

def pack_conv(w, scale, bias, stride, pad):
    kh, kw, cin, cout = w.shape
    K, N = kh * kw * cin, cout
    Kp, Np = _round_up(K, 128), _round_up(N, 128)
    tk, tn = _pick_tk(Kp), _pick_tn(Np)
    # Fold BN scale into the weights in f32, then cast to bf16 (synthetic
    # scales are ~1.0, well inside bf16 range).
    w2d = (w.reshape(K, N) * scale[None, :]).astype(jnp.bfloat16)
    w_p = jnp.zeros((Kp, Np), jnp.bfloat16).at[:K, :N].set(w2d)
    c_p = jnp.zeros((1, Np), jnp.float32).at[0, :N].set(bias)
    return dict(w=w_p, bias=c_p, K=K, N=N, tk=tk, tn=tn,
                kh=kh, kw=kw, stride=stride, pad=pad)


def pack_params(raw):
    packed = {
        'stem': pack_conv(raw['conv1_w'], raw['bn1'][0], raw['bn1'][1],
                          stride=2, pad=3),
        'fc_w': raw['fc_w'].astype(jnp.bfloat16),
        'fc_b': raw['fc_b'].reshape(1, -1).astype(jnp.float32),
        'layers': [],
    }
    for li in range(1, 5):
        blocks, stride = raw[f'layer{li}']
        pblocks = []
        for bi, b in enumerate(blocks):
            s = stride if bi == 0 else 1
            pb = {
                'conv1': pack_conv(b['conv1_w'], b['bn1'][0], b['bn1'][1],
                                   stride=s, pad=1),
                'conv2': pack_conv(b['conv2_w'], b['bn2'][0], b['bn2'][1],
                                   stride=1, pad=1),
            }
            if 'down_w' in b:
                pb['down'] = pack_conv(b['down_w'], b['down_bn'][0],
                                       b['down_bn'][1], stride=s, pad=0)
            pblocks.append(pb)
        packed['layers'].append(pblocks)
    return packed


# --------------------------------------------------------------------------
# Deterministic synthetic parameters (timm resnet18 shapes + fc(512,512))
# --------------------------------------------------------------------------

def fold_bn(gamma, beta, mean, var, eps=1e-5):
    scale = gamma / jnp.sqrt(var + eps)
    return scale, beta - mean * scale


def init_conv(key, kh, kw, cin, cout):
    return 0.05 * jax.random.normal(key, (kh, kw, cin, cout), jnp.float32)


def init_bn(key, c):
    k1, k2, k3, k4 = jax.random.split(key, 4)
    gamma = 1.0 + 0.1 * jax.random.normal(k1, (c,), jnp.float32)
    beta = 0.1 * jax.random.normal(k2, (c,), jnp.float32)
    mean = 0.1 * jax.random.normal(k3, (c,), jnp.float32)
    var = 0.9 + 0.2 * jax.random.uniform(k4, (c,), jnp.float32)
    return fold_bn(gamma, beta, mean, var)


def init_block(key, cin, cout, downsample):
    ks = jax.random.split(key, 6)
    p = {
        'conv1_w': init_conv(ks[0], 3, 3, cin, cout),
        'bn1': init_bn(ks[1], cout),
        'conv2_w': init_conv(ks[2], 3, 3, cout, cout),
        'bn2': init_bn(ks[3], cout),
    }
    if downsample:
        p['down_w'] = init_conv(ks[4], 1, 1, cin, cout)
        p['down_bn'] = init_bn(ks[5], cout)
    return p


def init_embedder(key):
    ks = jax.random.split(key, 12)
    params = {
        'conv1_w': init_conv(ks[0], 7, 7, 3, 64),
        'bn1': init_bn(ks[1], 64),
        'fc_w': 0.02 * jax.random.normal(ks[10], (512, 512), jnp.float32),
        'fc_b': 0.01 * jax.random.normal(ks[11], (512,), jnp.float32),
    }
    cfg = [(64, 64, 1), (64, 128, 2), (128, 256, 2), (256, 512, 2)]
    for li, (cin, cout, stride) in enumerate(cfg):
        bkeys = jax.random.split(ks[2 + li], 2)
        blocks = [
            init_block(bkeys[0], cin, cout,
                       downsample=(stride != 1 or cin != cout)),
            init_block(bkeys[1], cout, cout, downsample=False),
        ]
        params[f'layer{li + 1}'] = (blocks, stride)
    return params


if __name__ == "__main__":
    key = jax.random.PRNGKey(0)
    pkey, xkey = jax.random.split(key)
    raw_params = init_embedder(pkey)
    packed_params = pack_params(raw_params)          # one-time weight packing

    fwd = jax.jit(functools.partial(embedder_forward, packed_params))

    # Small input consistent with the module: NCHW, 3 channels (ResNet stem).
    x = jax.random.normal(xkey, (2, 3, 32, 32), jnp.float32)
    out = jax.block_until_ready(fwd(x))
    assert out.shape == (2, 512)
    # Rows are unit-norm after F.normalize-equivalent.
    assert bool(jnp.all(jnp.abs(jnp.linalg.norm(out, axis=1) - 1.0) < 1e-3))
    print("KERNEL_OK")
</pallas_src>

<mosaic_0001>
module attributes {stable_mosaic.version = 11 : i64} {
  func.func @_matmul_bias_kernel(%arg0: i32, %arg1: i32, %arg2: i32, %arg3: memref<256x128xbf16, #tpu.memory_space<vmem>>, %arg4: memref<128x128xbf16, #tpu.memory_space<vmem>>, %arg5: memref<1x128xf32, #tpu.memory_space<vmem>>, %arg6: memref<256x128xbf16, #tpu.memory_space<vmem>>, %arg7: memref<256x128xf32, #tpu.memory_space<vmem>>) attributes {dimension_semantics = [#tpu.dimension_semantics<parallel>, #tpu.dimension_semantics<parallel>, #tpu.dimension_semantics<arbitrary>], iteration_bounds = array<i64: 2, 1, 2>, scalar_prefetch = 0 : i64, scratch_operands = 1 : i64, tpu.core_type = #tpu.core_type<tc>, window_params = [{transform_indices = @transform_0, window_bounds = array<i64: 256, 128>}, {transform_indices = @transform_1, window_bounds = array<i64: 128, 128>}, {transform_indices = @transform_2, window_bounds = array<i64: 1, 128>}, {transform_indices = @transform_3, window_bounds = array<i64: 256, 128>}]} {
    %c0_i32 = arith.constant 0 : i32
    %0 = arith.cmpi eq, %arg2, %c0_i32 : i32
    %1 = arith.extui %0 : i1 to i32
    %c0_i32_0 = arith.constant 0 : i32
    %2 = arith.cmpi ne, %1, %c0_i32_0 : i32
    scf.if %2 {
      %cst_9 = arith.constant 0.000000e+00 : f32
      %12 = vector.broadcast %cst_9 : f32 to vector<256x128xf32>
      %c0_10 = arith.constant 0 : index
      %c0_11 = arith.constant 0 : index
      %13 = vector.load %arg7[%c0_10, %c0_11] : memref<256x128xf32, #tpu.memory_space<vmem>>, vector<256x128xf32>
      tpu.vector_store %arg7[%c0_10, %c0_11], %12 {strides = array<i32>} : memref<256x128xf32, #tpu.memory_space<vmem>>, vector<256x128xf32>,
    } else {
    }
    %c0 = arith.constant 0 : index
    %c0_1 = arith.constant 0 : index
    %3 = vector.load %arg7[%c0, %c0_1] : memref<256x128xf32, #tpu.memory_space<vmem>>, vector<256x128xf32>
    %c0_2 = arith.constant 0 : index
    %c0_3 = arith.constant 0 : index
    %4 = vector.load %arg3[%c0_2, %c0_3] : memref<256x128xbf16, #tpu.memory_space<vmem>>, vector<256x128xbf16>
    %c0_4 = arith.constant 0 : index
    %c0_5 = arith.constant 0 : index
    %5 = vector.load %arg4[%c0_4, %c0_5] : memref<128x128xbf16, #tpu.memory_space<vmem>>, vector<128x128xbf16>
    %cst = arith.constant dense<0.000000e+00> : vector<256x128xf32>
    %6 = tpu.matmul %4, %5, %cst {dimension_numbers = #tpu.dot_dimension_numbers<[1], [0], [0], [1], [0, 0, 1, 1], [], []>} : vector<256x128xbf16>, vector<128x128xbf16>, vector<256x128xf32> -> vector<256x128xf32>
    %7 = arith.addf %3, %6 : vector<256x128xf32>
    %c0_6 = arith.constant 0 : index
    %c0_7 = arith.constant 0 : index
    %8 = vector.load %arg7[%c0_6, %c0_7] : memref<256x128xf32, #tpu.memory_space<vmem>>, vector<256x128xf32>
    tpu.vector_store %arg7[%c0_6, %c0_7], %7 {strides = array<i32>} : memref<256x128xf32, #tpu.memory_space<vmem>>, vector<256x128xf32>,
    %c1_i32 = arith.constant 1 : i32
    %9 = arith.cmpi eq, %arg2, %c1_i32 : i32
    %10 = arith.extui %9 : i1 to i32
    %c0_i32_8 = arith.constant 0 : i32
    %11 = arith.cmpi ne, %10, %c0_i32_8 : i32
    scf.if %11 {
      %c0_9 = arith.constant 0 : index
      %c0_10 = arith.constant 0 : index
      %12 = vector.load %arg7[%c0_9, %c0_10] : memref<256x128xf32, #tpu.memory_space<vmem>>, vector<256x128xf32>
      %c0_11 = arith.constant 0 : index
      %c0_12 = arith.constant 0 : index
      %13 = vector.load %arg5[%c0_11, %c0_12] : memref<1x128xf32, #tpu.memory_space<vmem>>, vector<1x128xf32>
      %14 = vector.broadcast %13 : vector<1x128xf32> to vector<256x128xf32>
      %15 = arith.addf %12, %14 : vector<256x128xf32>
      %cst_13 = arith.constant 0.000000e+00 : f32
      %16 = vector.broadcast %cst_13 : f32 to vector<256x128xf32>
      %17 = arith.maximumf %15, %16 : vector<256x128xf32>
      %18 = arith.truncf %17 : vector<256x128xf32> to vector<256x128xbf16>
      %c0_14 = arith.constant 0 : index
      %c0_15 = arith.constant 0 : index
      %19 = vector.load %arg6[%c0_14, %c0_15] : memref<256x128xbf16, #tpu.memory_space<vmem>>, vector<256x128xbf16>
      tpu.vector_store %arg6[%c0_14, %c0_15], %18 {strides = array<i32>} : memref<256x128xbf16, #tpu.memory_space<vmem>>, vector<256x128xbf16>,
    } else {
    }
    return
  }
  func.func @transform_0(%arg0: i32, %arg1: i32, %arg2: i32) -> (i32, i32) {
    %c0_i32 = arith.constant 0 : i32
    return %arg0, %arg2 : i32, i32
  }
  func.func @transform_1(%arg0: i32, %arg1: i32, %arg2: i32) -> (i32, i32) {
    %c0_i32 = arith.constant 0 : i32
    return %arg2, %arg1 : i32, i32
  }
  func.func @transform_2(%arg0: i32, %arg1: i32, %arg2: i32) -> (i32, i32) {
    %c0_i32 = arith.constant 0 : i32
    %c0_i32_0 = arith.constant 0 : i32
    return %c0_i32, %arg1 : i32, i32
  }
  func.func @transform_3(%arg0: i32, %arg1: i32, %arg2: i32) -> (i32, i32) {
    %c0_i32 = arith.constant 0 : i32
    return %arg0, %arg1 : i32, i32
  }
}

module attributes {stable_mosaic.version = 11 : i64} {
  func.func @_matmul_bias_kernel(%arg0: i32, %arg1: i32, %arg2: i32, %arg3: memref<64x128xbf16, #tpu.memory_space<vmem>>, %arg4: memref<128x128xbf16, #tpu.memory_space<vmem>>, %arg5: memref<1x128xf32, #tpu.memory_space<vmem>>, %arg6: memref<64x128xbf16, #tpu.memory_space<vmem>>, %arg7: memref<64x128xf32, #tpu.memory_space<vmem>>) attributes {dimension_semantics = [#tpu.dimension_semantics<parallel>, #tpu.dimension_semantics<parallel>, #tpu.dimension_semantics<arbitrary>], iteration_bounds = array<i64: 2, 1, 5>, scalar_prefetch = 0 : i64, scratch_operands = 1 : i64, tpu.core_type = #tpu.core_type<tc>, window_params = [{transform_indices = @transform_0, window_bounds = array<i64: 64, 128>}, {transform_indices = @transform_1, window_bounds = array<i64: 128, 128>}, {transform_indices = @transform_2, window_bounds = array<i64: 1, 128>}, {transform_indices = @transform_3, window_bounds = array<i64: 64, 128>}]} {
    %c0_i32 = arith.constant 0 : i32
    %0 = arith.cmpi eq, %arg2, %c0_i32 : i32
    %1 = arith.extui %0 : i1 to i32
    %c0_i32_0 = arith.constant 0 : i32
    %2 = arith.cmpi ne, %1, %c0_i32_0 : i32
    scf.if %2 {
      %cst_9 = arith.constant 0.000000e+00 : f32
      %12 = vector.broadcast %cst_9 : f32 to vector<64x128xf32>
      %c0_10 = arith.constant 0 : index
      %c0_11 = arith.constant 0 : index
      %13 = vector.load %arg7[%c0_10, %c0_11] : memref<64x128xf32, #tpu.memory_space<vmem>>, vector<64x128xf32>
      tpu.vector_store %arg7[%c0_10, %c0_11], %12 {strides = array<i32>} : memref<64x128xf32, #tpu.memory_space<vmem>>, vector<64x128xf32>,
    } else {
    }
    %c0 = arith.constant 0 : index
    %c0_1 = arith.constant 0 : index
    %3 = vector.load %arg7[%c0, %c0_1] : memref<64x128xf32, #tpu.memory_space<vmem>>, vector<64x128xf32>
    %c0_2 = arith.constant 0 : index
    %c0_3 = arith.constant 0 : index
    %4 = vector.load %arg3[%c0_2, %c0_3] : memref<64x128xbf16, #tpu.memory_space<vmem>>, vector<64x128xbf16>
    %c0_4 = arith.constant 0 : index
    %c0_5 = arith.constant 0 : index
    %5 = vector.load %arg4[%c0_4, %c0_5] : memref<128x128xbf16, #tpu.memory_space<vmem>>, vector<128x128xbf16>
    %cst = arith.constant dense<0.000000e+00> : vector<64x128xf32>
    %6 = tpu.matmul %4, %5, %cst {dimension_numbers = #tpu.dot_dimension_numbers<[1], [0], [0], [1], [0, 0, 1, 1], [], []>} : vector<64x128xbf16>, vector<128x128xbf16>, vector<64x128xf32> -> vector<64x128xf32>
    %7 = arith.addf %3, %6 : vector<64x128xf32>
    %c0_6 = arith.constant 0 : index
    %c0_7 = arith.constant 0 : index
    %8 = vector.load %arg7[%c0_6, %c0_7] : memref<64x128xf32, #tpu.memory_space<vmem>>, vector<64x128xf32>
    tpu.vector_store %arg7[%c0_6, %c0_7], %7 {strides = array<i32>} : memref<64x128xf32, #tpu.memory_space<vmem>>, vector<64x128xf32>,
    %c4_i32 = arith.constant 4 : i32
    %9 = arith.cmpi eq, %arg2, %c4_i32 : i32
    %10 = arith.extui %9 : i1 to i32
    %c0_i32_8 = arith.constant 0 : i32
    %11 = arith.cmpi ne, %10, %c0_i32_8 : i32
    scf.if %11 {
      %c0_9 = arith.constant 0 : index
      %c0_10 = arith.constant 0 : index
      %12 = vector.load %arg7[%c0_9, %c0_10] : memref<64x128xf32, #tpu.memory_space<vmem>>, vector<64x128xf32>
      %c0_11 = arith.constant 0 : index
      %c0_12 = arith.constant 0 : index
      %13 = vector.load %arg5[%c0_11, %c0_12] : memref<1x128xf32, #tpu.memory_space<vmem>>, vector<1x128xf32>
      %14 = vector.broadcast %13 : vector<1x128xf32> to vector<64x128xf32>
      %15 = arith.addf %12, %14 : vector<64x128xf32>
      %cst_13 = arith.constant 0.000000e+00 : f32
      %16 = vector.broadcast %cst_13 : f32 to vector<64x128xf32>
      %17 = arith.maximumf %15, %16 : vector<64x128xf32>
      %18 = arith.truncf %17 : vector<64x128xf32> to vector<64x128xbf16>
      %c0_14 = arith.constant 0 : index
      %c0_15 = arith.constant 0 : index
      %19 = vector.load %arg6[%c0_14, %c0_15] : memref<64x128xbf16, #tpu.memory_space<vmem>>, vector<64x128xbf16>
      tpu.vector_store %arg6[%c0_14, %c0_15], %18 {strides = array<i32>} : memref<64x128xbf16, #tpu.memory_space<vmem>>, vector<64x128xbf16>,
    } else {
    }
    return
  }
  func.func @transform_0(%arg0: i32, %arg1: i32, %arg2: i32) -> (i32, i32) {
    %c0_i32 = arith.constant 0 : i32
    return %arg0, %arg2 : i32, i32
  }
  func.func @transform_1(%arg0: i32, %arg1: i32, %arg2: i32) -> (i32, i32) {
    %c0_i32 = arith.constant 0 : i32
    return %arg2, %arg1 : i32, i32
  }
  func.func @transform_2(%arg0: i32, %arg1: i32, %arg2: i32) -> (i32, i32) {
    %c0_i32 = arith.constant 0 : i32
    %c0_i32_0 = arith.constant 0 : i32
    return %c0_i32, %arg1 : i32, i32
  }
  func.func @transform_3(%arg0: i32, %arg1: i32, %arg2: i32) -> (i32, i32) {
    %c0_i32 = arith.constant 0 : i32
    return %arg0, %arg1 : i32, i32
  }
}

module attributes {stable_mosaic.version = 11 : i64} {
  func.func @_matmul_bias_kernel(%arg0: i32, %arg1: i32, %arg2: i32, %arg3: memref<64x128xbf16, #tpu.memory_space<vmem>>, %arg4: memref<128x128xbf16, #tpu.memory_space<vmem>>, %arg5: memref<1x128xf32, #tpu.memory_space<vmem>>, %arg6: memref<64x128xbf16, #tpu.memory_space<vmem>>, %arg7: memref<64x128xbf16, #tpu.memory_space<vmem>>, %arg8: memref<64x128xf32, #tpu.memory_space<vmem>>) attributes {dimension_semantics = [#tpu.dimension_semantics<parallel>, #tpu.dimension_semantics<parallel>, #tpu.dimension_semantics<arbitrary>], iteration_bounds = array<i64: 2, 1, 5>, scalar_prefetch = 0 : i64, scratch_operands = 1 : i64, tpu.core_type = #tpu.core_type<tc>, window_params = [{transform_indices = @transform_0, window_bounds = array<i64: 64, 128>}, {transform_indices = @transform_1, window_bounds = array<i64: 128, 128>}, {transform_indices = @transform_2, window_bounds = array<i64: 1, 128>}, {transform_indices = @transform_3, window_bounds = array<i64: 64, 128>}, {transform_indices = @transform_4, window_bounds = array<i64: 64, 128>}]} {
    %c0_i32 = arith.constant 0 : i32
    %0 = arith.cmpi eq, %arg2, %c0_i32 : i32
    %1 = arith.extui %0 : i1 to i32
    %c0_i32_0 = arith.constant 0 : i32
    %2 = arith.cmpi ne, %1, %c0_i32_0 : i32
    scf.if %2 {
      %cst_9 = arith.constant 0.000000e+00 : f32
      %12 = vector.broadcast %cst_9 : f32 to vector<64x128xf32>
      %c0_10 = arith.constant 0 : index
      %c0_11 = arith.constant 0 : index
      %13 = vector.load %arg8[%c0_10, %c0_11] : memref<64x128xf32, #tpu.memory_space<vmem>>, vector<64x128xf32>
      tpu.vector_store %arg8[%c0_10, %c0_11], %12 {strides = array<i32>} : memref<64x128xf32, #tpu.memory_space<vmem>>, vector<64x128xf32>,
    } else {
    }
    %c0 = arith.constant 0 : index
    %c0_1 = arith.constant 0 : index
    %3 = vector.load %arg8[%c0, %c0_1] : memref<64x128xf32, #tpu.memory_space<vmem>>, vector<64x128xf32>
    %c0_2 = arith.constant 0 : index
    %c0_3 = arith.constant 0 : index
    %4 = vector.load %arg3[%c0_2, %c0_3] : memref<64x128xbf16, #tpu.memory_space<vmem>>, vector<64x128xbf16>
    %c0_4 = arith.constant 0 : index
    %c0_5 = arith.constant 0 : index
    %5 = vector.load %arg4[%c0_4, %c0_5] : memref<128x128xbf16, #tpu.memory_space<vmem>>, vector<128x128xbf16>
    %cst = arith.constant dense<0.000000e+00> : vector<64x128xf32>
    %6 = tpu.matmul %4, %5, %cst {dimension_numbers = #tpu.dot_dimension_numbers<[1], [0], [0], [1], [0, 0, 1, 1], [], []>} : vector<64x128xbf16>, vector<128x128xbf16>, vector<64x128xf32> -> vector<64x128xf32>
    %7 = arith.addf %3, %6 : vector<64x128xf32>
    %c0_6 = arith.constant 0 : index
    %c0_7 = arith.constant 0 : index
    %8 = vector.load %arg8[%c0_6, %c0_7] : memref<64x128xf32, #tpu.memory_space<vmem>>, vector<64x128xf32>
    tpu.vector_store %arg8[%c0_6, %c0_7], %7 {strides = array<i32>} : memref<64x128xf32, #tpu.memory_space<vmem>>, vector<64x128xf32>,
    %c4_i32 = arith.constant 4 : i32
    %9 = arith.cmpi eq, %arg2, %c4_i32 : i32
    %10 = arith.extui %9 : i1 to i32
    %c0_i32_8 = arith.constant 0 : i32
    %11 = arith.cmpi ne, %10, %c0_i32_8 : i32
    scf.if %11 {
      %c0_9 = arith.constant 0 : index
      %c0_10 = arith.constant 0 : index
      %12 = vector.load %arg8[%c0_9, %c0_10] : memref<64x128xf32, #tpu.memory_space<vmem>>, vector<64x128xf32>
      %c0_11 = arith.constant 0 : index
      %c0_12 = arith.constant 0 : index
      %13 = vector.load %arg5[%c0_11, %c0_12] : memref<1x128xf32, #tpu.memory_space<vmem>>, vector<1x128xf32>
      %14 = vector.broadcast %13 : vector<1x128xf32> to vector<64x128xf32>
      %15 = arith.addf %12, %14 : vector<64x128xf32>
      %c0_13 = arith.constant 0 : index
      %c0_14 = arith.constant 0 : index
      %16 = vector.load %arg6[%c0_13, %c0_14] : memref<64x128xbf16, #tpu.memory_space<vmem>>, vector<64x128xbf16>
      %17 = arith.extf %16 : vector<64x128xbf16> to vector<64x128xf32>
      %18 = arith.addf %15, %17 : vector<64x128xf32>
      %cst_15 = arith.constant 0.000000e+00 : f32
      %19 = vector.broadcast %cst_15 : f32 to vector<64x128xf32>
      %20 = arith.maximumf %18, %19 : vector<64x128xf32>
      %21 = arith.truncf %20 : vector<64x128xf32> to vector<64x128xbf16>
      %c0_16 = arith.constant 0 : index
      %c0_17 = arith.constant 0 : index
      %22 = vector.load %arg7[%c0_16, %c0_17] : memref<64x128xbf16, #tpu.memory_space<vmem>>, vector<64x128xbf16>
      tpu.vector_store %arg7[%c0_16, %c0_17], %21 {strides = array<i32>} : memref<64x128xbf16, #tpu.memory_space<vmem>>, vector<64x128xbf16>,
    } else {
    }
    return
  }
  func.func @transform_0(%arg0: i32, %arg1: i32, %arg2: i32) -> (i32, i32) {
    %c0_i32 = arith.constant 0 : i32
    return %arg0, %arg2 : i32, i32
  }
  func.func @transform_1(%arg0: i32, %arg1: i32, %arg2: i32) -> (i32, i32) {
    %c0_i32 = arith.constant 0 : i32
    return %arg2, %arg1 : i32, i32
  }
  func.func @transform_2(%arg0: i32, %arg1: i32, %arg2: i32) -> (i32, i32) {
    %c0_i32 = arith.constant 0 : i32
    %c0_i32_0 = arith.constant 0 : i32
    return %c0_i32, %arg1 : i32, i32
  }
  func.func @transform_3(%arg0: i32, %arg1: i32, %arg2: i32) -> (i32, i32) {
    %c0_i32 = arith.constant 0 : i32
    return %arg0, %arg1 : i32, i32
  }
  func.func @transform_4(%arg0: i32, %arg1: i32, %arg2: i32) -> (i32, i32) {
    %c0_i32 = arith.constant 0 : i32
    return %arg0, %arg1 : i32, i32
  }
}

module attributes {stable_mosaic.version = 11 : i64} {
  func.func @_matmul_bias_kernel(%arg0: i32, %arg1: i32, %arg2: i32, %arg3: memref<16x128xbf16, #tpu.memory_space<vmem>>, %arg4: memref<128x128xbf16, #tpu.memory_space<vmem>>, %arg5: memref<1x128xf32, #tpu.memory_space<vmem>>, %arg6: memref<16x128xbf16, #tpu.memory_space<vmem>>, %arg7: memref<16x128xf32, #tpu.memory_space<vmem>>) attributes {dimension_semantics = [#tpu.dimension_semantics<parallel>, #tpu.dimension_semantics<parallel>, #tpu.dimension_semantics<arbitrary>], iteration_bounds = array<i64: 2, 1, 5>, scalar_prefetch = 0 : i64, scratch_operands = 1 : i64, tpu.core_type = #tpu.core_type<tc>, window_params = [{transform_indices = @transform_0, window_bounds = array<i64: 16, 128>}, {transform_indices = @transform_1, window_bounds = array<i64: 128, 128>}, {transform_indices = @transform_2, window_bounds = array<i64: 1, 128>}, {transform_indices = @transform_3, window_bounds = array<i64: 16, 128>}]} {
    %c0_i32 = arith.constant 0 : i32
    %0 = arith.cmpi eq, %arg2, %c0_i32 : i32
    %1 = arith.extui %0 : i1 to i32
    %c0_i32_0 = arith.constant 0 : i32
    %2 = arith.cmpi ne, %1, %c0_i32_0 : i32
    scf.if %2 {
      %cst_9 = arith.constant 0.000000e+00 : f32
      %12 = vector.broadcast %cst_9 : f32 to vector<16x128xf32>
      %c0_10 = arith.constant 0 : index
      %c0_11 = arith.constant 0 : index
      %13 = vector.load %arg7[%c0_10, %c0_11] : memref<16x128xf32, #tpu.memory_space<vmem>>, vector<16x128xf32>
      tpu.vector_store %arg7[%c0_10, %c0_11], %12 {strides = array<i32>} : memref<16x128xf32, #tpu.memory_space<vmem>>, vector<16x128xf32>,
    } else {
    }
    %c0 = arith.constant 0 : index
    %c0_1 = arith.constant 0 : index
    %3 = vector.load %arg7[%c0, %c0_1] : memref<16x128xf32, #tpu.memory_space<vmem>>, vector<16x128xf32>
    %c0_2 = arith.constant 0 : index
    %c0_3 = arith.constant 0 : index
    %4 = vector.load %arg3[%c0_2, %c0_3] : memref<16x128xbf16, #tpu.memory_space<vmem>>, vector<16x128xbf16>
    %c0_4 = arith.constant 0 : index
    %c0_5 = arith.constant 0 : index
    %5 = vector.load %arg4[%c0_4, %c0_5] : memref<128x128xbf16, #tpu.memory_space<vmem>>, vector<128x128xbf16>
    %cst = arith.constant dense<0.000000e+00> : vector<16x128xf32>
    %6 = tpu.matmul %4, %5, %cst {dimension_numbers = #tpu.dot_dimension_numbers<[1], [0], [0], [1], [0, 0, 1, 1], [], []>} : vector<16x128xbf16>, vector<128x128xbf16>, vector<16x128xf32> -> vector<16x128xf32>
    %7 = arith.addf %3, %6 : vector<16x128xf32>
    %c0_6 = arith.constant 0 : index
    %c0_7 = arith.constant 0 : index
    %8 = vector.load %arg7[%c0_6, %c0_7] : memref<16x128xf32, #tpu.memory_space<vmem>>, vector<16x128xf32>
    tpu.vector_store %arg7[%c0_6, %c0_7], %7 {strides = array<i32>} : memref<16x128xf32, #tpu.memory_space<vmem>>, vector<16x128xf32>,
    %c4_i32 = arith.constant 4 : i32
    %9 = arith.cmpi eq, %arg2, %c4_i32 : i32
    %10 = arith.extui %9 : i1 to i32
    %c0_i32_8 = arith.constant 0 : i32
    %11 = arith.cmpi ne, %10, %c0_i32_8 : i32
    scf.if %11 {
      %c0_9 = arith.constant 0 : index
      %c0_10 = arith.constant 0 : index
      %12 = vector.load %arg7[%c0_9, %c0_10] : memref<16x128xf32, #tpu.memory_space<vmem>>, vector<16x128xf32>
      %c0_11 = arith.constant 0 : index
      %c0_12 = arith.constant 0 : index
      %13 = vector.load %arg5[%c0_11, %c0_12] : memref<1x128xf32, #tpu.memory_space<vmem>>, vector<1x128xf32>
      %14 = vector.broadcast %13 : vector<1x128xf32> to vector<16x128xf32>
      %15 = arith.addf %12, %14 : vector<16x128xf32>
      %cst_13 = arith.constant 0.000000e+00 : f32
      %16 = vector.broadcast %cst_13 : f32 to vector<16x128xf32>
      %17 = arith.maximumf %15, %16 : vector<16x128xf32>
      %18 = arith.truncf %17 : vector<16x128xf32> to vector<16x128xbf16>
      %c0_14 = arith.constant 0 : index
      %c0_15 = arith.constant 0 : index
      %19 = vector.load %arg6[%c0_14, %c0_15] : memref<16x128xbf16, #tpu.memory_space<vmem>>, vector<16x128xbf16>
      tpu.vector_store %arg6[%c0_14, %c0_15], %18 {strides = array<i32>} : memref<16x128xbf16, #tpu.memory_space<vmem>>, vector<16x128xbf16>,
    } else {
    }
    return
  }
  func.func @transform_0(%arg0: i32, %arg1: i32, %arg2: i32) -> (i32, i32) {
    %c0_i32 = arith.constant 0 : i32
    return %arg0, %arg2 : i32, i32
  }
  func.func @transform_1(%arg0: i32, %arg1: i32, %arg2: i32) -> (i32, i32) {
    %c0_i32 = arith.constant 0 : i32
    return %arg2, %arg1 : i32, i32
  }
  func.func @transform_2(%arg0: i32, %arg1: i32, %arg2: i32) -> (i32, i32) {
    %c0_i32 = arith.constant 0 : i32
    %c0_i32_0 = arith.constant 0 : i32
    return %c0_i32, %arg1 : i32, i32
  }
  func.func @transform_3(%arg0: i32, %arg1: i32, %arg2: i32) -> (i32, i32) {
    %c0_i32 = arith.constant 0 : i32
    return %arg0, %arg1 : i32, i32
  }
}

module attributes {stable_mosaic.version = 11 : i64} {
  func.func @_matmul_bias_kernel(%arg0: i32, %arg1: i32, %arg2: i32, %arg3: memref<16x384xbf16, #tpu.memory_space<vmem>>, %arg4: memref<384x128xbf16, #tpu.memory_space<vmem>>, %arg5: memref<1x128xf32, #tpu.memory_space<vmem>>, %arg6: memref<16x128xbf16, #tpu.memory_space<vmem>>, %arg7: memref<16x128xbf16, #tpu.memory_space<vmem>>, %arg8: memref<16x128xf32, #tpu.memory_space<vmem>>) attributes {dimension_semantics = [#tpu.dimension_semantics<parallel>, #tpu.dimension_semantics<parallel>, #tpu.dimension_semantics<arbitrary>], iteration_bounds = array<i64: 2, 1, 3>, scalar_prefetch = 0 : i64, scratch_operands = 1 : i64, tpu.core_type = #tpu.core_type<tc>, window_params = [{transform_indices = @transform_0, window_bounds = array<i64: 16, 384>}, {transform_indices = @transform_1, window_bounds = array<i64: 384, 128>}, {transform_indices = @transform_2, window_bounds = array<i64: 1, 128>}, {transform_indices = @transform_3, window_bounds = array<i64: 16, 128>}, {transform_indices = @transform_4, window_bounds = array<i64: 16, 128>}]} {
    %c0_i32 = arith.constant 0 : i32
    %0 = arith.cmpi eq, %arg2, %c0_i32 : i32
    %1 = arith.extui %0 : i1 to i32
    %c0_i32_0 = arith.constant 0 : i32
    %2 = arith.cmpi ne, %1, %c0_i32_0 : i32
    scf.if %2 {
      %cst_9 = arith.constant 0.000000e+00 : f32
      %12 = vector.broadcast %cst_9 : f32 to vector<16x128xf32>
      %c0_10 = arith.constant 0 : index
      %c0_11 = arith.constant 0 : index
      %13 = vector.load %arg8[%c0_10, %c0_11] : memref<16x128xf32, #tpu.memory_space<vmem>>, vector<16x128xf32>
      tpu.vector_store %arg8[%c0_10, %c0_11], %12 {strides = array<i32>} : memref<16x128xf32, #tpu.memory_space<vmem>>, vector<16x128xf32>,
    } else {
    }
    %c0 = arith.constant 0 : index
    %c0_1 = arith.constant 0 : index
    %3 = vector.load %arg8[%c0, %c0_1] : memref<16x128xf32, #tpu.memory_space<vmem>>, vector<16x128xf32>
    %c0_2 = arith.constant 0 : index
    %c0_3 = arith.constant 0 : index
    %4 = vector.load %arg3[%c0_2, %c0_3] : memref<16x384xbf16, #tpu.memory_space<vmem>>, vector<16x384xbf16>
    %c0_4 = arith.constant 0 : index
    %c0_5 = arith.constant 0 : index
    %5 = vector.load %arg4[%c0_4, %c0_5] : memref<384x128xbf16, #tpu.memory_space<vmem>>, vector<384x128xbf16>
    %cst = arith.constant dense<0.000000e+00> : vector<16x128xf32>
    %6 = tpu.matmul %4, %5, %cst {dimension_numbers = #tpu.dot_dimension_numbers<[1], [0], [0], [1], [0, 0, 1, 1], [], []>} : vector<16x384xbf16>, vector<384x128xbf16>, vector<16x128xf32> -> vector<16x128xf32>
    %7 = arith.addf %3, %6 : vector<16x128xf32>
    %c0_6 = arith.constant 0 : index
    %c0_7 = arith.constant 0 : index
    %8 = vector.load %arg8[%c0_6, %c0_7] : memref<16x128xf32, #tpu.memory_space<vmem>>, vector<16x128xf32>
    tpu.vector_store %arg8[%c0_6, %c0_7], %7 {strides = array<i32>} : memref<16x128xf32, #tpu.memory_space<vmem>>, vector<16x128xf32>,
    %c2_i32 = arith.constant 2 : i32
    %9 = arith.cmpi eq, %arg2, %c2_i32 : i32
    %10 = arith.extui %9 : i1 to i32
    %c0_i32_8 = arith.constant 0 : i32
    %11 = arith.cmpi ne, %10, %c0_i32_8 : i32
    scf.if %11 {
      %c0_9 = arith.constant 0 : index
      %c0_10 = arith.constant 0 : index
      %12 = vector.load %arg8[%c0_9, %c0_10] : memref<16x128xf32, #tpu.memory_space<vmem>>, vector<16x128xf32>
      %c0_11 = arith.constant 0 : index
      %c0_12 = arith.constant 0 : index
      %13 = vector.load %arg5[%c0_11, %c0_12] : memref<1x128xf32, #tpu.memory_space<vmem>>, vector<1x128xf32>
      %14 = vector.broadcast %13 : vector<1x128xf32> to vector<16x128xf32>
      %15 = arith.addf %12, %14 : vector<16x128xf32>
      %c0_13 = arith.constant 0 : index
      %c0_14 = arith.constant 0 : index
      %16 = vector.load %arg6[%c0_13, %c0_14] : memref<16x128xbf16, #tpu.memory_space<vmem>>, vector<16x128xbf16>
      %17 = arith.extf %16 : vector<16x128xbf16> to vector<16x128xf32>
      %18 = arith.addf %15, %17 : vector<16x128xf32>
      %cst_15 = arith.constant 0.000000e+00 : f32
      %19 = vector.broadcast %cst_15 : f32 to vector<16x128xf32>
      %20 = arith.maximumf %18, %19 : vector<16x128xf32>
      %21 = arith.truncf %20 : vector<16x128xf32> to vector<16x128xbf16>
      %c0_16 = arith.constant 0 : index
      %c0_17 = arith.constant 0 : index
      %22 = vector.load %arg7[%c0_16, %c0_17] : memref<16x128xbf16, #tpu.memory_space<vmem>>, vector<16x128xbf16>
      tpu.vector_store %arg7[%c0_16, %c0_17], %21 {strides = array<i32>} : memref<16x128xbf16, #tpu.memory_space<vmem>>, vector<16x128xbf16>,
    } else {
    }
    return
  }
  func.func @transform_0(%arg0: i32, %arg1: i32, %arg2: i32) -> (i32, i32) {
    %c0_i32 = arith.constant 0 : i32
    return %arg0, %arg2 : i32, i32
  }
  func.func @transform_1(%arg0: i32, %arg1: i32, %arg2: i32) -> (i32, i32) {
    %c0_i32 = arith.constant 0 : i32
    return %arg2, %arg1 : i32, i32
  }
  func.func @transform_2(%arg0: i32, %arg1: i32, %arg2: i32) -> (i32, i32) {
    %c0_i32 = arith.constant 0 : i32
    %c0_i32_0 = arith.constant 0 : i32
    return %c0_i32, %arg1 : i32, i32
  }
  func.func @transform_3(%arg0: i32, %arg1: i32, %arg2: i32) -> (i32, i32) {
    %c0_i32 = arith.constant 0 : i32
    return %arg0, %arg1 : i32, i32
  }
  func.func @transform_4(%arg0: i32, %arg1: i32, %arg2: i32) -> (i32, i32) {
    %c0_i32 = arith.constant 0 : i32
    return %arg0, %arg1 : i32, i32
  }
}

module attributes {stable_mosaic.version = 11 : i64} {
  func.func @_matmul_bias_kernel(%arg0: i32, %arg1: i32, %arg2: memref<16x128xbf16, #tpu.memory_space<vmem>>, %arg3: memref<128x128xbf16, #tpu.memory_space<vmem>>, %arg4: memref<1x128xf32, #tpu.memory_space<vmem>>, %arg5: memref<16x128xbf16, #tpu.memory_space<vmem>>) attributes {dimension_semantics = [#tpu.dimension_semantics<parallel>, #tpu.dimension_semantics<parallel>], iteration_bounds = array<i64: 2, 1>, scalar_prefetch = 0 : i64, scratch_operands = 0 : i64, tpu.core_type = #tpu.core_type<tc>, window_params = [{transform_indices = @transform_0, window_bounds = array<i64: 16, 128>}, {transform_indices = @transform_1, window_bounds = array<i64: 128, 128>}, {transform_indices = @transform_2, window_bounds = array<i64: 1, 128>}, {transform_indices = @transform_3, window_bounds = array<i64: 16, 128>}]} {
    %c0 = arith.constant 0 : index
    %c0_0 = arith.constant 0 : index
    %0 = vector.load %arg2[%c0, %c0_0] : memref<16x128xbf16, #tpu.memory_space<vmem>>, vector<16x128xbf16>
    %c0_1 = arith.constant 0 : index
    %c0_2 = arith.constant 0 : index
    %1 = vector.load %arg3[%c0_1, %c0_2] : memref<128x128xbf16, #tpu.memory_space<vmem>>, vector<128x128xbf16>
    %cst = arith.constant dense<0.000000e+00> : vector<16x128xf32>
    %2 = tpu.matmul %0, %1, %cst {dimension_numbers = #tpu.dot_dimension_numbers<[1], [0], [0], [1], [0, 0, 1, 1], [], []>} : vector<16x128xbf16>, vector<128x128xbf16>, vector<16x128xf32> -> vector<16x128xf32>
    %c0_3 = arith.constant 0 : index
    %c0_4 = arith.constant 0 : index
    %3 = vector.load %arg4[%c0_3, %c0_4] : memref<1x128xf32, #tpu.memory_space<vmem>>, vector<1x128xf32>
    %4 = vector.broadcast %3 : vector<1x128xf32> to vector<16x128xf32>
    %5 = arith.addf %2, %4 : vector<16x128xf32>
    %6 = arith.truncf %5 : vector<16x128xf32> to vector<16x128xbf16>
    %c0_5 = arith.constant 0 : index
    %c0_6 = arith.constant 0 : index
    %7 = vector.load %arg5[%c0_5, %c0_6] : memref<16x128xbf16, #tpu.memory_space<vmem>>, vector<16x128xbf16>
    tpu.vector_store %arg5[%c0_5, %c0_6], %6 {strides = array<i32>} : memref<16x128xbf16, #tpu.memory_space<vmem>>, vector<16x128xbf16>,
    return
  }
  func.func @transform_0(%arg0: i32, %arg1: i32) -> (i32, i32) {
    %c0_i32 = arith.constant 0 : i32
    %c0_i32_0 = arith.constant 0 : i32
    return %arg0, %c0_i32 : i32, i32
  }
  func.func @transform_1(%arg0: i32, %arg1: i32) -> (i32, i32) {
    %c0_i32 = arith.constant 0 : i32
    %c0_i32_0 = arith.constant 0 : i32
    return %c0_i32, %arg1 : i32, i32
  }
  func.func @transform_2(%arg0: i32, %arg1: i32) -> (i32, i32) {
    %c0_i32 = arith.constant 0 : i32
    %c0_i32_0 = arith.constant 0 : i32
    return %c0_i32, %arg1 : i32, i32
  }
  func.func @transform_3(%arg0: i32, %arg1: i32) -> (i32, i32) {
    %c0_i32 = arith.constant 0 : i32
    return %arg0, %arg1 : i32, i32
  }
}

module attributes {stable_mosaic.version = 11 : i64} {
  func.func @_matmul_bias_kernel(%arg0: i32, %arg1: i32, %arg2: i32, %arg3: memref<16x384xbf16, #tpu.memory_space<vmem>>, %arg4: memref<384x128xbf16, #tpu.memory_space<vmem>>, %arg5: memref<1x128xf32, #tpu.memory_space<vmem>>, %arg6: memref<16x128xbf16, #tpu.memory_space<vmem>>, %arg7: memref<16x128xf32, #tpu.memory_space<vmem>>) attributes {dimension_semantics = [#tpu.dimension_semantics<parallel>, #tpu.dimension_semantics<parallel>, #tpu.dimension_semantics<arbitrary>], iteration_bounds = array<i64: 2, 1, 3>, scalar_prefetch = 0 : i64, scratch_operands = 1 : i64, tpu.core_type = #tpu.core_type<tc>, window_params = [{transform_indices = @transform_0, window_bounds = array<i64: 16, 384>}, {transform_indices = @transform_1, window_bounds = array<i64: 384, 128>}, {transform_indices = @transform_2, window_bounds = array<i64: 1, 128>}, {transform_indices = @transform_3, window_bounds = array<i64: 16, 128>}]} {
    %c0_i32 = arith.constant 0 : i32
    %0 = arith.cmpi eq, %arg2, %c0_i32 : i32
    %1 = arith.extui %0 : i1 to i32
    %c0_i32_0 = arith.constant 0 : i32
    %2 = arith.cmpi ne, %1, %c0_i32_0 : i32
    scf.if %2 {
      %cst_9 = arith.constant 0.000000e+00 : f32
      %12 = vector.broadcast %cst_9 : f32 to vector<16x128xf32>
      %c0_10 = arith.constant 0 : index
      %c0_11 = arith.constant 0 : index
      %13 = vector.load %arg7[%c0_10, %c0_11] : memref<16x128xf32, #tpu.memory_space<vmem>>, vector<16x128xf32>
      tpu.vector_store %arg7[%c0_10, %c0_11], %12 {strides = array<i32>} : memref<16x128xf32, #tpu.memory_space<vmem>>, vector<16x128xf32>,
    } else {
    }
    %c0 = arith.constant 0 : index
    %c0_1 = arith.constant 0 : index
    %3 = vector.load %arg7[%c0, %c0_1] : memref<16x128xf32, #tpu.memory_space<vmem>>, vector<16x128xf32>
    %c0_2 = arith.constant 0 : index
    %c0_3 = arith.constant 0 : index
    %4 = vector.load %arg3[%c0_2, %c0_3] : memref<16x384xbf16, #tpu.memory_space<vmem>>, vector<16x384xbf16>
    %c0_4 = arith.constant 0 : index
    %c0_5 = arith.constant 0 : index
    %5 = vector.load %arg4[%c0_4, %c0_5] : memref<384x128xbf16, #tpu.memory_space<vmem>>, vector<384x128xbf16>
    %cst = arith.constant dense<0.000000e+00> : vector<16x128xf32>
    %6 = tpu.matmul %4, %5, %cst {dimension_numbers = #tpu.dot_dimension_numbers<[1], [0], [0], [1], [0, 0, 1, 1], [], []>} : vector<16x384xbf16>, vector<384x128xbf16>, vector<16x128xf32> -> vector<16x128xf32>
    %7 = arith.addf %3, %6 : vector<16x128xf32>
    %c0_6 = arith.constant 0 : index
    %c0_7 = arith.constant 0 : index
    %8 = vector.load %arg7[%c0_6, %c0_7] : memref<16x128xf32, #tpu.memory_space<vmem>>, vector<16x128xf32>
    tpu.vector_store %arg7[%c0_6, %c0_7], %7 {strides = array<i32>} : memref<16x128xf32, #tpu.memory_space<vmem>>, vector<16x128xf32>,
    %c2_i32 = arith.constant 2 : i32
    %9 = arith.cmpi eq, %arg2, %c2_i32 : i32
    %10 = arith.extui %9 : i1 to i32
    %c0_i32_8 = arith.constant 0 : i32
    %11 = arith.cmpi ne, %10, %c0_i32_8 : i32
    scf.if %11 {
      %c0_9 = arith.constant 0 : index
      %c0_10 = arith.constant 0 : index
      %12 = vector.load %arg7[%c0_9, %c0_10] : memref<16x128xf32, #tpu.memory_space<vmem>>, vector<16x128xf32>
      %c0_11 = arith.constant 0 : index
      %c0_12 = arith.constant 0 : index
      %13 = vector.load %arg5[%c0_11, %c0_12] : memref<1x128xf32, #tpu.memory_space<vmem>>, vector<1x128xf32>
      %14 = vector.broadcast %13 : vector<1x128xf32> to vector<16x128xf32>
      %15 = arith.addf %12, %14 : vector<16x128xf32>
      %cst_13 = arith.constant 0.000000e+00 : f32
      %16 = vector.broadcast %cst_13 : f32 to vector<16x128xf32>
      %17 = arith.maximumf %15, %16 : vector<16x128xf32>
      %18 = arith.truncf %17 : vector<16x128xf32> to vector<16x128xbf16>
      %c0_14 = arith.constant 0 : index
      %c0_15 = arith.constant 0 : index
      %19 = vector.load %arg6[%c0_14, %c0_15] : memref<16x128xbf16, #tpu.memory_space<vmem>>, vector<16x128xbf16>
      tpu.vector_store %arg6[%c0_14, %c0_15], %18 {strides = array<i32>} : memref<16x128xbf16, #tpu.memory_space<vmem>>, vector<16x128xbf16>,
    } else {
    }
    return
  }
  func.func @transform_0(%arg0: i32, %arg1: i32, %arg2: i32) -> (i32, i32) {
    %c0_i32 = arith.constant 0 : i32
    return %arg0, %arg2 : i32, i32
  }
  func.func @transform_1(%arg0: i32, %arg1: i32, %arg2: i32) -> (i32, i32) {
    %c0_i32 = arith.constant 0 : i32
    return %arg2, %arg1 : i32, i32
  }
  func.func @transform_2(%arg0: i32, %arg1: i32, %arg2: i32) -> (i32, i32) {
    %c0_i32 = arith.constant 0 : i32
    %c0_i32_0 = arith.constant 0 : i32
    return %c0_i32, %arg1 : i32, i32
  }
  func.func @transform_3(%arg0: i32, %arg1: i32, %arg2: i32) -> (i32, i32) {
    %c0_i32 = arith.constant 0 : i32
    return %arg0, %arg1 : i32, i32
  }
}

module attributes {stable_mosaic.version = 11 : i64} {
  func.func @_matmul_bias_kernel(%arg0: i32, %arg1: i32, %arg2: i32, %arg3: memref<8x384xbf16, #tpu.memory_space<vmem>>, %arg4: memref<384x128xbf16, #tpu.memory_space<vmem>>, %arg5: memref<1x128xf32, #tpu.memory_space<vmem>>, %arg6: memref<8x128xbf16, #tpu.memory_space<vmem>>, %arg7: memref<8x128xf32, #tpu.memory_space<vmem>>) attributes {dimension_semantics = [#tpu.dimension_semantics<parallel>, #tpu.dimension_semantics<parallel>, #tpu.dimension_semantics<arbitrary>], iteration_bounds = array<i64: 1, 2, 3>, scalar_prefetch = 0 : i64, scratch_operands = 1 : i64, tpu.core_type = #tpu.core_type<tc>, window_params = [{transform_indices = @transform_0, window_bounds = array<i64: 8, 384>}, {transform_indices = @transform_1, window_bounds = array<i64: 384, 128>}, {transform_indices = @transform_2, window_bounds = array<i64: 1, 128>}, {transform_indices = @transform_3, window_bounds = array<i64: 8, 128>}]} {
    %c0_i32 = arith.constant 0 : i32
    %0 = arith.cmpi eq, %arg2, %c0_i32 : i32
    %1 = arith.extui %0 : i1 to i32
    %c0_i32_0 = arith.constant 0 : i32
    %2 = arith.cmpi ne, %1, %c0_i32_0 : i32
    scf.if %2 {
      %cst_9 = arith.constant 0.000000e+00 : f32
      %12 = vector.broadcast %cst_9 : f32 to vector<8x128xf32>
      %c0_10 = arith.constant 0 : index
      %c0_11 = arith.constant 0 : index
      %13 = vector.load %arg7[%c0_10, %c0_11] : memref<8x128xf32, #tpu.memory_space<vmem>>, vector<8x128xf32>
      tpu.vector_store %arg7[%c0_10, %c0_11], %12 {strides = array<i32>} : memref<8x128xf32, #tpu.memory_space<vmem>>, vector<8x128xf32>,
    } else {
    }
    %c0 = arith.constant 0 : index
    %c0_1 = arith.constant 0 : index
    %3 = vector.load %arg7[%c0, %c0_1] : memref<8x128xf32, #tpu.memory_space<vmem>>, vector<8x128xf32>
    %c0_2 = arith.constant 0 : index
    %c0_3 = arith.constant 0 : index
    %4 = vector.load %arg3[%c0_2, %c0_3] : memref<8x384xbf16, #tpu.memory_space<vmem>>, vector<8x384xbf16>
    %c0_4 = arith.constant 0 : index
    %c0_5 = arith.constant 0 : index
    %5 = vector.load %arg4[%c0_4, %c0_5] : memref<384x128xbf16, #tpu.memory_space<vmem>>, vector<384x128xbf16>
    %cst = arith.constant dense<0.000000e+00> : vector<8x128xf32>
    %6 = tpu.matmul %4, %5, %cst {dimension_numbers = #tpu.dot_dimension_numbers<[1], [0], [0], [1], [0, 0, 1, 1], [], []>} : vector<8x384xbf16>, vector<384x128xbf16>, vector<8x128xf32> -> vector<8x128xf32>
    %7 = arith.addf %3, %6 : vector<8x128xf32>
    %c0_6 = arith.constant 0 : index
    %c0_7 = arith.constant 0 : index
    %8 = vector.load %arg7[%c0_6, %c0_7] : memref<8x128xf32, #tpu.memory_space<vmem>>, vector<8x128xf32>
    tpu.vector_store %arg7[%c0_6, %c0_7], %7 {strides = array<i32>} : memref<8x128xf32, #tpu.memory_space<vmem>>, vector<8x128xf32>,
    %c2_i32 = arith.constant 2 : i32
    %9 = arith.cmpi eq, %arg2, %c2_i32 : i32
    %10 = arith.extui %9 : i1 to i32
    %c0_i32_8 = arith.constant 0 : i32
    %11 = arith.cmpi ne, %10, %c0_i32_8 : i32
    scf.if %11 {
      %c0_9 = arith.constant 0 : index
      %c0_10 = arith.constant 0 : index
      %12 = vector.load %arg7[%c0_9, %c0_10] : memref<8x128xf32, #tpu.memory_space<vmem>>, vector<8x128xf32>
      %c0_11 = arith.constant 0 : index
      %c0_12 = arith.constant 0 : index
      %13 = vector.load %arg5[%c0_11, %c0_12] : memref<1x128xf32, #tpu.memory_space<vmem>>, vector<1x128xf32>
      %14 = vector.broadcast %13 : vector<1x128xf32> to vector<8x128xf32>
      %15 = arith.addf %12, %14 : vector<8x128xf32>
      %cst_13 = arith.constant 0.000000e+00 : f32
      %16 = vector.broadcast %cst_13 : f32 to vector<8x128xf32>
      %17 = arith.maximumf %15, %16 : vector<8x128xf32>
      %18 = arith.truncf %17 : vector<8x128xf32> to vector<8x128xbf16>
      %c0_14 = arith.constant 0 : index
      %c0_15 = arith.constant 0 : index
      %19 = vector.load %arg6[%c0_14, %c0_15] : memref<8x128xbf16, #tpu.memory_space<vmem>>, vector<8x128xbf16>
      tpu.vector_store %arg6[%c0_14, %c0_15], %18 {strides = array<i32>} : memref<8x128xbf16, #tpu.memory_space<vmem>>, vector<8x128xbf16>,
    } else {
    }
    return
  }
  func.func @transform_0(%arg0: i32, %arg1: i32, %arg2: i32) -> (i32, i32) {
    %c0_i32 = arith.constant 0 : i32
    return %arg0, %arg2 : i32, i32
  }
  func.func @transform_1(%arg0: i32, %arg1: i32, %arg2: i32) -> (i32, i32) {
    %c0_i32 = arith.constant 0 : i32
    return %arg2, %arg1 : i32, i32
  }
  func.func @transform_2(%arg0: i32, %arg1: i32, %arg2: i32) -> (i32, i32) {
    %c0_i32 = arith.constant 0 : i32
    %c0_i32_0 = arith.constant 0 : i32
    return %c0_i32, %arg1 : i32, i32
  }
  func.func @transform_3(%arg0: i32, %arg1: i32, %arg2: i32) -> (i32, i32) {
    %c0_i32 = arith.constant 0 : i32
    return %arg0, %arg1 : i32, i32
  }
}

module attributes {stable_mosaic.version = 11 : i64} {
  func.func @_matmul_bias_kernel(%arg0: i32, %arg1: i32, %arg2: memref<8x128xbf16, #tpu.memory_space<vmem>>, %arg3: memref<128x128xbf16, #tpu.memory_space<vmem>>, %arg4: memref<1x128xf32, #tpu.memory_space<vmem>>, %arg5: memref<8x128xbf16, #tpu.memory_space<vmem>>) attributes {dimension_semantics = [#tpu.dimension_semantics<parallel>, #tpu.dimension_semantics<parallel>], iteration_bounds = array<i64: 1, 2>, scalar_prefetch = 0 : i64, scratch_operands = 0 : i64, tpu.core_type = #tpu.core_type<tc>, window_params = [{transform_indices = @transform_0, window_bounds = array<i64: 8, 128>}, {transform_indices = @transform_1, window_bounds = array<i64: 128, 128>}, {transform_indices = @transform_2, window_bounds = array<i64: 1, 128>}, {transform_indices = @transform_3, window_bounds = array<i64: 8, 128>}]} {
    %c0 = arith.constant 0 : index
    %c0_0 = arith.constant 0 : index
    %0 = vector.load %arg2[%c0, %c0_0] : memref<8x128xbf16, #tpu.memory_space<vmem>>, vector<8x128xbf16>
    %c0_1 = arith.constant 0 : index
    %c0_2 = arith.constant 0 : index
    %1 = vector.load %arg3[%c0_1, %c0_2] : memref<128x128xbf16, #tpu.memory_space<vmem>>, vector<128x128xbf16>
    %cst = arith.constant dense<0.000000e+00> : vector<8x128xf32>
    %2 = tpu.matmul %0, %1, %cst {dimension_numbers = #tpu.dot_dimension_numbers<[1], [0], [0], [1], [0, 0, 1, 1], [], []>} : vector<8x128xbf16>, vector<128x128xbf16>, vector<8x128xf32> -> vector<8x128xf32>
    %c0_3 = arith.constant 0 : index
    %c0_4 = arith.constant 0 : index
    %3 = vector.load %arg4[%c0_3, %c0_4] : memref<1x128xf32, #tpu.memory_space<vmem>>, vector<1x128xf32>
    %4 = vector.broadcast %3 : vector<1x128xf32> to vector<8x128xf32>
    %5 = arith.addf %2, %4 : vector<8x128xf32>
    %6 = arith.truncf %5 : vector<8x128xf32> to vector<8x128xbf16>
    %c0_5 = arith.constant 0 : index
    %c0_6 = arith.constant 0 : index
    %7 = vector.load %arg5[%c0_5, %c0_6] : memref<8x128xbf16, #tpu.memory_space<vmem>>, vector<8x128xbf16>
    tpu.vector_store %arg5[%c0_5, %c0_6], %6 {strides = array<i32>} : memref<8x128xbf16, #tpu.memory_space<vmem>>, vector<8x128xbf16>,
    return
  }
  func.func @transform_0(%arg0: i32, %arg1: i32) -> (i32, i32) {
    %c0_i32 = arith.constant 0 : i32
    %c0_i32_0 = arith.constant 0 : i32
    return %arg0, %c0_i32 : i32, i32
  }
  func.func @transform_1(%arg0: i32, %arg1: i32) -> (i32, i32) {
    %c0_i32 = arith.constant 0 : i32
    %c0_i32_0 = arith.constant 0 : i32
    return %c0_i32, %arg1 : i32, i32
  }
  func.func @transform_2(%arg0: i32, %arg1: i32) -> (i32, i32) {
    %c0_i32 = arith.constant 0 : i32
    %c0_i32_0 = arith.constant 0 : i32
    return %c0_i32, %arg1 : i32, i32
  }
  func.func @transform_3(%arg0: i32, %arg1: i32) -> (i32, i32) {
    %c0_i32 = arith.constant 0 : i32
    return %arg0, %arg1 : i32, i32
  }
}

module attributes {stable_mosaic.version = 11 : i64} {
  func.func @_matmul_bias_kernel(%arg0: i32, %arg1: i32, %arg2: i32, %arg3: memref<8x384xbf16, #tpu.memory_space<vmem>>, %arg4: memref<384x128xbf16, #tpu.memory_space<vmem>>, %arg5: memref<1x128xf32, #tpu.memory_space<vmem>>, %arg6: memref<8x128xbf16, #tpu.memory_space<vmem>>, %arg7: memref<8x128xf32, #tpu.memory_space<vmem>>) attributes {dimension_semantics = [#tpu.dimension_semantics<parallel>, #tpu.dimension_semantics<parallel>, #tpu.dimension_semantics<arbitrary>], iteration_bounds = array<i64: 1, 2, 6>, scalar_prefetch = 0 : i64, scratch_operands = 1 : i64, tpu.core_type = #tpu.core_type<tc>, window_params = [{transform_indices = @transform_0, window_bounds = array<i64: 8, 384>}, {transform_indices = @transform_1, window_bounds = array<i64: 384, 128>}, {transform_indices = @transform_2, window_bounds = array<i64: 1, 128>}, {transform_indices = @transform_3, window_bounds = array<i64: 8, 128>}]} {
    %c0_i32 = arith.constant 0 : i32
    %0 = arith.cmpi eq, %arg2, %c0_i32 : i32
    %1 = arith.extui %0 : i1 to i32
    %c0_i32_0 = arith.constant 0 : i32
    %2 = arith.cmpi ne, %1, %c0_i32_0 : i32
    scf.if %2 {
      %cst_9 = arith.constant 0.000000e+00 : f32
      %12 = vector.broadcast %cst_9 : f32 to vector<8x128xf32>
      %c0_10 = arith.constant 0 : index
      %c0_11 = arith.constant 0 : index
      %13 = vector.load %arg7[%c0_10, %c0_11] : memref<8x128xf32, #tpu.memory_space<vmem>>, vector<8x128xf32>
      tpu.vector_store %arg7[%c0_10, %c0_11], %12 {strides = array<i32>} : memref<8x128xf32, #tpu.memory_space<vmem>>, vector<8x128xf32>,
    } else {
    }
    %c0 = arith.constant 0 : index
    %c0_1 = arith.constant 0 : index
    %3 = vector.load %arg7[%c0, %c0_1] : memref<8x128xf32, #tpu.memory_space<vmem>>, vector<8x128xf32>
    %c0_2 = arith.constant 0 : index
    %c0_3 = arith.constant 0 : index
    %4 = vector.load %arg3[%c0_2, %c0_3] : memref<8x384xbf16, #tpu.memory_space<vmem>>, vector<8x384xbf16>
    %c0_4 = arith.constant 0 : index
    %c0_5 = arith.constant 0 : index
    %5 = vector.load %arg4[%c0_4, %c0_5] : memref<384x128xbf16, #tpu.memory_space<vmem>>, vector<384x128xbf16>
    %cst = arith.constant dense<0.000000e+00> : vector<8x128xf32>
    %6 = tpu.matmul %4, %5, %cst {dimension_numbers = #tpu.dot_dimension_numbers<[1], [0], [0], [1], [0, 0, 1, 1], [], []>} : vector<8x384xbf16>, vector<384x128xbf16>, vector<8x128xf32> -> vector<8x128xf32>
    %7 = arith.addf %3, %6 : vector<8x128xf32>
    %c0_6 = arith.constant 0 : index
    %c0_7 = arith.constant 0 : index
    %8 = vector.load %arg7[%c0_6, %c0_7] : memref<8x128xf32, #tpu.memory_space<vmem>>, vector<8x128xf32>
    tpu.vector_store %arg7[%c0_6, %c0_7], %7 {strides = array<i32>} : memref<8x128xf32, #tpu.memory_space<vmem>>, vector<8x128xf32>,
    %c5_i32 = arith.constant 5 : i32
    %9 = arith.cmpi eq, %arg2, %c5_i32 : i32
    %10 = arith.extui %9 : i1 to i32
    %c0_i32_8 = arith.constant 0 : i32
    %11 = arith.cmpi ne, %10, %c0_i32_8 : i32
    scf.if %11 {
      %c0_9 = arith.constant 0 : index
      %c0_10 = arith.constant 0 : index
      %12 = vector.load %arg7[%c0_9, %c0_10] : memref<8x128xf32, #tpu.memory_space<vmem>>, vector<8x128xf32>
      %c0_11 = arith.constant 0 : index
      %c0_12 = arith.constant 0 : index
      %13 = vector.load %arg5[%c0_11, %c0_12] : memref<1x128xf32, #tpu.memory_space<vmem>>, vector<1x128xf32>
      %14 = vector.broadcast %13 : vector<1x128xf32> to vector<8x128xf32>
      %15 = arith.addf %12, %14 : vector<8x128xf32>
      %cst_13 = arith.constant 0.000000e+00 : f32
      %16 = vector.broadcast %cst_13 : f32 to vector<8x128xf32>
      %17 = arith.maximumf %15, %16 : vector<8x128xf32>
      %18 = arith.truncf %17 : vector<8x128xf32> to vector<8x128xbf16>
      %c0_14 = arith.constant 0 : index
      %c0_15 = arith.constant 0 : index
      %19 = vector.load %arg6[%c0_14, %c0_15] : memref<8x128xbf16, #tpu.memory_space<vmem>>, vector<8x128xbf16>
      tpu.vector_store %arg6[%c0_14, %c0_15], %18 {strides = array<i32>} : memref<8x128xbf16, #tpu.memory_space<vmem>>, vector<8x128xbf16>,
    } else {
    }
    return
  }
  func.func @transform_0(%arg0: i32, %arg1: i32, %arg2: i32) -> (i32, i32) {
    %c0_i32 = arith.constant 0 : i32
    return %arg0, %arg2 : i32, i32
  }
  func.func @transform_1(%arg0: i32, %arg1: i32, %arg2: i32) -> (i32, i32) {
    %c0_i32 = arith.constant 0 : i32
    return %arg2, %arg1 : i32, i32
  }
  func.func @transform_2(%arg0: i32, %arg1: i32, %arg2: i32) -> (i32, i32) {
    %c0_i32 = arith.constant 0 : i32
    %c0_i32_0 = arith.constant 0 : i32
    return %c0_i32, %arg1 : i32, i32
  }
  func.func @transform_3(%arg0: i32, %arg1: i32, %arg2: i32) -> (i32, i32) {
    %c0_i32 = arith.constant 0 : i32
    return %arg0, %arg1 : i32, i32
  }
}

module attributes {stable_mosaic.version = 11 : i64} {
  func.func @_matmul_bias_kernel(%arg0: i32, %arg1: i32, %arg2: i32, %arg3: memref<8x384xbf16, #tpu.memory_space<vmem>>, %arg4: memref<384x128xbf16, #tpu.memory_space<vmem>>, %arg5: memref<1x128xf32, #tpu.memory_space<vmem>>, %arg6: memref<8x128xbf16, #tpu.memory_space<vmem>>, %arg7: memref<8x128xbf16, #tpu.memory_space<vmem>>, %arg8: memref<8x128xf32, #tpu.memory_space<vmem>>) attributes {dimension_semantics = [#tpu.dimension_semantics<parallel>, #tpu.dimension_semantics<parallel>, #tpu.dimension_semantics<arbitrary>], iteration_bounds = array<i64: 1, 2, 6>, scalar_prefetch = 0 : i64, scratch_operands = 1 : i64, tpu.core_type = #tpu.core_type<tc>, window_params = [{transform_indices = @transform_0, window_bounds = array<i64: 8, 384>}, {transform_indices = @transform_1, window_bounds = array<i64: 384, 128>}, {transform_indices = @transform_2, window_bounds = array<i64: 1, 128>}, {transform_indices = @transform_3, window_bounds = array<i64: 8, 128>}, {transform_indices = @transform_4, window_bounds = array<i64: 8, 128>}]} {
    %c0_i32 = arith.constant 0 : i32
    %0 = arith.cmpi eq, %arg2, %c0_i32 : i32
    %1 = arith.extui %0 : i1 to i32
    %c0_i32_0 = arith.constant 0 : i32
    %2 = arith.cmpi ne, %1, %c0_i32_0 : i32
    scf.if %2 {
      %cst_9 = arith.constant 0.000000e+00 : f32
      %12 = vector.broadcast %cst_9 : f32 to vector<8x128xf32>
      %c0_10 = arith.constant 0 : index
      %c0_11 = arith.constant 0 : index
      %13 = vector.load %arg8[%c0_10, %c0_11] : memref<8x128xf32, #tpu.memory_space<vmem>>, vector<8x128xf32>
      tpu.vector_store %arg8[%c0_10, %c0_11], %12 {strides = array<i32>} : memref<8x128xf32, #tpu.memory_space<vmem>>, vector<8x128xf32>,
    } else {
    }
    %c0 = arith.constant 0 : index
    %c0_1 = arith.constant 0 : index
    %3 = vector.load %arg8[%c0, %c0_1] : memref<8x128xf32, #tpu.memory_space<vmem>>, vector<8x128xf32>
    %c0_2 = arith.constant 0 : index
    %c0_3 = arith.constant 0 : index
    %4 = vector.load %arg3[%c0_2, %c0_3] : memref<8x384xbf16, #tpu.memory_space<vmem>>, vector<8x384xbf16>
    %c0_4 = arith.constant 0 : index
    %c0_5 = arith.constant 0 : index
    %5 = vector.load %arg4[%c0_4, %c0_5] : memref<384x128xbf16, #tpu.memory_space<vmem>>, vector<384x128xbf16>
    %cst = arith.constant dense<0.000000e+00> : vector<8x128xf32>
    %6 = tpu.matmul %4, %5, %cst {dimension_numbers = #tpu.dot_dimension_numbers<[1], [0], [0], [1], [0, 0, 1, 1], [], []>} : vector<8x384xbf16>, vector<384x128xbf16>, vector<8x128xf32> -> vector<8x128xf32>
    %7 = arith.addf %3, %6 : vector<8x128xf32>
    %c0_6 = arith.constant 0 : index
    %c0_7 = arith.constant 0 : index
    %8 = vector.load %arg8[%c0_6, %c0_7] : memref<8x128xf32, #tpu.memory_space<vmem>>, vector<8x128xf32>
    tpu.vector_store %arg8[%c0_6, %c0_7], %7 {strides = array<i32>} : memref<8x128xf32, #tpu.memory_space<vmem>>, vector<8x128xf32>,
    %c5_i32 = arith.constant 5 : i32
    %9 = arith.cmpi eq, %arg2, %c5_i32 : i32
    %10 = arith.extui %9 : i1 to i32
    %c0_i32_8 = arith.constant 0 : i32
    %11 = arith.cmpi ne, %10, %c0_i32_8 : i32
    scf.if %11 {
      %c0_9 = arith.constant 0 : index
      %c0_10 = arith.constant 0 : index
      %12 = vector.load %arg8[%c0_9, %c0_10] : memref<8x128xf32, #tpu.memory_space<vmem>>, vector<8x128xf32>
      %c0_11 = arith.constant 0 : index
      %c0_12 = arith.constant 0 : index
      %13 = vector.load %arg5[%c0_11, %c0_12] : memref<1x128xf32, #tpu.memory_space<vmem>>, vector<1x128xf32>
      %14 = vector.broadcast %13 : vector<1x128xf32> to vector<8x128xf32>
      %15 = arith.addf %12, %14 : vector<8x128xf32>
      %c0_13 = arith.constant 0 : index
      %c0_14 = arith.constant 0 : index
      %16 = vector.load %arg6[%c0_13, %c0_14] : memref<8x128xbf16, #tpu.memory_space<vmem>>, vector<8x128xbf16>
      %17 = arith.extf %16 : vector<8x128xbf16> to vector<8x128xf32>
      %18 = arith.addf %15, %17 : vector<8x128xf32>
      %cst_15 = arith.constant 0.000000e+00 : f32
      %19 = vector.broadcast %cst_15 : f32 to vector<8x128xf32>
      %20 = arith.maximumf %18, %19 : vector<8x128xf32>
      %21 = arith.truncf %20 : vector<8x128xf32> to vector<8x128xbf16>
      %c0_16 = arith.constant 0 : index
      %c0_17 = arith.constant 0 : index
      %22 = vector.load %arg7[%c0_16, %c0_17] : memref<8x128xbf16, #tpu.memory_space<vmem>>, vector<8x128xbf16>
      tpu.vector_store %arg7[%c0_16, %c0_17], %21 {strides = array<i32>} : memref<8x128xbf16, #tpu.memory_space<vmem>>, vector<8x128xbf16>,
    } else {
    }
    return
  }
  func.func @transform_0(%arg0: i32, %arg1: i32, %arg2: i32) -> (i32, i32) {
    %c0_i32 = arith.constant 0 : i32
    return %arg0, %arg2 : i32, i32
  }
  func.func @transform_1(%arg0: i32, %arg1: i32, %arg2: i32) -> (i32, i32) {
    %c0_i32 = arith.constant 0 : i32
    return %arg2, %arg1 : i32, i32
  }
  func.func @transform_2(%arg0: i32, %arg1: i32, %arg2: i32) -> (i32, i32) {
    %c0_i32 = arith.constant 0 : i32
    %c0_i32_0 = arith.constant 0 : i32
    return %c0_i32, %arg1 : i32, i32
  }
  func.func @transform_3(%arg0: i32, %arg1: i32, %arg2: i32) -> (i32, i32) {
    %c0_i32 = arith.constant 0 : i32
    return %arg0, %arg1 : i32, i32
  }
  func.func @transform_4(%arg0: i32, %arg1: i32, %arg2: i32) -> (i32, i32) {
    %c0_i32 = arith.constant 0 : i32
    return %arg0, %arg1 : i32, i32
  }
}

module attributes {stable_mosaic.version = 11 : i64} {
  func.func @_matmul_bias_kernel(%arg0: i32, %arg1: i32, %arg2: i32, %arg3: memref<8x384xbf16, #tpu.memory_space<vmem>>, %arg4: memref<384x256xbf16, #tpu.memory_space<vmem>>, %arg5: memref<1x256xf32, #tpu.memory_space<vmem>>, %arg6: memref<8x256xbf16, #tpu.memory_space<vmem>>, %arg7: memref<8x256xf32, #tpu.memory_space<vmem>>) attributes {dimension_semantics = [#tpu.dimension_semantics<parallel>, #tpu.dimension_semantics<parallel>, #tpu.dimension_semantics<arbitrary>], iteration_bounds = array<i64: 1, 2, 6>, scalar_prefetch = 0 : i64, scratch_operands = 1 : i64, tpu.core_type = #tpu.core_type<tc>, window_params = [{transform_indices = @transform_0, window_bounds = array<i64: 8, 384>}, {transform_indices = @transform_1, window_bounds = array<i64: 384, 256>}, {transform_indices = @transform_2, window_bounds = array<i64: 1, 256>}, {transform_indices = @transform_3, window_bounds = array<i64: 8, 256>}]} {
    %c0_i32 = arith.constant 0 : i32
    %0 = arith.cmpi eq, %arg2, %c0_i32 : i32
    %1 = arith.extui %0 : i1 to i32
    %c0_i32_0 = arith.constant 0 : i32
    %2 = arith.cmpi ne, %1, %c0_i32_0 : i32
    scf.if %2 {
      %cst_9 = arith.constant 0.000000e+00 : f32
      %12 = vector.broadcast %cst_9 : f32 to vector<8x256xf32>
      %c0_10 = arith.constant 0 : index
      %c0_11 = arith.constant 0 : index
      %13 = vector.load %arg7[%c0_10, %c0_11] : memref<8x256xf32, #tpu.memory_space<vmem>>, vector<8x256xf32>
      tpu.vector_store %arg7[%c0_10, %c0_11], %12 {strides = array<i32>} : memref<8x256xf32, #tpu.memory_space<vmem>>, vector<8x256xf32>,
    } else {
    }
    %c0 = arith.constant 0 : index
    %c0_1 = arith.constant 0 : index
    %3 = vector.load %arg7[%c0, %c0_1] : memref<8x256xf32, #tpu.memory_space<vmem>>, vector<8x256xf32>
    %c0_2 = arith.constant 0 : index
    %c0_3 = arith.constant 0 : index
    %4 = vector.load %arg3[%c0_2, %c0_3] : memref<8x384xbf16, #tpu.memory_space<vmem>>, vector<8x384xbf16>
    %c0_4 = arith.constant 0 : index
    %c0_5 = arith.constant 0 : index
    %5 = vector.load %arg4[%c0_4, %c0_5] : memref<384x256xbf16, #tpu.memory_space<vmem>>, vector<384x256xbf16>
    %cst = arith.constant dense<0.000000e+00> : vector<8x256xf32>
    %6 = tpu.matmul %4, %5, %cst {dimension_numbers = #tpu.dot_dimension_numbers<[1], [0], [0], [1], [0, 0, 1, 1], [], []>} : vector<8x384xbf16>, vector<384x256xbf16>, vector<8x256xf32> -> vector<8x256xf32>
    %7 = arith.addf %3, %6 : vector<8x256xf32>
    %c0_6 = arith.constant 0 : index
    %c0_7 = arith.constant 0 : index
    %8 = vector.load %arg7[%c0_6, %c0_7] : memref<8x256xf32, #tpu.memory_space<vmem>>, vector<8x256xf32>
    tpu.vector_store %arg7[%c0_6, %c0_7], %7 {strides = array<i32>} : memref<8x256xf32, #tpu.memory_space<vmem>>, vector<8x256xf32>,
    %c5_i32 = arith.constant 5 : i32
    %9 = arith.cmpi eq, %arg2, %c5_i32 : i32
    %10 = arith.extui %9 : i1 to i32
    %c0_i32_8 = arith.constant 0 : i32
    %11 = arith.cmpi ne, %10, %c0_i32_8 : i32
    scf.if %11 {
      %c0_9 = arith.constant 0 : index
      %c0_10 = arith.constant 0 : index
      %12 = vector.load %arg7[%c0_9, %c0_10] : memref<8x256xf32, #tpu.memory_space<vmem>>, vector<8x256xf32>
      %c0_11 = arith.constant 0 : index
      %c0_12 = arith.constant 0 : index
      %13 = vector.load %arg5[%c0_11, %c0_12] : memref<1x256xf32, #tpu.memory_space<vmem>>, vector<1x256xf32>
      %14 = vector.broadcast %13 : vector<1x256xf32> to vector<8x256xf32>
      %15 = arith.addf %12, %14 : vector<8x256xf32>
      %cst_13 = arith.constant 0.000000e+00 : f32
      %16 = vector.broadcast %cst_13 : f32 to vector<8x256xf32>
      %17 = arith.maximumf %15, %16 : vector<8x256xf32>
      %18 = arith.truncf %17 : vector<8x256xf32> to vector<8x256xbf16>
      %c0_14 = arith.constant 0 : index
      %c0_15 = arith.constant 0 : index
      %19 = vector.load %arg6[%c0_14, %c0_15] : memref<8x256xbf16, #tpu.memory_space<vmem>>, vector<8x256xbf16>
      tpu.vector_store %arg6[%c0_14, %c0_15], %18 {strides = array<i32>} : memref<8x256xbf16, #tpu.memory_space<vmem>>, vector<8x256xbf16>,
    } else {
    }
    return
  }
  func.func @transform_0(%arg0: i32, %arg1: i32, %arg2: i32) -> (i32, i32) {
    %c0_i32 = arith.constant 0 : i32
    return %arg0, %arg2 : i32, i32
  }
  func.func @transform_1(%arg0: i32, %arg1: i32, %arg2: i32) -> (i32, i32) {
    %c0_i32 = arith.constant 0 : i32
    return %arg2, %arg1 : i32, i32
  }
  func.func @transform_2(%arg0: i32, %arg1: i32, %arg2: i32) -> (i32, i32) {
    %c0_i32 = arith.constant 0 : i32
    %c0_i32_0 = arith.constant 0 : i32
    return %c0_i32, %arg1 : i32, i32
  }
  func.func @transform_3(%arg0: i32, %arg1: i32, %arg2: i32) -> (i32, i32) {
    %c0_i32 = arith.constant 0 : i32
    return %arg0, %arg1 : i32, i32
  }
}

module attributes {stable_mosaic.version = 11 : i64} {
  func.func @_matmul_bias_kernel(%arg0: i32, %arg1: i32, %arg2: i32, %arg3: memref<8x128xbf16, #tpu.memory_space<vmem>>, %arg4: memref<128x256xbf16, #tpu.memory_space<vmem>>, %arg5: memref<1x256xf32, #tpu.memory_space<vmem>>, %arg6: memref<8x256xbf16, #tpu.memory_space<vmem>>, %arg7: memref<8x256xf32, #tpu.memory_space<vmem>>) attributes {dimension_semantics = [#tpu.dimension_semantics<parallel>, #tpu.dimension_semantics<parallel>, #tpu.dimension_semantics<arbitrary>], iteration_bounds = array<i64: 1, 2, 2>, scalar_prefetch = 0 : i64, scratch_operands = 1 : i64, tpu.core_type = #tpu.core_type<tc>, window_params = [{transform_indices = @transform_0, window_bounds = array<i64: 8, 128>}, {transform_indices = @transform_1, window_bounds = array<i64: 128, 256>}, {transform_indices = @transform_2, window_bounds = array<i64: 1, 256>}, {transform_indices = @transform_3, window_bounds = array<i64: 8, 256>}]} {
    %c0_i32 = arith.constant 0 : i32
    %0 = arith.cmpi eq, %arg2, %c0_i32 : i32
    %1 = arith.extui %0 : i1 to i32
    %c0_i32_0 = arith.constant 0 : i32
    %2 = arith.cmpi ne, %1, %c0_i32_0 : i32
    scf.if %2 {
      %cst_9 = arith.constant 0.000000e+00 : f32
      %12 = vector.broadcast %cst_9 : f32 to vector<8x256xf32>
      %c0_10 = arith.constant 0 : index
      %c0_11 = arith.constant 0 : index
      %13 = vector.load %arg7[%c0_10, %c0_11] : memref<8x256xf32, #tpu.memory_space<vmem>>, vector<8x256xf32>
      tpu.vector_store %arg7[%c0_10, %c0_11], %12 {strides = array<i32>} : memref<8x256xf32, #tpu.memory_space<vmem>>, vector<8x256xf32>,
    } else {
    }
    %c0 = arith.constant 0 : index
    %c0_1 = arith.constant 0 : index
    %3 = vector.load %arg7[%c0, %c0_1] : memref<8x256xf32, #tpu.memory_space<vmem>>, vector<8x256xf32>
    %c0_2 = arith.constant 0 : index
    %c0_3 = arith.constant 0 : index
    %4 = vector.load %arg3[%c0_2, %c0_3] : memref<8x128xbf16, #tpu.memory_space<vmem>>, vector<8x128xbf16>
    %c0_4 = arith.constant 0 : index
    %c0_5 = arith.constant 0 : index
    %5 = vector.load %arg4[%c0_4, %c0_5] : memref<128x256xbf16, #tpu.memory_space<vmem>>, vector<128x256xbf16>
    %cst = arith.constant dense<0.000000e+00> : vector<8x256xf32>
    %6 = tpu.matmul %4, %5, %cst {dimension_numbers = #tpu.dot_dimension_numbers<[1], [0], [0], [1], [0, 0, 1, 1], [], []>} : vector<8x128xbf16>, vector<128x256xbf16>, vector<8x256xf32> -> vector<8x256xf32>
    %7 = arith.addf %3, %6 : vector<8x256xf32>
    %c0_6 = arith.constant 0 : index
    %c0_7 = arith.constant 0 : index
    %8 = vector.load %arg7[%c0_6, %c0_7] : memref<8x256xf32, #tpu.memory_space<vmem>>, vector<8x256xf32>
    tpu.vector_store %arg7[%c0_6, %c0_7], %7 {strides = array<i32>} : memref<8x256xf32, #tpu.memory_space<vmem>>, vector<8x256xf32>,
    %c1_i32 = arith.constant 1 : i32
    %9 = arith.cmpi eq, %arg2, %c1_i32 : i32
    %10 = arith.extui %9 : i1 to i32
    %c0_i32_8 = arith.constant 0 : i32
    %11 = arith.cmpi ne, %10, %c0_i32_8 : i32
    scf.if %11 {
      %c0_9 = arith.constant 0 : index
      %c0_10 = arith.constant 0 : index
      %12 = vector.load %arg7[%c0_9, %c0_10] : memref<8x256xf32, #tpu.memory_space<vmem>>, vector<8x256xf32>
      %c0_11 = arith.constant 0 : index
      %c0_12 = arith.constant 0 : index
      %13 = vector.load %arg5[%c0_11, %c0_12] : memref<1x256xf32, #tpu.memory_space<vmem>>, vector<1x256xf32>
      %14 = vector.broadcast %13 : vector<1x256xf32> to vector<8x256xf32>
      %15 = arith.addf %12, %14 : vector<8x256xf32>
      %16 = arith.truncf %15 : vector<8x256xf32> to vector<8x256xbf16>
      %c0_13 = arith.constant 0 : index
      %c0_14 = arith.constant 0 : index
      %17 = vector.load %arg6[%c0_13, %c0_14] : memref<8x256xbf16, #tpu.memory_space<vmem>>, vector<8x256xbf16>
      tpu.vector_store %arg6[%c0_13, %c0_14], %16 {strides = array<i32>} : memref<8x256xbf16, #tpu.memory_space<vmem>>, vector<8x256xbf16>,
    } else {
    }
    return
  }
  func.func @transform_0(%arg0: i32, %arg1: i32, %arg2: i32) -> (i32, i32) {
    %c0_i32 = arith.constant 0 : i32
    return %arg0, %arg2 : i32, i32
  }
  func.func @transform_1(%arg0: i32, %arg1: i32, %arg2: i32) -> (i32, i32) {
    %c0_i32 = arith.constant 0 : i32
    return %arg2, %arg1 : i32, i32
  }
  func.func @transform_2(%arg0: i32, %arg1: i32, %arg2: i32) -> (i32, i32) {
    %c0_i32 = arith.constant 0 : i32
    %c0_i32_0 = arith.constant 0 : i32
    return %c0_i32, %arg1 : i32, i32
  }
  func.func @transform_3(%arg0: i32, %arg1: i32, %arg2: i32) -> (i32, i32) {
    %c0_i32 = arith.constant 0 : i32
    return %arg0, %arg1 : i32, i32
  }
}

module attributes {stable_mosaic.version = 11 : i64} {
  func.func @_matmul_bias_kernel(%arg0: i32, %arg1: i32, %arg2: i32, %arg3: memref<8x512xbf16, #tpu.memory_space<vmem>>, %arg4: memref<512x256xbf16, #tpu.memory_space<vmem>>, %arg5: memref<1x256xf32, #tpu.memory_space<vmem>>, %arg6: memref<8x256xbf16, #tpu.memory_space<vmem>>, %arg7: memref<8x256xbf16, #tpu.memory_space<vmem>>, %arg8: memref<8x256xf32, #tpu.memory_space<vmem>>) attributes {dimension_semantics = [#tpu.dimension_semantics<parallel>, #tpu.dimension_semantics<parallel>, #tpu.dimension_semantics<arbitrary>], iteration_bounds = array<i64: 1, 2, 9>, scalar_prefetch = 0 : i64, scratch_operands = 1 : i64, tpu.core_type = #tpu.core_type<tc>, window_params = [{transform_indices = @transform_0, window_bounds = array<i64: 8, 512>}, {transform_indices = @transform_1, window_bounds = array<i64: 512, 256>}, {transform_indices = @transform_2, window_bounds = array<i64: 1, 256>}, {transform_indices = @transform_3, window_bounds = array<i64: 8, 256>}, {transform_indices = @transform_4, window_bounds = array<i64: 8, 256>}]} {
    %c0_i32 = arith.constant 0 : i32
    %0 = arith.cmpi eq, %arg2, %c0_i32 : i32
    %1 = arith.extui %0 : i1 to i32
    %c0_i32_0 = arith.constant 0 : i32
    %2 = arith.cmpi ne, %1, %c0_i32_0 : i32
    scf.if %2 {
      %cst_9 = arith.constant 0.000000e+00 : f32
      %12 = vector.broadcast %cst_9 : f32 to vector<8x256xf32>
      %c0_10 = arith.constant 0 : index
      %c0_11 = arith.constant 0 : index
      %13 = vector.load %arg8[%c0_10, %c0_11] : memref<8x256xf32, #tpu.memory_space<vmem>>, vector<8x256xf32>
      tpu.vector_store %arg8[%c0_10, %c0_11], %12 {strides = array<i32>} : memref<8x256xf32, #tpu.memory_space<vmem>>, vector<8x256xf32>,
    } else {
    }
    %c0 = arith.constant 0 : index
    %c0_1 = arith.constant 0 : index
    %3 = vector.load %arg8[%c0, %c0_1] : memref<8x256xf32, #tpu.memory_space<vmem>>, vector<8x256xf32>
    %c0_2 = arith.constant 0 : index
    %c0_3 = arith.constant 0 : index
    %4 = vector.load %arg3[%c0_2, %c0_3] : memref<8x512xbf16, #tpu.memory_space<vmem>>, vector<8x512xbf16>
    %c0_4 = arith.constant 0 : index
    %c0_5 = arith.constant 0 : index
    %5 = vector.load %arg4[%c0_4, %c0_5] : memref<512x256xbf16, #tpu.memory_space<vmem>>, vector<512x256xbf16>
    %cst = arith.constant dense<0.000000e+00> : vector<8x256xf32>
    %6 = tpu.matmul %4, %5, %cst {dimension_numbers = #tpu.dot_dimension_numbers<[1], [0], [0], [1], [0, 0, 1, 1], [], []>} : vector<8x512xbf16>, vector<512x256xbf16>, vector<8x256xf32> -> vector<8x256xf32>
    %7 = arith.addf %3, %6 : vector<8x256xf32>
    %c0_6 = arith.constant 0 : index
    %c0_7 = arith.constant 0 : index
    %8 = vector.load %arg8[%c0_6, %c0_7] : memref<8x256xf32, #tpu.memory_space<vmem>>, vector<8x256xf32>
    tpu.vector_store %arg8[%c0_6, %c0_7], %7 {strides = array<i32>} : memref<8x256xf32, #tpu.memory_space<vmem>>, vector<8x256xf32>,
    %c8_i32 = arith.constant 8 : i32
    %9 = arith.cmpi eq, %arg2, %c8_i32 : i32
    %10 = arith.extui %9 : i1 to i32
    %c0_i32_8 = arith.constant 0 : i32
    %11 = arith.cmpi ne, %10, %c0_i32_8 : i32
    scf.if %11 {
      %c0_9 = arith.constant 0 : index
      %c0_10 = arith.constant 0 : index
      %12 = vector.load %arg8[%c0_9, %c0_10] : memref<8x256xf32, #tpu.memory_space<vmem>>, vector<8x256xf32>
      %c0_11 = arith.constant 0 : index
      %c0_12 = arith.constant 0 : index
      %13 = vector.load %arg5[%c0_11, %c0_12] : memref<1x256xf32, #tpu.memory_space<vmem>>, vector<1x256xf32>
      %14 = vector.broadcast %13 : vector<1x256xf32> to vector<8x256xf32>
      %15 = arith.addf %12, %14 : vector<8x256xf32>
      %c0_13 = arith.constant 0 : index
      %c0_14 = arith.constant 0 : index
      %16 = vector.load %arg6[%c0_13, %c0_14] : memref<8x256xbf16, #tpu.memory_space<vmem>>, vector<8x256xbf16>
      %17 = arith.extf %16 : vector<8x256xbf16> to vector<8x256xf32>
      %18 = arith.addf %15, %17 : vector<8x256xf32>
      %cst_15 = arith.constant 0.000000e+00 : f32
      %19 = vector.broadcast %cst_15 : f32 to vector<8x256xf32>
      %20 = arith.maximumf %18, %19 : vector<8x256xf32>
      %21 = arith.truncf %20 : vector<8x256xf32> to vector<8x256xbf16>
      %c0_16 = arith.constant 0 : index
      %c0_17 = arith.constant 0 : index
      %22 = vector.load %arg7[%c0_16, %c0_17] : memref<8x256xbf16, #tpu.memory_space<vmem>>, vector<8x256xbf16>
      tpu.vector_store %arg7[%c0_16, %c0_17], %21 {strides = array<i32>} : memref<8x256xbf16, #tpu.memory_space<vmem>>, vector<8x256xbf16>,
    } else {
    }
    return
  }
  func.func @transform_0(%arg0: i32, %arg1: i32, %arg2: i32) -> (i32, i32) {
    %c0_i32 = arith.constant 0 : i32
    return %arg0, %arg2 : i32, i32
  }
  func.func @transform_1(%arg0: i32, %arg1: i32, %arg2: i32) -> (i32, i32) {
    %c0_i32 = arith.constant 0 : i32
    return %arg2, %arg1 : i32, i32
  }
  func.func @transform_2(%arg0: i32, %arg1: i32, %arg2: i32) -> (i32, i32) {
    %c0_i32 = arith.constant 0 : i32
    %c0_i32_0 = arith.constant 0 : i32
    return %c0_i32, %arg1 : i32, i32
  }
  func.func @transform_3(%arg0: i32, %arg1: i32, %arg2: i32) -> (i32, i32) {
    %c0_i32 = arith.constant 0 : i32
    return %arg0, %arg1 : i32, i32
  }
  func.func @transform_4(%arg0: i32, %arg1: i32, %arg2: i32) -> (i32, i32) {
    %c0_i32 = arith.constant 0 : i32
    return %arg0, %arg1 : i32, i32
  }
}

module attributes {stable_mosaic.version = 11 : i64} {
  func.func @_matmul_bias_kernel(%arg0: i32, %arg1: i32, %arg2: i32, %arg3: memref<8x512xbf16, #tpu.memory_space<vmem>>, %arg4: memref<512x256xbf16, #tpu.memory_space<vmem>>, %arg5: memref<1x256xf32, #tpu.memory_space<vmem>>, %arg6: memref<8x256xbf16, #tpu.memory_space<vmem>>, %arg7: memref<8x256xf32, #tpu.memory_space<vmem>>) attributes {dimension_semantics = [#tpu.dimension_semantics<parallel>, #tpu.dimension_semantics<parallel>, #tpu.dimension_semantics<arbitrary>], iteration_bounds = array<i64: 1, 2, 9>, scalar_prefetch = 0 : i64, scratch_operands = 1 : i64, tpu.core_type = #tpu.core_type<tc>, window_params = [{transform_indices = @transform_0, window_bounds = array<i64: 8, 512>}, {transform_indices = @transform_1, window_bounds = array<i64: 512, 256>}, {transform_indices = @transform_2, window_bounds = array<i64: 1, 256>}, {transform_indices = @transform_3, window_bounds = array<i64: 8, 256>}]} {
    %c0_i32 = arith.constant 0 : i32
    %0 = arith.cmpi eq, %arg2, %c0_i32 : i32
    %1 = arith.extui %0 : i1 to i32
    %c0_i32_0 = arith.constant 0 : i32
    %2 = arith.cmpi ne, %1, %c0_i32_0 : i32
    scf.if %2 {
      %cst_9 = arith.constant 0.000000e+00 : f32
      %12 = vector.broadcast %cst_9 : f32 to vector<8x256xf32>
      %c0_10 = arith.constant 0 : index
      %c0_11 = arith.constant 0 : index
      %13 = vector.load %arg7[%c0_10, %c0_11] : memref<8x256xf32, #tpu.memory_space<vmem>>, vector<8x256xf32>
      tpu.vector_store %arg7[%c0_10, %c0_11], %12 {strides = array<i32>} : memref<8x256xf32, #tpu.memory_space<vmem>>, vector<8x256xf32>,
    } else {
    }
    %c0 = arith.constant 0 : index
    %c0_1 = arith.constant 0 : index
    %3 = vector.load %arg7[%c0, %c0_1] : memref<8x256xf32, #tpu.memory_space<vmem>>, vector<8x256xf32>
    %c0_2 = arith.constant 0 : index
    %c0_3 = arith.constant 0 : index
    %4 = vector.load %arg3[%c0_2, %c0_3] : memref<8x512xbf16, #tpu.memory_space<vmem>>, vector<8x512xbf16>
    %c0_4 = arith.constant 0 : index
    %c0_5 = arith.constant 0 : index
    %5 = vector.load %arg4[%c0_4, %c0_5] : memref<512x256xbf16, #tpu.memory_space<vmem>>, vector<512x256xbf16>
    %cst = arith.constant dense<0.000000e+00> : vector<8x256xf32>
    %6 = tpu.matmul %4, %5, %cst {dimension_numbers = #tpu.dot_dimension_numbers<[1], [0], [0], [1], [0, 0, 1, 1], [], []>} : vector<8x512xbf16>, vector<512x256xbf16>, vector<8x256xf32> -> vector<8x256xf32>
    %7 = arith.addf %3, %6 : vector<8x256xf32>
    %c0_6 = arith.constant 0 : index
    %c0_7 = arith.constant 0 : index
    %8 = vector.load %arg7[%c0_6, %c0_7] : memref<8x256xf32, #tpu.memory_space<vmem>>, vector<8x256xf32>
    tpu.vector_store %arg7[%c0_6, %c0_7], %7 {strides = array<i32>} : memref<8x256xf32, #tpu.memory_space<vmem>>, vector<8x256xf32>,
    %c8_i32 = arith.constant 8 : i32
    %9 = arith.cmpi eq, %arg2, %c8_i32 : i32
    %10 = arith.extui %9 : i1 to i32
    %c0_i32_8 = arith.constant 0 : i32
    %11 = arith.cmpi ne, %10, %c0_i32_8 : i32
    scf.if %11 {
      %c0_9 = arith.constant 0 : index
      %c0_10 = arith.constant 0 : index
      %12 = vector.load %arg7[%c0_9, %c0_10] : memref<8x256xf32, #tpu.memory_space<vmem>>, vector<8x256xf32>
      %c0_11 = arith.constant 0 : index
      %c0_12 = arith.constant 0 : index
      %13 = vector.load %arg5[%c0_11, %c0_12] : memref<1x256xf32, #tpu.memory_space<vmem>>, vector<1x256xf32>
      %14 = vector.broadcast %13 : vector<1x256xf32> to vector<8x256xf32>
      %15 = arith.addf %12, %14 : vector<8x256xf32>
      %cst_13 = arith.constant 0.000000e+00 : f32
      %16 = vector.broadcast %cst_13 : f32 to vector<8x256xf32>
      %17 = arith.maximumf %15, %16 : vector<8x256xf32>
      %18 = arith.truncf %17 : vector<8x256xf32> to vector<8x256xbf16>
      %c0_14 = arith.constant 0 : index
      %c0_15 = arith.constant 0 : index
      %19 = vector.load %arg6[%c0_14, %c0_15] : memref<8x256xbf16, #tpu.memory_space<vmem>>, vector<8x256xbf16>
      tpu.vector_store %arg6[%c0_14, %c0_15], %18 {strides = array<i32>} : memref<8x256xbf16, #tpu.memory_space<vmem>>, vector<8x256xbf16>,
    } else {
    }
    return
  }
  func.func @transform_0(%arg0: i32, %arg1: i32, %arg2: i32) -> (i32, i32) {
    %c0_i32 = arith.constant 0 : i32
    return %arg0, %arg2 : i32, i32
  }
  func.func @transform_1(%arg0: i32, %arg1: i32, %arg2: i32) -> (i32, i32) {
    %c0_i32 = arith.constant 0 : i32
    return %arg2, %arg1 : i32, i32
  }
  func.func @transform_2(%arg0: i32, %arg1: i32, %arg2: i32) -> (i32, i32) {
    %c0_i32 = arith.constant 0 : i32
    %c0_i32_0 = arith.constant 0 : i32
    return %c0_i32, %arg1 : i32, i32
  }
  func.func @transform_3(%arg0: i32, %arg1: i32, %arg2: i32) -> (i32, i32) {
    %c0_i32 = arith.constant 0 : i32
    return %arg0, %arg1 : i32, i32
  }
}

module attributes {stable_mosaic.version = 11 : i64} {
  func.func @_fc_norm_kernel(%arg0: i32, %arg1: memref<8x512xbf16, #tpu.memory_space<vmem>>, %arg2: memref<512x512xbf16, #tpu.memory_space<vmem>>, %arg3: memref<1x512xf32, #tpu.memory_space<vmem>>, %arg4: memref<8x512xf32, #tpu.memory_space<vmem>>) attributes {dimension_semantics = [#tpu.dimension_semantics<arbitrary>], iteration_bounds = array<i64: 1>, scalar_prefetch = 0 : i64, scratch_operands = 0 : i64, tpu.core_type = #tpu.core_type<tc>, window_params = [{pipeline_mode = #tpu.pipeline_mode<synchronous>, transform_indices = @transform_0, window_bounds = array<i64: 8, 512>}, {pipeline_mode = #tpu.pipeline_mode<synchronous>, transform_indices = @transform_1, window_bounds = array<i64: 512, 512>}, {pipeline_mode = #tpu.pipeline_mode<synchronous>, transform_indices = @transform_2, window_bounds = array<i64: 1, 512>}, {pipeline_mode = #tpu.pipeline_mode<synchronous>, transform_indices = @transform_3, window_bounds = array<i64: 8, 512>}]} {
    %c0 = arith.constant 0 : index
    %c0_0 = arith.constant 0 : index
    %0 = vector.load %arg1[%c0, %c0_0] : memref<8x512xbf16, #tpu.memory_space<vmem>>, vector<8x512xbf16>
    %c0_1 = arith.constant 0 : index
    %c0_2 = arith.constant 0 : index
    %1 = vector.load %arg2[%c0_1, %c0_2] : memref<512x512xbf16, #tpu.memory_space<vmem>>, vector<512x512xbf16>
    %cst = arith.constant dense<0.000000e+00> : vector<8x512xf32>
    %2 = tpu.matmul %0, %1, %cst {dimension_numbers = #tpu.dot_dimension_numbers<[1], [0], [0], [1], [0, 0, 1, 1], [], []>} : vector<8x512xbf16>, vector<512x512xbf16>, vector<8x512xf32> -> vector<8x512xf32>
    %c0_3 = arith.constant 0 : index
    %c0_4 = arith.constant 0 : index
    %3 = vector.load %arg3[%c0_3, %c0_4] : memref<1x512xf32, #tpu.memory_space<vmem>>, vector<1x512xf32>
    %4 = vector.broadcast %3 : vector<1x512xf32> to vector<8x512xf32>
    %5 = arith.addf %2, %4 : vector<8x512xf32>
    %6 = arith.mulf %5, %5 : vector<8x512xf32>
    %cst_5 = arith.constant dense<0.000000e+00> : vector<8xf32>
    %7 = vector.multi_reduction <add>, %6, %cst_5 [1] : vector<8x512xf32> to vector<8xf32>
    %8 = vector.shape_cast %7 : vector<8xf32> to vector<8x1xf32>
    %cst_6 = arith.constant 1.000000e-24 : f32
    %9 = vector.broadcast %cst_6 : f32 to vector<8x1xf32>
    %10 = arith.maximumf %8, %9 : vector<8x1xf32>
    %11 = math.rsqrt %10 : vector<8x1xf32>
    %12 = vector.broadcast %11 : vector<8x1xf32> to vector<8x512xf32>
    %13 = arith.mulf %5, %12 : vector<8x512xf32>
    %c0_7 = arith.constant 0 : index
    %c0_8 = arith.constant 0 : index
    %14 = vector.load %arg4[%c0_7, %c0_8] : memref<8x512xf32, #tpu.memory_space<vmem>>, vector<8x512xf32>
    tpu.vector_store %arg4[%c0_7, %c0_8], %13 {strides = array<i32>} : memref<8x512xf32, #tpu.memory_space<vmem>>, vector<8x512xf32>,
    return
  }
  func.func @transform_0(%arg0: i32) -> (i32, i32) {
    %c0_i32 = arith.constant 0 : i32
    %c0_i32_0 = arith.constant 0 : i32
    %c0_i32_1 = arith.constant 0 : i32
    return %c0_i32, %c0_i32_0 : i32, i32
  }
  func.func @transform_1(%arg0: i32) -> (i32, i32) {
    %c0_i32 = arith.constant 0 : i32
    %c0_i32_0 = arith.constant 0 : i32
    %c0_i32_1 = arith.constant 0 : i32
    return %c0_i32, %c0_i32_0 : i32, i32
  }
  func.func @transform_2(%arg0: i32) -> (i32, i32) {
    %c0_i32 = arith.constant 0 : i32
    %c0_i32_0 = arith.constant 0 : i32
    %c0_i32_1 = arith.constant 0 : i32
    return %c0_i32, %c0_i32_0 : i32, i32
  }
  func.func @transform_3(%arg0: i32) -> (i32, i32) {
    %c0_i32 = arith.constant 0 : i32
    %c0_i32_0 = arith.constant 0 : i32
    %c0_i32_1 = arith.constant 0 : i32
    return %c0_i32, %c0_i32_0 : i32, i32
  }
}

</mosaic_0001>

<bundles_post_ra>
// kernel: embedder_forward.21
= control target key start
LH: loop header
LB: loop body
LE: loop exit
PB: predicated region body
PF: predicated region fallthrough
CT: control target
= control target key end

     0   :  { %s1736_s12 = smov 0   ;;  %s1738_s13 = smov 0   ;;  %s1981_s0 = inlined_call_operand.vmem [shape: bf16[512,256], index: 0, kind: input, shape index: {}]   ;;  %s1982_s1 = inlined_call_operand.vmem [shape: bf16[256,128], index: 1, kind: input, shape index: {}]   ;;  %s1983_s2 = inlined_call_operand.vmem [shape: f32[1,128], index: 2, kind: input, shape index: {}]   ;;  %s1984_s3 = inlined_call_operand.vmem [shape: bf16[512,128], index: 3, kind: output, shape index: {}]  }
   0x1   :  { %s1740_s14 = smov 0   ;;  %s1742_s15 = smov 0  }
   0x2   :  { %s1744_s16 = smov 0   ;;  %s1746_s17 = smov 0  }
   0x3   :  { %s1748_s18 = smov 0  }
   0x4 LB: > { %s25_s19 = sadd.s32 1, %s1705_s16  ;;  %s32_s20 = sadd.s32 1, %s1709_s17  ;;  %s1713_s18 = sphi %s1748_s18, %s13_s18   ;;  %s1709_s17 = sphi %s1746_s17, %s1990_s17   ;;  %s1705_s16 = sphi %s1744_s16, %s1989_s16   ;;  %s1701_s15 = sphi %s1742_s15, %s1988_s15   ;;  %s1697_s14 = sphi %s1740_s14, %s1987_s14   ;;  %s1693_s13 = sphi %s1738_s13, %s1986_s13   ;;  %s1689_s12 = sphi %s1736_s12, %s1985_s12  }
   0x5   : > { %p26_p0 = scmp.ge.s32.totalorder %s25_s19, 2  ;;  %p48_p1 = scmp.ne.s32.totalorder %s1693_s13, %s1689_s12 }
   0x6   : > { %p49_p2 = scmp.eq.s32.totalorder %s1713_s18, 0  ;;  %s41_s24 = sadd.s32 1, %s1693_s13 }
   0x7   : > { %s1992_s19 = smov (%p26_p0, %s25_s19), 0  ;;  %s1994_s20 = smov (!%p26_p0, %s32_s20), %s1709_s17 }
   0x8   : > { %p50_p3 = por %p49_p2, %p48_p1  ;;  %p34_p4 = scmp.ge.s32.totalorder %s1994_s20, 2 }
   0x9   : > { %s37_s21 = ssub.s32 %s1705_s16, %s1992_s19  ;;  %p1290_p6 = scmp.ge.s32.totalorder %s1713_s18, 4 }
   0xa   : > { %s1996_s20 = smov (%p34_p4, %s1994_s20), 0 }
   0xb   : > { %s36_s22 = ssub.s32 %s1709_s17, %s1996_s20  ;;  %162 = sbr.rel (%p1290_p6) target bundleno = 45 (0x2d), region = 20 }
   0xc   : > { %s38_s23 = sor.u32 %s37_s21, %s36_s22 }
   0xd   : > { %p39_p5 = scmp.eq.s32.totalorder %s38_s23, 0 }
   0xf   : > { %s1787_s25 = scalar_select %p39_p5, %s1693_s13, %s41_s24  }
  0x12   : > { %165 = sbr.rel (!%p50_p3) target bundleno = 45 (0x2d), region = 24  ;;  %s167_s26 = sand.u32 (%p50_p3), 1, %s1693_s13  }
  0x13   : > { %s1362_s27 = sshll.u32 (%p50_p3), %s1709_s17, 6  ;;  %s1291_s28 = sshll.u32 (%p50_p3), %s167_s26, 7 }
  0x14   : > { %s172_s29 = sadd.s32 (%p50_p3), %s1705_s16, %s1362_s27  ;;  %s1801_s7 = scalar_lea.vmem (%p50_p3), [#allocation3], %s1291_s28 }
  0x15   : > { %s1294_s30 = sshll.u32 (%p50_p3), %s172_s29, 2 }
  0x16   : > { %s1796_s6 = scalar_lea.vmem (%p50_p3), %s1981_s0, %s1294_s30 }
  0x17   : > { %v190_v0 = vld [vmem:[%s1796_s6] sm:$0xf] (%p50_p3)  ;;  %v192_v1 = vld [vmem:[%s1796_s6 + $0x8] sm:$0xf] (%p50_p3)  ;;  %v194_v2 = vld [vmem:[%s1796_s6 + $0x10] sm:$0xf] (%p50_p3) }
  0x18   : > { %191 = vst [vmem:[%s1801_s7] sm:$0xf] (%p50_p3), %v190_v0  ;;  %193 = vst [vmem:[%s1801_s7 + $0x4] sm:$0xf] (%p50_p3), %v192_v1  ;;  %v196_v3 = vld [vmem:[%s1796_s6 + $0x18] sm:$0xf] (%p50_p3) }
  0x19   : > { %195 = vst [vmem:[%s1801_s7 + $0x8] sm:$0xf] %v194_v2  ;;  %v198_v4 = vld [vmem:[%s1796_s6 + $0x20] sm:$0xf]  ;;  %v200_v5 = vld [vmem:[%s1796_s6 + $0x28] sm:$0xf] }
  0x1a   : > { %197 = vst [vmem:[%s1801_s7 + $0xc] sm:$0xf] %v196_v3  ;;  %199 = vst [vmem:[%s1801_s7 + $0x10] sm:$0xf] %v198_v4  ;;  %v202_v6 = vld [vmem:[%s1796_s6 + $0x30] sm:$0xf] }
  0x1b   : > { %201 = vst [vmem:[%s1801_s7 + $0x14] sm:$0xf] %v200_v5  ;;  %v204_v7 = vld [vmem:[%s1796_s6 + $0x38] sm:$0xf]  ;;  %v206_v8 = vld [vmem:[%s1796_s6 + $0x40] sm:$0xf] }
  0x1c   : > { %203 = vst [vmem:[%s1801_s7 + $0x18] sm:$0xf] %v202_v6  ;;  %205 = vst [vmem:[%s1801_s7 + $0x1c] sm:$0xf] %v204_v7  ;;  %v208_v9 = vld [vmem:[%s1796_s6 + $0x48] sm:$0xf] }
  0x1d   : > { %207 = vst [vmem:[%s1801_s7 + $0x20] sm:$0xf] %v206_v8  ;;  %v210_v10 = vld [vmem:[%s1796_s6 + $0x50] sm:$0xf]  ;;  %v212_v11 = vld [vmem:[%s1796_s6 + $0x58] sm:$0xf] }
  0x1e   : > { %209 = vst [vmem:[%s1801_s7 + $0x24] sm:$0xf] %v208_v9  ;;  %211 = vst [vmem:[%s1801_s7 + $0x28] sm:$0xf] %v210_v10  ;;  %v214_v12 = vld [vmem:[%s1796_s6 + $0x60] sm:$0xf] }
  0x1f   : > { %213 = vst [vmem:[%s1801_s7 + $0x2c] sm:$0xf] %v212_v11  ;;  %v216_v13 = vld [vmem:[%s1796_s6 + $0x68] sm:$0xf]  ;;  %v218_v14 = vld [vmem:[%s1796_s6 + $0x70] sm:$0xf] }
  0x20   : > { %215 = vst [vmem:[%s1801_s7 + $0x30] sm:$0xf] %v214_v12  ;;  %217 = vst [vmem:[%s1801_s7 + $0x34] sm:$0xf] %v216_v13  ;;  %v220_v15 = vld [vmem:[%s1796_s6 + $0x78] sm:$0xf] }
  0x21   : > { %219 = vst [vmem:[%s1801_s7 + $0x38] sm:$0xf] %v218_v14  ;;  %v222_v16 = vld [vmem:[%s1796_s6 + $0x80] sm:$0xf]  ;;  %v224_v17 = vld [vmem:[%s1796_s6 + $0x88] sm:$0xf] }
  0x22   : > { %221 = vst [vmem:[%s1801_s7 + $0x3c] sm:$0xf] %v220_v15  ;;  %223 = vst [vmem:[%s1801_s7 + $0x40] sm:$0xf] %v222_v16  ;;  %v226_v18 = vld [vmem:[%s1796_s6 + $0x90] sm:$0xf] }
  0x23   : > { %225 = vst [vmem:[%s1801_s7 + $0x44] sm:$0xf] %v224_v17  ;;  %v228_v19 = vld [vmem:[%s1796_s6 + $0x98] sm:$0xf]  ;;  %v230_v20 = vld [vmem:[%s1796_s6 + $0xa0] sm:$0xf] }
  0x24   : > { %227 = vst [vmem:[%s1801_s7 + $0x48] sm:$0xf] %v226_v18  ;;  %229 = vst [vmem:[%s1801_s7 + $0x4c] sm:$0xf] %v228_v19  ;;  %v232_v21 = vld [vmem:[%s1796_s6 + $0xa8] sm:$0xf] }
  0x25   : > { %231 = vst [vmem:[%s1801_s7 + $0x50] sm:$0xf] %v230_v20  ;;  %v234_v22 = vld [vmem:[%s1796_s6 + $0xb0] sm:$0xf]  ;;  %v236_v23 = vld [vmem:[%s1796_s6 + $0xb8] sm:$0xf] }
  0x26   : > { %233 = vst [vmem:[%s1801_s7 + $0x54] sm:$0xf] %v232_v21  ;;  %235 = vst [vmem:[%s1801_s7 + $0x58] sm:$0xf] %v234_v22  ;;  %v238_v24 = vld [vmem:[%s1796_s6 + $0xc0] sm:$0xf] }
  0x27   : > { %237 = vst [vmem:[%s1801_s7 + $0x5c] sm:$0xf] %v236_v23  ;;  %v240_v25 = vld [vmem:[%s1796_s6 + $0xc8] sm:$0xf]  ;;  %v242_v26 = vld [vmem:[%s1796_s6 + $0xd0] sm:$0xf] }
  0x28   : > { %239 = vst [vmem:[%s1801_s7 + $0x60] sm:$0xf] %v238_v24  ;;  %241 = vst [vmem:[%s1801_s7 + $0x64] sm:$0xf] %v240_v25  ;;  %v244_v27 = vld [vmem:[%s1796_s6 + $0xd8] sm:$0xf] }
  0x29   : > { %243 = vst [vmem:[%s1801_s7 + $0x68] sm:$0xf] %v242_v26  ;;  %v246_v28 = vld [vmem:[%s1796_s6 + $0xe0] sm:$0xf]  ;;  %v248_v29 = vld [vmem:[%s1796_s6 + $0xe8] sm:$0xf] }
  0x2a   : > { %245 = vst [vmem:[%s1801_s7 + $0x6c] sm:$0xf] %v244_v27  ;;  %247 = vst [vmem:[%s1801_s7 + $0x70] sm:$0xf] %v246_v28  ;;  %v250_v30 = vld [vmem:[%s1796_s6 + $0xf0] sm:$0xf] }
  0x2b   : > { %249 = vst [vmem:[%s1801_s7 + $0x74] sm:$0xf] %v248_v29  ;;  %v252_v31 = vld [vmem:[%s1796_s6 + $0xf8] sm:$0xf]  ;;  %251 = vst [vmem:[%s1801_s7 + $0x78] sm:$0xf] %v250_v30 }
  0x2c   : > { %253 = vst [vmem:[%s1801_s7 + $0x7c] sm:$0xf] %v252_v31 }
  0x2d PF: > { %p1295_p7 = scmp.ge.s32.totalorder %s1713_s18, 1  ;;  %p351_p8 = scmp.lt.s32.totalorder %s1713_s18, 5 }
  0x2f   : > { %p352_p9 = pnand %p1295_p7, %p351_p8 }
  0x30   : > { %s358_s8 = sand.u32 (!%p352_p9), 1, %s1689_s12   ;;  %s1297_s9 = sshll.u32 (!%p352_p9), %s1697_s14, 4 }
  0x31   : > { %355 = sbr.rel (%p352_p9) target bundleno = 365 (0x16d), region = 69  ;;  %s1296_s10 = sshll.u32 (!%p352_p9), %s358_s8, 7 }
  0x32   : > { %p397_p10 = scmp.lt.s32.totalorder (!%p352_p9), %s1297_s9, 31  ;;  %s1299_s11 = sshll.u32 (!%p352_p9), %s1701_s15, 5 }
  0x33   : > { %p409_p11 = scmp.lt.s32.totalorder (!%p352_p9), %s1299_s11, 63  ;;  %s1879_s12 = scalar_lea.vmem (!%p352_p9), [#allocation3], %s1296_s10 }
  0x34   : > { %p1301_p12 = scmp.ne.s32.totalorder (!%p352_p9), %s1697_s14, 0 }
  0x38   : > { %s1998_s9 = smov (!%p397_p10, %s1297_s9), 31  ;;  %s2000_s11 = smov (!%p409_p11, %s1299_s11), 63 }
  0x39   : > { %s1298_s21 = sshll.u32 %s1998_s9, 2  ;;  %s1300_s26 = sshll.u32 %s2000_s11, 2  ;;  %v1715_v32 = vmov (!%p1301_p12), 0.0  }
  0x3a   : > { %s1872_s24 = scalar_lea.vmem %s1982_s1, %s1298_s21  ;;  %s1877_s29 = scalar_lea.vmem %s1984_s3, %s1300_s26  ;;  %422 = vst [vmem:[#allocation2] sm:$0xff] (!%p1301_p12), %v1715_v32  ;;  %423 = vst [vmem:[#allocation2 + $0x8] sm:$0xff] (!%p1301_p12), %v1715_v32 }
  0x3b   : > { %421 = sbr.rel (%p1301_p12) target bundleno = 74 (0x4a), region = 77  ;;  %424 = vst [vmem:[#allocation2 + $0x10] sm:$0xff] (!%p1301_p12), %v1715_v32  ;;  %425 = vst [vmem:[#allocation2 + $0x18] sm:$0xff] (!%p1301_p12), %v1715_v32 }
  0x3c   : > { %426 = vst [vmem:[#allocation2 + $0x20] sm:$0xff] (!%p1301_p12), %v1715_v32  ;;  %427 = vst [vmem:[#allocation2 + $0x28] sm:$0xff] (!%p1301_p12), %v1715_v32 }
  0x3d   : > { %428 = vst [vmem:[#allocation2 + $0x30] sm:$0xff] (!%p1301_p12), %v1715_v32  ;;  %429 = vst [vmem:[#allocation2 + $0x38] sm:$0xff] (!%p1301_p12), %v1715_v32 }
  0x3e   : > { %430 = vst [vmem:[#allocation2 + $0x40] sm:$0xff] (!%p1301_p12), %v1715_v32  ;;  %431 = vst [vmem:[#allocation2 + $0x48] sm:$0xff] (!%p1301_p12), %v1715_v32 }
  0x3f   : > { %432 = vst [vmem:[#allocation2 + $0x50] sm:$0xff] (!%p1301_p12), %v1715_v32  ;;  %433 = vst [vmem:[#allocation2 + $0x58] sm:$0xff] (!%p1301_p12), %v1715_v32 }
  0x40   : > { %434 = vst [vmem:[#allocation2 + $0x60] sm:$0xff] (!%p1301_p12), %v1715_v32  ;;  %435 = vst [vmem:[#allocation2 + $0x68] sm:$0xff] (!%p1301_p12), %v1715_v32 }
  0x41   : > { %436 = vst [vmem:[#allocation2 + $0x70] sm:$0xff] (!%p1301_p12), %v1715_v32  ;;  %437 = vst [vmem:[#allocation2 + $0x78] sm:$0xff] (!%p1301_p12), %v1715_v32 }
  0x42   : > { %438 = vst [vmem:[#allocation2 + $0x80] sm:$0xff] %v1715_v32  ;;  %439 = vst [vmem:[#allocation2 + $0x88] sm:$0xff] %v1715_v32 }
  0x43   : > { %440 = vst [vmem:[#allocation2 + $0x90] sm:$0xff] %v1715_v32  ;;  %441 = vst [vmem:[#allocation2 + $0x98] sm:$0xff] %v1715_v32 }
  0x44   : > { %442 = vst [vmem:[#allocation2 + $0xa0] sm:$0xff] %v1715_v32  ;;  %443 = vst [vmem:[#allocation2 + $0xa8] sm:$0xff] %v1715_v32 }
  0x45   : > { %444 = vst [vmem:[#allocation2 + $0xb0] sm:$0xff] %v1715_v32  ;;  %445 = vst [vmem:[#allocation2 + $0xb8] sm:$0xff] %v1715_v32 }
  0x46   : > { %446 = vst [vmem:[#allocation2 + $0xc0] sm:$0xff] %v1715_v32  ;;  %447 = vst [vmem:[#allocation2 + $0xc8] sm:$0xff] %v1715_v32 }
  0x47   : > { %448 = vst [vmem:[#allocation2 + $0xd0] sm:$0xff] %v1715_v32  ;;  %449 = vst [vmem:[#allocation2 + $0xd8] sm:$0xff] %v1715_v32 }
  0x48   : > { %450 = vst [vmem:[#allocation2 + $0xe0] sm:$0xff] %v1715_v32  ;;  %451 = vst [vmem:[#allocation2 + $0xe8] sm:$0xff] %v1715_v32 }
  0x49   : > { %452 = vst [vmem:[#allocation2 + $0xf0] sm:$0xff] %v1715_v32  ;;  %453 = vst [vmem:[#allocation2 + $0xf8] sm:$0xff] %v1715_v32 }
  0x4a PF: > { %v1635_v33 = vld [vmem:[%s1872_s24] sm:$0xff]   ;;  %v1636_v34 = vld [vmem:[%s1872_s24 + $0x8] sm:$0xff]   ;;  %v1637_v35 = vld [vmem:[%s1872_s24 + $0x10] sm:$0xff]   ;;  %p1326_p13 = scmp.ne.s32.totalorder %s1697_s14, 1 }
  0x4b   : > { %1514 = vmatprep.subr.bf16.mxu0 %v1635_v33  ;;  %1562 = vmatprep.subr.bf16.mxu1 %v1635_v33  ;;  %v1638_v36 = vld [vmem:[%s1872_s24 + $0x18] sm:$0xff]   ;;  %v1643_v37 = vld [vmem:[%s1879_s12] sm:$0xff]   ;;  %v1640_v40 = vld [vmem:[%s1872_s24 + $0x28] sm:$0xff]  }
  0x4c   : > { %1515 = vmatpush3.bf16.msra.mxu0 %v1635_v33  ;;  %1570 = vmatpush3.bf16.msra.mxu1 %v1635_v33  ;;  %v1644_v38 = vld [vmem:[%s1879_s12 + $0x40] sm:$0xff]   ;;  %v1641_v41 = vld [vmem:[%s1872_s24 + $0x30] sm:$0xff]   ;;  %v1642_v42 = vld [vmem:[%s1872_s24 + $0x38] sm:$0xff]  }
  0x4d   : > { %1516 = vmatprep.subr.bf16.mxu0 %v1636_v34  ;;  %1563 = vmatprep.subr.bf16.mxu1 %v1636_v34  ;;  %v1639_v39 = vld [vmem:[%s1872_s24 + $0x20] sm:$0xff]   ;;  %v1645_v43 = vld [vmem:[%s1879_s12 + $0x8] sm:$0xff]   ;;  %v1647_v45 = vld [vmem:[%s1879_s12 + $0x10] sm:$0xff]  }
  0x4e   : > { %1530 = vmatprep.mubr.bf16.mxu0 %v1643_v37  ;;  %1546 = vmatprep.mubr.bf16.mxu1 %v1644_v38  ;;  %v1646_v44 = vld [vmem:[%s1879_s12 + $0x48] sm:$0xff]   ;;  %v1648_v46 = vld [vmem:[%s1879_s12 + $0x50] sm:$0xff]   ;;  %v1649_v47 = vld [vmem:[%s1879_s12 + $0x18] sm:$0xff]  }
  0x4f   : > { %v1650_v48 = vld [vmem:[%s1879_s12 + $0x58] sm:$0xff]   ;;  %v1651_v49 = vld [vmem:[%s1879_s12 + $0x20] sm:$0xff]   ;;  %v1653_v51 = vld [vmem:[%s1879_s12 + $0x28] sm:$0xff]  }
  0x50   : > { %1517 = vmatpush3.bf16.msra.mxu0 %v1636_v34  ;;  %1571 = vmatpush3.bf16.msra.mxu1 %v1636_v34  ;;  %v1652_v50 = vld [vmem:[%s1879_s12 + $0x60] sm:$0xff]   ;;  %v1654_v52 = vld [vmem:[%s1879_s12 + $0x68] sm:$0xff]   ;;  %v1655_v53 = vld [vmem:[%s1879_s12 + $0x30] sm:$0xff]  }
  0x51   : > { %1518 = vmatprep.subr.bf16.mxu0 %v1637_v35  ;;  %1564 = vmatprep.subr.bf16.mxu1 %v1637_v35  ;;  %v1656_v54 = vld [vmem:[%s1879_s12 + $0x70] sm:$0xff]   ;;  %v1657_v55 = vld [vmem:[%s1879_s12 + $0x38] sm:$0xff]   ;;  %v454_v59 = vld [vmem:[#allocation2] sm:$0xff] }
  0x52   : > { %v1658_v56 = vld [vmem:[%s1879_s12 + $0x78] sm:$0xff]   ;;  %v456_v57 = vld [vmem:[#allocation2 + $0x10] sm:$0xff]  ;;  %v470_v60 = vld [vmem:[#allocation2 + $0x80] sm:$0xff] }
  0x53   : > { %v472_v58 = vld [vmem:[#allocation2 + $0x90] sm:$0xff]  ;;  %v457_v63 = vld [vmem:[#allocation2 + $0x18] sm:$0xff]  ;;  %v455_v5 = vld [vmem:[#allocation2 + $0x8] sm:$0xff] }
  0x54   : > { %1519 = vmatpush3.bf16.msra.mxu0 %v1637_v35  ;;  %1572 = vmatpush3.bf16.msra.mxu1 %v1637_v35  ;;  %v473_v0 = vld [vmem:[#allocation2 + $0x98] sm:$0xff]  ;;  %v471_v6 = vld [vmem:[#allocation2 + $0x88] sm:$0xff]  ;;  %v460_v17 = vld [vmem:[#allocation2 + $0x30] sm:$0xff] }
  0x55   : > { %1520 = vmatprep.subr.bf16.mxu0 %v1638_v36  ;;  %1565 = vmatprep.subr.bf16.mxu1 %v1638_v36  ;;  %v476_v18 = vld [vmem:[#allocation2 + $0xb0] sm:$0xff]  ;;  %v458_v19 = vld [vmem:[#allocation2 + $0x20] sm:$0xff]  ;;  %v461_v23 = vld [vmem:[#allocation2 + $0x38] sm:$0xff] }
  0x56   : > { %v474_v20 = vld [vmem:[#allocation2 + $0xa0] sm:$0xff]  ;;  %v477_v24 = vld [vmem:[#allocation2 + $0xb8] sm:$0xff]  ;;  %v459_v29 = vld [vmem:[#allocation2 + $0x28] sm:$0xff] }
  0x57   : > { %v475_v30 = vld [vmem:[#allocation2 + $0xa8] sm:$0xff] }
  0x58   : > { %1521 = vmatpush3.bf16.msra.mxu0 %v1638_v36  ;;  %1573 = vmatpush3.bf16.msra.mxu1 %v1638_v36 }
  0x59   : > { %1522 = vmatprep.subr.bf16.mxu0 %v1639_v39  ;;  %1566 = vmatprep.subr.bf16.mxu1 %v1639_v39 }
  0x5c   : > { %1523 = vmatpush3.bf16.msra.mxu0 %v1639_v39  ;;  %1574 = vmatpush3.bf16.msra.mxu1 %v1639_v39 }
  0x5d   : > { %1524 = vmatprep.subr.bf16.mxu0 %v1640_v40  ;;  %1567 = vmatprep.subr.bf16.mxu1 %v1640_v40 }
  0x60   : > { %1525 = vmatpush3.bf16.msra.mxu0 %v1640_v40  ;;  %1575 = vmatpush3.bf16.msra.mxu1 %v1640_v40 }
  0x61   : > { %1526 = vmatprep.subr.bf16.mxu0 %v1641_v41  ;;  %1568 = vmatprep.subr.bf16.mxu1 %v1641_v41 }
  0x64   : > { %1527 = vmatpush3.bf16.msra.mxu0 %v1641_v41  ;;  %1576 = vmatpush3.bf16.msra.mxu1 %v1641_v41  ;;  %v464_v41 = vld [vmem:[#allocation2 + $0x50] sm:$0xff] }
  0x65   : > { %1528 = vmatprep.subr.bf16.mxu0 %v1642_v42  ;;  %1569 = vmatprep.subr.bf16.mxu1 %v1642_v42 }
  0x68   : > { %1529 = vmatpush3.bf16.msra.mxu0 %v1642_v42  ;;  %1577 = vmatpush3.bf16.msra.mxu1 %v1642_v42  ;;  %v480_v42 = vld [vmem:[#allocation2 + $0xd0] sm:$0xff] }
  0x6b   : > { %1531 = vmatmul.mubr.bf16.vlgmr.msra.gmra.mrb[0].mxu0 %v1645_v43  ;;  %1547 = vmatmul.mubr.bf16.vlgmr.msra.gmra.mrb[0].mxu1 %v1646_v44  ;;  %v462_v43 = vld [vmem:[#allocation2 + $0x40] sm:$0xff] }
  0x6c   : > { %1534 = vmatprep.mubr.bf16.mxu0 %v1647_v45  ;;  %1550 = vmatprep.mubr.bf16.mxu1 %v1648_v46  ;;  %v478_v44 = vld [vmem:[#allocation2 + $0xc0] sm:$0xff] }
  0x73   : > { %1535 = vmatmul.mubr.bf16.gmra.mrb[4].mxu0 %v1649_v47  ;;  %1551 = vmatmul.mubr.bf16.gmra.mrb[4].mxu1 %v1650_v48  ;;  %v465_v47 = vld [vmem:[#allocation2 + $0x58] sm:$0xff] }
  0x74   : > { %1538 = vmatprep.mubr.bf16.mxu0 %v1651_v49  ;;  %1554 = vmatprep.mubr.bf16.mxu1 %v1652_v50  ;;  %v481_v48 = vld [vmem:[#allocation2 + $0xd8] sm:$0xff] }
  0x7b   : > { %1539 = vmatmul.mubr.bf16.gmra.mrb[8].mxu0 %v1653_v51  ;;  %1555 = vmatmul.mubr.bf16.gmra.mrb[8].mxu1 %v1654_v52 }
  0x7c   : > { %1542 = vmatprep.mubr.bf16.mxu0 %v1655_v53  ;;  %1558 = vmatprep.mubr.bf16.mxu1 %v1656_v54  ;;  %v463_v53 = vld [vmem:[#allocation2 + $0x48] sm:$0xff] }
  0x7d   : > { %v479_v54 = vld [vmem:[#allocation2 + $0xc8] sm:$0xff] }
  0x83   : > { %1543 = vmatmul.mubr.bf16.gmra.mrb[12].mxu0 %v1657_v55  ;;  %1559 = vmatmul.mubr.bf16.gmra.mrb[12].mxu1 %v1658_v56 }
 0x13e   : > { %v1532_v61 = vpop.f32.mrb[0].mxu0  ;;  %v1548_v62 = vpop.f32.mrb[0].mxu1 }
 0x13f   : > { %v841_v1 = vadd.f32 %v1532_v61, %v456_v57  ;;  %v857_v2 = vadd.f32 %v1548_v62, %v472_v58  ;;  %v712_v3 = vpop.f32.mrb[1].mxu0  ;;  %v776_v4 = vpop.f32.mrb[1].mxu1 }
 0x140   : > { %v839_v7 = vadd.f32 %v712_v3, %v454_v59  ;;  %v855_v8 = vadd.f32 %v776_v4, %v470_v60  ;;  %v1533_v9 = vpop.f32.mrb[2].mxu0  ;;  %v1549_v10 = vpop.f32.mrb[2].mxu1  ;;  %v466_v3 = vld [vmem:[#allocation2 + $0x60] sm:$0xff] }
 0x141   : > { %873 = vst [vmem:[#allocation2 + $0x10] sm:$0xff] %v841_v1  ;;  %889 = vst [vmem:[#allocation2 + $0x90] sm:$0xff] %v857_v2  ;;  %v842_v11 = vadd.f32 %v1533_v9, %v457_v63  ;;  %v858_v12 = vadd.f32 %v1549_v10, %v473_v0  ;;  %v715_v13 = vpop.f32.mrb[3].mxu0  ;;  %v779_v14 = vpop.f32.mrb[3].mxu1  ;;  %v468_v1 = vld [vmem:[#allocation2 + $0x70] sm:$0xff]  ;;  %v482_v4 = vld [vmem:[#allocation2 + $0xe0] sm:$0xff] }
 0x142   : > { %871 = vst [vmem:[#allocation2] sm:$0xff] %v839_v7  ;;  %887 = vst [vmem:[#allocation2 + $0x80] sm:$0xff] %v855_v8  ;;  %v840_v15 = vadd.f32 %v715_v13, %v455_v5  ;;  %v856_v16 = vadd.f32 %v779_v14, %v471_v6  ;;  %v484_v2 = vld [vmem:[#allocation2 + $0xf0] sm:$0xff]  ;;  %v469_v7 = vld [vmem:[#allocation2 + $0x78] sm:$0xff] }
 0x143   : > { %874 = vst [vmem:[#allocation2 + $0x18] sm:$0xff] %v842_v11  ;;  %890 = vst [vmem:[#allocation2 + $0x98] sm:$0xff] %v858_v12  ;;  %v485_v8 = vld [vmem:[#allocation2 + $0xf8] sm:$0xff]  ;;  %v467_v13 = vld [vmem:[#allocation2 + $0x68] sm:$0xff] }
 0x144   : > { %872 = vst [vmem:[#allocation2 + $0x8] sm:$0xff] %v840_v15  ;;  %888 = vst [vmem:[#allocation2 + $0x88] sm:$0xff] %v856_v16  ;;  %v483_v14 = vld [vmem:[#allocation2 + $0xe8] sm:$0xff] }
 0x146   : > { %v1536_v21 = vpop.f32.mrb[4].mxu0  ;;  %v1552_v22 = vpop.f32.mrb[4].mxu1 }
 0x147   : > { %v845_v25 = vadd.f32 %v1536_v21, %v460_v17  ;;  %v861_v26 = vadd.f32 %v1552_v22, %v476_v18  ;;  %v728_v27 = vpop.f32.mrb[5].mxu0  ;;  %v792_v28 = vpop.f32.mrb[5].mxu1 }
 0x148   : > { %v843_v31 = vadd.f32 %v728_v27, %v458_v19  ;;  %v859_v32 = vadd.f32 %v792_v28, %v474_v20  ;;  %v1537_v33 = vpop.f32.mrb[6].mxu0  ;;  %v1553_v34 = vpop.f32.mrb[6].mxu1  ;;  %v1910_v27 = vld [vmem:[%s1983_s2] ss:$0 sm:$0xff] (!%p1326_p13) }
 0x149   : > { %877 = vst [vmem:[#allocation2 + $0x30] sm:$0xff] %v845_v25  ;;  %893 = vst [vmem:[#allocation2 + $0xb0] sm:$0xff] %v861_v26  ;;  %v846_v35 = vadd.f32 %v1537_v33, %v461_v23  ;;  %v862_v36 = vadd.f32 %v1553_v34, %v477_v24  ;;  %v731_v37 = vpop.f32.mrb[7].mxu0  ;;  %v795_v38 = vpop.f32.mrb[7].mxu1  ;;  %v907_v25 = vld [vmem:[#allocation2] sm:$0xff] (!%p1326_p13) }
 0x14a   : > { %875 = vst [vmem:[#allocation2 + $0x20] sm:$0xff] %v843_v31  ;;  %891 = vst [vmem:[#allocation2 + $0xa0] sm:$0xff] %v859_v32  ;;  %v844_v39 = vadd.f32 %v731_v37, %v459_v29  ;;  %v860_v40 = vadd.f32 %v795_v38, %v475_v30  ;;  %v946_v28 = vadd.f32 (!%p1326_p13), %v1910_v27, %v907_v25  ;;  %v909_v30 = vld [vmem:[#allocation2 + $0x10] sm:$0xff] (!%p1326_p13)  ;;  %v910_v31 = vld [vmem:[#allocation2 + $0x18] sm:$0xff] (!%p1326_p13) }
 0x14b   : > { %878 = vst [vmem:[#allocation2 + $0x38] sm:$0xff] %v846_v35  ;;  %894 = vst [vmem:[#allocation2 + $0xb8] sm:$0xff] %v862_v36  ;;  %v908_v26 = vld [vmem:[#allocation2 + $0x8] sm:$0xff] (!%p1326_p13)  ;;  %v948_v33 = vadd.f32 (!%p1326_p13), %v1910_v27, %v909_v30  ;;  %v949_v34 = vadd.f32 (!%p1326_p13), %v1910_v27, %v910_v31 }
 0x14c   : > { %876 = vst [vmem:[#allocation2 + $0x28] sm:$0xff] %v844_v39  ;;  %892 = vst [vmem:[#allocation2 + $0xa8] sm:$0xff] %v860_v40  ;;  %v947_v29 = vadd.f32 (!%p1326_p13), %v1910_v27, %v908_v26  ;;  %v978_v39 = vmax.f32 (!%p1326_p13), %v946_v28, 0.0 }
 0x14e   : > { %v1540_v45 = vpop.f32.mrb[8].mxu0  ;;  %v1556_v46 = vpop.f32.mrb[8].mxu1  ;;  %v979_v40 = vmax.f32 (!%p1326_p13), %v947_v29, 0.0 }
 0x14f   : > { %v849_v49 = vadd.f32 %v1540_v45, %v464_v41  ;;  %v865_v50 = vadd.f32 %v1556_v46, %v480_v42  ;;  %v744_v51 = vpop.f32.mrb[9].mxu0  ;;  %v808_v52 = vpop.f32.mrb[9].mxu1  ;;  %v980_v46 = vmax.f32 (!%p1326_p13), %v948_v33, 0.0 }
 0x150   : > { %v847_v55 = vadd.f32 %v744_v51, %v462_v43  ;;  %v863_v56 = vadd.f32 %v808_v52, %v478_v44  ;;  %v1541_v57 = vpop.f32.mrb[10].mxu0  ;;  %v1557_v58 = vpop.f32.mrb[10].mxu1  ;;  %v913_v37 = vld [vmem:[#allocation2 + $0x30] sm:$0xff] (!%p1326_p13)  ;;  %v1398_v52 = vpack.c.bf16 (!%p1326_p13), %v979_v40, %v978_v39 }
 0x151   : > { %881 = vst [vmem:[#allocation2 + $0x50] sm:$0xff] %v849_v49  ;;  %897 = vst [vmem:[#allocation2 + $0xd0] sm:$0xff] %v865_v50  ;;  %v850_v59 = vadd.f32 %v1541_v57, %v465_v47  ;;  %v866_v60 = vadd.f32 %v1557_v58, %v481_v48  ;;  %v747_v61 = vpop.f32.mrb[11].mxu0  ;;  %v811_v62 = vpop.f32.mrb[11].mxu1  ;;  %v911_v32 = vld [vmem:[#allocation2 + $0x20] sm:$0xff] (!%p1326_p13)  ;;  %v952_v42 = vadd.f32 (!%p1326_p13), %v1910_v27, %v913_v37  ;;  %v981_v47 = vmax.f32 (!%p1326_p13), %v949_v34, 0.0 }
 0x152   : > { %879 = vst [vmem:[#allocation2 + $0x40] sm:$0xff] %v847_v55  ;;  %895 = vst [vmem:[#allocation2 + $0xc0] sm:$0xff] %v863_v56  ;;  %v848_v63 = vadd.f32 %v747_v61, %v463_v53  ;;  %v864_v0 = vadd.f32 %v811_v62, %v479_v54  ;;  %v950_v36 = vadd.f32 (!%p1326_p13), %v1910_v27, %v911_v32  ;;  %v914_v38 = vld [vmem:[#allocation2 + $0x38] sm:$0xff] (!%p1326_p13)  ;;  %v929_v25 = vld [vmem:[#allocation2 + $0xb0] sm:$0xff] (!%p1326_p13) }
 0x153   : > { %882 = vst [vmem:[#allocation2 + $0x58] sm:$0xff] %v850_v59  ;;  %898 = vst [vmem:[#allocation2 + $0xd8] sm:$0xff] %v866_v60  ;;  %v912_v35 = vld [vmem:[#allocation2 + $0x28] sm:$0xff] (!%p1326_p13)  ;;  %v953_v49 = vadd.f32 (!%p1326_p13), %v1910_v27, %v914_v38  ;;  %v984_v54 = vmax.f32 (!%p1326_p13), %v952_v42, 0.0  ;;  %v1403_v57 = vpack.c.bf16 (!%p1326_p13), %v981_v47, %v980_v46  ;;  %v930_v26 = vld [vmem:[#allocation2 + $0xb8] sm:$0xff] (!%p1326_p13) }
 0x154   : > { %880 = vst [vmem:[#allocation2 + $0x48] sm:$0xff] %v848_v63  ;;  %896 = vst [vmem:[#allocation2 + $0xc8] sm:$0xff] %v864_v0  ;;  %v951_v41 = vadd.f32 (!%p1326_p13), %v1910_v27, %v912_v35  ;;  %v982_v48 = vmax.f32 (!%p1326_p13), %v950_v36, 0.0  ;;  %v969_v42 = vadd.f32 (!%p1326_p13), %v1910_v27, %v930_v26 }
 0x155   : > { %v985_v58 = vmax.f32 (!%p1326_p13), %v953_v49, 0.0  ;;  %1399 = vst [vmem:[%s1877_s29] sm:$0xff] (!%p1326_p13), %v1398_v52   ;;  %1475 = vst [vmem:[%s1877_s29 + $0x8] sm:$0xff] (!%p1326_p13), %v1403_v57  }
 0x156   : > { %v1544_v5 = vpop.f32.mrb[12].mxu0  ;;  %v1560_v6 = vpop.f32.mrb[12].mxu1  ;;  %906 = sbr.rel (%p1326_p13) target bundleno = 365 (0x16d), region = 81  ;;  %v983_v53 = vmax.f32 (!%p1326_p13), %v951_v41, 0.0  ;;  %v968_v41 = vadd.f32 (!%p1326_p13), %v1910_v27, %v929_v25  ;;  %v1001_v52 = vmax.f32 (!%p1326_p13), %v969_v42, 0.0 }
 0x157   : > { %v853_v9 = vadd.f32 %v1544_v5, %v468_v1  ;;  %v869_v10 = vadd.f32 %v1560_v6, %v484_v2  ;;  %v760_v11 = vpop.f32.mrb[13].mxu0  ;;  %v824_v12 = vpop.f32.mrb[13].mxu1  ;;  %v1413_v5 = vpack.c.bf16 (!%p1326_p13), %v985_v58, %v984_v54 }
 0x158   : > { %v851_v15 = vadd.f32 %v760_v11, %v466_v3  ;;  %v867_v16 = vadd.f32 %v824_v12, %v482_v4  ;;  %v1545_v17 = vpop.f32.mrb[14].mxu0  ;;  %v1561_v18 = vpop.f32.mrb[14].mxu1  ;;  %v917_v45 = vld [vmem:[#allocation2 + $0x50] sm:$0xff] (!%p1326_p13)  ;;  %v1408_v63 = vpack.c.bf16 (!%p1326_p13), %v983_v53, %v982_v48  ;;  %v923_v3 = vld [vmem:[#allocation2 + $0x80] sm:$0xff] (!%p1326_p13)  ;;  %v924_v4 = vld [vmem:[#allocation2 + $0x88] sm:$0xff] (!%p1326_p13) }
 0x159   : > { %885 = vst [vmem:[#allocation2 + $0x70] sm:$0xff] %v853_v9  ;;  %901 = vst [vmem:[#allocation2 + $0xf0] sm:$0xff] %v869_v10  ;;  %v854_v19 = vadd.f32 %v1545_v17, %v469_v7  ;;  %v870_v20 = vadd.f32 %v1561_v18, %v485_v8  ;;  %v763_v21 = vpop.f32.mrb[15].mxu0  ;;  %v827_v22 = vpop.f32.mrb[15].mxu1  ;;  %v915_v43 = vld [vmem:[#allocation2 + $0x40] sm:$0xff] (!%p1326_p13)  ;;  %v956_v60 = vadd.f32 (!%p1326_p13), %v1910_v27, %v917_v45  ;;  %v925_v9 = vld [vmem:[#allocation2 + $0x90] sm:$0xff] (!%p1326_p13) }
 0x15a   : > { %883 = vst [vmem:[#allocation2 + $0x60] sm:$0xff] %v851_v15  ;;  %899 = vst [vmem:[#allocation2 + $0xe0] sm:$0xff] %v867_v16  ;;  %v852_v23 = vadd.f32 %v763_v21, %v467_v13  ;;  %v868_v24 = vadd.f32 %v827_v22, %v483_v14  ;;  %v918_v50 = vld [vmem:[#allocation2 + $0x58] sm:$0xff] (!%p1326_p13)  ;;  %v954_v55 = vadd.f32 (!%p1326_p13), %v1910_v27, %v915_v43  ;;  %v931_v32 = vld [vmem:[#allocation2 + $0xc0] sm:$0xff] (!%p1326_p13) }
 0x15b   : > { %886 = vst [vmem:[#allocation2 + $0x78] sm:$0xff] %v854_v19  ;;  %902 = vst [vmem:[#allocation2 + $0xf8] sm:$0xff] %v870_v20  ;;  %v916_v44 = vld [vmem:[#allocation2 + $0x48] sm:$0xff] (!%p1326_p13)  ;;  %v957_v1 = vadd.f32 (!%p1326_p13), %v1910_v27, %v918_v50  ;;  %v988_v7 = vmax.f32 (!%p1326_p13), %v956_v60, 0.0  ;;  %v926_v14 = vld [vmem:[#allocation2 + $0x98] sm:$0xff] (!%p1326_p13)  ;;  %v962_v17 = vadd.f32 (!%p1326_p13), %v1910_v27, %v923_v3  ;;  %v963_v18 = vadd.f32 (!%p1326_p13), %v1910_v27, %v924_v4 }
 0x15c   : > { %884 = vst [vmem:[#allocation2 + $0x68] sm:$0xff] %v852_v23  ;;  %900 = vst [vmem:[#allocation2 + $0xe8] sm:$0xff] %v868_v24  ;;  %v955_v59 = vadd.f32 (!%p1326_p13), %v1910_v27, %v916_v44  ;;  %v986_v0 = vmax.f32 (!%p1326_p13), %v954_v55, 0.0  ;;  %v927_v19 = vld [vmem:[#allocation2 + $0xa0] sm:$0xff] (!%p1326_p13)  ;;  %v928_v20 = vld [vmem:[#allocation2 + $0xa8] sm:$0xff] (!%p1326_p13)  ;;  %v964_v24 = vadd.f32 (!%p1326_p13), %v1910_v27, %v925_v9  ;;  %v965_v31 = vadd.f32 (!%p1326_p13), %v1910_v27, %v926_v14 }
 0x15d   : > { %1476 = vst [vmem:[%s1877_s29 + $0x10] sm:$0xff] %v1408_v63   ;;  %v989_v10 = vmax.f32 %v957_v1, 0.0  ;;  %1477 = vst [vmem:[%s1877_s29 + $0x18] sm:$0xff] %v1413_v5   ;;  %v994_v29 = vmax.f32 %v962_v17, 0.0  ;;  %v995_v30 = vmax.f32 %v963_v18, 0.0  ;;  %v932_v33 = vld [vmem:[#allocation2 + $0xc8] sm:$0xff]  ;;  %v966_v36 = vadd.f32 %v1910_v27, %v927_v19 }
 0x15e   : > { %v987_v6 = vmax.f32 %v955_v59, 0.0  ;;  %v996_v35 = vmax.f32 %v964_v24, 0.0  ;;  %v967_v37 = vadd.f32 %v1910_v27, %v928_v20  ;;  %v933_v38 = vld [vmem:[#allocation2 + $0xd0] sm:$0xff]  ;;  %v997_v40 = vmax.f32 %v965_v31, 0.0  ;;  %v934_v43 = vld [vmem:[#allocation2 + $0xd8] sm:$0xff] }
 0x15f   : > { %v1423_v21 = vpack.c.bf16 %v989_v10, %v988_v7  ;;  %v1438_v39 = vpack.c.bf16 %v995_v30, %v994_v29  ;;  %v998_v44 = vmax.f32 %v966_v36, 0.0  ;;  %v970_v46 = vadd.f32 %v1910_v27, %v931_v32 }
 0x160   : > { %v921_v61 = vld [vmem:[#allocation2 + $0x70] sm:$0xff]  ;;  %v1418_v15 = vpack.c.bf16 %v987_v6, %v986_v0  ;;  %v999_v45 = vmax.f32 %v967_v37, 0.0  ;;  %v971_v47 = vadd.f32 %v1910_v27, %v932_v33  ;;  %v1443_v50 = vpack.c.bf16 %v997_v40, %v996_v35 }
 0x161   : > { %v919_v51 = vld [vmem:[#allocation2 + $0x60] sm:$0xff]  ;;  %v960_v12 = vadd.f32 %v1910_v27, %v921_v61  ;;  %1479 = vst [vmem:[%s1877_s29 + $0x28] sm:$0xff] %v1423_v21   ;;  %1482 = vst [vmem:[%s1877_s29 + $0x40] sm:$0xff] %v1438_v39   ;;  %v972_v53 = vadd.f32 %v1910_v27, %v933_v38  ;;  %v937_v54 = vld [vmem:[#allocation2 + $0xf0] sm:$0xff]  ;;  %v1002_v57 = vmax.f32 %v970_v46, 0.0  ;;  %v973_v59 = vadd.f32 %v1910_v27, %v934_v43 }
 0x162   : > { %v922_v62 = vld [vmem:[#allocation2 + $0x78] sm:$0xff]  ;;  %v958_v2 = vadd.f32 %v1910_v27, %v919_v51  ;;  %1478 = vst [vmem:[%s1877_s29 + $0x20] sm:$0xff] %v1418_v15   ;;  %v935_v48 = vld [vmem:[#allocation2 + $0xe0] sm:$0xff]  ;;  %v1000_v51 = vmax.f32 %v968_v41, 0.0  ;;  %v1003_v58 = vmax.f32 %v971_v47, 0.0  ;;  %1483 = vst [vmem:[%s1877_s29 + $0x48] sm:$0xff] %v1443_v50  }
 0x163   : > { %v920_v56 = vld [vmem:[#allocation2 + $0x68] sm:$0xff]  ;;  %v961_v13 = vadd.f32 %v1910_v27, %v922_v62  ;;  %v992_v22 = vmax.f32 %v960_v12, 0.0  ;;  %v938_v55 = vld [vmem:[#allocation2 + $0xf8] sm:$0xff]  ;;  %v1004_v61 = vmax.f32 %v972_v53, 0.0  ;;  %v974_v62 = vadd.f32 %v1910_v27, %v935_v48 }
 0x164   : > { %v959_v8 = vadd.f32 %v1910_v27, %v920_v56  ;;  %v990_v11 = vmax.f32 %v958_v2, 0.0  ;;  %v936_v49 = vld [vmem:[#allocation2 + $0xe8] sm:$0xff]  ;;  %v1448_v56 = vpack.c.bf16 %v999_v45, %v998_v44  ;;  %v1453_v60 = vpack.c.bf16 %v1001_v52, %v1000_v51 }
 0x165   : > { %v993_v23 = vmax.f32 %v961_v13, 0.0  ;;  %v975_v63 = vadd.f32 %v1910_v27, %v936_v49  ;;  %v1458_v0 = vpack.c.bf16 %v1003_v58, %v1002_v57  ;;  %v1005_v1 = vmax.f32 %v973_v59, 0.0 }
 0x166   : > { %v991_v16 = vmax.f32 %v959_v8, 0.0  ;;  %1484 = vst [vmem:[%s1877_s29 + $0x50] sm:$0xff] %v1448_v56   ;;  %v976_v2 = vadd.f32 %v1910_v27, %v937_v54  ;;  %v977_v3 = vadd.f32 %v1910_v27, %v938_v55  ;;  %1485 = vst [vmem:[%s1877_s29 + $0x58] sm:$0xff] %v1453_v60   ;;  %v1006_v4 = vmax.f32 %v974_v62, 0.0 }
 0x167   : > { %v1433_v34 = vpack.c.bf16 %v993_v23, %v992_v22  ;;  %v1007_v5 = vmax.f32 %v975_v63, 0.0  ;;  %1486 = vst [vmem:[%s1877_s29 + $0x60] sm:$0xff] %v1458_v0   ;;  %v1463_v6 = vpack.c.bf16 %v1005_v1, %v1004_v61 }
 0x168   : > { %v1428_v28 = vpack.c.bf16 %v991_v16, %v990_v11  ;;  %v1008_v7 = vmax.f32 %v976_v2, 0.0  ;;  %v1009_v8 = vmax.f32 %v977_v3, 0.0 }
 0x169   : > { %1481 = vst [vmem:[%s1877_s29 + $0x38] sm:$0xff] %v1433_v34   ;;  %v1468_v9 = vpack.c.bf16 %v1007_v5, %v1006_v4  ;;  %1487 = vst [vmem:[%s1877_s29 + $0x68] sm:$0xff] %v1463_v6  }
 0x16a   : > { %1480 = vst [vmem:[%s1877_s29 + $0x30] sm:$0xff] %v1428_v28   ;;  %v1473_v10 = vpack.c.bf16 %v1009_v8, %v1008_v7 }
 0x16b   : > { %1488 = vst [vmem:[%s1877_s29 + $0x70] sm:$0xff] %v1468_v9  }
 0x16c   : > { %1489 = vst [vmem:[%s1877_s29 + $0x78] sm:$0xff] %v1473_v10  }
 0x16d PF: > { %s13_s18 = sadd.s32 1, %s1713_s18   ;;  %s1985_s12 = smov %s1693_s13 }
 0x16e   : > { %p10_p0 = scmp.ge.s32.totalorder %s13_s18, 6   ;;  %s1986_s13 = smov %s1787_s25 }
 0x16f   : > { %s1987_s14 = smov %s1705_s16  ;;  %s1988_s15 = smov %s1709_s17 }
 0x170   : > { %s1989_s16 = smov %s1992_s19  ;;  %s1990_s17 = smov %s1996_s20 }
 0x171   :  { %12 = sbr.rel (!%p10_p0) target bundleno = 4 (0x4), region = 122 }

// kernel: embedder_forward.22
= control target key start
LH: loop header
LB: loop body
LE: loop exit
PB: predicated region body
PF: predicated region fallthrough
CT: control target
= control target key end

     0   :  { %s980_s12 = smov 0   ;;  %s982_s13 = smov 0   ;;  %s1099_s0 = inlined_call_operand.vmem [shape: bf16[128,640], index: 0, kind: input, shape index: {}]   ;;  %s1100_s1 = inlined_call_operand.vmem [shape: bf16[640,128], index: 1, kind: input, shape index: {}]   ;;  %s1101_s2 = inlined_call_operand.vmem [shape: f32[1,128], index: 2, kind: input, shape index: {}]   ;;  %s1102_s3 = inlined_call_operand.vmem [shape: bf16[128,128], index: 3, kind: output, shape index: {}]  }
   0x1   :  { %s984_s14 = smov 0   ;;  %s986_s15 = smov 0  }
   0x2   :  { %s988_s16 = smov 0   ;;  %s990_s17 = smov 0  }
   0x3   :  { %s992_s18 = smov 0  }
   0x4 LB: > { %s25_s19 = sadd.s32 1, %s949_s16  ;;  %s32_s20 = sadd.s32 1, %s953_s17  ;;  %s957_s18 = sphi %s992_s18, %s13_s18   ;;  %s953_s17 = sphi %s990_s17, %s1108_s17   ;;  %s949_s16 = sphi %s988_s16, %s1107_s16   ;;  %s945_s15 = sphi %s986_s15, %s1106_s15   ;;  %s941_s14 = sphi %s984_s14, %s1105_s14   ;;  %s937_s13 = sphi %s982_s13, %s1104_s13   ;;  %s933_s12 = sphi %s980_s12, %s1103_s12  }
   0x5   : > { %p26_p0 = scmp.ge.s32.totalorder %s25_s19, 5  ;;  %p48_p1 = scmp.ne.s32.totalorder %s937_s13, %s933_s12 }
   0x6   : > { %p49_p2 = scmp.eq.s32.totalorder %s957_s18, 0  ;;  %s41_s24 = sadd.s32 1, %s937_s13 }
   0x7   : > { %s1110_s19 = smov (%p26_p0, %s25_s19), 0  ;;  %s1112_s20 = smov (!%p26_p0, %s32_s20), %s953_s17 }
   0x8   : > { %p50_p3 = por %p49_p2, %p48_p1  ;;  %p34_p4 = scmp.ge.s32.totalorder %s1112_s20, 2 }
   0x9   : > { %s37_s21 = ssub.s32 %s949_s16, %s1110_s19  ;;  %p714_p6 = scmp.ge.s32.totalorder %s957_s18, 10 }
   0xa   : > { %s1114_s20 = smov (%p34_p4, %s1112_s20), 0 }
   0xb   : > { %s36_s22 = ssub.s32 %s953_s17, %s1114_s20  ;;  %162 = sbr.rel (%p714_p6) target bundleno = 30 (0x1e), region = 20 }
   0xc   : > { %s38_s23 = sor.u32 %s37_s21, %s36_s22 }
   0xd   : > { %p39_p5 = scmp.eq.s32.totalorder %s38_s23, 0 }
   0xf   : > { %s1031_s25 = scalar_select %p39_p5, %s937_s13, %s41_s24  }
  0x12   : > { %165 = sbr.rel (!%p50_p3) target bundleno = 30 (0x1e), region = 24  ;;  %s167_s26 = sand.u32 (%p50_p3), 1, %s937_s13  }
  0x13   : > { %s833_s27 = smul.u32 (%p50_p3), 40, %s953_s17  ;;  %s715_s28 = sshll.u32 (%p50_p3), %s167_s26, 5 }
  0x14   : > { %s169_s7 = scalar_lea.vmem (%p50_p3), [#allocation3], %s715_s28 }
  0x15   : > { %s172_s29 = sadd.s32 (%p50_p3), %s949_s16, %s833_s27 }
  0x16   : > { %s718_s30 = sshll.u32 (%p50_p3), %s172_s29, 2 }
  0x17   : > { %s174_s6 = scalar_lea.vmem (%p50_p3), %s1099_s0, %s718_s30 }
  0x18   : > { %v190_v0 = vld [vmem:[%s174_s6] sm:$0xf] (%p50_p3)  ;;  %v192_v1 = vld [vmem:[%s174_s6 + $0x14] sm:$0xf] (%p50_p3)  ;;  %v194_v2 = vld [vmem:[%s174_s6 + $0x28] sm:$0xf] (%p50_p3) }
  0x19   : > { %191 = vst [vmem:[%s169_s7] sm:$0xf] %v190_v0  ;;  %193 = vst [vmem:[%s169_s7 + $0x4] sm:$0xf] %v192_v1  ;;  %v196_v3 = vld [vmem:[%s174_s6 + $0x3c] sm:$0xf] }
  0x1a   : > { %195 = vst [vmem:[%s169_s7 + $0x8] sm:$0xf] %v194_v2  ;;  %v198_v4 = vld [vmem:[%s174_s6 + $0x50] sm:$0xf]  ;;  %v200_v5 = vld [vmem:[%s174_s6 + $0x64] sm:$0xf] }
  0x1b   : > { %197 = vst [vmem:[%s169_s7 + $0xc] sm:$0xf] %v196_v3  ;;  %199 = vst [vmem:[%s169_s7 + $0x10] sm:$0xf] %v198_v4  ;;  %v202_v6 = vld [vmem:[%s174_s6 + $0x78] sm:$0xf] }
  0x1c   : > { %201 = vst [vmem:[%s169_s7 + $0x14] sm:$0xf] %v200_v5  ;;  %v204_v7 = vld [vmem:[%s174_s6 + $0x8c] sm:$0xf]  ;;  %203 = vst [vmem:[%s169_s7 + $0x18] sm:$0xf] %v202_v6 }
  0x1d   : > { %205 = vst [vmem:[%s169_s7 + $0x1c] sm:$0xf] %v204_v7 }
  0x1e PF: > { %p719_p7 = scmp.ge.s32.totalorder %s957_s18, 1  ;;  %p255_p8 = scmp.lt.s32.totalorder %s957_s18, 11 }
  0x20   : > { %p256_p9 = pnand %p719_p7, %p255_p8 }
  0x21   : > { %s262_s8 = sand.u32 (!%p256_p9), 1, %s933_s12   ;;  %s721_s9 = sshll.u32 (!%p256_p9), %s941_s14, 4 }
  0x22   : > { %259 = sbr.rel (%p256_p9) target bundleno = 317 (0x13d), region = 69  ;;  %s720_s10 = sshll.u32 (!%p256_p9), %s262_s8, 5 }
  0x23   : > { %p301_p10 = scmp.lt.s32.totalorder (!%p256_p9), %s721_s9, 79  ;;  %s723_s11 = sshll.u32 (!%p256_p9), %s945_s15, 3 }
  0x24   : > { %p313_p11 = scmp.lt.s32.totalorder (!%p256_p9), %s723_s11, 15  ;;  %s1055_s12 = scalar_lea.vmem (!%p256_p9), [#allocation3], %s720_s10 }
  0x25   : > { %p725_p12 = scmp.ne.s32.totalorder (!%p256_p9), %s941_s14, 0 }
  0x29   : > { %s1116_s9 = smov (!%p301_p10, %s721_s9), 79  ;;  %s1118_s11 = smov (!%p313_p11, %s723_s11), 15 }
  0x2a   : > { %s722_s21 = sshll.u32 %s1116_s9, 2  ;;  %s724_s26 = sshll.u32 %s1118_s11, 2  ;;  %v959_v8 = vmov (!%p725_p12), 0.0  }
  0x2b   : > { %s1048_s24 = scalar_lea.vmem %s1100_s1, %s722_s21  ;;  %s1053_s29 = scalar_lea.vmem %s1102_s3, %s724_s26  ;;  %326 = vst [vmem:[#allocation2] sm:$0xff] (!%p725_p12), %v959_v8  ;;  %327 = vst [vmem:[#allocation2 + $0x8] sm:$0xff] (!%p725_p12), %v959_v8 }
  0x2c   : > { %325 = sbr.rel (%p725_p12) target bundleno = 51 (0x33), region = 77  ;;  %328 = vst [vmem:[#allocation2 + $0x10] sm:$0xff] (!%p725_p12), %v959_v8  ;;  %329 = vst [vmem:[#allocation2 + $0x18] sm:$0xff] (!%p725_p12), %v959_v8 }
  0x2d   : > { %330 = vst [vmem:[#allocation2 + $0x20] sm:$0xff] (!%p725_p12), %v959_v8  ;;  %331 = vst [vmem:[#allocation2 + $0x28] sm:$0xff] (!%p725_p12), %v959_v8 }
  0x2e   : > { %332 = vst [vmem:[#allocation2 + $0x30] sm:$0xff] (!%p725_p12), %v959_v8  ;;  %333 = vst [vmem:[#allocation2 + $0x38] sm:$0xff] (!%p725_p12), %v959_v8 }
  0x33 PF: > { %v891_v9 = vld [vmem:[%s1048_s24] sm:$0xff]   ;;  %v892_v10 = vld [vmem:[%s1048_s24 + $0x8] sm:$0xff]   ;;  %v893_v11 = vld [vmem:[%s1048_s24 + $0x10] sm:$0xff]   ;;  %p738_p13 = scmp.ne.s32.totalorder %s941_s14, 4 }
  0x34   : > { %793 = vmatprep.subr.bf16.mxu0 %v891_v9  ;;  %817 = vmatprep.subr.bf16.mxu1 %v891_v9  ;;  %v894_v12 = vld [vmem:[%s1048_s24 + $0x18] sm:$0xff]   ;;  %v899_v13 = vld [vmem:[%s1055_s12] sm:$0xff]   ;;  %v900_v14 = vld [vmem:[%s1055_s12 + $0x10] sm:$0xff]  }
  0x35   : > { %794 = vmatpush3.bf16.msra.mxu0 %v891_v9  ;;  %825 = vmatpush3.bf16.msra.mxu1 %v891_v9  ;;  %v895_v15 = vld [vmem:[%s1048_s24 + $0x20] sm:$0xff]   ;;  %v896_v16 = vld [vmem:[%s1048_s24 + $0x28] sm:$0xff]   ;;  %v897_v17 = vld [vmem:[%s1048_s24 + $0x30] sm:$0xff]  }
  0x36   : > { %795 = vmatprep.subr.bf16.mxu0 %v892_v10  ;;  %818 = vmatprep.subr.bf16.mxu1 %v892_v10  ;;  %v898_v18 = vld [vmem:[%s1048_s24 + $0x38] sm:$0xff]   ;;  %v901_v19 = vld [vmem:[%s1055_s12 + $0x8] sm:$0xff]   ;;  %v336_v21 = vld [vmem:[#allocation2 + $0x10] sm:$0xff] }
  0x37   : > { %809 = vmatprep.mubr.bf16.mxu0 %v899_v13  ;;  %813 = vmatprep.mubr.bf16.mxu1 %v900_v14  ;;  %v902_v20 = vld [vmem:[%s1055_s12 + $0x18] sm:$0xff]   ;;  %v340_v22 = vld [vmem:[#allocation2 + $0x30] sm:$0xff]  ;;  %v334_v23 = vld [vmem:[#allocation2] sm:$0xff] }
  0x38   : > { %v338_v24 = vld [vmem:[#allocation2 + $0x20] sm:$0xff]  ;;  %v337_v27 = vld [vmem:[#allocation2 + $0x18] sm:$0xff]  ;;  %v335_v33 = vld [vmem:[#allocation2 + $0x8] sm:$0xff] }
  0x39   : > { %796 = vmatpush3.bf16.msra.mxu0 %v892_v10  ;;  %826 = vmatpush3.bf16.msra.mxu1 %v892_v10  ;;  %v341_v28 = vld [vmem:[#allocation2 + $0x38] sm:$0xff]  ;;  %v339_v34 = vld [vmem:[#allocation2 + $0x28] sm:$0xff]  ;;  %v739_v47 = vld [vmem:[%s1101_s2] ss:$0 sm:$0xff] (!%p738_p13) }
  0x3a   : > { %797 = vmatprep.subr.bf16.mxu0 %v893_v11  ;;  %819 = vmatprep.subr.bf16.mxu1 %v893_v11 }
  0x3d   : > { %798 = vmatpush3.bf16.msra.mxu0 %v893_v11  ;;  %827 = vmatpush3.bf16.msra.mxu1 %v893_v11 }
  0x3e   : > { %799 = vmatprep.subr.bf16.mxu0 %v894_v12  ;;  %820 = vmatprep.subr.bf16.mxu1 %v894_v12 }
  0x41   : > { %800 = vmatpush3.bf16.msra.mxu0 %v894_v12  ;;  %828 = vmatpush3.bf16.msra.mxu1 %v894_v12 }
  0x42   : > { %801 = vmatprep.subr.bf16.mxu0 %v895_v15  ;;  %821 = vmatprep.subr.bf16.mxu1 %v895_v15 }
  0x45   : > { %802 = vmatpush3.bf16.msra.mxu0 %v895_v15  ;;  %829 = vmatpush3.bf16.msra.mxu1 %v895_v15 }
  0x46   : > { %803 = vmatprep.subr.bf16.mxu0 %v896_v16  ;;  %822 = vmatprep.subr.bf16.mxu1 %v896_v16 }
  0x49   : > { %804 = vmatpush3.bf16.msra.mxu0 %v896_v16  ;;  %830 = vmatpush3.bf16.msra.mxu1 %v896_v16 }
  0x4a   : > { %805 = vmatprep.subr.bf16.mxu0 %v897_v17  ;;  %823 = vmatprep.subr.bf16.mxu1 %v897_v17 }
  0x4d   : > { %806 = vmatpush3.bf16.msra.mxu0 %v897_v17  ;;  %831 = vmatpush3.bf16.msra.mxu1 %v897_v17 }
  0x4e   : > { %807 = vmatprep.subr.bf16.mxu0 %v898_v18  ;;  %824 = vmatprep.subr.bf16.mxu1 %v898_v18 }
  0x51   : > { %808 = vmatpush3.bf16.msra.mxu0 %v898_v18  ;;  %832 = vmatpush3.bf16.msra.mxu1 %v898_v18 }
  0x54   : > { %810 = vmatmul.mubr.bf16.vlgmr.msra.gmra.mrb[0].mxu0 %v901_v19  ;;  %814 = vmatmul.mubr.bf16.vlgmr.msra.gmra.mrb[0].mxu1 %v902_v20 }
 0x127   : > { %v811_v25 = vpop.f32.mrb[0].mxu0  ;;  %v815_v26 = vpop.f32.mrb[0].mxu1  ;;  %522 = sbr.rel (%p738_p13) target bundleno = 317 (0x13d), region = 81 }
 0x128   : > { %v505_v29 = vadd.f32 %v811_v25, %v336_v21  ;;  %v509_v30 = vadd.f32 %v815_v26, %v340_v22  ;;  %v472_v31 = vpop.f32.mrb[1].mxu0  ;;  %v488_v32 = vpop.f32.mrb[1].mxu1 }
 0x129   : > { %v503_v35 = vadd.f32 %v472_v31, %v334_v23  ;;  %v507_v36 = vadd.f32 %v488_v32, %v338_v24  ;;  %v812_v37 = vpop.f32.mrb[2].mxu0  ;;  %v816_v38 = vpop.f32.mrb[2].mxu1 }
 0x12a   : > { %513 = vst [vmem:[#allocation2 + $0x10] sm:$0xff] %v505_v29  ;;  %517 = vst [vmem:[#allocation2 + $0x30] sm:$0xff] %v509_v30  ;;  %v506_v39 = vadd.f32 %v812_v37, %v337_v27  ;;  %v510_v40 = vadd.f32 %v816_v38, %v341_v28  ;;  %v475_v41 = vpop.f32.mrb[3].mxu0  ;;  %v491_v42 = vpop.f32.mrb[3].mxu1 }
 0x12b   : > { %511 = vst [vmem:[#allocation2] sm:$0xff] %v503_v35  ;;  %515 = vst [vmem:[#allocation2 + $0x20] sm:$0xff] %v507_v36  ;;  %v504_v43 = vadd.f32 %v475_v41, %v335_v33  ;;  %v508_v44 = vadd.f32 %v491_v42, %v339_v34 }
 0x12c   : > { %514 = vst [vmem:[#allocation2 + $0x18] sm:$0xff] %v506_v39  ;;  %518 = vst [vmem:[#allocation2 + $0x38] sm:$0xff] %v510_v40 }
 0x12d   : > { %512 = vst [vmem:[#allocation2 + $0x8] sm:$0xff] %v504_v43  ;;  %516 = vst [vmem:[#allocation2 + $0x28] sm:$0xff] %v508_v44 }
 0x131   : > { %v525_v50 = vld [vmem:[#allocation2 + $0x10] sm:$0xff] }
 0x132   : > { %v523_v45 = vld [vmem:[#allocation2] sm:$0xff]  ;;  %v540_v53 = vadd.f32 %v739_v47, %v525_v50  ;;  %v529_v57 = vld [vmem:[#allocation2 + $0x30] sm:$0xff] }
 0x133   : > { %v538_v48 = vadd.f32 %v739_v47, %v523_v45  ;;  %v526_v51 = vld [vmem:[#allocation2 + $0x18] sm:$0xff]  ;;  %v527_v52 = vld [vmem:[#allocation2 + $0x20] sm:$0xff]  ;;  %v544_v62 = vadd.f32 %v739_v47, %v529_v57 }
 0x134   : > { %v524_v46 = vld [vmem:[#allocation2 + $0x8] sm:$0xff]  ;;  %v541_v54 = vadd.f32 %v739_v47, %v526_v51  ;;  %v542_v56 = vadd.f32 %v739_v47, %v527_v52  ;;  %v530_v58 = vld [vmem:[#allocation2 + $0x38] sm:$0xff]  ;;  %v548_v63 = vmax.f32 %v540_v53, 0.0 }
 0x135   : > { %v539_v49 = vadd.f32 %v739_v47, %v524_v46  ;;  %v528_v55 = vld [vmem:[#allocation2 + $0x28] sm:$0xff]  ;;  %v546_v59 = vmax.f32 %v538_v48, 0.0  ;;  %v545_v2 = vadd.f32 %v739_v47, %v530_v58  ;;  %v552_v5 = vmax.f32 %v544_v62, 0.0 }
 0x136   : > { %v543_v61 = vadd.f32 %v739_v47, %v528_v55  ;;  %v549_v0 = vmax.f32 %v541_v54, 0.0  ;;  %v550_v1 = vmax.f32 %v542_v56, 0.0 }
 0x137   : > { %v547_v60 = vmax.f32 %v539_v49, 0.0  ;;  %v553_v7 = vmax.f32 %v545_v2, 0.0 }
 0x138   : > { %v551_v4 = vmax.f32 %v543_v61, 0.0  ;;  %v766_v6 = vpack.c.bf16 %v549_v0, %v548_v63 }
 0x139   : > { %v761_v3 = vpack.c.bf16 %v547_v60, %v546_v59  ;;  %v776_v9 = vpack.c.bf16 %v553_v7, %v552_v5 }
 0x13a   : > { %v771_v8 = vpack.c.bf16 %v551_v4, %v550_v1  ;;  %778 = vst [vmem:[%s1053_s29 + $0x8] sm:$0xff] %v766_v6  }
 0x13b   : > { %762 = vst [vmem:[%s1053_s29] sm:$0xff] %v761_v3   ;;  %780 = vst [vmem:[%s1053_s29 + $0x18] sm:$0xff] %v776_v9  }
 0x13c   : > { %779 = vst [vmem:[%s1053_s29 + $0x10] sm:$0xff] %v771_v8  }
 0x13d PF: > { %s13_s18 = sadd.s32 1, %s957_s18   ;;  %s1103_s12 = smov %s937_s13 }
 0x13e   : > { %p10_p0 = scmp.ge.s32.totalorder %s13_s18, 12   ;;  %s1104_s13 = smov %s1031_s25 }
 0x13f   : > { %s1105_s14 = smov %s949_s16  ;;  %s1106_s15 = smov %s953_s17 }
 0x140   : > { %s1107_s16 = smov %s1110_s19  ;;  %s1108_s17 = smov %s1114_s20 }
 0x141   :  { %12 = sbr.rel (!%p10_p0) target bundleno = 4 (0x4), region = 122 }

// kernel: embedder_forward.23
= control target key start
LH: loop header
LB: loop body
LE: loop exit
PB: predicated region body
PF: predicated region fallthrough
CT: control target
= control target key end

     0   :  { %s1105_s15 = smov 0   ;;  %s1107_s16 = smov 0   ;;  %s1233_s0 = inlined_call_operand.vmem [shape: bf16[128,640], index: 0, kind: input, shape index: {}]   ;;  %s1234_s1 = inlined_call_operand.vmem [shape: bf16[640,128], index: 1, kind: input, shape index: {}]   ;;  %s1235_s2 = inlined_call_operand.vmem [shape: f32[1,128], index: 2, kind: input, shape index: {}]   ;;  %s1236_s3 = inlined_call_operand.vmem [shape: bf16[128,128], index: 3, kind: input, shape index: {}]   ;;  %s1237_s4 = inlined_call_operand.vmem [shape: bf16[128,128], index: 4, kind: output, shape index: {}]  }
   0x1   :  { %s1109_s17 = smov 0   ;;  %s1111_s18 = smov 0  }
   0x2   :  { %s1113_s19 = smov 0   ;;  %s1115_s20 = smov 0  }
   0x3   :  { %s1117_s21 = smov 0  }
   0x4 LB: > { %s26_s22 = sadd.s32 1, %s1069_s19  ;;  %s33_s23 = sadd.s32 1, %s1073_s20  ;;  %s1077_s21 = sphi %s1117_s21, %s14_s21   ;;  %s1073_s20 = sphi %s1115_s20, %s1243_s20   ;;  %s1069_s19 = sphi %s1113_s19, %s1242_s19   ;;  %s1065_s18 = sphi %s1111_s18, %s1241_s18   ;;  %s1061_s17 = sphi %s1109_s17, %s1240_s17   ;;  %s1057_s16 = sphi %s1107_s16, %s1239_s16   ;;  %s1053_s15 = sphi %s1105_s15, %s1238_s15  }
   0x5   : > { %p27_p0 = scmp.ge.s32.totalorder %s26_s22, 5  ;;  %p49_p1 = scmp.ne.s32.totalorder %s1057_s16, %s1053_s15 }
   0x6   : > { %p50_p2 = scmp.eq.s32.totalorder %s1077_s21, 0  ;;  %s42_s27 = sadd.s32 1, %s1057_s16 }
   0x7   : > { %s1245_s22 = smov (%p27_p0, %s26_s22), 0  ;;  %s1247_s23 = smov (!%p27_p0, %s33_s23), %s1073_s20 }
   0x8   : > { %p51_p3 = por %p50_p2, %p49_p1  ;;  %p35_p4 = scmp.ge.s32.totalorder %s1247_s23, 2 }
   0x9   : > { %s38_s24 = ssub.s32 %s1069_s19, %s1245_s22  ;;  %p813_p6 = scmp.ge.s32.totalorder %s1077_s21, 10 }
   0xa   : > { %s1249_s23 = smov (%p35_p4, %s1247_s23), 0 }
   0xb   : > { %s37_s25 = ssub.s32 %s1073_s20, %s1249_s23  ;;  %191 = sbr.rel (%p813_p6) target bundleno = 30 (0x1e), region = 20 }
   0xc   : > { %s39_s26 = sor.u32 %s38_s24, %s37_s25 }
   0xd   : > { %p40_p5 = scmp.eq.s32.totalorder %s39_s26, 0 }
   0xf   : > { %s1156_s28 = scalar_select %p40_p5, %s1057_s16, %s42_s27  }
  0x12   : > { %194 = sbr.rel (!%p51_p3) target bundleno = 30 (0x1e), region = 24  ;;  %s196_s29 = sand.u32 (%p51_p3), 1, %s1057_s16  }
  0x13   : > { %s953_s30 = smul.u32 (%p51_p3), 40, %s1073_s20  ;;  %s814_s5 = sshll.u32 (%p51_p3), %s196_s29, 5 }
  0x14   : > { %s198_s11 = scalar_lea.vmem (%p51_p3), [#allocation3], %s814_s5 }
  0x15   : > { %s201_s6 = sadd.s32 (%p51_p3), %s1069_s19, %s953_s30 }
  0x16   : > { %s817_s7 = sshll.u32 (%p51_p3), %s201_s6, 2 }
  0x17   : > { %s203_s10 = scalar_lea.vmem (%p51_p3), %s1233_s0, %s817_s7 }
  0x18   : > { %v219_v0 = vld [vmem:[%s203_s10] sm:$0xf] (%p51_p3)  ;;  %v221_v1 = vld [vmem:[%s203_s10 + $0x14] sm:$0xf] (%p51_p3)  ;;  %v223_v2 = vld [vmem:[%s203_s10 + $0x28] sm:$0xf] (%p51_p3) }
  0x19   : > { %220 = vst [vmem:[%s198_s11] sm:$0xf] %v219_v0  ;;  %222 = vst [vmem:[%s198_s11 + $0x4] sm:$0xf] %v221_v1  ;;  %v225_v3 = vld [vmem:[%s203_s10 + $0x3c] sm:$0xf] }
  0x1a   : > { %224 = vst [vmem:[%s198_s11 + $0x8] sm:$0xf] %v223_v2  ;;  %v227_v4 = vld [vmem:[%s203_s10 + $0x50] sm:$0xf]  ;;  %v229_v5 = vld [vmem:[%s203_s10 + $0x64] sm:$0xf] }
  0x1b   : > { %226 = vst [vmem:[%s198_s11 + $0xc] sm:$0xf] %v225_v3  ;;  %228 = vst [vmem:[%s198_s11 + $0x10] sm:$0xf] %v227_v4  ;;  %v231_v6 = vld [vmem:[%s203_s10 + $0x78] sm:$0xf] }
  0x1c   : > { %230 = vst [vmem:[%s198_s11 + $0x14] sm:$0xf] %v229_v5  ;;  %v233_v7 = vld [vmem:[%s203_s10 + $0x8c] sm:$0xf]  ;;  %232 = vst [vmem:[%s198_s11 + $0x18] sm:$0xf] %v231_v6 }
  0x1d   : > { %234 = vst [vmem:[%s198_s11 + $0x1c] sm:$0xf] %v233_v7 }
  0x1e PF: > { %p818_p7 = scmp.ge.s32.totalorder %s1077_s21, 1  ;;  %p296_p8 = scmp.lt.s32.totalorder %s1077_s21, 11 }
  0x20   : > { %p297_p9 = pnand %p818_p7, %p296_p8 }
  0x21   : > { %s303_s12 = sand.u32 (!%p297_p9), 1, %s1053_s15   ;;  %s820_s13 = sshll.u32 (!%p297_p9), %s1061_s17, 4 }
  0x22   : > { %300 = sbr.rel (%p297_p9) target bundleno = 319 (0x13f), region = 73  ;;  %s819_s14 = sshll.u32 (!%p297_p9), %s303_s12, 5 }
  0x23   : > { %p352_p10 = scmp.lt.s32.totalorder (!%p297_p9), %s820_s13, 79  ;;  %s822_s24 = sshll.u32 (!%p297_p9), %s1065_s18, 3 }
  0x24   : > { %p364_p11 = scmp.lt.s32.totalorder (!%p297_p9), %s822_s24, 15  ;;  %s1185_s18 = scalar_lea.vmem (!%p297_p9), [#allocation3], %s819_s14 }
  0x25   : > { %p826_p12 = scmp.ne.s32.totalorder (!%p297_p9), %s1061_s17, 0 }
  0x29   : > { %s1251_s13 = smov (!%p352_p10, %s820_s13), 79  ;;  %s1253_s24 = smov (!%p364_p11, %s822_s24), 15 }
  0x2a   : > { %s821_s25 = sshll.u32 %s1251_s13, 2  ;;  %s823_s30 = sshll.u32 %s1253_s24, 2  ;;  %v1079_v8 = vmov (!%p826_p12), 0.0  }
  0x2b   : > { %s1173_s29 = scalar_lea.vmem %s1234_s1, %s821_s25  ;;  %s1178_s7 = scalar_lea.vmem %s1236_s3, %s823_s30  ;;  %386 = vst [vmem:[#allocation2] sm:$0xff] (!%p826_p12), %v1079_v8  ;;  %387 = vst [vmem:[#allocation2 + $0x8] sm:$0xff] (!%p826_p12), %v1079_v8 }
  0x2c   : > { %s1183_s9 = scalar_lea.vmem %s1237_s4, %s823_s30  ;;  %385 = sbr.rel (%p826_p12) target bundleno = 51 (0x33), region = 81  ;;  %388 = vst [vmem:[#allocation2 + $0x10] sm:$0xff] (!%p826_p12), %v1079_v8  ;;  %389 = vst [vmem:[#allocation2 + $0x18] sm:$0xff] (!%p826_p12), %v1079_v8 }
  0x2d   : > { %390 = vst [vmem:[#allocation2 + $0x20] sm:$0xff] (!%p826_p12), %v1079_v8  ;;  %391 = vst [vmem:[#allocation2 + $0x28] sm:$0xff] (!%p826_p12), %v1079_v8 }
  0x2e   : > { %392 = vst [vmem:[#allocation2 + $0x30] sm:$0xff] (!%p826_p12), %v1079_v8  ;;  %393 = vst [vmem:[#allocation2 + $0x38] sm:$0xff] (!%p826_p12), %v1079_v8 }
  0x33 PF: > { %v1011_v9 = vld [vmem:[%s1173_s29] sm:$0xff]   ;;  %v1012_v10 = vld [vmem:[%s1173_s29 + $0x8] sm:$0xff]   ;;  %v1013_v11 = vld [vmem:[%s1173_s29 + $0x10] sm:$0xff]   ;;  %p839_p13 = scmp.ne.s32.totalorder %s1061_s17, 4 }
  0x34   : > { %913 = vmatprep.subr.bf16.mxu0 %v1011_v9  ;;  %937 = vmatprep.subr.bf16.mxu1 %v1011_v9  ;;  %v1014_v12 = vld [vmem:[%s1173_s29 + $0x18] sm:$0xff]   ;;  %v1019_v13 = vld [vmem:[%s1185_s18] sm:$0xff]   ;;  %v1020_v14 = vld [vmem:[%s1185_s18 + $0x10] sm:$0xff]  }
  0x35   : > { %914 = vmatpush3.bf16.msra.mxu0 %v1011_v9  ;;  %945 = vmatpush3.bf16.msra.mxu1 %v1011_v9  ;;  %v1015_v15 = vld [vmem:[%s1173_s29 + $0x20] sm:$0xff]   ;;  %v1016_v16 = vld [vmem:[%s1173_s29 + $0x28] sm:$0xff]   ;;  %v1017_v17 = vld [vmem:[%s1173_s29 + $0x30] sm:$0xff]  }
  0x36   : > { %915 = vmatprep.subr.bf16.mxu0 %v1012_v10  ;;  %938 = vmatprep.subr.bf16.mxu1 %v1012_v10  ;;  %v1018_v18 = vld [vmem:[%s1173_s29 + $0x38] sm:$0xff]   ;;  %v1021_v19 = vld [vmem:[%s1185_s18 + $0x8] sm:$0xff]   ;;  %v396_v21 = vld [vmem:[#allocation2 + $0x10] sm:$0xff] }
  0x37   : > { %929 = vmatprep.mubr.bf16.mxu0 %v1019_v13  ;;  %933 = vmatprep.mubr.bf16.mxu1 %v1020_v14  ;;  %v1022_v20 = vld [vmem:[%s1185_s18 + $0x18] sm:$0xff]   ;;  %v400_v22 = vld [vmem:[#allocation2 + $0x30] sm:$0xff]  ;;  %v394_v23 = vld [vmem:[#allocation2] sm:$0xff] }
  0x38   : > { %v398_v24 = vld [vmem:[#allocation2 + $0x20] sm:$0xff]  ;;  %v397_v27 = vld [vmem:[#allocation2 + $0x18] sm:$0xff]  ;;  %v395_v33 = vld [vmem:[#allocation2 + $0x8] sm:$0xff] }
  0x39   : > { %916 = vmatpush3.bf16.msra.mxu0 %v1012_v10  ;;  %946 = vmatpush3.bf16.msra.mxu1 %v1012_v10  ;;  %v401_v28 = vld [vmem:[#allocation2 + $0x38] sm:$0xff]  ;;  %v399_v34 = vld [vmem:[#allocation2 + $0x28] sm:$0xff]  ;;  %v840_v47 = vld [vmem:[%s1235_s2] ss:$0 sm:$0xff] (!%p839_p13) }
  0x3a   : > { %917 = vmatprep.subr.bf16.mxu0 %v1013_v11  ;;  %939 = vmatprep.subr.bf16.mxu1 %v1013_v11  ;;  %v860_v50 = vld [vmem:[%s1178_s7] sm:$0xff] (!%p839_p13)   ;;  %v895_v57 = vld [vmem:[%s1178_s7 + $0x8] sm:$0xff] (!%p839_p13)   ;;  %v896_v0 = vld [vmem:[%s1178_s7 + $0x10] sm:$0xff] (!%p839_p13)  }
  0x3b   : > { %v861_v53 = vunpack.c.l.bf16 (!%p839_p13), %v860_v50  ;;  %v862_v54 = vunpack.c.h.bf16 (!%p839_p13), %v860_v50  ;;  %v865_v60 = vunpack.c.l.bf16 (!%p839_p13), %v895_v57  ;;  %v866_v61 = vunpack.c.h.bf16 (!%p839_p13), %v895_v57  ;;  %v897_v7 = vld [vmem:[%s1178_s7 + $0x18] sm:$0xff] (!%p839_p13)  }
  0x3c   : > { %v869_v5 = vunpack.c.l.bf16 (!%p839_p13), %v896_v0  ;;  %v870_v6 = vunpack.c.h.bf16 (!%p839_p13), %v896_v0 }
  0x3d   : > { %918 = vmatpush3.bf16.msra.mxu0 %v1013_v11  ;;  %947 = vmatpush3.bf16.msra.mxu1 %v1013_v11 }
  0x3e   : > { %919 = vmatprep.subr.bf16.mxu0 %v1014_v12  ;;  %940 = vmatprep.subr.bf16.mxu1 %v1014_v12 }
  0x41   : > { %920 = vmatpush3.bf16.msra.mxu0 %v1014_v12  ;;  %948 = vmatpush3.bf16.msra.mxu1 %v1014_v12 }
  0x42   : > { %921 = vmatprep.subr.bf16.mxu0 %v1015_v15  ;;  %941 = vmatprep.subr.bf16.mxu1 %v1015_v15 }
  0x45   : > { %922 = vmatpush3.bf16.msra.mxu0 %v1015_v15  ;;  %949 = vmatpush3.bf16.msra.mxu1 %v1015_v15 }
  0x46   : > { %923 = vmatprep.subr.bf16.mxu0 %v1016_v16  ;;  %942 = vmatprep.subr.bf16.mxu1 %v1016_v16 }
  0x49   : > { %924 = vmatpush3.bf16.msra.mxu0 %v1016_v16  ;;  %950 = vmatpush3.bf16.msra.mxu1 %v1016_v16 }
  0x4a   : > { %925 = vmatprep.subr.bf16.mxu0 %v1017_v17  ;;  %943 = vmatprep.subr.bf16.mxu1 %v1017_v17 }
  0x4d   : > { %926 = vmatpush3.bf16.msra.mxu0 %v1017_v17  ;;  %951 = vmatpush3.bf16.msra.mxu1 %v1017_v17 }
  0x4e   : > { %927 = vmatprep.subr.bf16.mxu0 %v1018_v18  ;;  %944 = vmatprep.subr.bf16.mxu1 %v1018_v18 }
  0x51   : > { %928 = vmatpush3.bf16.msra.mxu0 %v1018_v18  ;;  %952 = vmatpush3.bf16.msra.mxu1 %v1018_v18  ;;  %v873_v18 = vunpack.c.l.bf16 (!%p839_p13), %v897_v7 }
  0x54   : > { %930 = vmatmul.mubr.bf16.vlgmr.msra.gmra.mrb[0].mxu0 %v1021_v19  ;;  %934 = vmatmul.mubr.bf16.vlgmr.msra.gmra.mrb[0].mxu1 %v1022_v20  ;;  %v874_v19 = vunpack.c.h.bf16 (!%p839_p13), %v897_v7 }
 0x127   : > { %v931_v25 = vpop.f32.mrb[0].mxu0  ;;  %v935_v26 = vpop.f32.mrb[0].mxu1  ;;  %582 = sbr.rel (%p839_p13) target bundleno = 319 (0x13f), region = 85 }
 0x128   : > { %v565_v29 = vadd.f32 %v931_v25, %v396_v21  ;;  %v569_v30 = vadd.f32 %v935_v26, %v400_v22  ;;  %v532_v31 = vpop.f32.mrb[1].mxu0  ;;  %v548_v32 = vpop.f32.mrb[1].mxu1 }
 0x129   : > { %v563_v35 = vadd.f32 %v532_v31, %v394_v23  ;;  %v567_v36 = vadd.f32 %v548_v32, %v398_v24  ;;  %v932_v37 = vpop.f32.mrb[2].mxu0  ;;  %v936_v38 = vpop.f32.mrb[2].mxu1 }
 0x12a   : > { %573 = vst [vmem:[#allocation2 + $0x10] sm:$0xff] %v565_v29  ;;  %577 = vst [vmem:[#allocation2 + $0x30] sm:$0xff] %v569_v30  ;;  %v566_v39 = vadd.f32 %v932_v37, %v397_v27  ;;  %v570_v40 = vadd.f32 %v936_v38, %v401_v28  ;;  %v535_v41 = vpop.f32.mrb[3].mxu0  ;;  %v551_v42 = vpop.f32.mrb[3].mxu1 }
 0x12b   : > { %571 = vst [vmem:[#allocation2] sm:$0xff] %v563_v35  ;;  %575 = vst [vmem:[#allocation2 + $0x20] sm:$0xff] %v567_v36  ;;  %v564_v43 = vadd.f32 %v535_v41, %v395_v33  ;;  %v568_v44 = vadd.f32 %v551_v42, %v399_v34 }
 0x12c   : > { %574 = vst [vmem:[#allocation2 + $0x18] sm:$0xff] %v566_v39  ;;  %578 = vst [vmem:[#allocation2 + $0x38] sm:$0xff] %v570_v40 }
 0x12d   : > { %572 = vst [vmem:[#allocation2 + $0x8] sm:$0xff] %v564_v43  ;;  %576 = vst [vmem:[#allocation2 + $0x28] sm:$0xff] %v568_v44 }
 0x131   : > { %v585_v51 = vld [vmem:[#allocation2 + $0x10] sm:$0xff] }
 0x132   : > { %v583_v45 = vld [vmem:[#allocation2] sm:$0xff]  ;;  %v600_v55 = vadd.f32 %v840_v47, %v585_v51  ;;  %v589_v1 = vld [vmem:[#allocation2 + $0x30] sm:$0xff] }
 0x133   : > { %v598_v48 = vadd.f32 %v840_v47, %v583_v45  ;;  %v586_v52 = vld [vmem:[#allocation2 + $0x18] sm:$0xff]  ;;  %v587_v58 = vld [vmem:[#allocation2 + $0x20] sm:$0xff]  ;;  %v604_v10 = vadd.f32 %v840_v47, %v589_v1 }
 0x134   : > { %v584_v46 = vld [vmem:[#allocation2 + $0x8] sm:$0xff]  ;;  %v601_v56 = vadd.f32 %v840_v47, %v586_v52  ;;  %v602_v62 = vadd.f32 %v840_v47, %v587_v58  ;;  %v590_v2 = vld [vmem:[#allocation2 + $0x38] sm:$0xff]  ;;  %v624_v8 = vadd.f32 %v865_v60, %v600_v55 }
 0x135   : > { %v599_v49 = vadd.f32 %v840_v47, %v584_v46  ;;  %v588_v59 = vld [vmem:[#allocation2 + $0x28] sm:$0xff]  ;;  %v622_v3 = vadd.f32 %v861_v53, %v598_v48  ;;  %v605_v11 = vadd.f32 %v840_v47, %v590_v2  ;;  %v628_v24 = vadd.f32 %v873_v18, %v604_v10 }
 0x136   : > { %v603_v63 = vadd.f32 %v840_v47, %v588_v59  ;;  %v625_v9 = vadd.f32 %v866_v61, %v601_v56  ;;  %v626_v14 = vadd.f32 %v869_v5, %v602_v62  ;;  %v632_v16 = vmax.f32 %v624_v8, 0.0 }
 0x137   : > { %v623_v4 = vadd.f32 %v862_v54, %v599_v49  ;;  %v630_v12 = vmax.f32 %v622_v3, 0.0  ;;  %v629_v25 = vadd.f32 %v874_v19, %v605_v11  ;;  %v636_v27 = vmax.f32 %v628_v24, 0.0 }
 0x138   : > { %v627_v15 = vadd.f32 %v870_v6, %v603_v63  ;;  %v633_v17 = vmax.f32 %v625_v9, 0.0  ;;  %v634_v21 = vmax.f32 %v626_v14, 0.0 }
 0x139   : > { %v631_v13 = vmax.f32 %v623_v4, 0.0  ;;  %v637_v28 = vmax.f32 %v629_v25, 0.0 }
 0x13a   : > { %v635_v22 = vmax.f32 %v627_v15, 0.0  ;;  %v883_v23 = vpack.c.bf16 %v633_v17, %v632_v16 }
 0x13b   : > { %v878_v20 = vpack.c.bf16 %v631_v13, %v630_v12  ;;  %v893_v29 = vpack.c.bf16 %v637_v28, %v636_v27 }
 0x13c   : > { %v888_v26 = vpack.c.bf16 %v635_v22, %v634_v21  ;;  %898 = vst [vmem:[%s1183_s9 + $0x8] sm:$0xff] %v883_v23  }
 0x13d   : > { %879 = vst [vmem:[%s1183_s9] sm:$0xff] %v878_v20   ;;  %900 = vst [vmem:[%s1183_s9 + $0x18] sm:$0xff] %v893_v29  }
 0x13e   : > { %899 = vst [vmem:[%s1183_s9 + $0x10] sm:$0xff] %v888_v26  }
 0x13f PF: > { %s14_s21 = sadd.s32 1, %s1077_s21   ;;  %s1238_s15 = smov %s1057_s16 }
 0x140   : > { %p11_p0 = scmp.ge.s32.totalorder %s14_s21, 12   ;;  %s1239_s16 = smov %s1156_s28 }
 0x141   : > { %s1240_s17 = smov %s1069_s19  ;;  %s1241_s18 = smov %s1073_s20 }
 0x142   : > { %s1242_s19 = smov %s1245_s22  ;;  %s1243_s20 = smov %s1249_s23 }
 0x143   :  { %13 = sbr.rel (!%p11_p0) target bundleno = 4 (0x4), region = 129 }

// kernel: embedder_forward.26
= control target key start
LH: loop header
LB: loop body
LE: loop exit
PB: predicated region body
PF: predicated region fallthrough
CT: control target
= control target key end

     0   :  { %s781_s12 = smov 0   ;;  %s783_s13 = smov 0   ;;  %s896_s0 = inlined_call_operand.vmem [shape: bf16[32,640], index: 0, kind: input, shape index: {}]   ;;  %s897_s1 = inlined_call_operand.vmem [shape: bf16[640,128], index: 1, kind: input, shape index: {}]   ;;  %s898_s2 = inlined_call_operand.vmem [shape: f32[1,128], index: 2, kind: input, shape index: {}]   ;;  %s899_s3 = inlined_call_operand.vmem [shape: bf16[32,128], index: 3, kind: output, shape index: {}]  }
   0x1   :  { %s785_s14 = smov 0   ;;  %s787_s15 = smov 0  }
   0x2   :  { %s789_s16 = smov 0   ;;  %s791_s17 = smov 0  }
   0x3   :  { %s793_s18 = smov 0  }
   0x4 LB: > { %s25_s19 = sadd.s32 1, %s748_s16  ;;  %s32_s20 = sadd.s32 1, %s752_s17  ;;  %s756_s18 = sphi %s793_s18, %s13_s18   ;;  %s752_s17 = sphi %s791_s17, %s905_s17   ;;  %s748_s16 = sphi %s789_s16, %s904_s16   ;;  %s744_s15 = sphi %s787_s15, %s903_s15   ;;  %s740_s14 = sphi %s785_s14, %s902_s14   ;;  %s736_s13 = sphi %s783_s13, %s901_s13   ;;  %s732_s12 = sphi %s781_s12, %s900_s12  }
   0x5   : > { %p26_p0 = scmp.ge.s32.totalorder %s25_s19, 5  ;;  %p48_p1 = scmp.ne.s32.totalorder %s736_s13, %s732_s12 }
   0x6   : > { %p49_p2 = scmp.eq.s32.totalorder %s756_s18, 0  ;;  %s41_s24 = sadd.s32 1, %s736_s13 }
   0x7   : > { %s907_s19 = smov (%p26_p0, %s25_s19), 0  ;;  %s909_s20 = smov (!%p26_p0, %s32_s20), %s752_s17 }
   0x8   : > { %p50_p3 = por %p49_p2, %p48_p1  ;;  %p34_p4 = scmp.ge.s32.totalorder %s909_s20, 2 }
   0x9   : > { %s37_s21 = ssub.s32 %s748_s16, %s907_s19  ;;  %p570_p6 = scmp.ge.s32.totalorder %s756_s18, 10 }
   0xa   : > { %s911_s20 = smov (%p34_p4, %s909_s20), 0 }
   0xb   : > { %s36_s22 = ssub.s32 %s752_s17, %s911_s20  ;;  %162 = sbr.rel (%p570_p6) target bundleno = 26 (0x1a), region = 20 }
   0xc   : > { %s38_s23 = sor.u32 %s37_s21, %s36_s22 }
   0xd   : > { %p39_p5 = scmp.eq.s32.totalorder %s38_s23, 0 }
   0xf   : > { %s832_s25 = scalar_select %p39_p5, %s736_s13, %s41_s24  }
  0x12   : > { %165 = sbr.rel (!%p50_p3) target bundleno = 26 (0x1a), region = 24  ;;  %s167_s26 = sand.u32 (%p50_p3), 1, %s736_s13  }
  0x13   : > { %s633_s27 = smul.u32 (%p50_p3), 10, %s752_s17  ;;  %s571_s28 = sshll.u32 (%p50_p3), %s167_s26, 3 }
  0x14   : > { %s169_s7 = scalar_lea.vmem (%p50_p3), [#allocation3], %s571_s28 }
  0x15   : > { %s172_s29 = sadd.s32 (%p50_p3), %s748_s16, %s633_s27 }
  0x16   : > { %s574_s30 = sshll.u32 (%p50_p3), %s172_s29, 2 }
  0x17   : > { %s174_s6 = scalar_lea.vmem (%p50_p3), %s896_s0, %s574_s30 }
  0x18   : > { %v190_v0 = vld [vmem:[%s174_s6] sm:$0xf] (%p50_p3)  ;;  %v192_v1 = vld [vmem:[%s174_s6 + $0x14] sm:$0xf] (%p50_p3) }
  0x19   : > { %191 = vst [vmem:[%s169_s7] sm:$0xf] %v190_v0  ;;  %193 = vst [vmem:[%s169_s7 + $0x4] sm:$0xf] %v192_v1 }
  0x1a PF: > { %p575_p7 = scmp.ge.s32.totalorder %s756_s18, 1  ;;  %p231_p8 = scmp.lt.s32.totalorder %s756_s18, 11 }
  0x1c   : > { %p232_p9 = pnand %p575_p7, %p231_p8 }
  0x1d   : > { %s238_s8 = sand.u32 (!%p232_p9), 1, %s732_s12   ;;  %s577_s9 = sshll.u32 (!%p232_p9), %s740_s14, 4 }
  0x1e   : > { %235 = sbr.rel (%p232_p9) target bundleno = 311 (0x137), region = 69  ;;  %s845_s10 = sshll.u32 (!%p232_p9), %s238_s8, 3 }
  0x1f   : > { %p277_p10 = scmp.lt.s32.totalorder (!%p232_p9), %s577_s9, 79  ;;  %s579_s11 = sshll.u32 (!%p232_p9), %s744_s15, 1 }
  0x20   : > { %p289_p11 = scmp.lt.s32.totalorder (!%p232_p9), %s579_s11, 3  ;;  %s240_s29 = scalar_lea.vmem (!%p232_p9), [#allocation3], %s845_s10 }
  0x21   : > { %p581_p12 = scmp.ne.s32.totalorder (!%p232_p9), %s740_s14, 0 }
  0x25   : > { %s913_s9 = smov (!%p277_p10, %s577_s9), 79  ;;  %s915_s11 = smov (!%p289_p11, %s579_s11), 3 }
  0x26   : > { %s578_s21 = sshll.u32 %s913_s9, 2  ;;  %s580_s26 = sshll.u32 %s915_s11, 2  ;;  %v758_v2 = vmov (!%p581_p12), 0.0  }
  0x27   : > { %s851_s24 = scalar_lea.vmem %s897_s1, %s578_s21  ;;  %s856_s12 = scalar_lea.vmem %s899_s3, %s580_s26  ;;  %302 = vst [vmem:[#allocation2] sm:$0xff] (!%p581_p12), %v758_v2  ;;  %303 = vst [vmem:[#allocation2 + $0x8] sm:$0xff] (!%p581_p12), %v758_v2 }
  0x28   : > { %301 = sbr.rel (%p581_p12) target bundleno = 47 (0x2f), region = 77 }
  0x2f PF: > { %v693_v3 = vld [vmem:[%s851_s24] sm:$0xff]   ;;  %v759_v4 = vmov 0.0   ;;  %v694_v5 = vld [vmem:[%s851_s24 + $0x8] sm:$0xff]   ;;  %vm760_vm0 = vmmov 0   ;;  %v695_v6 = vld [vmem:[%s851_s24 + $0x10] sm:$0xff]   ;;  %p591_p13 = scmp.ne.s32.totalorder %s740_s14, 4 }
  0x30   : > { %613 = vmatprep.subr.bf16.mxu0 %v759_v4  ;;  %629 = vmatprep.mubr.msk.bf16.mxu0 %vm760_vm0, %v759_v4  ;;  %v696_v7 = vld [vmem:[%s851_s24 + $0x18] sm:$0xff]   ;;  %v697_v8 = vld [vmem:[%s851_s24 + $0x20] sm:$0xff]   ;;  %v698_v9 = vld [vmem:[%s851_s24 + $0x28] sm:$0xff]  }
  0x31   : > { %614 = vmatpush3.bf16.msra.mxu0 %v693_v3  ;;  %v699_v10 = vld [vmem:[%s851_s24 + $0x30] sm:$0xff]   ;;  %v700_v11 = vld [vmem:[%s851_s24 + $0x38] sm:$0xff]   ;;  %v304_v13 = vld [vmem:[#allocation2] sm:$0xff] }
  0x32   : > { %615 = vmatprep.subr.bf16.mxu0 %v759_v4  ;;  %v701_v12 = vld [vmem:[%s240_s29] sm:$0xff]   ;;  %v305_v15 = vld [vmem:[#allocation2 + $0x8] sm:$0xff]  ;;  %v592_v23 = vld [vmem:[%s898_s2] ss:$0 sm:$0xff] (!%p591_p13) }
  0x35   : > { %616 = vmatpush3.bf16.msra.mxu0 %v694_v5 }
  0x36   : > { %617 = vmatprep.subr.bf16.mxu0 %v759_v4 }
  0x39   : > { %618 = vmatpush3.bf16.msra.mxu0 %v695_v6 }
  0x3a   : > { %619 = vmatprep.subr.bf16.mxu0 %v759_v4 }
  0x3d   : > { %620 = vmatpush3.bf16.msra.mxu0 %v696_v7 }
  0x3e   : > { %621 = vmatprep.subr.bf16.mxu0 %v759_v4 }
  0x41   : > { %622 = vmatpush3.bf16.msra.mxu0 %v697_v8 }
  0x42   : > { %623 = vmatprep.subr.bf16.mxu0 %v759_v4 }
  0x45   : > { %624 = vmatpush3.bf16.msra.mxu0 %v698_v9 }
  0x46   : > { %625 = vmatprep.subr.bf16.mxu0 %v759_v4 }
  0x49   : > { %626 = vmatpush3.bf16.msra.mxu0 %v699_v10 }
  0x4a   : > { %627 = vmatprep.subr.bf16.mxu0 %v759_v4 }
  0x4d   : > { %628 = vmatpush3.bf16.msra.mxu0 %v700_v11 }
  0x50   : > { %630 = vmatmul.mubr.bf16.vlgmr.msra.gmra.mrb[0].mxu0 %v701_v12 }
 0x122   : > { %426 = sbr.rel (%p591_p13) target bundleno = 311 (0x137), region = 81 }
 0x123   : > { %v412_v14 = vpop.f32.mrb[0].mxu0 }
 0x124   : > { %v419_v16 = vadd.f32 %v412_v14, %v304_v13  ;;  %v631_v17 = vpop.f32.mrb[1].mxu0 }
 0x125   : > { %v415_v18 = vpop.f32.mrb[2].mxu0 }
 0x126   : > { %421 = vst [vmem:[#allocation2] sm:$0xff] %v419_v16  ;;  %v420_v19 = vadd.f32 %v415_v18, %v305_v15  ;;  %v632_v20 = vpop.f32.mrb[3].mxu0 }
 0x128   : > { %422 = vst [vmem:[#allocation2 + $0x8] sm:$0xff] %v420_v19 }
 0x12d   : > { %v427_v21 = vld [vmem:[#allocation2] sm:$0xff] }
 0x12e   : > { %v436_v24 = vadd.f32 %v592_v23, %v427_v21 }
 0x12f   : > { %v428_v22 = vld [vmem:[#allocation2 + $0x8] sm:$0xff] }
 0x130   : > { %v437_v25 = vadd.f32 %v592_v23, %v428_v22  ;;  %v438_v26 = vmax.f32 %v436_v24, 0.0 }
 0x132   : > { %v439_v27 = vmax.f32 %v437_v25, 0.0 }
 0x134   : > { %v602_v28 = vpack.c.bf16 %v439_v27, %v438_v26 }
 0x136   : > { %603 = vst [vmem:[%s856_s12] sm:$0xff] %v602_v28  }
 0x137 PF: > { %s13_s18 = sadd.s32 1, %s756_s18   ;;  %s900_s12 = smov %s736_s13 }
 0x138   : > { %p10_p0 = scmp.ge.s32.totalorder %s13_s18, 12   ;;  %s901_s13 = smov %s832_s25 }
 0x139   : > { %s902_s14 = smov %s748_s16  ;;  %s903_s15 = smov %s752_s17 }
 0x13a   : > { %s904_s16 = smov %s907_s19  ;;  %s905_s17 = smov %s911_s20 }
 0x13b   :  { %12 = sbr.rel (!%p10_p0) target bundleno = 4 (0x4), region = 122 }

// kernel: embedder_forward.27
= control target key start
LH: loop header
LB: loop body
LE: loop exit
PB: predicated region body
PF: predicated region fallthrough
CT: control target
= control target key end

     0   :  { %s600_s12 = smov 0   ;;  %s602_s13 = smov 0   ;;  %s663_s0 = inlined_call_operand.vmem [shape: bf16[32,128], index: 0, kind: input, shape index: {}]   ;;  %s664_s1 = inlined_call_operand.vmem [shape: bf16[128,128], index: 1, kind: input, shape index: {}]   ;;  %s665_s2 = inlined_call_operand.vmem [shape: f32[1,128], index: 2, kind: input, shape index: {}]   ;;  %s666_s3 = inlined_call_operand.vmem [shape: bf16[32,128], index: 3, kind: output, shape index: {}]  }
   0x1   :  { %s604_s14 = smov 0  }
   0x2 LB: > { %s25_s15 = sadd.s32 1, %s572_s13  ;;  %p464_p0 = scmp.ge.s32.totalorder %s576_s14, 1  ;;  %s576_s14 = sphi %s604_s14, %s13_s14   ;;  %s572_s13 = sphi %s602_s13, %s668_s13   ;;  %s568_s12 = sphi %s600_s12, %s667_s12  }
   0x3   : > { %p27_p1 = scmp.ge.s32.totalorder %s25_s15, 2  ;;  %p169_p2 = scmp.lt.s32.totalorder %s576_s14, 3 }
   0x5   : > { %s670_s15 = smov (%p27_p1, %s25_s15), 0  ;;  %p170_p3 = pnand %p464_p0, %p169_p2 }
   0x6   : > { %v545_v0 = vld [vmem:[%s664_s1] sm:$0xff] (!%p170_p3)   ;;  %v578_v1 = vmov (!%p170_p3), 0.0   ;;  %v546_v2 = vld [vmem:[%s664_s1 + $0x8] sm:$0xff] (!%p170_p3)   ;;  %vm579_vm0 = vmmov (!%p170_p3), 0   ;;  %s465_s20 = sshll.u32 (!%p170_p3), %s568_s12, 1  ;;  %v547_v3 = vld [vmem:[%s664_s1 + $0x10] sm:$0xff] (!%p170_p3)  }
   0x7   : > { %173 = sbr.rel (%p170_p3) target bundleno = 258 (0x102), region = 32  ;;  %499 = vmatprep.subr.bf16.mxu0 (!%p170_p3), %v578_v1  ;;  %515 = vmatprep.mubr.msk.bf16.mxu0 (!%p170_p3), %vm579_vm0, %v578_v1  ;;  %p204_p4 = scmp.lt.s32.totalorder (!%p170_p3), %s465_s20, 3  ;;  %v548_v4 = vld [vmem:[%s664_s1 + $0x18] sm:$0xff] (!%p170_p3)   ;;  %v549_v5 = vld [vmem:[%s664_s1 + $0x20] sm:$0xff] (!%p170_p3)   ;;  %v550_v6 = vld [vmem:[%s664_s1 + $0x28] sm:$0xff] (!%p170_p3)  }
   0x8   : > { %500 = vmatpush3.bf16.msra.mxu0 (!%p170_p3), %v545_v0  ;;  %v551_v7 = vld [vmem:[%s664_s1 + $0x30] sm:$0xff] (!%p170_p3)   ;;  %v552_v8 = vld [vmem:[%s664_s1 + $0x38] sm:$0xff] (!%p170_p3)   ;;  %v469_v10 = vld [vmem:[%s665_s2] ss:$0 sm:$0xff] (!%p170_p3) }
   0x9   : > { %501 = vmatprep.subr.bf16.mxu0 (!%p170_p3), %v578_v1 }
   0xc   : > { %502 = vmatpush3.bf16.msra.mxu0 (!%p170_p3), %v546_v2 }
   0xd   : > { %503 = vmatprep.subr.bf16.mxu0 (!%p170_p3), %v578_v1 }
   0xe   : > { %s672_s20 = smov (!%p204_p4, %s465_s20), 3 }
   0xf   : > { %s466_s23 = sshll.u32 %s672_s20, 2 }
  0x10   : > { %s207_s26 = scalar_lea.vmem %s663_s0, %s466_s23  ;;  %504 = vmatpush3.bf16.msra.mxu0 %v547_v3  ;;  %s223_s17 = scalar_lea.vmem %s666_s3, %s466_s23 }
  0x11   : > { %505 = vmatprep.subr.bf16.mxu0 %v578_v1  ;;  %v553_v9 = vld [vmem:[%s207_s26] sm:$0xff]  }
  0x14   : > { %506 = vmatpush3.bf16.msra.mxu0 %v548_v4 }
  0x15   : > { %507 = vmatprep.subr.bf16.mxu0 %v578_v1 }
  0x18   : > { %508 = vmatpush3.bf16.msra.mxu0 %v549_v5 }
  0x19   : > { %509 = vmatprep.subr.bf16.mxu0 %v578_v1 }
  0x1c   : > { %510 = vmatpush3.bf16.msra.mxu0 %v550_v6 }
  0x1d   : > { %511 = vmatprep.subr.bf16.mxu0 %v578_v1 }
  0x20   : > { %512 = vmatpush3.bf16.msra.mxu0 %v551_v7 }
  0x21   : > { %513 = vmatprep.subr.bf16.mxu0 %v578_v1 }
  0x24   : > { %514 = vmatpush3.bf16.msra.mxu0 %v552_v8 }
  0x27   : > { %516 = vmatmul.mubr.bf16.vlgmr.msra.gmra.mrb[0].mxu0 %v553_v9 }
  0xfa   : > { %v339_v11 = vpop.f32.mrb[0].mxu0 }
  0xfb   : > { %v517_v12 = vpop.f32.mrb[1].mxu0  ;;  %v340_v14 = vadd.f32 %v469_v10, %v339_v11 }
  0xfc   : > { %v342_v13 = vpop.f32.mrb[2].mxu0 }
  0xfd   : > { %v343_v15 = vadd.f32 %v469_v10, %v342_v13  ;;  %v518_v16 = vpop.f32.mrb[3].mxu0 }
  0xff   : > { %v488_v17 = vpack.c.bf16 %v343_v15, %v340_v14 }
 0x101   : > { %489 = vst [vmem:[%s223_s17] sm:$0xff] %v488_v17  }
 0x102 PF: > { %s13_s14 = sadd.s32 1, %s576_s14   ;;  %s667_s12 = smov %s572_s13 }
 0x103   : > { %p10_p5 = scmp.ge.s32.totalorder %s13_s14, 4   ;;  %s668_s13 = smov %s670_s15 }
 0x105   :  { %12 = sbr.rel (!%p10_p5) target bundleno = 2 (0x2), region = 68 }

// kernel: embedder_forward.28
= control target key start
LH: loop header
LB: loop body
LE: loop exit
PB: predicated region body
PF: predicated region fallthrough
CT: control target
= control target key end

     0   :  { %s1112_s15 = smov 0   ;;  %s1114_s16 = smov 0   ;;  %s1249_s0 = inlined_call_operand.vmem [shape: bf16[32,1152], index: 0, kind: input, shape index: {}]   ;;  %s1250_s1 = inlined_call_operand.vmem [shape: bf16[1152,128], index: 1, kind: input, shape index: {}]   ;;  %s1251_s2 = inlined_call_operand.vmem [shape: f32[1,128], index: 2, kind: input, shape index: {}]   ;;  %s1252_s3 = inlined_call_operand.vmem [shape: bf16[32,128], index: 3, kind: input, shape index: {}]   ;;  %s1253_s4 = inlined_call_operand.vmem [shape: bf16[32,128], index: 4, kind: output, shape index: {}]  }
   0x1   :  { %s1116_s17 = smov 0   ;;  %s1118_s18 = smov 0  }
   0x2   :  { %s1120_s19 = smov 0   ;;  %s1122_s20 = smov 0  }
   0x3   :  { %s1124_s21 = smov 0  }
   0x4 LB: > { %s26_s22 = sadd.s32 1, %s1074_s19  ;;  %s33_s23 = sadd.s32 1, %s1078_s20  ;;  %s1082_s21 = sphi %s1124_s21, %s14_s21   ;;  %s1078_s20 = sphi %s1122_s20, %s1259_s20   ;;  %s1074_s19 = sphi %s1120_s19, %s1258_s19   ;;  %s1070_s18 = sphi %s1118_s18, %s1257_s18   ;;  %s1066_s17 = sphi %s1116_s17, %s1256_s17   ;;  %s1062_s16 = sphi %s1114_s16, %s1255_s16   ;;  %s1058_s15 = sphi %s1112_s15, %s1254_s15  }
   0x5   : > { %p27_p0 = scmp.ge.s32.totalorder %s26_s22, 3  ;;  %p49_p1 = scmp.ne.s32.totalorder %s1062_s16, %s1058_s15 }
   0x6   : > { %p50_p2 = scmp.eq.s32.totalorder %s1082_s21, 0  ;;  %s42_s27 = sadd.s32 1, %s1062_s16 }
   0x7   : > { %s1261_s22 = smov (%p27_p0, %s26_s22), 0  ;;  %s1263_s23 = smov (!%p27_p0, %s33_s23), %s1078_s20 }
   0x8   : > { %p51_p3 = por %p50_p2, %p49_p1  ;;  %p35_p4 = scmp.ge.s32.totalorder %s1263_s23, 2 }
   0x9   : > { %s38_s24 = ssub.s32 %s1074_s19, %s1261_s22  ;;  %p828_p6 = scmp.ge.s32.totalorder %s1082_s21, 6 }
   0xa   : > { %s1265_s23 = smov (%p35_p4, %s1263_s23), 0 }
   0xb   : > { %s37_s25 = ssub.s32 %s1078_s20, %s1265_s23  ;;  %191 = sbr.rel (%p828_p6) target bundleno = 29 (0x1d), region = 20 }
   0xc   : > { %s39_s26 = sor.u32 %s38_s24, %s37_s25 }
   0xd   : > { %p40_p5 = scmp.eq.s32.totalorder %s39_s26, 0 }
   0xf   : > { %s1163_s28 = scalar_select %p40_p5, %s1062_s16, %s42_s27  }
  0x12   : > { %194 = sbr.rel (!%p51_p3) target bundleno = 29 (0x1d), region = 24  ;;  %s196_s29 = sand.u32 (%p51_p3), 1, %s1062_s16  }
  0x13   : > { %s200_s30 = smul.u32 (%p51_p3), 3, %s1074_s19 }
  0x14   : > { %s938_s5 = smul.u32 (%p51_p3), 24, %s196_s29 }
  0x15   : > { %s939_s6 = smul.u32 (%p51_p3), 18, %s1078_s20 }
  0x16   : > { %s198_s12 = scalar_lea.vmem (%p51_p3), [#allocation3], %s938_s5 }
  0x17   : > { %s202_s7 = sadd.s32 (%p51_p3), %s939_s6, %s200_s30 }
  0x18   : > { %s831_s8 = sshll.u32 (%p51_p3), %s202_s7, 2 }
  0x19   : > { %s204_s11 = scalar_lea.vmem %s1249_s0, %s831_s8 }
  0x1a   : > { %v219_v0 = vld [vmem:[%s204_s11] sm:$0xff]  ;;  %v832_v2 = vld [vmem:[%s204_s11 + $0x8] sm:$0xf]  ;;  %v834_v3 = vld [vmem:[%s204_s11 + $0x2c] sm:$0xf] }
  0x1b   : > { %v221_v1 = vld [vmem:[%s204_s11 + $0x24] sm:$0xff]  ;;  %220 = vst [vmem:[%s198_s12] sm:$0xff] %v219_v0  ;;  %833 = vst [vmem:[%s198_s12 + $0x8] sm:$0xf] %v832_v2 }
  0x1c   : > { %222 = vst [vmem:[%s198_s12 + $0xc] sm:$0xff] %v221_v1  ;;  %835 = vst [vmem:[%s198_s12 + $0x14] sm:$0xf] %v834_v3 }
  0x1d PF: > { %p836_p7 = scmp.ge.s32.totalorder %s1082_s21, 1  ;;  %p262_p8 = scmp.lt.s32.totalorder %s1082_s21, 7 }
  0x1f   : > { %p263_p9 = pnand %p836_p7, %p262_p8 }
  0x20   : > { %s269_s13 = sand.u32 (!%p263_p9), 1, %s1058_s15   ;;  %s318_s14 = smul.u32 (!%p263_p9), 48, %s1066_s17 }
  0x21   : > { %266 = sbr.rel (%p263_p9) target bundleno = 321 (0x141), region = 58  ;;  %s838_s25 = sshll.u32 (!%p263_p9), %s1070_s18, 1 }
  0x22   : > { %s940_s24 = smul.u32 (!%p263_p9), 24, %s269_s13  ;;  %p319_p10 = scmp.lt.s32.totalorder (!%p263_p9), %s318_s14, 143 }
  0x23   : > { %p331_p11 = scmp.lt.s32.totalorder (!%p263_p9), %s838_s25, 3  ;;  %p842_p12 = scmp.ne.s32.totalorder (!%p263_p9), %s1066_s17, 0 }
  0x24   : > { %s1192_s10 = scalar_lea.vmem (!%p263_p9), [#allocation3], %s940_s24 }
  0x28   : > { %s1267_s14 = smov (!%p319_p10, %s318_s14), 143  ;;  %s1269_s25 = smov (!%p331_p11, %s838_s25), 3 }
  0x29   : > { %s837_s26 = sshll.u32 %s1267_s14, 2  ;;  %s839_s5 = sshll.u32 %s1269_s25, 2  ;;  %v1084_v4 = vmov (!%p842_p12), 0.0  }
  0x2a   : > { %s1180_s30 = scalar_lea.vmem %s1250_s1, %s837_s26  ;;  %s1185_s8 = scalar_lea.vmem %s1252_s3, %s839_s5  ;;  %353 = vst [vmem:[#allocation2] sm:$0xff] (!%p842_p12), %v1084_v4  ;;  %354 = vst [vmem:[#allocation2 + $0x8] sm:$0xff] (!%p842_p12), %v1084_v4 }
  0x2b   : > { %s1190_s18 = scalar_lea.vmem %s1253_s4, %s839_s5  ;;  %352 = sbr.rel (%p842_p12) target bundleno = 50 (0x32), region = 66 }
  0x32 PF: > { %v1000_v5 = vld [vmem:[%s1180_s30 + $0x40] sm:$0xff]   ;;  %v1085_v6 = vmov 0.0   ;;  %vm1086_vm0 = vmmov 0   ;;  %v1003_v9 = vld [vmem:[%s1180_s30 + $0x48] sm:$0xff]   ;;  %v1006_v12 = vld [vmem:[%s1180_s30 + $0x50] sm:$0xff]   ;;  %p870_p13 = scmp.ne.s32.totalorder %s1066_s17, 2 }
  0x33   : > { %918 = vmatprep.subr.bf16.mxu1 %v1085_v6  ;;  %v1001_v7 = vld [vmem:[%s1180_s30] sm:$0xff]   ;;  %887 = vmatprep.subr.bf16.mxu0 %v1000_v5  ;;  %v1004_v10 = vld [vmem:[%s1180_s30 + $0x8] sm:$0xff]   ;;  %v1007_v13 = vld [vmem:[%s1180_s30 + $0x10] sm:$0xff]  }
  0x34   : > { %v1002_v8 = vld [vmem:[%s1180_s30 + $0x80] sm:$0xff]   ;;  %934 = vmatprep.mubr.msk.bf16.mxu1 %vm1086_vm0, %v1085_v6  ;;  %888 = vmatpush3.bf16.msra.mxu0 %v1001_v7  ;;  %v1005_v11 = vld [vmem:[%s1180_s30 + $0x88] sm:$0xff]   ;;  %v1008_v14 = vld [vmem:[%s1180_s30 + $0x90] sm:$0xff]  }
  0x35   : > { %919 = vmatpush3.bf16.msra.mxu1 %v1002_v8  ;;  %889 = vmatprep.subr.bf16.mxu0 %v1003_v9  ;;  %v1009_v15 = vld [vmem:[%s1180_s30 + $0x58] sm:$0xff]   ;;  %v1012_v18 = vld [vmem:[%s1180_s30 + $0x60] sm:$0xff]   ;;  %v1015_v21 = vld [vmem:[%s1180_s30 + $0x68] sm:$0xff]  }
  0x36   : > { %920 = vmatprep.subr.bf16.mxu1 %v1085_v6  ;;  %v1010_v16 = vld [vmem:[%s1180_s30 + $0x18] sm:$0xff]   ;;  %v1013_v19 = vld [vmem:[%s1180_s30 + $0x20] sm:$0xff]   ;;  %v1016_v22 = vld [vmem:[%s1180_s30 + $0x28] sm:$0xff]  }
  0x37   : > { %v1011_v17 = vld [vmem:[%s1180_s30 + $0x98] sm:$0xff]   ;;  %v1014_v20 = vld [vmem:[%s1180_s30 + $0xa0] sm:$0xff]   ;;  %v1017_v23 = vld [vmem:[%s1180_s30 + $0xa8] sm:$0xff]  }
  0x38   : > { %890 = vmatpush3.bf16.msra.mxu0 %v1004_v10  ;;  %v1018_v24 = vld [vmem:[%s1180_s30 + $0x70] sm:$0xff]   ;;  %v1021_v27 = vld [vmem:[%s1180_s30 + $0x78] sm:$0xff]   ;;  %v355_v39 = vld [vmem:[#allocation2] sm:$0xff] }
  0x39   : > { %921 = vmatpush3.bf16.msra.mxu1 %v1005_v11  ;;  %891 = vmatprep.subr.bf16.mxu0 %v1006_v12  ;;  %v1019_v25 = vld [vmem:[%s1180_s30 + $0x30] sm:$0xff]   ;;  %v1022_v29 = vld [vmem:[%s1180_s30 + $0x38] sm:$0xff]   ;;  %v356_v45 = vld [vmem:[#allocation2 + $0x8] sm:$0xff] }
  0x3a   : > { %922 = vmatprep.subr.bf16.mxu1 %v1085_v6  ;;  %v1020_v26 = vld [vmem:[%s1180_s30 + $0xb0] sm:$0xff]   ;;  %v1023_v30 = vld [vmem:[%s1180_s30 + $0xb8] sm:$0xff]   ;;  %v871_v51 = vld [vmem:[%s1251_s2] ss:$0 sm:$0xff] (!%p870_p13) }
  0x3b   : > { %v1026_v28 = vld [vmem:[%s1192_s10 + $0x4] ss:$12 sps:$4 sm:$0xff]   ;;  %v1024_v31 = vld [vmem:[%s1192_s10] ss:$12 sps:$4 sm:$0xff]   ;;  %v1027_v32 = vld [vmem:[%s1192_s10 + $0x8] ss:$12 sps:$4 sm:$0xff]  }
  0x3c   : > { %892 = vmatpush3.bf16.msra.mxu0 %v1007_v13  ;;  %601 = vmatprep.mubr.bf16.mxu0 %v1026_v28  ;;  %v879_v54 = vld [vmem:[%s1185_s8] sm:$0xff] (!%p870_p13)  }
  0x3d   : > { %923 = vmatpush3.bf16.msra.mxu1 %v1008_v14  ;;  %893 = vmatprep.subr.bf16.mxu0 %v1009_v15  ;;  %v880_v55 = vunpack.c.l.bf16 (!%p870_p13), %v879_v54  ;;  %v881_v56 = vunpack.c.h.bf16 (!%p870_p13), %v879_v54 }
  0x3e   : > { %924 = vmatprep.subr.bf16.mxu1 %v1085_v6 }
  0x40   : > { %894 = vmatpush3.bf16.msra.mxu0 %v1010_v16 }
  0x41   : > { %925 = vmatpush3.bf16.msra.mxu1 %v1011_v17  ;;  %895 = vmatprep.subr.bf16.mxu0 %v1012_v18 }
  0x42   : > { %926 = vmatprep.subr.bf16.mxu1 %v1085_v6 }
  0x44   : > { %896 = vmatpush3.bf16.msra.mxu0 %v1013_v19 }
  0x45   : > { %927 = vmatpush3.bf16.msra.mxu1 %v1014_v20  ;;  %897 = vmatprep.subr.bf16.mxu0 %v1015_v21 }
  0x46   : > { %928 = vmatprep.subr.bf16.mxu1 %v1085_v6 }
  0x48   : > { %898 = vmatpush3.bf16.msra.mxu0 %v1016_v22 }
  0x49   : > { %929 = vmatpush3.bf16.msra.mxu1 %v1017_v23  ;;  %899 = vmatprep.subr.bf16.mxu0 %v1018_v24 }
  0x4a   : > { %930 = vmatprep.subr.bf16.mxu1 %v1085_v6 }
  0x4c   : > { %900 = vmatpush3.bf16.msra.mxu0 %v1019_v25 }
  0x4d   : > { %931 = vmatpush3.bf16.msra.mxu1 %v1020_v26  ;;  %901 = vmatprep.subr.bf16.mxu0 %v1021_v27 }
  0x4e   : > { %932 = vmatprep.subr.bf16.mxu1 %v1085_v6 }
  0x50   : > { %902 = vmatpush3.bf16.msra.mxu0 %v1022_v29 }
  0x51   : > { %933 = vmatpush3.bf16.msra.mxu1 %v1023_v30 }
  0x53   : > { %602 = vmatmul.mubr.bf16.vlgmr.msra.gmra.mrb[0].mxu0 %v1024_v31 }
  0x54   : > { %935 = vmatmul.mubr.bf16.vlgmr.msra.gmra.mrb[0].mxu1 %v1027_v32 }
 0x126   : > { %v903_v33 = vpop.f32.mrb[0].mxu0 }
 0x127   : > { %v644_v34 = vpop.f32.mrb[0].mxu1  ;;  %v904_v35 = vpop.f32.mrb[1].mxu0 }
 0x128   : > { %v905_v36 = vadd.f32 %v904_v35, %v903_v33  ;;  %v936_v37 = vpop.f32.mrb[1].mxu1  ;;  %v906_v38 = vpop.f32.mrb[2].mxu0 }
 0x129   : > { %v647_v40 = vpop.f32.mrb[2].mxu1  ;;  %v907_v41 = vpop.f32.mrb[3].mxu0 }
 0x12a   : > { %v645_v42 = vadd.f32 %v905_v36, %v644_v34  ;;  %v908_v43 = vadd.f32 %v907_v41, %v906_v38  ;;  %v937_v44 = vpop.f32.mrb[3].mxu1  ;;  %658 = sbr.rel (%p870_p13) target bundleno = 321 (0x141), region = 70 }
 0x12c   : > { %v651_v46 = vadd.f32 %v645_v42, %v355_v39  ;;  %v648_v47 = vadd.f32 %v908_v43, %v647_v40 }
 0x12e   : > { %653 = vst [vmem:[#allocation2] sm:$0xff] %v651_v46  ;;  %v652_v48 = vadd.f32 %v648_v47, %v356_v45 }
 0x130   : > { %654 = vst [vmem:[#allocation2 + $0x8] sm:$0xff] %v652_v48 }
 0x135   : > { %v659_v49 = vld [vmem:[#allocation2] sm:$0xff] }
 0x136   : > { %v668_v52 = vadd.f32 %v871_v51, %v659_v49 }
 0x137   : > { %v660_v50 = vld [vmem:[#allocation2 + $0x8] sm:$0xff] }
 0x138   : > { %v669_v53 = vadd.f32 %v871_v51, %v660_v50  ;;  %v674_v57 = vadd.f32 %v880_v55, %v668_v52 }
 0x13a   : > { %v675_v58 = vadd.f32 %v881_v56, %v669_v53  ;;  %v676_v59 = vmax.f32 %v674_v57, 0.0 }
 0x13c   : > { %v677_v60 = vmax.f32 %v675_v58, 0.0 }
 0x13e   : > { %v885_v61 = vpack.c.bf16 %v677_v60, %v676_v59 }
 0x140   : > { %886 = vst [vmem:[%s1190_s18] sm:$0xff] %v885_v61  }
 0x141 PF: > { %s14_s21 = sadd.s32 1, %s1082_s21   ;;  %s1254_s15 = smov %s1062_s16 }
 0x142   : > { %p11_p0 = scmp.ge.s32.totalorder %s14_s21, 8   ;;  %s1255_s16 = smov %s1163_s28 }
 0x143   : > { %s1256_s17 = smov %s1074_s19  ;;  %s1257_s18 = smov %s1078_s20 }
 0x144   : > { %s1258_s19 = smov %s1261_s22  ;;  %s1259_s20 = smov %s1265_s23 }
 0x145   :  { %13 = sbr.rel (!%p11_p0) target bundleno = 4 (0x4), region = 120 }

// kernel: embedder_forward.29
= control target key start
LH: loop header
LB: loop body
LE: loop exit
PB: predicated region body
PF: predicated region fallthrough
CT: control target
= control target key end

     0   :  { %s1020_s12 = smov 0   ;;  %s1022_s13 = smov 0   ;;  %s1151_s0 = inlined_call_operand.vmem [shape: bf16[32,1152], index: 0, kind: input, shape index: {}]   ;;  %s1152_s1 = inlined_call_operand.vmem [shape: bf16[1152,128], index: 1, kind: input, shape index: {}]   ;;  %s1153_s2 = inlined_call_operand.vmem [shape: f32[1,128], index: 2, kind: input, shape index: {}]   ;;  %s1154_s3 = inlined_call_operand.vmem [shape: bf16[32,128], index: 3, kind: output, shape index: {}]  }
   0x1   :  { %s1024_s14 = smov 0   ;;  %s1026_s15 = smov 0  }
   0x2   :  { %s1028_s16 = smov 0   ;;  %s1030_s17 = smov 0  }
   0x3   :  { %s1032_s18 = smov 0  }
   0x4 LB: > { %s25_s19 = sadd.s32 1, %s987_s16  ;;  %s32_s20 = sadd.s32 1, %s991_s17  ;;  %s995_s18 = sphi %s1032_s18, %s13_s18   ;;  %s991_s17 = sphi %s1030_s17, %s1160_s17   ;;  %s987_s16 = sphi %s1028_s16, %s1159_s16   ;;  %s983_s15 = sphi %s1026_s15, %s1158_s15   ;;  %s979_s14 = sphi %s1024_s14, %s1157_s14   ;;  %s975_s13 = sphi %s1022_s13, %s1156_s13   ;;  %s971_s12 = sphi %s1020_s12, %s1155_s12  }
   0x5   : > { %p26_p0 = scmp.ge.s32.totalorder %s25_s19, 3  ;;  %p48_p1 = scmp.ne.s32.totalorder %s975_s13, %s971_s12 }
   0x6   : > { %p49_p2 = scmp.eq.s32.totalorder %s995_s18, 0  ;;  %s41_s24 = sadd.s32 1, %s975_s13 }
   0x7   : > { %s1162_s19 = smov (%p26_p0, %s25_s19), 0  ;;  %s1164_s20 = smov (!%p26_p0, %s32_s20), %s991_s17 }
   0x8   : > { %p50_p3 = por %p49_p2, %p48_p1  ;;  %p34_p4 = scmp.ge.s32.totalorder %s1164_s20, 2 }
   0x9   : > { %s37_s21 = ssub.s32 %s987_s16, %s1162_s19  ;;  %p747_p6 = scmp.ge.s32.totalorder %s995_s18, 6 }
   0xa   : > { %s1166_s20 = smov (%p34_p4, %s1164_s20), 0 }
   0xb   : > { %s36_s22 = ssub.s32 %s991_s17, %s1166_s20  ;;  %162 = sbr.rel (%p747_p6) target bundleno = 29 (0x1d), region = 20 }
   0xc   : > { %s38_s23 = sor.u32 %s37_s21, %s36_s22 }
   0xd   : > { %p39_p5 = scmp.eq.s32.totalorder %s38_s23, 0 }
   0xf   : > { %s1071_s25 = scalar_select %p39_p5, %s975_s13, %s41_s24  }
  0x12   : > { %165 = sbr.rel (!%p50_p3) target bundleno = 29 (0x1d), region = 24  ;;  %s167_s26 = sand.u32 (%p50_p3), 1, %s975_s13  }
  0x13   : > { %s171_s27 = smul.u32 (%p50_p3), 3, %s987_s16 }
  0x14   : > { %s851_s28 = smul.u32 (%p50_p3), 24, %s167_s26 }
  0x15   : > { %s852_s29 = smul.u32 (%p50_p3), 18, %s991_s17 }
  0x16   : > { %s169_s8 = scalar_lea.vmem (%p50_p3), [#allocation3], %s851_s28 }
  0x17   : > { %s173_s30 = sadd.s32 (%p50_p3), %s852_s29, %s171_s27 }
  0x18   : > { %s750_s4 = sshll.u32 (%p50_p3), %s173_s30, 2 }
  0x19   : > { %s175_s7 = scalar_lea.vmem %s1151_s0, %s750_s4 }
  0x1a   : > { %v190_v0 = vld [vmem:[%s175_s7] sm:$0xff]  ;;  %v751_v2 = vld [vmem:[%s175_s7 + $0x8] sm:$0xf]  ;;  %v753_v3 = vld [vmem:[%s175_s7 + $0x2c] sm:$0xf] }
  0x1b   : > { %v192_v1 = vld [vmem:[%s175_s7 + $0x24] sm:$0xff]  ;;  %191 = vst [vmem:[%s169_s8] sm:$0xff] %v190_v0  ;;  %752 = vst [vmem:[%s169_s8 + $0x8] sm:$0xf] %v751_v2 }
  0x1c   : > { %193 = vst [vmem:[%s169_s8 + $0xc] sm:$0xff] %v192_v1  ;;  %754 = vst [vmem:[%s169_s8 + $0x14] sm:$0xf] %v753_v3 }
  0x1d PF: > { %p755_p7 = scmp.ge.s32.totalorder %s995_s18, 1  ;;  %p221_p8 = scmp.lt.s32.totalorder %s995_s18, 7 }
  0x1f   : > { %p222_p9 = pnand %p755_p7, %p221_p8 }
  0x20   : > { %s228_s9 = sand.u32 (!%p222_p9), 1, %s971_s12   ;;  %s267_s10 = smul.u32 (!%p222_p9), 48, %s979_s14 }
  0x21   : > { %225 = sbr.rel (%p222_p9) target bundleno = 319 (0x13f), region = 54  ;;  %s757_s21 = sshll.u32 (!%p222_p9), %s983_s15, 1 }
  0x22   : > { %s853_s11 = smul.u32 (!%p222_p9), 24, %s228_s9  ;;  %p268_p10 = scmp.lt.s32.totalorder (!%p222_p9), %s267_s10, 143 }
  0x23   : > { %p280_p11 = scmp.lt.s32.totalorder (!%p222_p9), %s757_s21, 3  ;;  %p759_p12 = scmp.ne.s32.totalorder (!%p222_p9), %s979_s14, 0 }
  0x24   : > { %s1095_s12 = scalar_lea.vmem (!%p222_p9), [#allocation3], %s853_s11 }
  0x28   : > { %s1168_s10 = smov (!%p268_p10, %s267_s10), 143  ;;  %s1170_s21 = smov (!%p280_p11, %s757_s21), 3 }
  0x29   : > { %s756_s22 = sshll.u32 %s1168_s10, 2  ;;  %s758_s27 = sshll.u32 %s1170_s21, 2  ;;  %v997_v4 = vmov (!%p759_p12), 0.0  }
  0x2a   : > { %s1088_s26 = scalar_lea.vmem %s1152_s1, %s756_s22  ;;  %s1093_s30 = scalar_lea.vmem %s1154_s3, %s758_s27  ;;  %293 = vst [vmem:[#allocation2] sm:$0xff] (!%p759_p12), %v997_v4  ;;  %294 = vst [vmem:[#allocation2 + $0x8] sm:$0xff] (!%p759_p12), %v997_v4 }
  0x2b   : > { %292 = sbr.rel (%p759_p12) target bundleno = 50 (0x32), region = 62 }
  0x32 PF: > { %v913_v5 = vld [vmem:[%s1088_s26 + $0x40] sm:$0xff]   ;;  %v998_v6 = vmov 0.0   ;;  %vm999_vm0 = vmmov 0   ;;  %v916_v9 = vld [vmem:[%s1088_s26 + $0x48] sm:$0xff]   ;;  %v919_v12 = vld [vmem:[%s1088_s26 + $0x50] sm:$0xff]   ;;  %p787_p13 = scmp.ne.s32.totalorder %s979_s14, 2 }
  0x33   : > { %831 = vmatprep.subr.bf16.mxu1 %v998_v6  ;;  %v914_v7 = vld [vmem:[%s1088_s26] sm:$0xff]   ;;  %800 = vmatprep.subr.bf16.mxu0 %v913_v5  ;;  %v917_v10 = vld [vmem:[%s1088_s26 + $0x8] sm:$0xff]   ;;  %v920_v13 = vld [vmem:[%s1088_s26 + $0x10] sm:$0xff]  }
  0x34   : > { %v915_v8 = vld [vmem:[%s1088_s26 + $0x80] sm:$0xff]   ;;  %847 = vmatprep.mubr.msk.bf16.mxu1 %vm999_vm0, %v998_v6  ;;  %801 = vmatpush3.bf16.msra.mxu0 %v914_v7  ;;  %v918_v11 = vld [vmem:[%s1088_s26 + $0x88] sm:$0xff]   ;;  %v921_v14 = vld [vmem:[%s1088_s26 + $0x90] sm:$0xff]  }
  0x35   : > { %832 = vmatpush3.bf16.msra.mxu1 %v915_v8  ;;  %802 = vmatprep.subr.bf16.mxu0 %v916_v9  ;;  %v922_v15 = vld [vmem:[%s1088_s26 + $0x58] sm:$0xff]   ;;  %v925_v18 = vld [vmem:[%s1088_s26 + $0x60] sm:$0xff]   ;;  %v928_v21 = vld [vmem:[%s1088_s26 + $0x68] sm:$0xff]  }
  0x36   : > { %833 = vmatprep.subr.bf16.mxu1 %v998_v6  ;;  %v923_v16 = vld [vmem:[%s1088_s26 + $0x18] sm:$0xff]   ;;  %v926_v19 = vld [vmem:[%s1088_s26 + $0x20] sm:$0xff]   ;;  %v929_v22 = vld [vmem:[%s1088_s26 + $0x28] sm:$0xff]  }
  0x37   : > { %v924_v17 = vld [vmem:[%s1088_s26 + $0x98] sm:$0xff]   ;;  %v927_v20 = vld [vmem:[%s1088_s26 + $0xa0] sm:$0xff]   ;;  %v930_v23 = vld [vmem:[%s1088_s26 + $0xa8] sm:$0xff]  }
  0x38   : > { %803 = vmatpush3.bf16.msra.mxu0 %v917_v10  ;;  %v931_v24 = vld [vmem:[%s1088_s26 + $0x70] sm:$0xff]   ;;  %v934_v27 = vld [vmem:[%s1088_s26 + $0x78] sm:$0xff]   ;;  %v295_v39 = vld [vmem:[#allocation2] sm:$0xff] }
  0x39   : > { %834 = vmatpush3.bf16.msra.mxu1 %v918_v11  ;;  %804 = vmatprep.subr.bf16.mxu0 %v919_v12  ;;  %v932_v25 = vld [vmem:[%s1088_s26 + $0x30] sm:$0xff]   ;;  %v935_v29 = vld [vmem:[%s1088_s26 + $0x38] sm:$0xff]   ;;  %v296_v45 = vld [vmem:[#allocation2 + $0x8] sm:$0xff] }
  0x3a   : > { %835 = vmatprep.subr.bf16.mxu1 %v998_v6  ;;  %v933_v26 = vld [vmem:[%s1088_s26 + $0xb0] sm:$0xff]   ;;  %v936_v30 = vld [vmem:[%s1088_s26 + $0xb8] sm:$0xff]   ;;  %v788_v51 = vld [vmem:[%s1153_s2] ss:$0 sm:$0xff] (!%p787_p13) }
  0x3b   : > { %v939_v28 = vld [vmem:[%s1095_s12 + $0x4] ss:$12 sps:$4 sm:$0xff]   ;;  %v937_v31 = vld [vmem:[%s1095_s12] ss:$12 sps:$4 sm:$0xff]   ;;  %v940_v32 = vld [vmem:[%s1095_s12 + $0x8] ss:$12 sps:$4 sm:$0xff]  }
  0x3c   : > { %805 = vmatpush3.bf16.msra.mxu0 %v920_v13  ;;  %541 = vmatprep.mubr.bf16.mxu0 %v939_v28 }
  0x3d   : > { %836 = vmatpush3.bf16.msra.mxu1 %v921_v14  ;;  %806 = vmatprep.subr.bf16.mxu0 %v922_v15 }
  0x3e   : > { %837 = vmatprep.subr.bf16.mxu1 %v998_v6 }
  0x40   : > { %807 = vmatpush3.bf16.msra.mxu0 %v923_v16 }
  0x41   : > { %838 = vmatpush3.bf16.msra.mxu1 %v924_v17  ;;  %808 = vmatprep.subr.bf16.mxu0 %v925_v18 }
  0x42   : > { %839 = vmatprep.subr.bf16.mxu1 %v998_v6 }
  0x44   : > { %809 = vmatpush3.bf16.msra.mxu0 %v926_v19 }
  0x45   : > { %840 = vmatpush3.bf16.msra.mxu1 %v927_v20  ;;  %810 = vmatprep.subr.bf16.mxu0 %v928_v21 }
  0x46   : > { %841 = vmatprep.subr.bf16.mxu1 %v998_v6 }
  0x48   : > { %811 = vmatpush3.bf16.msra.mxu0 %v929_v22 }
  0x49   : > { %842 = vmatpush3.bf16.msra.mxu1 %v930_v23  ;;  %812 = vmatprep.subr.bf16.mxu0 %v931_v24 }
  0x4a   : > { %843 = vmatprep.subr.bf16.mxu1 %v998_v6 }
  0x4c   : > { %813 = vmatpush3.bf16.msra.mxu0 %v932_v25 }
  0x4d   : > { %844 = vmatpush3.bf16.msra.mxu1 %v933_v26  ;;  %814 = vmatprep.subr.bf16.mxu0 %v934_v27 }
  0x4e   : > { %845 = vmatprep.subr.bf16.mxu1 %v998_v6 }
  0x50   : > { %815 = vmatpush3.bf16.msra.mxu0 %v935_v29 }
  0x51   : > { %846 = vmatpush3.bf16.msra.mxu1 %v936_v30 }
  0x53   : > { %542 = vmatmul.mubr.bf16.vlgmr.msra.gmra.mrb[0].mxu0 %v937_v31 }
  0x54   : > { %848 = vmatmul.mubr.bf16.vlgmr.msra.gmra.mrb[0].mxu1 %v940_v32 }
 0x126   : > { %v816_v33 = vpop.f32.mrb[0].mxu0 }
 0x127   : > { %v584_v34 = vpop.f32.mrb[0].mxu1  ;;  %v817_v35 = vpop.f32.mrb[1].mxu0 }
 0x128   : > { %v818_v36 = vadd.f32 %v817_v35, %v816_v33  ;;  %v849_v37 = vpop.f32.mrb[1].mxu1  ;;  %v819_v38 = vpop.f32.mrb[2].mxu0 }
 0x129   : > { %v587_v40 = vpop.f32.mrb[2].mxu1  ;;  %v820_v41 = vpop.f32.mrb[3].mxu0 }
 0x12a   : > { %v585_v42 = vadd.f32 %v818_v36, %v584_v34  ;;  %v821_v43 = vadd.f32 %v820_v41, %v819_v38  ;;  %v850_v44 = vpop.f32.mrb[3].mxu1  ;;  %598 = sbr.rel (%p787_p13) target bundleno = 319 (0x13f), region = 66 }
 0x12c   : > { %v591_v46 = vadd.f32 %v585_v42, %v295_v39  ;;  %v588_v47 = vadd.f32 %v821_v43, %v587_v40 }
 0x12e   : > { %593 = vst [vmem:[#allocation2] sm:$0xff] %v591_v46  ;;  %v592_v48 = vadd.f32 %v588_v47, %v296_v45 }
 0x130   : > { %594 = vst [vmem:[#allocation2 + $0x8] sm:$0xff] %v592_v48 }
 0x135   : > { %v599_v49 = vld [vmem:[#allocation2] sm:$0xff] }
 0x136   : > { %v608_v52 = vadd.f32 %v788_v51, %v599_v49 }
 0x137   : > { %v600_v50 = vld [vmem:[#allocation2 + $0x8] sm:$0xff] }
 0x138   : > { %v609_v53 = vadd.f32 %v788_v51, %v600_v50  ;;  %v610_v54 = vmax.f32 %v608_v52, 0.0 }
 0x13a   : > { %v611_v55 = vmax.f32 %v609_v53, 0.0 }
 0x13c   : > { %v798_v56 = vpack.c.bf16 %v611_v55, %v610_v54 }
 0x13e   : > { %799 = vst [vmem:[%s1093_s30] sm:$0xff] %v798_v56  }
 0x13f PF: > { %s13_s18 = sadd.s32 1, %s995_s18   ;;  %s1155_s12 = smov %s975_s13 }
 0x140   : > { %p10_p0 = scmp.ge.s32.totalorder %s13_s18, 8   ;;  %s1156_s13 = smov %s1071_s25 }
 0x141   : > { %s1157_s14 = smov %s987_s16  ;;  %s1158_s15 = smov %s991_s17 }
 0x142   : > { %s1159_s16 = smov %s1162_s19  ;;  %s1160_s17 = smov %s1166_s20 }
 0x143   :  { %12 = sbr.rel (!%p10_p0) target bundleno = 4 (0x4), region = 113 }

// kernel: embedder_forward.31
= control target key start
LH: loop header
LB: loop body
LE: loop exit
PB: predicated region body
PF: predicated region fallthrough
CT: control target
= control target key end

     0   :  { %s1171_s12 = smov 0   ;;  %s1173_s13 = smov 0   ;;  %s1411_s0 = inlined_call_operand.vmem [shape: bf16[8,1152], index: 0, kind: input, shape index: {}]   ;;  %s1412_s1 = inlined_call_operand.vmem [shape: bf16[1152,256], index: 1, kind: input, shape index: {}]   ;;  %s1413_s2 = inlined_call_operand.vmem [shape: f32[1,256], index: 2, kind: input, shape index: {}]   ;;  %s1414_s3 = inlined_call_operand.vmem [shape: bf16[8,256], index: 3, kind: output, shape index: {}]  }
   0x1   :  { %s1175_s14 = smov 0   ;;  %s1177_s15 = smov 0  }
   0x2   :  { %s1179_s16 = smov 0   ;;  %s1181_s17 = smov 0  }
   0x3   :  { %s1183_s18 = smov 0  }
   0x4 LB: > { %s25_s19 = sadd.s32 1, %s1138_s16  ;;  %s28_s20 = sadd.s32 1, %s1142_s17  ;;  %s1146_s18 = sphi %s1183_s18, %s13_s18   ;;  %s1142_s17 = sphi %s1181_s17, %s1420_s17   ;;  %s1138_s16 = sphi %s1179_s16, %s1419_s16   ;;  %s1134_s15 = sphi %s1177_s15, %s1418_s15   ;;  %s1130_s14 = sphi %s1175_s14, %s1417_s14   ;;  %s1126_s13 = sphi %s1173_s13, %s1416_s13   ;;  %s1122_s12 = sphi %s1171_s12, %s1415_s12  }
   0x5   : > { %p26_p0 = scmp.ge.s32.totalorder %s25_s19, 3  ;;  %p76_p1 = scmp.ne.s32.totalorder %s1126_s13, %s1122_s12 }
   0x6   : > { %p77_p2 = scmp.eq.s32.totalorder %s1146_s18, 0  ;;  %s69_s24 = sadd.s32 1, %s1126_s13 }
   0x7   : > { %s1422_s19 = smov (%p26_p0, %s25_s19), 0  ;;  %s1424_s20 = smov (!%p26_p0, %s28_s20), %s1142_s17 }
   0x8   : > { %p78_p3 = por %p77_p2, %p76_p1  ;;  %p30_p4 = scmp.ge.s32.totalorder %s1424_s20, 2 }
   0x9   : > { %s64_s21 = ssub.s32 %s1138_s16, %s1422_s19  ;;  %p914_p6 = scmp.ge.s32.totalorder %s1146_s18, 6 }
   0xa   : > { %s1426_s20 = smov (%p30_p4, %s1424_s20), 0 }
   0xb   : > { %s65_s22 = ssub.s32 %s1142_s17, %s1426_s20  ;;  %156 = sbr.rel (%p914_p6) target bundleno = 57 (0x39), region = 16 }
   0xc   : > { %s66_s23 = sor.u32 %s65_s22, %s64_s21 }
   0xd   : > { %p67_p5 = scmp.eq.s32.totalorder %s66_s23, 0 }
   0xf   : > { %s1222_s25 = scalar_select %p67_p5, %s1126_s13, %s69_s24  }
  0x12   : > { %172 = sbr.rel (!%p78_p3) target bundleno = 57 (0x39), region = 24  ;;  %s174_s26 = sand.u32 (%p78_p3), 1, %s1126_s13  }
  0x13   : > { %s952_s27 = smul.u32 (%p78_p3), 96, %s1138_s16 }
  0x14   : > { %s1004_s28 = smul.u32 (%p78_p3), 192, %s174_s26 }
  0x15   : > { %s179_s29 = sadd.s32 (%p78_p3), %s1142_s17, %s952_s27 }
  0x16   : > { %s916_s30 = sshll.u32 (%p78_p3), %s179_s29, 2  ;;  %s1236_s7 = scalar_lea.vmem (%p78_p3), [#allocation3], %s1004_s28 }
  0x17   : > { %s1231_s6 = scalar_lea.vmem (%p78_p3), %s1412_s1, %s916_s30 }
  0x18   : > { %v197_v0 = vld [vmem:[%s1231_s6] sm:$0xf] (%p78_p3)  ;;  %v199_v1 = vld [vmem:[%s1231_s6 + $0x8] sm:$0xf] (%p78_p3)  ;;  %v201_v2 = vld [vmem:[%s1231_s6 + $0x10] sm:$0xf] (%p78_p3) }
  0x19   : > { %198 = vst [vmem:[%s1236_s7] sm:$0xf] %v197_v0  ;;  %200 = vst [vmem:[%s1236_s7 + $0x4] sm:$0xf] %v199_v1  ;;  %v203_v3 = vld [vmem:[%s1231_s6 + $0x18] sm:$0xf] }
  0x1a   : > { %202 = vst [vmem:[%s1236_s7 + $0x8] sm:$0xf] %v201_v2  ;;  %v205_v4 = vld [vmem:[%s1231_s6 + $0x20] sm:$0xf]  ;;  %v207_v5 = vld [vmem:[%s1231_s6 + $0x28] sm:$0xf] }
  0x1b   : > { %204 = vst [vmem:[%s1236_s7 + $0xc] sm:$0xf] %v203_v3  ;;  %206 = vst [vmem:[%s1236_s7 + $0x10] sm:$0xf] %v205_v4  ;;  %v209_v6 = vld [vmem:[%s1231_s6 + $0x30] sm:$0xf] }
  0x1c   : > { %208 = vst [vmem:[%s1236_s7 + $0x14] sm:$0xf] %v207_v5  ;;  %v211_v7 = vld [vmem:[%s1231_s6 + $0x38] sm:$0xf]  ;;  %v213_v8 = vld [vmem:[%s1231_s6 + $0x40] sm:$0xf] }
  0x1d   : > { %210 = vst [vmem:[%s1236_s7 + $0x18] sm:$0xf] %v209_v6  ;;  %212 = vst [vmem:[%s1236_s7 + $0x1c] sm:$0xf] %v211_v7  ;;  %v215_v9 = vld [vmem:[%s1231_s6 + $0x48] sm:$0xf] }
  0x1e   : > { %214 = vst [vmem:[%s1236_s7 + $0x20] sm:$0xf] %v213_v8  ;;  %v217_v10 = vld [vmem:[%s1231_s6 + $0x50] sm:$0xf]  ;;  %v219_v11 = vld [vmem:[%s1231_s6 + $0x58] sm:$0xf] }
  0x1f   : > { %216 = vst [vmem:[%s1236_s7 + $0x24] sm:$0xf] %v215_v9  ;;  %218 = vst [vmem:[%s1236_s7 + $0x28] sm:$0xf] %v217_v10  ;;  %v221_v12 = vld [vmem:[%s1231_s6 + $0x60] sm:$0xf] }
  0x20   : > { %220 = vst [vmem:[%s1236_s7 + $0x2c] sm:$0xf] %v219_v11  ;;  %v223_v13 = vld [vmem:[%s1231_s6 + $0x68] sm:$0xf]  ;;  %v225_v14 = vld [vmem:[%s1231_s6 + $0x70] sm:$0xf] }
  0x21   : > { %222 = vst [vmem:[%s1236_s7 + $0x30] sm:$0xf] %v221_v12  ;;  %224 = vst [vmem:[%s1236_s7 + $0x34] sm:$0xf] %v223_v13  ;;  %v227_v15 = vld [vmem:[%s1231_s6 + $0x78] sm:$0xf] }
  0x22   : > { %226 = vst [vmem:[%s1236_s7 + $0x38] sm:$0xf] %v225_v14  ;;  %v229_v16 = vld [vmem:[%s1231_s6 + $0x80] sm:$0xf]  ;;  %v231_v17 = vld [vmem:[%s1231_s6 + $0x88] sm:$0xf] }
  0x23   : > { %228 = vst [vmem:[%s1236_s7 + $0x3c] sm:$0xf] %v227_v15  ;;  %230 = vst [vmem:[%s1236_s7 + $0x40] sm:$0xf] %v229_v16  ;;  %v233_v18 = vld [vmem:[%s1231_s6 + $0x90] sm:$0xf] }
  0x24   : > { %232 = vst [vmem:[%s1236_s7 + $0x44] sm:$0xf] %v231_v17  ;;  %v235_v19 = vld [vmem:[%s1231_s6 + $0x98] sm:$0xf]  ;;  %v237_v20 = vld [vmem:[%s1231_s6 + $0xa0] sm:$0xf] }
  0x25   : > { %234 = vst [vmem:[%s1236_s7 + $0x48] sm:$0xf] %v233_v18  ;;  %236 = vst [vmem:[%s1236_s7 + $0x4c] sm:$0xf] %v235_v19  ;;  %v239_v21 = vld [vmem:[%s1231_s6 + $0xa8] sm:$0xf] }
  0x26   : > { %238 = vst [vmem:[%s1236_s7 + $0x50] sm:$0xf] %v237_v20  ;;  %v241_v22 = vld [vmem:[%s1231_s6 + $0xb0] sm:$0xf]  ;;  %v243_v23 = vld [vmem:[%s1231_s6 + $0xb8] sm:$0xf] }
  0x27   : > { %240 = vst [vmem:[%s1236_s7 + $0x54] sm:$0xf] %v239_v21  ;;  %242 = vst [vmem:[%s1236_s7 + $0x58] sm:$0xf] %v241_v22  ;;  %v245_v24 = vld [vmem:[%s1231_s6 + $0xc0] sm:$0xf] }
  0x28   : > { %244 = vst [vmem:[%s1236_s7 + $0x5c] sm:$0xf] %v243_v23  ;;  %v247_v25 = vld [vmem:[%s1231_s6 + $0xc8] sm:$0xf]  ;;  %v249_v26 = vld [vmem:[%s1231_s6 + $0xd0] sm:$0xf] }
  0x29   : > { %246 = vst [vmem:[%s1236_s7 + $0x60] sm:$0xf] %v245_v24  ;;  %248 = vst [vmem:[%s1236_s7 + $0x64] sm:$0xf] %v247_v25  ;;  %v251_v27 = vld [vmem:[%s1231_s6 + $0xd8] sm:$0xf] }
  0x2a   : > { %250 = vst [vmem:[%s1236_s7 + $0x68] sm:$0xf] %v249_v26  ;;  %v253_v28 = vld [vmem:[%s1231_s6 + $0xe0] sm:$0xf]  ;;  %v255_v29 = vld [vmem:[%s1231_s6 + $0xe8] sm:$0xf] }
  0x2b   : > { %252 = vst [vmem:[%s1236_s7 + $0x6c] sm:$0xf] %v251_v27  ;;  %254 = vst [vmem:[%s1236_s7 + $0x70] sm:$0xf] %v253_v28  ;;  %v257_v30 = vld [vmem:[%s1231_s6 + $0xf0] sm:$0xf] }
  0x2c   : > { %256 = vst [vmem:[%s1236_s7 + $0x74] sm:$0xf] %v255_v29  ;;  %v259_v31 = vld [vmem:[%s1231_s6 + $0xf8] sm:$0xf]  ;;  %v261_v32 = vld [vmem:[%s1231_s6 + $0x100] sm:$0xf] }
  0x2d   : > { %258 = vst [vmem:[%s1236_s7 + $0x78] sm:$0xf] %v257_v30  ;;  %260 = vst [vmem:[%s1236_s7 + $0x7c] sm:$0xf] %v259_v31  ;;  %v263_v33 = vld [vmem:[%s1231_s6 + $0x108] sm:$0xf] }
  0x2e   : > { %262 = vst [vmem:[%s1236_s7 + $0x80] sm:$0xf] %v261_v32  ;;  %v265_v34 = vld [vmem:[%s1231_s6 + $0x110] sm:$0xf]  ;;  %v267_v35 = vld [vmem:[%s1231_s6 + $0x118] sm:$0xf] }
  0x2f   : > { %264 = vst [vmem:[%s1236_s7 + $0x84] sm:$0xf] %v263_v33  ;;  %266 = vst [vmem:[%s1236_s7 + $0x88] sm:$0xf] %v265_v34  ;;  %v269_v36 = vld [vmem:[%s1231_s6 + $0x120] sm:$0xf] }
  0x30   : > { %268 = vst [vmem:[%s1236_s7 + $0x8c] sm:$0xf] %v267_v35  ;;  %v271_v37 = vld [vmem:[%s1231_s6 + $0x128] sm:$0xf]  ;;  %v273_v38 = vld [vmem:[%s1231_s6 + $0x130] sm:$0xf] }
  0x31   : > { %270 = vst [vmem:[%s1236_s7 + $0x90] sm:$0xf] %v269_v36  ;;  %272 = vst [vmem:[%s1236_s7 + $0x94] sm:$0xf] %v271_v37  ;;  %v275_v39 = vld [vmem:[%s1231_s6 + $0x138] sm:$0xf] }
  0x32   : > { %274 = vst [vmem:[%s1236_s7 + $0x98] sm:$0xf] %v273_v38  ;;  %v277_v40 = vld [vmem:[%s1231_s6 + $0x140] sm:$0xf]  ;;  %v279_v41 = vld [vmem:[%s1231_s6 + $0x148] sm:$0xf] }
  0x33   : > { %276 = vst [vmem:[%s1236_s7 + $0x9c] sm:$0xf] %v275_v39  ;;  %278 = vst [vmem:[%s1236_s7 + $0xa0] sm:$0xf] %v277_v40  ;;  %v281_v42 = vld [vmem:[%s1231_s6 + $0x150] sm:$0xf] }
  0x34   : > { %280 = vst [vmem:[%s1236_s7 + $0xa4] sm:$0xf] %v279_v41  ;;  %v283_v43 = vld [vmem:[%s1231_s6 + $0x158] sm:$0xf]  ;;  %v285_v44 = vld [vmem:[%s1231_s6 + $0x160] sm:$0xf] }
  0x35   : > { %282 = vst [vmem:[%s1236_s7 + $0xa8] sm:$0xf] %v281_v42  ;;  %284 = vst [vmem:[%s1236_s7 + $0xac] sm:$0xf] %v283_v43  ;;  %v287_v45 = vld [vmem:[%s1231_s6 + $0x168] sm:$0xf] }
  0x36   : > { %286 = vst [vmem:[%s1236_s7 + $0xb0] sm:$0xf] %v285_v44  ;;  %v289_v46 = vld [vmem:[%s1231_s6 + $0x170] sm:$0xf]  ;;  %v291_v47 = vld [vmem:[%s1231_s6 + $0x178] sm:$0xf] }
  0x37   : > { %288 = vst [vmem:[%s1236_s7 + $0xb4] sm:$0xf] %v287_v45  ;;  %290 = vst [vmem:[%s1236_s7 + $0xb8] sm:$0xf] %v289_v46 }
  0x38   : > { %292 = vst [vmem:[%s1236_s7 + $0xbc] sm:$0xf] %v291_v47 }
  0x39 PF: > { %p917_p7 = scmp.ge.s32.totalorder %s1146_s18, 1  ;;  %p416_p8 = scmp.lt.s32.totalorder %s1146_s18, 7 }
  0x3b   : > { %p417_p9 = pnand %p917_p7, %p416_p8 }
  0x3c   : > { %s423_s8 = sand.u32 (!%p417_p9), 1, %s1122_s12   ;;  %s461_s9 = smul.u32 (!%p417_p9), 3, %s1130_s14 }
  0x3d   : > { %420 = sbr.rel (%p417_p9) target bundleno = 345 (0x159), region = 69  ;;  %p472_p10 = scmp.lt.s32.totalorder (!%p417_p9), %s1134_s15, 1 }
  0x3e   : > { %s1005_s10 = smul.u32 (!%p417_p9), 192, %s423_s8  ;;  %p464_p11 = scmp.lt.s32.totalorder (!%p417_p9), %s461_s9, 8 }
  0x3f   : > { %p920_p12 = scmp.ne.s32.totalorder (!%p417_p9), %s1130_s14, 0 }
  0x40   : > { %s1354_s4 = scalar_lea.vmem (!%p417_p9), [#allocation3], %s1005_s10 }
  0x44   : > { %s1428_s9 = smov (!%p464_p11, %s461_s9), 8  ;;  %s1430_s15 = smov (!%p472_p10, %s1134_s15), 1 }
  0x45   : > { %s918_s11 = sshll.u32 %s1428_s9, 2  ;;  %s474_s27 = scalar_lea.vmem %s1413_s2, %s1430_s15  ;;  %v1148_v48 = vmov (!%p920_p12), 0.0  }
  0x46   : > { %s1342_s23 = scalar_lea.vmem %s1411_s0, %s918_s11  ;;  %s919_s12 = sshll.u32 %s1430_s15, 2  ;;  %488 = vst [vmem:[#allocation2] sm:$0xff] (!%p920_p12), %v1148_v48 }
  0x47   : > { %s1352_s30 = scalar_lea.vmem %s1414_s3, %s919_s12  ;;  %487 = sbr.rel (%p920_p12) target bundleno = 78 (0x4e), region = 77 }
  0x4e PF: > { %v1065_v49 = vld [vmem:[%s1354_s4 + $0x40] sm:$0xff]   ;;  %v1149_v50 = vmov 0.0   ;;  %vm1150_vm0 = vmmov 0   ;;  %v1068_v53 = vld [vmem:[%s1354_s4 + $0x48] sm:$0xff]   ;;  %v1071_v56 = vld [vmem:[%s1354_s4 + $0x50] sm:$0xff]   ;;  %p948_p13 = scmp.ne.s32.totalorder %s1130_s14, 2 }
  0x4f   : > { %984 = vmatprep.subr.bf16.mxu1 %v1149_v50  ;;  %v1066_v51 = vld [vmem:[%s1354_s4] sm:$0xff]   ;;  %953 = vmatprep.subr.bf16.mxu0 %v1065_v49  ;;  %v1069_v54 = vld [vmem:[%s1354_s4 + $0x8] sm:$0xff]   ;;  %v1072_v57 = vld [vmem:[%s1354_s4 + $0x10] sm:$0xff]  }
  0x50   : > { %v1067_v52 = vld [vmem:[%s1354_s4 + $0x80] sm:$0xff]   ;;  %1000 = vmatprep.mubr.msk.bf16.mxu1 %vm1150_vm0, %v1149_v50  ;;  %954 = vmatpush3.bf16.msra.mxu0 %v1066_v51  ;;  %v1070_v55 = vld [vmem:[%s1354_s4 + $0x88] sm:$0xff]   ;;  %v1073_v58 = vld [vmem:[%s1354_s4 + $0x90] sm:$0xff]  }
  0x51   : > { %985 = vmatpush3.bf16.msra.mxu1 %v1067_v52  ;;  %955 = vmatprep.subr.bf16.mxu0 %v1068_v53  ;;  %v1074_v59 = vld [vmem:[%s1354_s4 + $0x58] sm:$0xff]   ;;  %v1077_v62 = vld [vmem:[%s1354_s4 + $0x60] sm:$0xff]   ;;  %v1080_v1 = vld [vmem:[%s1354_s4 + $0x68] sm:$0xff]  }
  0x52   : > { %986 = vmatprep.subr.bf16.mxu1 %v1149_v50  ;;  %v1075_v60 = vld [vmem:[%s1354_s4 + $0x18] sm:$0xff]   ;;  %v1078_v63 = vld [vmem:[%s1354_s4 + $0x20] sm:$0xff]   ;;  %v1081_v2 = vld [vmem:[%s1354_s4 + $0x28] sm:$0xff]  }
  0x53   : > { %v1076_v61 = vld [vmem:[%s1354_s4 + $0x98] sm:$0xff]   ;;  %v1079_v0 = vld [vmem:[%s1354_s4 + $0xa0] sm:$0xff]   ;;  %v1082_v3 = vld [vmem:[%s1354_s4 + $0xa8] sm:$0xff]  }
  0x54   : > { %956 = vmatpush3.bf16.msra.mxu0 %v1069_v54  ;;  %v1083_v4 = vld [vmem:[%s1354_s4 + $0x70] sm:$0xff]   ;;  %v1086_v7 = vld [vmem:[%s1354_s4 + $0x78] sm:$0xff]   ;;  %v1091_v13 = vld [vmem:[%s1342_s23 + $0x8] ss:$0 sps:$4 sm:$0xff]  }
  0x55   : > { %987 = vmatpush3.bf16.msra.mxu1 %v1070_v55  ;;  %957 = vmatprep.subr.bf16.mxu0 %v1071_v56  ;;  %v1084_v5 = vld [vmem:[%s1354_s4 + $0x30] sm:$0xff]   ;;  %v490_v8 = vld [vmem:[%s1342_s23] sm:$0xff] }
  0x56   : > { %988 = vmatprep.subr.bf16.mxu1 %v1149_v50  ;;  %v1085_v6 = vld [vmem:[%s1354_s4 + $0xb0] sm:$0xff]   ;;  %v922_v9 = vcombine.high %v490_v8, %v490_v8  ;;  %v1087_v10 = vld [vmem:[%s1354_s4 + $0x38] sm:$0xff]   ;;  %v921_v12 = vcombine.low %v490_v8, %v490_v8 }
  0x57   : > { %v1088_v11 = vld [vmem:[%s1354_s4 + $0xb8] sm:$0xff]  }
  0x58   : > { %958 = vmatpush3.bf16.msra.mxu0 %v1072_v57  ;;  %727 = vmatprep.mubr.bf16.mxu0 %v922_v9  ;;  %v489_v20 = vld [vmem:[#allocation2] sm:$0xff] }
  0x59   : > { %989 = vmatpush3.bf16.msra.mxu1 %v1073_v58  ;;  %959 = vmatprep.subr.bf16.mxu0 %v1074_v59  ;;  %v949_v27 = vld [vmem:[%s474_s27] ss:$0 sm:$0xff] (!%p948_p13) }
  0x5a   : > { %990 = vmatprep.subr.bf16.mxu1 %v1149_v50 }
  0x5c   : > { %960 = vmatpush3.bf16.msra.mxu0 %v1075_v60 }
  0x5d   : > { %991 = vmatpush3.bf16.msra.mxu1 %v1076_v61  ;;  %961 = vmatprep.subr.bf16.mxu0 %v1077_v62 }
  0x5e   : > { %992 = vmatprep.subr.bf16.mxu1 %v1149_v50 }
  0x60   : > { %962 = vmatpush3.bf16.msra.mxu0 %v1078_v63 }
  0x61   : > { %993 = vmatpush3.bf16.msra.mxu1 %v1079_v0  ;;  %963 = vmatprep.subr.bf16.mxu0 %v1080_v1 }
  0x62   : > { %994 = vmatprep.subr.bf16.mxu1 %v1149_v50 }
  0x64   : > { %964 = vmatpush3.bf16.msra.mxu0 %v1081_v2 }
  0x65   : > { %995 = vmatpush3.bf16.msra.mxu1 %v1082_v3  ;;  %965 = vmatprep.subr.bf16.mxu0 %v1083_v4 }
  0x66   : > { %996 = vmatprep.subr.bf16.mxu1 %v1149_v50 }
  0x68   : > { %966 = vmatpush3.bf16.msra.mxu0 %v1084_v5 }
  0x69   : > { %997 = vmatpush3.bf16.msra.mxu1 %v1085_v6  ;;  %967 = vmatprep.subr.bf16.mxu0 %v1086_v7 }
  0x6a   : > { %998 = vmatprep.subr.bf16.mxu1 %v1149_v50 }
  0x6c   : > { %968 = vmatpush3.bf16.msra.mxu0 %v1087_v10 }
  0x6d   : > { %999 = vmatpush3.bf16.msra.mxu1 %v1088_v11 }
  0x6f   : > { %728 = vmatmul.mubr.bf16.vlgmr.msra.gmra.mrb[0].mxu0 %v921_v12 }
  0x70   : > { %1001 = vmatmul.mubr.bf16.vlgmr.msra.gmra.mrb[0].mxu1 %v1091_v13 }
 0x142   : > { %v969_v14 = vpop.f32.mrb[0].mxu0 }
 0x143   : > { %v769_v15 = vpop.f32.mrb[0].mxu1  ;;  %v970_v16 = vpop.f32.mrb[1].mxu0 }
 0x144   : > { %v971_v17 = vadd.f32 %v970_v16, %v969_v14  ;;  %v1002_v18 = vpop.f32.mrb[1].mxu1  ;;  %v972_v19 = vpop.f32.mrb[2].mxu0  ;;  %780 = sbr.rel (%p948_p13) target bundleno = 345 (0x159), region = 81 }
 0x145   : > { %v772_v21 = vpop.f32.mrb[2].mxu1  ;;  %v973_v22 = vpop.f32.mrb[3].mxu0 }
 0x146   : > { %v770_v23 = vadd.f32 %v971_v17, %v769_v15  ;;  %v1003_v24 = vpop.f32.mrb[3].mxu1 }
 0x148   : > { %v775_v25 = vadd.f32 %v770_v23, %v489_v20 }
 0x14a   : > { %776 = vst [vmem:[#allocation2] sm:$0xff] %v775_v25 }
 0x151   : > { %v781_v26 = vld [vmem:[#allocation2] sm:$0xff] }
 0x152   : > { %v789_v28 = vadd.f32 %v949_v27, %v781_v26 }
 0x154   : > { %v790_v29 = vmax.f32 %v789_v28, 0.0 }
 0x156   : > { %v791_v30 = vpack.c.bf16 %v790_v29, %v790_v29 }
 0x158   : > { %792 = vst [vmem:[%s1352_s30] sm:$0xf] %v791_v30 }
 0x159 PF: > { %s13_s18 = sadd.s32 1, %s1146_s18   ;;  %s1415_s12 = smov %s1126_s13 }
 0x15a   : > { %p10_p0 = scmp.ge.s32.totalorder %s13_s18, 8   ;;  %s1416_s13 = smov %s1222_s25 }
 0x15b   : > { %s1417_s14 = smov %s1138_s16  ;;  %s1418_s15 = smov %s1142_s17 }
 0x15c   : > { %s1419_s16 = smov %s1422_s19  ;;  %s1420_s17 = smov %s1426_s20 }
 0x15d   :  { %12 = sbr.rel (!%p10_p0) target bundleno = 4 (0x4), region = 122 }

// kernel: embedder_forward.32
= control target key start
LH: loop header
LB: loop body
LE: loop exit
PB: predicated region body
PF: predicated region fallthrough
CT: control target
= control target key end

     0   :  { %s708_s12 = smov 0   ;;  %s710_s13 = smov 0   ;;  %s798_s0 = inlined_call_operand.vmem [shape: bf16[8,128], index: 0, kind: input, shape index: {}]   ;;  %s799_s1 = inlined_call_operand.vmem [shape: bf16[128,256], index: 1, kind: input, shape index: {}]   ;;  %s800_s2 = inlined_call_operand.vmem [shape: f32[1,256], index: 2, kind: input, shape index: {}]   ;;  %s801_s3 = inlined_call_operand.vmem [shape: bf16[8,256], index: 3, kind: output, shape index: {}]  }
   0x1   :  { %s712_s14 = smov 0   ;;  %s714_s15 = smov 0  }
   0x2   :  { %s716_s16 = smov 0  }
   0x3 LB: > { %s22_s17 = sadd.s32 1, %s680_s15  ;;  %p65_p1 = scmp.ne.s32.totalorder %s672_s13, %s668_s12  ;;  %s684_s16 = sphi %s716_s16, %s13_s16   ;;  %s680_s15 = sphi %s714_s15, %s805_s15   ;;  %s676_s14 = sphi %s712_s14, %s804_s14   ;;  %s672_s13 = sphi %s710_s13, %s803_s13   ;;  %s668_s12 = sphi %s708_s12, %s802_s12  }
   0x4   : > { %p23_p0 = scmp.ge.s32.totalorder %s22_s17, 2  ;;  %p66_p2 = scmp.eq.s32.totalorder %s684_s16, 0 }
   0x5   : > { %s58_s19 = sadd.s32 1, %s672_s13  ;;  %p550_p5 = scmp.ge.s32.totalorder %s684_s16, 2 }
   0x6   : > { %s807_s17 = smov (%p23_p0, %s22_s17), 0  ;;  %p67_p3 = por %p66_p2, %p65_p1 }
   0x7   : > { %s55_s18 = ssub.s32 %s680_s15, %s807_s17  ;;  %152 = sbr.rel (%p550_p5) target bundleno = 28 (0x1c), region = 20 }
   0x8   : > { %p56_p4 = scmp.eq.s32.totalorder %s55_s18, 0 }
   0xa   : > { %s743_s20 = scalar_select %p56_p4, %s672_s13, %s58_s19  }
   0xe   : > { %155 = sbr.rel (!%p67_p3) target bundleno = 28 (0x1c), region = 24  ;;  %s157_s21 = sand.u32 (%p67_p3), 1, %s672_s13  }
   0xf   : > { %s552_s22 = sshll.u32 (%p67_p3), %s680_s15, 2  ;;  %s551_s23 = sshll.u32 (%p67_p3), %s157_s21, 6 }
  0x10   : > { %s751_s26 = scalar_lea.vmem (%p67_p3), %s799_s1, %s552_s22  ;;  %s159_s27 = scalar_lea.vmem (%p67_p3), [#allocation2], %s551_s23 }
  0x11   : > { %v177_v0 = vld [vmem:[%s751_s26] sm:$0xf] (%p67_p3)  ;;  %v179_v1 = vld [vmem:[%s751_s26 + $0x8] sm:$0xf] (%p67_p3)  ;;  %v181_v2 = vld [vmem:[%s751_s26 + $0x10] sm:$0xf] (%p67_p3) }
  0x12   : > { %178 = vst [vmem:[%s159_s27] sm:$0xf] (%p67_p3), %v177_v0  ;;  %180 = vst [vmem:[%s159_s27 + $0x4] sm:$0xf] (%p67_p3), %v179_v1  ;;  %v183_v3 = vld [vmem:[%s751_s26 + $0x18] sm:$0xf] (%p67_p3) }
  0x13   : > { %v185_v4 = vld [vmem:[%s751_s26 + $0x20] sm:$0xf] (%p67_p3)  ;;  %182 = vst [vmem:[%s159_s27 + $0x8] sm:$0xf] (%p67_p3), %v181_v2  ;;  %184 = vst [vmem:[%s159_s27 + $0xc] sm:$0xf] (%p67_p3), %v183_v3 }
  0x14   : > { %186 = vst [vmem:[%s159_s27 + $0x10] sm:$0xf] (%p67_p3), %v185_v4  ;;  %v187_v5 = vld [vmem:[%s751_s26 + $0x28] sm:$0xf] (%p67_p3)  ;;  %v189_v6 = vld [vmem:[%s751_s26 + $0x30] sm:$0xf] (%p67_p3) }
  0x15   : > { %v191_v7 = vld [vmem:[%s751_s26 + $0x38] sm:$0xf]  ;;  %188 = vst [vmem:[%s159_s27 + $0x14] sm:$0xf] %v187_v5  ;;  %190 = vst [vmem:[%s159_s27 + $0x18] sm:$0xf] %v189_v6 }
  0x16   : > { %192 = vst [vmem:[%s159_s27 + $0x1c] sm:$0xf] %v191_v7  ;;  %v193_v8 = vld [vmem:[%s751_s26 + $0x40] sm:$0xf]  ;;  %v195_v9 = vld [vmem:[%s751_s26 + $0x48] sm:$0xf] }
  0x17   : > { %v197_v10 = vld [vmem:[%s751_s26 + $0x50] sm:$0xf]  ;;  %194 = vst [vmem:[%s159_s27 + $0x20] sm:$0xf] %v193_v8  ;;  %196 = vst [vmem:[%s159_s27 + $0x24] sm:$0xf] %v195_v9 }
  0x18   : > { %198 = vst [vmem:[%s159_s27 + $0x28] sm:$0xf] %v197_v10  ;;  %v199_v11 = vld [vmem:[%s751_s26 + $0x58] sm:$0xf]  ;;  %v201_v12 = vld [vmem:[%s751_s26 + $0x60] sm:$0xf] }
  0x19   : > { %v203_v13 = vld [vmem:[%s751_s26 + $0x68] sm:$0xf]  ;;  %200 = vst [vmem:[%s159_s27 + $0x2c] sm:$0xf] %v199_v11  ;;  %202 = vst [vmem:[%s159_s27 + $0x30] sm:$0xf] %v201_v12 }
  0x1a   : > { %204 = vst [vmem:[%s159_s27 + $0x34] sm:$0xf] %v203_v13  ;;  %v205_v14 = vld [vmem:[%s751_s26 + $0x70] sm:$0xf]  ;;  %v207_v15 = vld [vmem:[%s751_s26 + $0x78] sm:$0xf] }
  0x1b   : > { %206 = vst [vmem:[%s159_s27 + $0x38] sm:$0xf] %v205_v14  ;;  %208 = vst [vmem:[%s159_s27 + $0x3c] sm:$0xf] %v207_v15 }
  0x1c PF: > { %p553_p6 = scmp.ge.s32.totalorder %s684_s16, 1  ;;  %p268_p7 = scmp.lt.s32.totalorder %s684_s16, 3 }
  0x1e   : > { %p269_p8 = pnand %p553_p6, %p268_p7 }
  0x1f   : > { %s275_s28 = sand.u32 (!%p269_p8), 1, %s668_s12   ;;  %v686_v16 = vmov (!%p269_p8), 0.0   ;;  %vm687_vm0 = vmmov (!%p269_p8), 0   ;;  %v324_v25 = vld [vmem:[%s798_s0] sm:$0xf] (!%p269_p8)  ;;  %p312_p9 = scmp.lt.s32.totalorder (!%p269_p8), %s676_s14, 1 }
  0x20   : > { %272 = sbr.rel (%p269_p8) target bundleno = 283 (0x11b), region = 69  ;;  %576 = vmatprep.subr.bf16.mxu0 (!%p269_p8), %v686_v16  ;;  %s554_s29 = sshll.u32 (!%p269_p8), %s275_s28, 6  ;;  %592 = vmatprep.mubr.msk.bf16.mxu0 (!%p269_p8), %vm687_vm0, %v686_v16 }
  0x21   : > { %s277_s30 = scalar_lea.vmem (!%p269_p8), [#allocation2], %s554_s29 }
  0x22   : > { %v638_v17 = vld [vmem:[%s277_s30] sm:$0xff] (!%p269_p8)   ;;  %v639_v18 = vld [vmem:[%s277_s30 + $0x8] sm:$0xff] (!%p269_p8)   ;;  %v640_v19 = vld [vmem:[%s277_s30 + $0x10] sm:$0xff] (!%p269_p8)  }
  0x23   : > { %577 = vmatpush3.bf16.msra.mxu0 (!%p269_p8), %v638_v17  ;;  %v641_v20 = vld [vmem:[%s277_s30 + $0x18] sm:$0xff] (!%p269_p8)   ;;  %v642_v21 = vld [vmem:[%s277_s30 + $0x20] sm:$0xff] (!%p269_p8)   ;;  %v643_v22 = vld [vmem:[%s277_s30 + $0x28] sm:$0xff] (!%p269_p8)  }
  0x24   : > { %578 = vmatprep.subr.bf16.mxu0 (!%p269_p8), %v686_v16  ;;  %v644_v23 = vld [vmem:[%s277_s30 + $0x30] sm:$0xff] (!%p269_p8)   ;;  %v645_v24 = vld [vmem:[%s277_s30 + $0x38] sm:$0xff] (!%p269_p8)  }
  0x27   : > { %579 = vmatpush3.bf16.msra.mxu0 %v639_v18  ;;  %s809_s14 = smov (!%p312_p9, %s676_s14), 1 }
  0x28   : > { %580 = vmatprep.subr.bf16.mxu0 %v686_v16  ;;  %s314_s8 = scalar_lea.vmem %s800_s2, %s809_s14  ;;  %s555_s9 = sshll.u32 %s809_s14, 2 }
  0x29   : > { %v556_v26 = vld [vmem:[%s314_s8] ss:$0 sm:$0xff]  ;;  %s322_s12 = scalar_lea.vmem %s801_s3, %s555_s9 }
  0x2b   : > { %581 = vmatpush3.bf16.msra.mxu0 %v640_v19 }
  0x2c   : > { %582 = vmatprep.subr.bf16.mxu0 %v686_v16 }
  0x2f   : > { %583 = vmatpush3.bf16.msra.mxu0 %v641_v20 }
  0x30   : > { %584 = vmatprep.subr.bf16.mxu0 %v686_v16 }
  0x33   : > { %585 = vmatpush3.bf16.msra.mxu0 %v642_v21 }
  0x34   : > { %586 = vmatprep.subr.bf16.mxu0 %v686_v16 }
  0x37   : > { %587 = vmatpush3.bf16.msra.mxu0 %v643_v22 }
  0x38   : > { %588 = vmatprep.subr.bf16.mxu0 %v686_v16 }
  0x3b   : > { %589 = vmatpush3.bf16.msra.mxu0 %v644_v23 }
  0x3c   : > { %590 = vmatprep.subr.bf16.mxu0 %v686_v16 }
  0x3f   : > { %591 = vmatpush3.bf16.msra.mxu0 %v645_v24 }
  0x42   : > { %593 = vmatmul.mubr.bf16.vlgmr.msra.gmra.mrb[0].mxu0 %v324_v25 }
 0x115   : > { %v430_v27 = vpop.f32.mrb[0].mxu0 }
 0x116   : > { %v431_v28 = vadd.f32 %v556_v26, %v430_v27  ;;  %v594_v29 = vpop.f32.mrb[1].mxu0 }
 0x117   : > { %v433_v30 = vpop.f32.mrb[2].mxu0 }
 0x118   : > { %v436_v31 = vpack.c.bf16 %v431_v28, %v431_v28  ;;  %v595_v32 = vpop.f32.mrb[3].mxu0 }
 0x11a   : > { %437 = vst [vmem:[%s322_s12] sm:$0xf] %v436_v31 }
 0x11b PF: > { %s13_s16 = sadd.s32 1, %s684_s16   ;;  %s802_s12 = smov %s672_s13 }
 0x11c   : > { %p10_p10 = scmp.ge.s32.totalorder %s13_s16, 4   ;;  %s803_s13 = smov %s743_s20 }
 0x11d   : > { %s804_s14 = smov %s680_s15  ;;  %s805_s15 = smov %s807_s17 }
 0x11e   :  { %12 = sbr.rel (!%p10_p10) target bundleno = 3 (0x3), region = 114 }

// kernel: embedder_forward.34
= control target key start
LH: loop header
LB: loop body
LE: loop exit
PB: predicated region body
PF: predicated region fallthrough
CT: control target
= control target key end

     0   :  { %s1171_s12 = smov 0   ;;  %s1173_s13 = smov 0   ;;  %s1411_s0 = inlined_call_operand.vmem [shape: bf16[8,2304], index: 0, kind: input, shape index: {}]   ;;  %s1412_s1 = inlined_call_operand.vmem [shape: bf16[2304,256], index: 1, kind: input, shape index: {}]   ;;  %s1413_s2 = inlined_call_operand.vmem [shape: f32[1,256], index: 2, kind: input, shape index: {}]   ;;  %s1414_s3 = inlined_call_operand.vmem [shape: bf16[8,256], index: 3, kind: output, shape index: {}]  }
   0x1   :  { %s1175_s14 = smov 0   ;;  %s1177_s15 = smov 0  }
   0x2   :  { %s1179_s16 = smov 0   ;;  %s1181_s17 = smov 0  }
   0x3   :  { %s1183_s18 = smov 0  }
   0x4 LB: > { %s25_s19 = sadd.s32 1, %s1138_s16  ;;  %s28_s20 = sadd.s32 1, %s1142_s17  ;;  %s1146_s18 = sphi %s1183_s18, %s13_s18   ;;  %s1142_s17 = sphi %s1181_s17, %s1420_s17   ;;  %s1138_s16 = sphi %s1179_s16, %s1419_s16   ;;  %s1134_s15 = sphi %s1177_s15, %s1418_s15   ;;  %s1130_s14 = sphi %s1175_s14, %s1417_s14   ;;  %s1126_s13 = sphi %s1173_s13, %s1416_s13   ;;  %s1122_s12 = sphi %s1171_s12, %s1415_s12  }
   0x5   : > { %p26_p0 = scmp.ge.s32.totalorder %s25_s19, 6  ;;  %p76_p1 = scmp.ne.s32.totalorder %s1126_s13, %s1122_s12 }
   0x6   : > { %p77_p2 = scmp.eq.s32.totalorder %s1146_s18, 0  ;;  %s69_s24 = sadd.s32 1, %s1126_s13 }
   0x7   : > { %s1422_s19 = smov (%p26_p0, %s25_s19), 0  ;;  %s1424_s20 = smov (!%p26_p0, %s28_s20), %s1142_s17 }
   0x8   : > { %p78_p3 = por %p77_p2, %p76_p1  ;;  %p30_p4 = scmp.ge.s32.totalorder %s1424_s20, 2 }
   0x9   : > { %s64_s21 = ssub.s32 %s1138_s16, %s1422_s19  ;;  %p914_p6 = scmp.ge.s32.totalorder %s1146_s18, 12 }
   0xa   : > { %s1426_s20 = smov (%p30_p4, %s1424_s20), 0 }
   0xb   : > { %s65_s22 = ssub.s32 %s1142_s17, %s1426_s20  ;;  %156 = sbr.rel (%p914_p6) target bundleno = 57 (0x39), region = 16 }
   0xc   : > { %s66_s23 = sor.u32 %s65_s22, %s64_s21 }
   0xd   : > { %p67_p5 = scmp.eq.s32.totalorder %s66_s23, 0 }
   0xf   : > { %s1222_s25 = scalar_select %p67_p5, %s1126_s13, %s69_s24  }
  0x12   : > { %172 = sbr.rel (!%p78_p3) target bundleno = 57 (0x39), region = 24  ;;  %s174_s26 = sand.u32 (%p78_p3), 1, %s1126_s13  }
  0x13   : > { %s952_s27 = smul.u32 (%p78_p3), 96, %s1138_s16 }
  0x14   : > { %s1004_s28 = smul.u32 (%p78_p3), 192, %s174_s26 }
  0x15   : > { %s179_s29 = sadd.s32 (%p78_p3), %s1142_s17, %s952_s27 }
  0x16   : > { %s916_s30 = sshll.u32 (%p78_p3), %s179_s29, 2  ;;  %s1236_s7 = scalar_lea.vmem (%p78_p3), [#allocation3], %s1004_s28 }
  0x17   : > { %s1231_s6 = scalar_lea.vmem (%p78_p3), %s1412_s1, %s916_s30 }
  0x18   : > { %v197_v0 = vld [vmem:[%s1231_s6] sm:$0xf] (%p78_p3)  ;;  %v199_v1 = vld [vmem:[%s1231_s6 + $0x8] sm:$0xf] (%p78_p3)  ;;  %v201_v2 = vld [vmem:[%s1231_s6 + $0x10] sm:$0xf] (%p78_p3) }
  0x19   : > { %198 = vst [vmem:[%s1236_s7] sm:$0xf] %v197_v0  ;;  %200 = vst [vmem:[%s1236_s7 + $0x4] sm:$0xf] %v199_v1  ;;  %v203_v3 = vld [vmem:[%s1231_s6 + $0x18] sm:$0xf] }
  0x1a   : > { %202 = vst [vmem:[%s1236_s7 + $0x8] sm:$0xf] %v201_v2  ;;  %v205_v4 = vld [vmem:[%s1231_s6 + $0x20] sm:$0xf]  ;;  %v207_v5 = vld [vmem:[%s1231_s6 + $0x28] sm:$0xf] }
  0x1b   : > { %204 = vst [vmem:[%s1236_s7 + $0xc] sm:$0xf] %v203_v3  ;;  %206 = vst [vmem:[%s1236_s7 + $0x10] sm:$0xf] %v205_v4  ;;  %v209_v6 = vld [vmem:[%s1231_s6 + $0x30] sm:$0xf] }
  0x1c   : > { %208 = vst [vmem:[%s1236_s7 + $0x14] sm:$0xf] %v207_v5  ;;  %v211_v7 = vld [vmem:[%s1231_s6 + $0x38] sm:$0xf]  ;;  %v213_v8 = vld [vmem:[%s1231_s6 + $0x40] sm:$0xf] }
  0x1d   : > { %210 = vst [vmem:[%s1236_s7 + $0x18] sm:$0xf] %v209_v6  ;;  %212 = vst [vmem:[%s1236_s7 + $0x1c] sm:$0xf] %v211_v7  ;;  %v215_v9 = vld [vmem:[%s1231_s6 + $0x48] sm:$0xf] }
  0x1e   : > { %214 = vst [vmem:[%s1236_s7 + $0x20] sm:$0xf] %v213_v8  ;;  %v217_v10 = vld [vmem:[%s1231_s6 + $0x50] sm:$0xf]  ;;  %v219_v11 = vld [vmem:[%s1231_s6 + $0x58] sm:$0xf] }
  0x1f   : > { %216 = vst [vmem:[%s1236_s7 + $0x24] sm:$0xf] %v215_v9  ;;  %218 = vst [vmem:[%s1236_s7 + $0x28] sm:$0xf] %v217_v10  ;;  %v221_v12 = vld [vmem:[%s1231_s6 + $0x60] sm:$0xf] }
  0x20   : > { %220 = vst [vmem:[%s1236_s7 + $0x2c] sm:$0xf] %v219_v11  ;;  %v223_v13 = vld [vmem:[%s1231_s6 + $0x68] sm:$0xf]  ;;  %v225_v14 = vld [vmem:[%s1231_s6 + $0x70] sm:$0xf] }
  0x21   : > { %222 = vst [vmem:[%s1236_s7 + $0x30] sm:$0xf] %v221_v12  ;;  %224 = vst [vmem:[%s1236_s7 + $0x34] sm:$0xf] %v223_v13  ;;  %v227_v15 = vld [vmem:[%s1231_s6 + $0x78] sm:$0xf] }
  0x22   : > { %226 = vst [vmem:[%s1236_s7 + $0x38] sm:$0xf] %v225_v14  ;;  %v229_v16 = vld [vmem:[%s1231_s6 + $0x80] sm:$0xf]  ;;  %v231_v17 = vld [vmem:[%s1231_s6 + $0x88] sm:$0xf] }
  0x23   : > { %228 = vst [vmem:[%s1236_s7 + $0x3c] sm:$0xf] %v227_v15  ;;  %230 = vst [vmem:[%s1236_s7 + $0x40] sm:$0xf] %v229_v16  ;;  %v233_v18 = vld [vmem:[%s1231_s6 + $0x90] sm:$0xf] }
  0x24   : > { %232 = vst [vmem:[%s1236_s7 + $0x44] sm:$0xf] %v231_v17  ;;  %v235_v19 = vld [vmem:[%s1231_s6 + $0x98] sm:$0xf]  ;;  %v237_v20 = vld [vmem:[%s1231_s6 + $0xa0] sm:$0xf] }
  0x25   : > { %234 = vst [vmem:[%s1236_s7 + $0x48] sm:$0xf] %v233_v18  ;;  %236 = vst [vmem:[%s1236_s7 + $0x4c] sm:$0xf] %v235_v19  ;;  %v239_v21 = vld [vmem:[%s1231_s6 + $0xa8] sm:$0xf] }
  0x26   : > { %238 = vst [vmem:[%s1236_s7 + $0x50] sm:$0xf] %v237_v20  ;;  %v241_v22 = vld [vmem:[%s1231_s6 + $0xb0] sm:$0xf]  ;;  %v243_v23 = vld [vmem:[%s1231_s6 + $0xb8] sm:$0xf] }
  0x27   : > { %240 = vst [vmem:[%s1236_s7 + $0x54] sm:$0xf] %v239_v21  ;;  %242 = vst [vmem:[%s1236_s7 + $0x58] sm:$0xf] %v241_v22  ;;  %v245_v24 = vld [vmem:[%s1231_s6 + $0xc0] sm:$0xf] }
  0x28   : > { %244 = vst [vmem:[%s1236_s7 + $0x5c] sm:$0xf] %v243_v23  ;;  %v247_v25 = vld [vmem:[%s1231_s6 + $0xc8] sm:$0xf]  ;;  %v249_v26 = vld [vmem:[%s1231_s6 + $0xd0] sm:$0xf] }
  0x29   : > { %246 = vst [vmem:[%s1236_s7 + $0x60] sm:$0xf] %v245_v24  ;;  %248 = vst [vmem:[%s1236_s7 + $0x64] sm:$0xf] %v247_v25  ;;  %v251_v27 = vld [vmem:[%s1231_s6 + $0xd8] sm:$0xf] }
  0x2a   : > { %250 = vst [vmem:[%s1236_s7 + $0x68] sm:$0xf] %v249_v26  ;;  %v253_v28 = vld [vmem:[%s1231_s6 + $0xe0] sm:$0xf]  ;;  %v255_v29 = vld [vmem:[%s1231_s6 + $0xe8] sm:$0xf] }
  0x2b   : > { %252 = vst [vmem:[%s1236_s7 + $0x6c] sm:$0xf] %v251_v27  ;;  %254 = vst [vmem:[%s1236_s7 + $0x70] sm:$0xf] %v253_v28  ;;  %v257_v30 = vld [vmem:[%s1231_s6 + $0xf0] sm:$0xf] }
  0x2c   : > { %256 = vst [vmem:[%s1236_s7 + $0x74] sm:$0xf] %v255_v29  ;;  %v259_v31 = vld [vmem:[%s1231_s6 + $0xf8] sm:$0xf]  ;;  %v261_v32 = vld [vmem:[%s1231_s6 + $0x100] sm:$0xf] }
  0x2d   : > { %258 = vst [vmem:[%s1236_s7 + $0x78] sm:$0xf] %v257_v30  ;;  %260 = vst [vmem:[%s1236_s7 + $0x7c] sm:$0xf] %v259_v31  ;;  %v263_v33 = vld [vmem:[%s1231_s6 + $0x108] sm:$0xf] }
  0x2e   : > { %262 = vst [vmem:[%s1236_s7 + $0x80] sm:$0xf] %v261_v32  ;;  %v265_v34 = vld [vmem:[%s1231_s6 + $0x110] sm:$0xf]  ;;  %v267_v35 = vld [vmem:[%s1231_s6 + $0x118] sm:$0xf] }
  0x2f   : > { %264 = vst [vmem:[%s1236_s7 + $0x84] sm:$0xf] %v263_v33  ;;  %266 = vst [vmem:[%s1236_s7 + $0x88] sm:$0xf] %v265_v34  ;;  %v269_v36 = vld [vmem:[%s1231_s6 + $0x120] sm:$0xf] }
  0x30   : > { %268 = vst [vmem:[%s1236_s7 + $0x8c] sm:$0xf] %v267_v35  ;;  %v271_v37 = vld [vmem:[%s1231_s6 + $0x128] sm:$0xf]  ;;  %v273_v38 = vld [vmem:[%s1231_s6 + $0x130] sm:$0xf] }
  0x31   : > { %270 = vst [vmem:[%s1236_s7 + $0x90] sm:$0xf] %v269_v36  ;;  %272 = vst [vmem:[%s1236_s7 + $0x94] sm:$0xf] %v271_v37  ;;  %v275_v39 = vld [vmem:[%s1231_s6 + $0x138] sm:$0xf] }
  0x32   : > { %274 = vst [vmem:[%s1236_s7 + $0x98] sm:$0xf] %v273_v38  ;;  %v277_v40 = vld [vmem:[%s1231_s6 + $0x140] sm:$0xf]  ;;  %v279_v41 = vld [vmem:[%s1231_s6 + $0x148] sm:$0xf] }
  0x33   : > { %276 = vst [vmem:[%s1236_s7 + $0x9c] sm:$0xf] %v275_v39  ;;  %278 = vst [vmem:[%s1236_s7 + $0xa0] sm:$0xf] %v277_v40  ;;  %v281_v42 = vld [vmem:[%s1231_s6 + $0x150] sm:$0xf] }
  0x34   : > { %280 = vst [vmem:[%s1236_s7 + $0xa4] sm:$0xf] %v279_v41  ;;  %v283_v43 = vld [vmem:[%s1231_s6 + $0x158] sm:$0xf]  ;;  %v285_v44 = vld [vmem:[%s1231_s6 + $0x160] sm:$0xf] }
  0x35   : > { %282 = vst [vmem:[%s1236_s7 + $0xa8] sm:$0xf] %v281_v42  ;;  %284 = vst [vmem:[%s1236_s7 + $0xac] sm:$0xf] %v283_v43  ;;  %v287_v45 = vld [vmem:[%s1231_s6 + $0x168] sm:$0xf] }
  0x36   : > { %286 = vst [vmem:[%s1236_s7 + $0xb0] sm:$0xf] %v285_v44  ;;  %v289_v46 = vld [vmem:[%s1231_s6 + $0x170] sm:$0xf]  ;;  %v291_v47 = vld [vmem:[%s1231_s6 + $0x178] sm:$0xf] }
  0x37   : > { %288 = vst [vmem:[%s1236_s7 + $0xb4] sm:$0xf] %v287_v45  ;;  %290 = vst [vmem:[%s1236_s7 + $0xb8] sm:$0xf] %v289_v46 }
  0x38   : > { %292 = vst [vmem:[%s1236_s7 + $0xbc] sm:$0xf] %v291_v47 }
  0x39 PF: > { %p917_p7 = scmp.ge.s32.totalorder %s1146_s18, 1  ;;  %p416_p8 = scmp.lt.s32.totalorder %s1146_s18, 13 }
  0x3b   : > { %p417_p9 = pnand %p917_p7, %p416_p8 }
  0x3c   : > { %s423_s8 = sand.u32 (!%p417_p9), 1, %s1122_s12   ;;  %s461_s9 = smul.u32 (!%p417_p9), 3, %s1130_s14 }
  0x3d   : > { %420 = sbr.rel (%p417_p9) target bundleno = 345 (0x159), region = 69  ;;  %p472_p10 = scmp.lt.s32.totalorder (!%p417_p9), %s1134_s15, 1 }
  0x3e   : > { %s1005_s10 = smul.u32 (!%p417_p9), 192, %s423_s8  ;;  %p464_p11 = scmp.lt.s32.totalorder (!%p417_p9), %s461_s9, 17 }
  0x3f   : > { %p920_p12 = scmp.ne.s32.totalorder (!%p417_p9), %s1130_s14, 0 }
  0x40   : > { %s1354_s4 = scalar_lea.vmem (!%p417_p9), [#allocation3], %s1005_s10 }
  0x44   : > { %s1428_s9 = smov (!%p464_p11, %s461_s9), 17  ;;  %s1430_s15 = smov (!%p472_p10, %s1134_s15), 1 }
  0x45   : > { %s918_s11 = sshll.u32 %s1428_s9, 2  ;;  %s474_s27 = scalar_lea.vmem %s1413_s2, %s1430_s15  ;;  %v1148_v48 = vmov (!%p920_p12), 0.0  }
  0x46   : > { %s1342_s23 = scalar_lea.vmem %s1411_s0, %s918_s11  ;;  %s919_s12 = sshll.u32 %s1430_s15, 2  ;;  %488 = vst [vmem:[#allocation2] sm:$0xff] (!%p920_p12), %v1148_v48 }
  0x47   : > { %s1352_s30 = scalar_lea.vmem %s1414_s3, %s919_s12  ;;  %487 = sbr.rel (%p920_p12) target bundleno = 78 (0x4e), region = 77 }
  0x4e PF: > { %v1065_v49 = vld [vmem:[%s1354_s4 + $0x40] sm:$0xff]   ;;  %v1149_v50 = vmov 0.0   ;;  %vm1150_vm0 = vmmov 0   ;;  %v1068_v53 = vld [vmem:[%s1354_s4 + $0x48] sm:$0xff]   ;;  %v1071_v56 = vld [vmem:[%s1354_s4 + $0x50] sm:$0xff]   ;;  %p948_p13 = scmp.ne.s32.totalorder %s1130_s14, 5 }
  0x4f   : > { %984 = vmatprep.subr.bf16.mxu1 %v1149_v50  ;;  %v1066_v51 = vld [vmem:[%s1354_s4] sm:$0xff]   ;;  %953 = vmatprep.subr.bf16.mxu0 %v1065_v49  ;;  %v1069_v54 = vld [vmem:[%s1354_s4 + $0x8] sm:$0xff]   ;;  %v1072_v57 = vld [vmem:[%s1354_s4 + $0x10] sm:$0xff]  }
  0x50   : > { %v1067_v52 = vld [vmem:[%s1354_s4 + $0x80] sm:$0xff]   ;;  %1000 = vmatprep.mubr.msk.bf16.mxu1 %vm1150_vm0, %v1149_v50  ;;  %954 = vmatpush3.bf16.msra.mxu0 %v1066_v51  ;;  %v1070_v55 = vld [vmem:[%s1354_s4 + $0x88] sm:$0xff]   ;;  %v1073_v58 = vld [vmem:[%s1354_s4 + $0x90] sm:$0xff]  }
  0x51   : > { %985 = vmatpush3.bf16.msra.mxu1 %v1067_v52  ;;  %955 = vmatprep.subr.bf16.mxu0 %v1068_v53  ;;  %v1074_v59 = vld [vmem:[%s1354_s4 + $0x58] sm:$0xff]   ;;  %v1077_v62 = vld [vmem:[%s1354_s4 + $0x60] sm:$0xff]   ;;  %v1080_v1 = vld [vmem:[%s1354_s4 + $0x68] sm:$0xff]  }
  0x52   : > { %986 = vmatprep.subr.bf16.mxu1 %v1149_v50  ;;  %v1075_v60 = vld [vmem:[%s1354_s4 + $0x18] sm:$0xff]   ;;  %v1078_v63 = vld [vmem:[%s1354_s4 + $0x20] sm:$0xff]   ;;  %v1081_v2 = vld [vmem:[%s1354_s4 + $0x28] sm:$0xff]  }
  0x53   : > { %v1076_v61 = vld [vmem:[%s1354_s4 + $0x98] sm:$0xff]   ;;  %v1079_v0 = vld [vmem:[%s1354_s4 + $0xa0] sm:$0xff]   ;;  %v1082_v3 = vld [vmem:[%s1354_s4 + $0xa8] sm:$0xff]  }
  0x54   : > { %956 = vmatpush3.bf16.msra.mxu0 %v1069_v54  ;;  %v1083_v4 = vld [vmem:[%s1354_s4 + $0x70] sm:$0xff]   ;;  %v1086_v7 = vld [vmem:[%s1354_s4 + $0x78] sm:$0xff]   ;;  %v1091_v13 = vld [vmem:[%s1342_s23 + $0x8] ss:$0 sps:$4 sm:$0xff]  }
  0x55   : > { %987 = vmatpush3.bf16.msra.mxu1 %v1070_v55  ;;  %957 = vmatprep.subr.bf16.mxu0 %v1071_v56  ;;  %v1084_v5 = vld [vmem:[%s1354_s4 + $0x30] sm:$0xff]   ;;  %v490_v8 = vld [vmem:[%s1342_s23] sm:$0xff] }
  0x56   : > { %988 = vmatprep.subr.bf16.mxu1 %v1149_v50  ;;  %v1085_v6 = vld [vmem:[%s1354_s4 + $0xb0] sm:$0xff]   ;;  %v922_v9 = vcombine.high %v490_v8, %v490_v8  ;;  %v1087_v10 = vld [vmem:[%s1354_s4 + $0x38] sm:$0xff]   ;;  %v921_v12 = vcombine.low %v490_v8, %v490_v8 }
  0x57   : > { %v1088_v11 = vld [vmem:[%s1354_s4 + $0xb8] sm:$0xff]  }
  0x58   : > { %958 = vmatpush3.bf16.msra.mxu0 %v1072_v57  ;;  %727 = vmatprep.mubr.bf16.mxu0 %v922_v9  ;;  %v489_v20 = vld [vmem:[#allocation2] sm:$0xff] }
  0x59   : > { %989 = vmatpush3.bf16.msra.mxu1 %v1073_v58  ;;  %959 = vmatprep.subr.bf16.mxu0 %v1074_v59  ;;  %v949_v27 = vld [vmem:[%s474_s27] ss:$0 sm:$0xff] (!%p948_p13) }
  0x5a   : > { %990 = vmatprep.subr.bf16.mxu1 %v1149_v50 }
  0x5c   : > { %960 = vmatpush3.bf16.msra.mxu0 %v1075_v60 }
  0x5d   : > { %991 = vmatpush3.bf16.msra.mxu1 %v1076_v61  ;;  %961 = vmatprep.subr.bf16.mxu0 %v1077_v62 }
  0x5e   : > { %992 = vmatprep.subr.bf16.mxu1 %v1149_v50 }
  0x60   : > { %962 = vmatpush3.bf16.msra.mxu0 %v1078_v63 }
  0x61   : > { %993 = vmatpush3.bf16.msra.mxu1 %v1079_v0  ;;  %963 = vmatprep.subr.bf16.mxu0 %v1080_v1 }
  0x62   : > { %994 = vmatprep.subr.bf16.mxu1 %v1149_v50 }
  0x64   : > { %964 = vmatpush3.bf16.msra.mxu0 %v1081_v2 }
  0x65   : > { %995 = vmatpush3.bf16.msra.mxu1 %v1082_v3  ;;  %965 = vmatprep.subr.bf16.mxu0 %v1083_v4 }
  0x66   : > { %996 = vmatprep.subr.bf16.mxu1 %v1149_v50 }
  0x68   : > { %966 = vmatpush3.bf16.msra.mxu0 %v1084_v5 }
  0x69   : > { %997 = vmatpush3.bf16.msra.mxu1 %v1085_v6  ;;  %967 = vmatprep.subr.bf16.mxu0 %v1086_v7 }
  0x6a   : > { %998 = vmatprep.subr.bf16.mxu1 %v1149_v50 }
  0x6c   : > { %968 = vmatpush3.bf16.msra.mxu0 %v1087_v10 }
  0x6d   : > { %999 = vmatpush3.bf16.msra.mxu1 %v1088_v11 }
  0x6f   : > { %728 = vmatmul.mubr.bf16.vlgmr.msra.gmra.mrb[0].mxu0 %v921_v12 }
  0x70   : > { %1001 = vmatmul.mubr.bf16.vlgmr.msra.gmra.mrb[0].mxu1 %v1091_v13 }
 0x142   : > { %v969_v14 = vpop.f32.mrb[0].mxu0 }
 0x143   : > { %v769_v15 = vpop.f32.mrb[0].mxu1  ;;  %v970_v16 = vpop.f32.mrb[1].mxu0 }
 0x144   : > { %v971_v17 = vadd.f32 %v970_v16, %v969_v14  ;;  %v1002_v18 = vpop.f32.mrb[1].mxu1  ;;  %v972_v19 = vpop.f32.mrb[2].mxu0  ;;  %780 = sbr.rel (%p948_p13) target bundleno = 345 (0x159), region = 81 }
 0x145   : > { %v772_v21 = vpop.f32.mrb[2].mxu1  ;;  %v973_v22 = vpop.f32.mrb[3].mxu0 }
 0x146   : > { %v770_v23 = vadd.f32 %v971_v17, %v769_v15  ;;  %v1003_v24 = vpop.f32.mrb[3].mxu1 }
 0x148   : > { %v775_v25 = vadd.f32 %v770_v23, %v489_v20 }
 0x14a   : > { %776 = vst [vmem:[#allocation2] sm:$0xff] %v775_v25 }
 0x151   : > { %v781_v26 = vld [vmem:[#allocation2] sm:$0xff] }
 0x152   : > { %v789_v28 = vadd.f32 %v949_v27, %v781_v26 }
 0x154   : > { %v790_v29 = vmax.f32 %v789_v28, 0.0 }
 0x156   : > { %v791_v30 = vpack.c.bf16 %v790_v29, %v790_v29 }
 0x158   : > { %792 = vst [vmem:[%s1352_s30] sm:$0xf] %v791_v30 }
 0x159 PF: > { %s13_s18 = sadd.s32 1, %s1146_s18   ;;  %s1415_s12 = smov %s1126_s13 }
 0x15a   : > { %p10_p0 = scmp.ge.s32.totalorder %s13_s18, 14   ;;  %s1416_s13 = smov %s1222_s25 }
 0x15b   : > { %s1417_s14 = smov %s1138_s16  ;;  %s1418_s15 = smov %s1142_s17 }
 0x15c   : > { %s1419_s16 = smov %s1422_s19  ;;  %s1420_s17 = smov %s1426_s20 }
 0x15d   :  { %12 = sbr.rel (!%p10_p0) target bundleno = 4 (0x4), region = 122 }

// kernel: embedder_forward.33
= control target key start
LH: loop header
LB: loop body
LE: loop exit
PB: predicated region body
PF: predicated region fallthrough
CT: control target
= control target key end

     0   :  { %s1256_s15 = smov 0   ;;  %s1258_s16 = smov 0   ;;  %s1502_s0 = inlined_call_operand.vmem [shape: bf16[8,2304], index: 0, kind: input, shape index: {}]   ;;  %s1503_s1 = inlined_call_operand.vmem [shape: bf16[2304,256], index: 1, kind: input, shape index: {}]   ;;  %s1504_s2 = inlined_call_operand.vmem [shape: f32[1,256], index: 2, kind: input, shape index: {}]   ;;  %s1505_s3 = inlined_call_operand.vmem [shape: bf16[8,256], index: 3, kind: input, shape index: {}]   ;;  %s1506_s4 = inlined_call_operand.vmem [shape: bf16[8,256], index: 4, kind: output, shape index: {}]  }
   0x1   :  { %s1260_s17 = smov 0   ;;  %s1262_s18 = smov 0  }
   0x2   :  { %s1264_s19 = smov 0   ;;  %s1266_s20 = smov 0  }
   0x3   :  { %s1268_s21 = smov 0  }
   0x4 LB: > { %s26_s22 = sadd.s32 1, %s1218_s19  ;;  %s29_s23 = sadd.s32 1, %s1222_s20  ;;  %s1226_s21 = sphi %s1268_s21, %s14_s21   ;;  %s1222_s20 = sphi %s1266_s20, %s1512_s20   ;;  %s1218_s19 = sphi %s1264_s19, %s1511_s19   ;;  %s1214_s18 = sphi %s1262_s18, %s1510_s18   ;;  %s1210_s17 = sphi %s1260_s17, %s1509_s17   ;;  %s1206_s16 = sphi %s1258_s16, %s1508_s16   ;;  %s1202_s15 = sphi %s1256_s15, %s1507_s15  }
   0x5   : > { %p27_p0 = scmp.ge.s32.totalorder %s26_s22, 6  ;;  %p77_p1 = scmp.ne.s32.totalorder %s1206_s16, %s1202_s15 }
   0x6   : > { %p78_p2 = scmp.eq.s32.totalorder %s1226_s21, 0  ;;  %s70_s27 = sadd.s32 1, %s1206_s16 }
   0x7   : > { %s1514_s22 = smov (%p27_p0, %s26_s22), 0  ;;  %s1516_s23 = smov (!%p27_p0, %s29_s23), %s1222_s20 }
   0x8   : > { %p79_p3 = por %p78_p2, %p77_p1  ;;  %p31_p4 = scmp.ge.s32.totalorder %s1516_s23, 2 }
   0x9   : > { %s65_s24 = ssub.s32 %s1218_s19, %s1514_s22  ;;  %p993_p6 = scmp.ge.s32.totalorder %s1226_s21, 12 }
   0xa   : > { %s1518_s23 = smov (%p31_p4, %s1516_s23), 0 }
   0xb   : > { %s66_s25 = ssub.s32 %s1222_s20, %s1518_s23  ;;  %185 = sbr.rel (%p993_p6) target bundleno = 57 (0x39), region = 16 }
   0xc   : > { %s67_s26 = sor.u32 %s66_s25, %s65_s24 }
   0xd   : > { %p68_p5 = scmp.eq.s32.totalorder %s67_s26, 0 }
   0xf   : > { %s1307_s28 = scalar_select %p68_p5, %s1206_s16, %s70_s27  }
  0x12   : > { %201 = sbr.rel (!%p79_p3) target bundleno = 57 (0x39), region = 24  ;;  %s203_s29 = sand.u32 (%p79_p3), 1, %s1206_s16  }
  0x13   : > { %s1032_s30 = smul.u32 (%p79_p3), 96, %s1218_s19 }
  0x14   : > { %s1084_s5 = smul.u32 (%p79_p3), 192, %s203_s29 }
  0x15   : > { %s208_s6 = sadd.s32 (%p79_p3), %s1222_s20, %s1032_s30 }
  0x16   : > { %s995_s7 = sshll.u32 (%p79_p3), %s208_s6, 2  ;;  %s1321_s11 = scalar_lea.vmem (%p79_p3), [#allocation3], %s1084_s5 }
  0x17   : > { %s1316_s10 = scalar_lea.vmem (%p79_p3), %s1503_s1, %s995_s7 }
  0x18   : > { %v226_v0 = vld [vmem:[%s1316_s10] sm:$0xf] (%p79_p3)  ;;  %v228_v1 = vld [vmem:[%s1316_s10 + $0x8] sm:$0xf] (%p79_p3)  ;;  %v230_v2 = vld [vmem:[%s1316_s10 + $0x10] sm:$0xf] (%p79_p3) }
  0x19   : > { %227 = vst [vmem:[%s1321_s11] sm:$0xf] %v226_v0  ;;  %229 = vst [vmem:[%s1321_s11 + $0x4] sm:$0xf] %v228_v1  ;;  %v232_v3 = vld [vmem:[%s1316_s10 + $0x18] sm:$0xf] }
  0x1a   : > { %231 = vst [vmem:[%s1321_s11 + $0x8] sm:$0xf] %v230_v2  ;;  %v234_v4 = vld [vmem:[%s1316_s10 + $0x20] sm:$0xf]  ;;  %v236_v5 = vld [vmem:[%s1316_s10 + $0x28] sm:$0xf] }
  0x1b   : > { %233 = vst [vmem:[%s1321_s11 + $0xc] sm:$0xf] %v232_v3  ;;  %235 = vst [vmem:[%s1321_s11 + $0x10] sm:$0xf] %v234_v4  ;;  %v238_v6 = vld [vmem:[%s1316_s10 + $0x30] sm:$0xf] }
  0x1c   : > { %237 = vst [vmem:[%s1321_s11 + $0x14] sm:$0xf] %v236_v5  ;;  %v240_v7 = vld [vmem:[%s1316_s10 + $0x38] sm:$0xf]  ;;  %v242_v8 = vld [vmem:[%s1316_s10 + $0x40] sm:$0xf] }
  0x1d   : > { %239 = vst [vmem:[%s1321_s11 + $0x18] sm:$0xf] %v238_v6  ;;  %241 = vst [vmem:[%s1321_s11 + $0x1c] sm:$0xf] %v240_v7  ;;  %v244_v9 = vld [vmem:[%s1316_s10 + $0x48] sm:$0xf] }
  0x1e   : > { %243 = vst [vmem:[%s1321_s11 + $0x20] sm:$0xf] %v242_v8  ;;  %v246_v10 = vld [vmem:[%s1316_s10 + $0x50] sm:$0xf]  ;;  %v248_v11 = vld [vmem:[%s1316_s10 + $0x58] sm:$0xf] }
  0x1f   : > { %245 = vst [vmem:[%s1321_s11 + $0x24] sm:$0xf] %v244_v9  ;;  %247 = vst [vmem:[%s1321_s11 + $0x28] sm:$0xf] %v246_v10  ;;  %v250_v12 = vld [vmem:[%s1316_s10 + $0x60] sm:$0xf] }
  0x20   : > { %249 = vst [vmem:[%s1321_s11 + $0x2c] sm:$0xf] %v248_v11  ;;  %v252_v13 = vld [vmem:[%s1316_s10 + $0x68] sm:$0xf]  ;;  %v254_v14 = vld [vmem:[%s1316_s10 + $0x70] sm:$0xf] }
  0x21   : > { %251 = vst [vmem:[%s1321_s11 + $0x30] sm:$0xf] %v250_v12  ;;  %253 = vst [vmem:[%s1321_s11 + $0x34] sm:$0xf] %v252_v13  ;;  %v256_v15 = vld [vmem:[%s1316_s10 + $0x78] sm:$0xf] }
  0x22   : > { %255 = vst [vmem:[%s1321_s11 + $0x38] sm:$0xf] %v254_v14  ;;  %v258_v16 = vld [vmem:[%s1316_s10 + $0x80] sm:$0xf]  ;;  %v260_v17 = vld [vmem:[%s1316_s10 + $0x88] sm:$0xf] }
  0x23   : > { %257 = vst [vmem:[%s1321_s11 + $0x3c] sm:$0xf] %v256_v15  ;;  %259 = vst [vmem:[%s1321_s11 + $0x40] sm:$0xf] %v258_v16  ;;  %v262_v18 = vld [vmem:[%s1316_s10 + $0x90] sm:$0xf] }
  0x24   : > { %261 = vst [vmem:[%s1321_s11 + $0x44] sm:$0xf] %v260_v17  ;;  %v264_v19 = vld [vmem:[%s1316_s10 + $0x98] sm:$0xf]  ;;  %v266_v20 = vld [vmem:[%s1316_s10 + $0xa0] sm:$0xf] }
  0x25   : > { %263 = vst [vmem:[%s1321_s11 + $0x48] sm:$0xf] %v262_v18  ;;  %265 = vst [vmem:[%s1321_s11 + $0x4c] sm:$0xf] %v264_v19  ;;  %v268_v21 = vld [vmem:[%s1316_s10 + $0xa8] sm:$0xf] }
  0x26   : > { %267 = vst [vmem:[%s1321_s11 + $0x50] sm:$0xf] %v266_v20  ;;  %v270_v22 = vld [vmem:[%s1316_s10 + $0xb0] sm:$0xf]  ;;  %v272_v23 = vld [vmem:[%s1316_s10 + $0xb8] sm:$0xf] }
  0x27   : > { %269 = vst [vmem:[%s1321_s11 + $0x54] sm:$0xf] %v268_v21  ;;  %271 = vst [vmem:[%s1321_s11 + $0x58] sm:$0xf] %v270_v22  ;;  %v274_v24 = vld [vmem:[%s1316_s10 + $0xc0] sm:$0xf] }
  0x28   : > { %273 = vst [vmem:[%s1321_s11 + $0x5c] sm:$0xf] %v272_v23  ;;  %v276_v25 = vld [vmem:[%s1316_s10 + $0xc8] sm:$0xf]  ;;  %v278_v26 = vld [vmem:[%s1316_s10 + $0xd0] sm:$0xf] }
  0x29   : > { %275 = vst [vmem:[%s1321_s11 + $0x60] sm:$0xf] %v274_v24  ;;  %277 = vst [vmem:[%s1321_s11 + $0x64] sm:$0xf] %v276_v25  ;;  %v280_v27 = vld [vmem:[%s1316_s10 + $0xd8] sm:$0xf] }
  0x2a   : > { %279 = vst [vmem:[%s1321_s11 + $0x68] sm:$0xf] %v278_v26  ;;  %v282_v28 = vld [vmem:[%s1316_s10 + $0xe0] sm:$0xf]  ;;  %v284_v29 = vld [vmem:[%s1316_s10 + $0xe8] sm:$0xf] }
  0x2b   : > { %281 = vst [vmem:[%s1321_s11 + $0x6c] sm:$0xf] %v280_v27  ;;  %283 = vst [vmem:[%s1321_s11 + $0x70] sm:$0xf] %v282_v28  ;;  %v286_v30 = vld [vmem:[%s1316_s10 + $0xf0] sm:$0xf] }
  0x2c   : > { %285 = vst [vmem:[%s1321_s11 + $0x74] sm:$0xf] %v284_v29  ;;  %v288_v31 = vld [vmem:[%s1316_s10 + $0xf8] sm:$0xf]  ;;  %v290_v32 = vld [vmem:[%s1316_s10 + $0x100] sm:$0xf] }
  0x2d   : > { %287 = vst [vmem:[%s1321_s11 + $0x78] sm:$0xf] %v286_v30  ;;  %289 = vst [vmem:[%s1321_s11 + $0x7c] sm:$0xf] %v288_v31  ;;  %v292_v33 = vld [vmem:[%s1316_s10 + $0x108] sm:$0xf] }
  0x2e   : > { %291 = vst [vmem:[%s1321_s11 + $0x80] sm:$0xf] %v290_v32  ;;  %v294_v34 = vld [vmem:[%s1316_s10 + $0x110] sm:$0xf]  ;;  %v296_v35 = vld [vmem:[%s1316_s10 + $0x118] sm:$0xf] }
  0x2f   : > { %293 = vst [vmem:[%s1321_s11 + $0x84] sm:$0xf] %v292_v33  ;;  %295 = vst [vmem:[%s1321_s11 + $0x88] sm:$0xf] %v294_v34  ;;  %v298_v36 = vld [vmem:[%s1316_s10 + $0x120] sm:$0xf] }
  0x30   : > { %297 = vst [vmem:[%s1321_s11 + $0x8c] sm:$0xf] %v296_v35  ;;  %v300_v37 = vld [vmem:[%s1316_s10 + $0x128] sm:$0xf]  ;;  %v302_v38 = vld [vmem:[%s1316_s10 + $0x130] sm:$0xf] }
  0x31   : > { %299 = vst [vmem:[%s1321_s11 + $0x90] sm:$0xf] %v298_v36  ;;  %301 = vst [vmem:[%s1321_s11 + $0x94] sm:$0xf] %v300_v37  ;;  %v304_v39 = vld [vmem:[%s1316_s10 + $0x138] sm:$0xf] }
  0x32   : > { %303 = vst [vmem:[%s1321_s11 + $0x98] sm:$0xf] %v302_v38  ;;  %v306_v40 = vld [vmem:[%s1316_s10 + $0x140] sm:$0xf]  ;;  %v308_v41 = vld [vmem:[%s1316_s10 + $0x148] sm:$0xf] }
  0x33   : > { %305 = vst [vmem:[%s1321_s11 + $0x9c] sm:$0xf] %v304_v39  ;;  %307 = vst [vmem:[%s1321_s11 + $0xa0] sm:$0xf] %v306_v40  ;;  %v310_v42 = vld [vmem:[%s1316_s10 + $0x150] sm:$0xf] }
  0x34   : > { %309 = vst [vmem:[%s1321_s11 + $0xa4] sm:$0xf] %v308_v41  ;;  %v312_v43 = vld [vmem:[%s1316_s10 + $0x158] sm:$0xf]  ;;  %v314_v44 = vld [vmem:[%s1316_s10 + $0x160] sm:$0xf] }
  0x35   : > { %311 = vst [vmem:[%s1321_s11 + $0xa8] sm:$0xf] %v310_v42  ;;  %313 = vst [vmem:[%s1321_s11 + $0xac] sm:$0xf] %v312_v43  ;;  %v316_v45 = vld [vmem:[%s1316_s10 + $0x168] sm:$0xf] }
  0x36   : > { %315 = vst [vmem:[%s1321_s11 + $0xb0] sm:$0xf] %v314_v44  ;;  %v318_v46 = vld [vmem:[%s1316_s10 + $0x170] sm:$0xf]  ;;  %v320_v47 = vld [vmem:[%s1316_s10 + $0x178] sm:$0xf] }
  0x37   : > { %317 = vst [vmem:[%s1321_s11 + $0xb4] sm:$0xf] %v316_v45  ;;  %319 = vst [vmem:[%s1321_s11 + $0xb8] sm:$0xf] %v318_v46 }
  0x38   : > { %321 = vst [vmem:[%s1321_s11 + $0xbc] sm:$0xf] %v320_v47 }
  0x39 PF: > { %p996_p7 = scmp.ge.s32.totalorder %s1226_s21, 1  ;;  %p456_p8 = scmp.lt.s32.totalorder %s1226_s21, 13 }
  0x3b   : > { %p457_p9 = pnand %p996_p7, %p456_p8 }
  0x3c   : > { %s463_s12 = sand.u32 (!%p457_p9), 1, %s1202_s15   ;;  %s511_s13 = smul.u32 (!%p457_p9), 3, %s1210_s17 }
  0x3d   : > { %460 = sbr.rel (%p457_p9) target bundleno = 348 (0x15c), region = 73  ;;  %p522_p10 = scmp.lt.s32.totalorder (!%p457_p9), %s1214_s18, 1 }
  0x3e   : > { %s1085_s14 = smul.u32 (!%p457_p9), 192, %s463_s12  ;;  %p514_p11 = scmp.lt.s32.totalorder (!%p457_p9), %s511_s13, 17 }
  0x3f   : > { %p1000_p12 = scmp.ne.s32.totalorder (!%p457_p9), %s1210_s17, 0 }
  0x40   : > { %s1444_s12 = scalar_lea.vmem (!%p457_p9), [#allocation3], %s1085_s14 }
  0x44   : > { %s1520_s13 = smov (!%p514_p11, %s511_s13), 17  ;;  %s1522_s18 = smov (!%p522_p10, %s1214_s18), 1 }
  0x45   : > { %s997_s24 = sshll.u32 %s1520_s13, 2  ;;  %s524_s5 = scalar_lea.vmem %s1504_s2, %s1522_s18  ;;  %v1228_v48 = vmov (!%p1000_p12), 0.0  }
  0x46   : > { %s1427_s27 = scalar_lea.vmem %s1502_s0, %s997_s24  ;;  %s998_s15 = sshll.u32 %s1522_s18, 2  ;;  %546 = vst [vmem:[#allocation2] sm:$0xff] (!%p1000_p12), %v1228_v48 }
  0x47   : > { %s1437_s8 = scalar_lea.vmem %s1505_s3, %s998_s15  ;;  %s1442_s11 = scalar_lea.vmem %s1506_s4, %s998_s15 }
  0x48   : > { %545 = sbr.rel (%p1000_p12) target bundleno = 79 (0x4f), region = 81 }
  0x4f PF: > { %v1145_v49 = vld [vmem:[%s1444_s12 + $0x40] sm:$0xff]   ;;  %v1229_v50 = vmov 0.0   ;;  %vm1230_vm0 = vmmov 0   ;;  %v1148_v53 = vld [vmem:[%s1444_s12 + $0x48] sm:$0xff]   ;;  %v1151_v56 = vld [vmem:[%s1444_s12 + $0x50] sm:$0xff]   ;;  %p1028_p13 = scmp.ne.s32.totalorder %s1210_s17, 5 }
  0x50   : > { %1064 = vmatprep.subr.bf16.mxu1 %v1229_v50  ;;  %v1146_v51 = vld [vmem:[%s1444_s12] sm:$0xff]   ;;  %1033 = vmatprep.subr.bf16.mxu0 %v1145_v49  ;;  %v1149_v54 = vld [vmem:[%s1444_s12 + $0x8] sm:$0xff]   ;;  %v1152_v57 = vld [vmem:[%s1444_s12 + $0x10] sm:$0xff]  }
  0x51   : > { %v1147_v52 = vld [vmem:[%s1444_s12 + $0x80] sm:$0xff]   ;;  %1080 = vmatprep.mubr.msk.bf16.mxu1 %vm1230_vm0, %v1229_v50  ;;  %1034 = vmatpush3.bf16.msra.mxu0 %v1146_v51  ;;  %v1150_v55 = vld [vmem:[%s1444_s12 + $0x88] sm:$0xff]   ;;  %v1153_v58 = vld [vmem:[%s1444_s12 + $0x90] sm:$0xff]  }
  0x52   : > { %1065 = vmatpush3.bf16.msra.mxu1 %v1147_v52  ;;  %1035 = vmatprep.subr.bf16.mxu0 %v1148_v53  ;;  %v1154_v59 = vld [vmem:[%s1444_s12 + $0x58] sm:$0xff]   ;;  %v1157_v62 = vld [vmem:[%s1444_s12 + $0x60] sm:$0xff]   ;;  %v1160_v1 = vld [vmem:[%s1444_s12 + $0x68] sm:$0xff]  }
  0x53   : > { %1066 = vmatprep.subr.bf16.mxu1 %v1229_v50  ;;  %v1155_v60 = vld [vmem:[%s1444_s12 + $0x18] sm:$0xff]   ;;  %v1158_v63 = vld [vmem:[%s1444_s12 + $0x20] sm:$0xff]   ;;  %v1161_v2 = vld [vmem:[%s1444_s12 + $0x28] sm:$0xff]  }
  0x54   : > { %v1156_v61 = vld [vmem:[%s1444_s12 + $0x98] sm:$0xff]   ;;  %v1159_v0 = vld [vmem:[%s1444_s12 + $0xa0] sm:$0xff]   ;;  %v1162_v3 = vld [vmem:[%s1444_s12 + $0xa8] sm:$0xff]  }
  0x55   : > { %1036 = vmatpush3.bf16.msra.mxu0 %v1149_v54  ;;  %v1163_v4 = vld [vmem:[%s1444_s12 + $0x70] sm:$0xff]   ;;  %v1166_v7 = vld [vmem:[%s1444_s12 + $0x78] sm:$0xff]   ;;  %v1171_v13 = vld [vmem:[%s1427_s27 + $0x8] ss:$0 sps:$4 sm:$0xff]  }
  0x56   : > { %1067 = vmatpush3.bf16.msra.mxu1 %v1150_v55  ;;  %1037 = vmatprep.subr.bf16.mxu0 %v1151_v56  ;;  %v1164_v5 = vld [vmem:[%s1444_s12 + $0x30] sm:$0xff]   ;;  %v548_v8 = vld [vmem:[%s1427_s27] sm:$0xff] }
  0x57   : > { %1068 = vmatprep.subr.bf16.mxu1 %v1229_v50  ;;  %v1165_v6 = vld [vmem:[%s1444_s12 + $0xb0] sm:$0xff]   ;;  %v1002_v9 = vcombine.high %v548_v8, %v548_v8  ;;  %v1167_v10 = vld [vmem:[%s1444_s12 + $0x38] sm:$0xff]   ;;  %v1001_v12 = vcombine.low %v548_v8, %v548_v8 }
  0x58   : > { %v1168_v11 = vld [vmem:[%s1444_s12 + $0xb8] sm:$0xff]  }
  0x59   : > { %1038 = vmatpush3.bf16.msra.mxu0 %v1152_v57  ;;  %785 = vmatprep.mubr.bf16.mxu0 %v1002_v9  ;;  %v547_v20 = vld [vmem:[#allocation2] sm:$0xff] }
  0x5a   : > { %1069 = vmatpush3.bf16.msra.mxu1 %v1153_v58  ;;  %1039 = vmatprep.subr.bf16.mxu0 %v1154_v59  ;;  %v1029_v27 = vld [vmem:[%s524_s5] ss:$0 sm:$0xff] (!%p1028_p13) }
  0x5b   : > { %1070 = vmatprep.subr.bf16.mxu1 %v1229_v50  ;;  %v848_v28 = vld [vmem:[%s1437_s8] sm:$0xf] (!%p1028_p13) }
  0x5c   : > { %v849_v30 = vunpack.c.l.bf16 (!%p1028_p13), %v848_v28 }
  0x5d   : > { %1040 = vmatpush3.bf16.msra.mxu0 %v1155_v60 }
  0x5e   : > { %1071 = vmatpush3.bf16.msra.mxu1 %v1156_v61  ;;  %1041 = vmatprep.subr.bf16.mxu0 %v1157_v62 }
  0x5f   : > { %1072 = vmatprep.subr.bf16.mxu1 %v1229_v50 }
  0x61   : > { %1042 = vmatpush3.bf16.msra.mxu0 %v1158_v63 }
  0x62   : > { %1073 = vmatpush3.bf16.msra.mxu1 %v1159_v0  ;;  %1043 = vmatprep.subr.bf16.mxu0 %v1160_v1 }
  0x63   : > { %1074 = vmatprep.subr.bf16.mxu1 %v1229_v50 }
  0x65   : > { %1044 = vmatpush3.bf16.msra.mxu0 %v1161_v2 }
  0x66   : > { %1075 = vmatpush3.bf16.msra.mxu1 %v1162_v3  ;;  %1045 = vmatprep.subr.bf16.mxu0 %v1163_v4 }
  0x67   : > { %1076 = vmatprep.subr.bf16.mxu1 %v1229_v50 }
  0x69   : > { %1046 = vmatpush3.bf16.msra.mxu0 %v1164_v5 }
  0x6a   : > { %1077 = vmatpush3.bf16.msra.mxu1 %v1165_v6  ;;  %1047 = vmatprep.subr.bf16.mxu0 %v1166_v7 }
  0x6b   : > { %1078 = vmatprep.subr.bf16.mxu1 %v1229_v50 }
  0x6d   : > { %1048 = vmatpush3.bf16.msra.mxu0 %v1167_v10 }
  0x6e   : > { %1079 = vmatpush3.bf16.msra.mxu1 %v1168_v11 }
  0x70   : > { %786 = vmatmul.mubr.bf16.vlgmr.msra.gmra.mrb[0].mxu0 %v1001_v12 }
  0x71   : > { %1081 = vmatmul.mubr.bf16.vlgmr.msra.gmra.mrb[0].mxu1 %v1171_v13 }
 0x143   : > { %v1049_v14 = vpop.f32.mrb[0].mxu0 }
 0x144   : > { %v827_v15 = vpop.f32.mrb[0].mxu1  ;;  %v1050_v16 = vpop.f32.mrb[1].mxu0 }
 0x145   : > { %v1051_v17 = vadd.f32 %v1050_v16, %v1049_v14  ;;  %v1082_v18 = vpop.f32.mrb[1].mxu1  ;;  %v1052_v19 = vpop.f32.mrb[2].mxu0  ;;  %838 = sbr.rel (%p1028_p13) target bundleno = 348 (0x15c), region = 85 }
 0x146   : > { %v830_v21 = vpop.f32.mrb[2].mxu1  ;;  %v1053_v22 = vpop.f32.mrb[3].mxu0 }
 0x147   : > { %v828_v23 = vadd.f32 %v1051_v17, %v827_v15  ;;  %v1083_v24 = vpop.f32.mrb[3].mxu1 }
 0x149   : > { %v833_v25 = vadd.f32 %v828_v23, %v547_v20 }
 0x14b   : > { %834 = vst [vmem:[#allocation2] sm:$0xff] %v833_v25 }
 0x152   : > { %v839_v26 = vld [vmem:[#allocation2] sm:$0xff] }
 0x153   : > { %v847_v29 = vadd.f32 %v1029_v27, %v839_v26 }
 0x155   : > { %v850_v31 = vadd.f32 %v849_v30, %v847_v29 }
 0x157   : > { %v851_v32 = vmax.f32 %v850_v31, 0.0 }
 0x159   : > { %v852_v33 = vpack.c.bf16 %v851_v32, %v851_v32 }
 0x15b   : > { %853 = vst [vmem:[%s1442_s11] sm:$0xf] %v852_v33 }
 0x15c PF: > { %s14_s21 = sadd.s32 1, %s1226_s21   ;;  %s1507_s15 = smov %s1206_s16 }
 0x15d   : > { %p11_p0 = scmp.ge.s32.totalorder %s14_s21, 14   ;;  %s1508_s16 = smov %s1307_s28 }
 0x15e   : > { %s1509_s17 = smov %s1218_s19  ;;  %s1510_s18 = smov %s1222_s20 }
 0x15f   : > { %s1511_s19 = smov %s1514_s22  ;;  %s1512_s20 = smov %s1518_s23 }
 0x160   :  { %13 = sbr.rel (!%p11_p0) target bundleno = 4 (0x4), region = 129 }

// kernel: embedder_forward.36
= control target key start
LH: loop header
LB: loop body
LE: loop exit
PB: predicated region body
PF: predicated region fallthrough
CT: control target
= control target key end

     0   :  { %s1319_s12 = smov 0   ;;  %s1321_s13 = smov 0   ;;  %s1582_s0 = inlined_call_operand.vmem [shape: bf16[8,2304], index: 0, kind: input, shape index: {}]   ;;  %s1583_s1 = inlined_call_operand.vmem [shape: bf16[2304,512], index: 1, kind: input, shape index: {}]   ;;  %s1584_s2 = inlined_call_operand.vmem [shape: f32[1,512], index: 2, kind: input, shape index: {}]   ;;  %s1585_s3 = inlined_call_operand.vmem [shape: bf16[8,512], index: 3, kind: output, shape index: {}]  }
   0x1   :  { %s1323_s14 = smov 0   ;;  %s1325_s15 = smov 0  }
   0x2   :  { %s1327_s16 = smov 0   ;;  %s1329_s17 = smov 0  }
   0x3   :  { %s1331_s18 = smov 0  }
   0x4 LB: > { %s25_s19 = sadd.s32 1, %s1287_s16  ;;  %s28_s20 = sadd.s32 1, %s1291_s17  ;;  %s1295_s18 = sphi %s1331_s18, %s13_s18   ;;  %s1291_s17 = sphi %s1329_s17, %s1591_s17   ;;  %s1287_s16 = sphi %s1327_s16, %s1590_s16   ;;  %s1283_s15 = sphi %s1325_s15, %s1589_s15   ;;  %s1279_s14 = sphi %s1323_s14, %s1588_s14   ;;  %s1275_s13 = sphi %s1321_s13, %s1587_s13   ;;  %s1271_s12 = sphi %s1319_s12, %s1586_s12  }
   0x5   : > { %p26_p0 = scmp.ge.s32.totalorder %s25_s19, 6  ;;  %p76_p1 = scmp.ne.s32.totalorder %s1275_s13, %s1271_s12 }
   0x6   : > { %p77_p2 = scmp.eq.s32.totalorder %s1295_s18, 0  ;;  %s69_s24 = sadd.s32 1, %s1275_s13 }
   0x7   : > { %s1593_s19 = smov (%p26_p0, %s25_s19), 0  ;;  %s1595_s20 = smov (!%p26_p0, %s28_s20), %s1291_s17 }
   0x8   : > { %p78_p3 = por %p77_p2, %p76_p1  ;;  %p30_p4 = scmp.ge.s32.totalorder %s1595_s20, 2 }
   0x9   : > { %s64_s21 = ssub.s32 %s1287_s16, %s1593_s19  ;;  %p1039_p6 = scmp.ge.s32.totalorder %s1295_s18, 12 }
   0xa   : > { %s1597_s20 = smov (%p30_p4, %s1595_s20), 0 }
   0xb   : > { %s65_s22 = ssub.s32 %s1291_s17, %s1597_s20  ;;  %156 = sbr.rel (%p1039_p6) target bundleno = 50 (0x32), region = 16 }
   0xc   : > { %s66_s23 = sor.u32 %s65_s22, %s64_s21 }
   0xd   : > { %p67_p5 = scmp.eq.s32.totalorder %s66_s23, 0 }
   0xf   : > { %s1370_s25 = scalar_select %p67_p5, %s1275_s13, %s69_s24  }
  0x12   : > { %172 = sbr.rel (!%p78_p3) target bundleno = 50 (0x32), region = 24  ;;  %s174_s26 = sand.u32 (%p78_p3), 1, %s1275_s13  }
  0x13   : > { %s1106_s27 = smul.u32 (%p78_p3), 384, %s174_s26  ;;  %s1040_s28 = sshll.u32 (%p78_p3), %s1291_s17, 1 }
  0x14   : > { %s1104_s29 = smul.u32 (%p78_p3), 192, %s1287_s16 }
  0x15   : > { %s1384_s8 = scalar_lea.vmem (%p78_p3), [#allocation3], %s1106_s27 }
  0x16   : > { %s180_s30 = sadd.s32 (%p78_p3), %s1104_s29, %s1040_s28 }
  0x17   : > { %s1042_s4 = sshll.u32 (%p78_p3), %s180_s30, 2 }
  0x18   : > { %s1379_s7 = scalar_lea.vmem (%p78_p3), %s1583_s1, %s1042_s4 }
  0x19   : > { %v304_v0 = vld [vmem:[%s1379_s7] sm:$0xff]  ;;  %v306_v1 = vld [vmem:[%s1379_s7 + $0x10] sm:$0xff] }
  0x1a   : > { %v308_v2 = vld [vmem:[%s1379_s7 + $0x20] sm:$0xff]  ;;  %305 = vst [vmem:[%s1384_s8] sm:$0xff] %v304_v0  ;;  %307 = vst [vmem:[%s1384_s8 + $0x8] sm:$0xff] %v306_v1  ;;  %v310_v3 = vld [vmem:[%s1379_s7 + $0x30] sm:$0xff] }
  0x1b   : > { %309 = vst [vmem:[%s1384_s8 + $0x10] sm:$0xff] %v308_v2  ;;  %v312_v4 = vld [vmem:[%s1379_s7 + $0x40] sm:$0xff]  ;;  %v314_v5 = vld [vmem:[%s1379_s7 + $0x50] sm:$0xff]  ;;  %311 = vst [vmem:[%s1384_s8 + $0x18] sm:$0xff] %v310_v3 }
  0x1c   : > { %313 = vst [vmem:[%s1384_s8 + $0x20] sm:$0xff] %v312_v4  ;;  %315 = vst [vmem:[%s1384_s8 + $0x28] sm:$0xff] %v314_v5  ;;  %v316_v6 = vld [vmem:[%s1379_s7 + $0x60] sm:$0xff]  ;;  %v318_v7 = vld [vmem:[%s1379_s7 + $0x70] sm:$0xff] }
  0x1d   : > { %v320_v8 = vld [vmem:[%s1379_s7 + $0x80] sm:$0xff]  ;;  %317 = vst [vmem:[%s1384_s8 + $0x30] sm:$0xff] %v316_v6  ;;  %319 = vst [vmem:[%s1384_s8 + $0x38] sm:$0xff] %v318_v7  ;;  %v322_v9 = vld [vmem:[%s1379_s7 + $0x90] sm:$0xff] }
  0x1e   : > { %321 = vst [vmem:[%s1384_s8 + $0x40] sm:$0xff] %v320_v8  ;;  %v324_v10 = vld [vmem:[%s1379_s7 + $0xa0] sm:$0xff]  ;;  %v326_v11 = vld [vmem:[%s1379_s7 + $0xb0] sm:$0xff]  ;;  %323 = vst [vmem:[%s1384_s8 + $0x48] sm:$0xff] %v322_v9 }
  0x1f   : > { %325 = vst [vmem:[%s1384_s8 + $0x50] sm:$0xff] %v324_v10  ;;  %327 = vst [vmem:[%s1384_s8 + $0x58] sm:$0xff] %v326_v11  ;;  %v328_v12 = vld [vmem:[%s1379_s7 + $0xc0] sm:$0xff]  ;;  %v330_v13 = vld [vmem:[%s1379_s7 + $0xd0] sm:$0xff] }
  0x20   : > { %v332_v14 = vld [vmem:[%s1379_s7 + $0xe0] sm:$0xff]  ;;  %329 = vst [vmem:[%s1384_s8 + $0x60] sm:$0xff] %v328_v12  ;;  %331 = vst [vmem:[%s1384_s8 + $0x68] sm:$0xff] %v330_v13  ;;  %v334_v15 = vld [vmem:[%s1379_s7 + $0xf0] sm:$0xff] }
  0x21   : > { %333 = vst [vmem:[%s1384_s8 + $0x70] sm:$0xff] %v332_v14  ;;  %v336_v16 = vld [vmem:[%s1379_s7 + $0x100] sm:$0xff]  ;;  %v338_v17 = vld [vmem:[%s1379_s7 + $0x110] sm:$0xff]  ;;  %335 = vst [vmem:[%s1384_s8 + $0x78] sm:$0xff] %v334_v15 }
  0x22   : > { %337 = vst [vmem:[%s1384_s8 + $0x80] sm:$0xff] %v336_v16  ;;  %339 = vst [vmem:[%s1384_s8 + $0x88] sm:$0xff] %v338_v17  ;;  %v340_v18 = vld [vmem:[%s1379_s7 + $0x120] sm:$0xff]  ;;  %v342_v19 = vld [vmem:[%s1379_s7 + $0x130] sm:$0xff] }
  0x23   : > { %v344_v20 = vld [vmem:[%s1379_s7 + $0x140] sm:$0xff]  ;;  %341 = vst [vmem:[%s1384_s8 + $0x90] sm:$0xff] %v340_v18  ;;  %343 = vst [vmem:[%s1384_s8 + $0x98] sm:$0xff] %v342_v19  ;;  %v346_v21 = vld [vmem:[%s1379_s7 + $0x150] sm:$0xff] }
  0x24   : > { %345 = vst [vmem:[%s1384_s8 + $0xa0] sm:$0xff] %v344_v20  ;;  %v348_v22 = vld [vmem:[%s1379_s7 + $0x160] sm:$0xff]  ;;  %v350_v23 = vld [vmem:[%s1379_s7 + $0x170] sm:$0xff]  ;;  %347 = vst [vmem:[%s1384_s8 + $0xa8] sm:$0xff] %v346_v21 }
  0x25   : > { %349 = vst [vmem:[%s1384_s8 + $0xb0] sm:$0xff] %v348_v22  ;;  %351 = vst [vmem:[%s1384_s8 + $0xb8] sm:$0xff] %v350_v23  ;;  %v352_v24 = vld [vmem:[%s1379_s7 + $0x180] sm:$0xff]  ;;  %v354_v25 = vld [vmem:[%s1379_s7 + $0x190] sm:$0xff] }
  0x26   : > { %v356_v26 = vld [vmem:[%s1379_s7 + $0x1a0] sm:$0xff]  ;;  %353 = vst [vmem:[%s1384_s8 + $0xc0] sm:$0xff] %v352_v24  ;;  %355 = vst [vmem:[%s1384_s8 + $0xc8] sm:$0xff] %v354_v25  ;;  %v358_v27 = vld [vmem:[%s1379_s7 + $0x1b0] sm:$0xff] }
  0x27   : > { %357 = vst [vmem:[%s1384_s8 + $0xd0] sm:$0xff] %v356_v26  ;;  %v360_v28 = vld [vmem:[%s1379_s7 + $0x1c0] sm:$0xff]  ;;  %v362_v29 = vld [vmem:[%s1379_s7 + $0x1d0] sm:$0xff]  ;;  %359 = vst [vmem:[%s1384_s8 + $0xd8] sm:$0xff] %v358_v27 }
  0x28   : > { %361 = vst [vmem:[%s1384_s8 + $0xe0] sm:$0xff] %v360_v28  ;;  %363 = vst [vmem:[%s1384_s8 + $0xe8] sm:$0xff] %v362_v29  ;;  %v364_v30 = vld [vmem:[%s1379_s7 + $0x1e0] sm:$0xff]  ;;  %v366_v31 = vld [vmem:[%s1379_s7 + $0x1f0] sm:$0xff] }
  0x29   : > { %v368_v32 = vld [vmem:[%s1379_s7 + $0x200] sm:$0xff]  ;;  %365 = vst [vmem:[%s1384_s8 + $0xf0] sm:$0xff] %v364_v30  ;;  %367 = vst [vmem:[%s1384_s8 + $0xf8] sm:$0xff] %v366_v31  ;;  %v370_v33 = vld [vmem:[%s1379_s7 + $0x210] sm:$0xff] }
  0x2a   : > { %369 = vst [vmem:[%s1384_s8 + $0x100] sm:$0xff] %v368_v32  ;;  %v372_v34 = vld [vmem:[%s1379_s7 + $0x220] sm:$0xff]  ;;  %v374_v35 = vld [vmem:[%s1379_s7 + $0x230] sm:$0xff]  ;;  %371 = vst [vmem:[%s1384_s8 + $0x108] sm:$0xff] %v370_v33 }
  0x2b   : > { %373 = vst [vmem:[%s1384_s8 + $0x110] sm:$0xff] %v372_v34  ;;  %375 = vst [vmem:[%s1384_s8 + $0x118] sm:$0xff] %v374_v35  ;;  %v376_v36 = vld [vmem:[%s1379_s7 + $0x240] sm:$0xff]  ;;  %v378_v37 = vld [vmem:[%s1379_s7 + $0x250] sm:$0xff] }
  0x2c   : > { %v380_v38 = vld [vmem:[%s1379_s7 + $0x260] sm:$0xff]  ;;  %377 = vst [vmem:[%s1384_s8 + $0x120] sm:$0xff] %v376_v36  ;;  %379 = vst [vmem:[%s1384_s8 + $0x128] sm:$0xff] %v378_v37  ;;  %v382_v39 = vld [vmem:[%s1379_s7 + $0x270] sm:$0xff] }
  0x2d   : > { %381 = vst [vmem:[%s1384_s8 + $0x130] sm:$0xff] %v380_v38  ;;  %v384_v40 = vld [vmem:[%s1379_s7 + $0x280] sm:$0xff]  ;;  %v386_v41 = vld [vmem:[%s1379_s7 + $0x290] sm:$0xff]  ;;  %383 = vst [vmem:[%s1384_s8 + $0x138] sm:$0xff] %v382_v39 }
  0x2e   : > { %385 = vst [vmem:[%s1384_s8 + $0x140] sm:$0xff] %v384_v40  ;;  %387 = vst [vmem:[%s1384_s8 + $0x148] sm:$0xff] %v386_v41  ;;  %v388_v42 = vld [vmem:[%s1379_s7 + $0x2a0] sm:$0xff]  ;;  %v390_v43 = vld [vmem:[%s1379_s7 + $0x2b0] sm:$0xff] }
  0x2f   : > { %v392_v44 = vld [vmem:[%s1379_s7 + $0x2c0] sm:$0xff]  ;;  %389 = vst [vmem:[%s1384_s8 + $0x150] sm:$0xff] %v388_v42  ;;  %391 = vst [vmem:[%s1384_s8 + $0x158] sm:$0xff] %v390_v43  ;;  %v394_v45 = vld [vmem:[%s1379_s7 + $0x2d0] sm:$0xff] }
  0x30   : > { %393 = vst [vmem:[%s1384_s8 + $0x160] sm:$0xff] %v392_v44  ;;  %v396_v46 = vld [vmem:[%s1379_s7 + $0x2e0] sm:$0xff]  ;;  %v398_v47 = vld [vmem:[%s1379_s7 + $0x2f0] sm:$0xff]  ;;  %395 = vst [vmem:[%s1384_s8 + $0x168] sm:$0xff] %v394_v45 }
  0x31   : > { %397 = vst [vmem:[%s1384_s8 + $0x170] sm:$0xff] %v396_v46  ;;  %399 = vst [vmem:[%s1384_s8 + $0x178] sm:$0xff] %v398_v47 }
  0x32 PF: > { %p1043_p7 = scmp.ge.s32.totalorder %s1295_s18, 1  ;;  %p412_p8 = scmp.lt.s32.totalorder %s1295_s18, 13 }
  0x34   : > { %p413_p9 = pnand %p1043_p7, %p412_p8 }
  0x35   : > { %s419_s9 = sand.u32 (!%p413_p9), 1, %s1271_s12   ;;  %s459_s10 = smul.u32 (!%p413_p9), 3, %s1279_s14 }
  0x36   : > { %416 = sbr.rel (%p413_p9) target bundleno = 368 (0x170), region = 66  ;;  %s1045_s21 = sshll.u32 (!%p413_p9), %s1283_s15, 1 }
  0x37   : > { %s1107_s11 = smul.u32 (!%p413_p9), 384, %s419_s9  ;;  %p462_p10 = scmp.lt.s32.totalorder (!%p413_p9), %s459_s10, 17 }
  0x38   : > { %p472_p11 = scmp.lt.s32.totalorder (!%p413_p9), %s1045_s21, 3  ;;  %p1048_p12 = scmp.ne.s32.totalorder (!%p413_p9), %s1279_s14, 0 }
  0x39   : > { %s1501_s5 = scalar_lea.vmem (!%p413_p9), [#allocation3], %s1107_s11 }
  0x3d   : > { %s1599_s10 = smov (!%p462_p10, %s459_s10), 17  ;;  %s1601_s21 = smov (!%p472_p11, %s1045_s21), 3 }
  0x3e   : > { %s1044_s22 = sshll.u32 %s1599_s10, 2  ;;  %s474_s12 = scalar_lea.vmem %s1584_s2, %s1601_s21  ;;  %v1297_v48 = vmov (!%p1048_p12), 0.0  }
  0x3f   : > { %s1489_s26 = scalar_lea.vmem %s1582_s0, %s1044_s22  ;;  %s1047_s29 = sshll.u32 %s1601_s21, 2  ;;  %491 = vst [vmem:[#allocation2] sm:$0xff] (!%p1048_p12), %v1297_v48  ;;  %492 = vst [vmem:[#allocation2 + $0x8] sm:$0xff] (!%p1048_p12), %v1297_v48 }
  0x40   : > { %s1499_s4 = scalar_lea.vmem %s1585_s3, %s1047_s29  ;;  %490 = sbr.rel (%p1048_p12) target bundleno = 71 (0x47), region = 74 }
  0x47 PF: > { %v1166_v49 = vld [vmem:[%s1501_s5 + $0x4] ss:$8 sps:$4 sm:$0xff]   ;;  %v1168_v50 = vld [vmem:[%s1501_s5] ss:$8 sps:$4 sm:$0xff]   ;;  %v1298_v51 = vmov 0   ;;  %v495_v18 = vld [vmem:[%s1489_s26] sm:$0xff] }
  0x48   : > { %869 = vmatprep.mubr.bf16.mxu1 %v1298_v51  ;;  %796 = vmatprep.subr.bf16.mxu0 %v1166_v49  ;;  %v1169_v52 = vld [vmem:[%s1501_s5 + $0x14] ss:$8 sps:$4 sm:$0xff]   ;;  %v1171_v53 = vld [vmem:[%s1501_s5 + $0x10] ss:$8 sps:$4 sm:$0xff]   ;;  %v1172_v54 = vld [vmem:[%s1501_s5 + $0x24] ss:$8 sps:$4 sm:$0xff]   ;;  %v1050_v19 = vcombine.high %v495_v18, %v495_v18  ;;  %v1049_v37 = vcombine.low %v495_v18, %v495_v18 }
  0x49   : > { %797 = vmatpush1.bf16.msra.mxu0 %v1168_v50  ;;  %v1174_v55 = vld [vmem:[%s1501_s5 + $0x20] ss:$8 sps:$4 sm:$0xff]   ;;  %v1175_v56 = vld [vmem:[%s1501_s5 + $0x34] ss:$8 sps:$4 sm:$0xff]   ;;  %v1177_v57 = vld [vmem:[%s1501_s5 + $0x30] ss:$8 sps:$4 sm:$0xff]  }
  0x4a   : > { %798 = vmatprep.subr.bf16.mxu0 %v1169_v52  ;;  %v1190_v58 = vld [vmem:[%s1501_s5 + $0x104] ss:$8 sps:$4 sm:$0xff]   ;;  %v1192_v59 = vld [vmem:[%s1501_s5 + $0x100] ss:$8 sps:$4 sm:$0xff]   ;;  %v1196_v61 = vld [vmem:[%s1501_s5 + $0x114] ss:$8 sps:$4 sm:$0xff]   ;;  %828 = vmatprep.mubr.bf16.mxu0 %v1050_v19 }
  0x4b   : > { %v1178_v60 = vld [vmem:[%s1501_s5 + $0x44] ss:$8 sps:$4 sm:$0xff]   ;;  %837 = vmatprep.subr.bf16.mxu1 %v1190_v58  ;;  %v1198_v62 = vld [vmem:[%s1501_s5 + $0x110] ss:$8 sps:$4 sm:$0xff]   ;;  %v1180_v63 = vld [vmem:[%s1501_s5 + $0x40] ss:$8 sps:$4 sm:$0xff]  }
  0x4c   : > { %838 = vmatpush1.bf16.msra.mxu1 %v1192_v59  ;;  %v1181_v0 = vld [vmem:[%s1501_s5 + $0x54] ss:$8 sps:$4 sm:$0xff]   ;;  %v1202_v1 = vld [vmem:[%s1501_s5 + $0x124] ss:$8 sps:$4 sm:$0xff]   ;;  %v1204_v2 = vld [vmem:[%s1501_s5 + $0x120] ss:$8 sps:$4 sm:$0xff]  }
  0x4d   : > { %799 = vmatpush1.bf16.msra.mxu0 %v1171_v53  ;;  %839 = vmatprep.subr.bf16.mxu1 %v1196_v61  ;;  %v1183_v3 = vld [vmem:[%s1501_s5 + $0x50] ss:$8 sps:$4 sm:$0xff]   ;;  %v1208_v4 = vld [vmem:[%s1501_s5 + $0x134] ss:$8 sps:$4 sm:$0xff]   ;;  %v1184_v5 = vld [vmem:[%s1501_s5 + $0x64] ss:$8 sps:$4 sm:$0xff]  }
  0x4e   : > { %800 = vmatprep.subr.bf16.mxu0 %v1172_v54  ;;  %v1210_v6 = vld [vmem:[%s1501_s5 + $0x130] ss:$8 sps:$4 sm:$0xff]   ;;  %v1186_v7 = vld [vmem:[%s1501_s5 + $0x60] ss:$8 sps:$4 sm:$0xff]   ;;  %v1214_v8 = vld [vmem:[%s1501_s5 + $0x144] ss:$8 sps:$4 sm:$0xff]  }
  0x4f   : > { %v1187_v9 = vld [vmem:[%s1501_s5 + $0x74] ss:$8 sps:$4 sm:$0xff]   ;;  %v1216_v10 = vld [vmem:[%s1501_s5 + $0x140] ss:$8 sps:$4 sm:$0xff]   ;;  %v1189_v11 = vld [vmem:[%s1501_s5 + $0x70] ss:$8 sps:$4 sm:$0xff]  }
  0x50   : > { %840 = vmatpush1.bf16.msra.mxu1 %v1198_v62  ;;  %v1220_v12 = vld [vmem:[%s1501_s5 + $0x154] ss:$8 sps:$4 sm:$0xff]   ;;  %v1193_v13 = vld [vmem:[%s1501_s5 + $0x84] ss:$8 sps:$4 sm:$0xff]   ;;  %v1222_v14 = vld [vmem:[%s1501_s5 + $0x150] ss:$8 sps:$4 sm:$0xff]  }
  0x51   : > { %801 = vmatpush1.bf16.msra.mxu0 %v1174_v55  ;;  %841 = vmatprep.subr.bf16.mxu1 %v1202_v1  ;;  %v1195_v15 = vld [vmem:[%s1501_s5 + $0x80] ss:$8 sps:$4 sm:$0xff]   ;;  %v1226_v16 = vld [vmem:[%s1501_s5 + $0x164] ss:$8 sps:$4 sm:$0xff]   ;;  %v1199_v17 = vld [vmem:[%s1501_s5 + $0x94] ss:$8 sps:$4 sm:$0xff]  }
  0x52   : > { %802 = vmatprep.subr.bf16.mxu0 %v1175_v56  ;;  %v1228_v20 = vld [vmem:[%s1501_s5 + $0x160] ss:$8 sps:$4 sm:$0xff]   ;;  %v1201_v21 = vld [vmem:[%s1501_s5 + $0x90] ss:$8 sps:$4 sm:$0xff]   ;;  %v1232_v22 = vld [vmem:[%s1501_s5 + $0x174] ss:$8 sps:$4 sm:$0xff]  }
  0x53   : > { %v1205_v23 = vld [vmem:[%s1501_s5 + $0xa4] ss:$8 sps:$4 sm:$0xff]   ;;  %v1234_v24 = vld [vmem:[%s1501_s5 + $0x170] ss:$8 sps:$4 sm:$0xff]   ;;  %v1207_v25 = vld [vmem:[%s1501_s5 + $0xa0] ss:$8 sps:$4 sm:$0xff]  }
  0x54   : > { %842 = vmatpush1.bf16.msra.mxu1 %v1204_v2  ;;  %v1211_v26 = vld [vmem:[%s1501_s5 + $0xb4] ss:$8 sps:$4 sm:$0xff]   ;;  %v1238_v27 = vld [vmem:[%s1489_s26 + $0x8] ss:$0 sps:$4 sm:$0xff]   ;;  %v1217_v29 = vld [vmem:[%s1501_s5 + $0xc4] ss:$8 sps:$4 sm:$0xff]  }
  0x55   : > { %803 = vmatpush1.bf16.msra.mxu0 %v1177_v57  ;;  %843 = vmatprep.subr.bf16.mxu1 %v1208_v4  ;;  %v1213_v28 = vld [vmem:[%s1501_s5 + $0xb0] ss:$8 sps:$4 sm:$0xff]   ;;  %v1219_v30 = vld [vmem:[%s1501_s5 + $0xc0] ss:$8 sps:$4 sm:$0xff]   ;;  %v1223_v31 = vld [vmem:[%s1501_s5 + $0xd4] ss:$8 sps:$4 sm:$0xff]  }
  0x56   : > { %804 = vmatprep.subr.bf16.mxu0 %v1178_v60  ;;  %v1225_v32 = vld [vmem:[%s1501_s5 + $0xd0] ss:$8 sps:$4 sm:$0xff]   ;;  %v1229_v33 = vld [vmem:[%s1501_s5 + $0xe4] ss:$8 sps:$4 sm:$0xff]   ;;  %v1231_v34 = vld [vmem:[%s1501_s5 + $0xe0] ss:$8 sps:$4 sm:$0xff]  }
  0x57   : > { %v1235_v35 = vld [vmem:[%s1501_s5 + $0xf4] ss:$8 sps:$4 sm:$0xff]   ;;  %v1237_v36 = vld [vmem:[%s1501_s5 + $0xf0] ss:$8 sps:$4 sm:$0xff]   ;;  %p1100_p13 = scmp.ne.s32.totalorder %s1279_s14, 5 }
  0x58   : > { %844 = vmatpush1.bf16.msra.mxu1 %v1210_v6  ;;  %v493_v42 = vld [vmem:[#allocation2] sm:$0xff]  ;;  %v494_v45 = vld [vmem:[#allocation2 + $0x8] sm:$0xff]  ;;  %v890_v52 = vlaneseq (!%p1100_p13) }
  0x59   : > { %805 = vmatpush1.bf16.msra.mxu0 %v1180_v63  ;;  %845 = vmatprep.subr.bf16.mxu1 %v1214_v8  ;;  %v888_v54 = vld [vmem:[%s474_s12] sm:$0x3] (!%p1100_p13) }
  0x5a   : > { %806 = vmatprep.subr.bf16.mxu0 %v1181_v0  ;;  %v891_v53 = vshrl.u32 (!%p1100_p13), %v890_v52, 7 }
  0x5c   : > { %846 = vmatpush1.bf16.msra.mxu1 %v1216_v10  ;;  %v892_v55 = vsub.s32 (!%p1100_p13), 0, %v891_v53  ;;  %v896_v56 = vsub.s32 (!%p1100_p13), 1, %v891_v53 }
  0x5d   : > { %807 = vmatpush1.bf16.msra.mxu0 %v1183_v3  ;;  %847 = vmatprep.subr.bf16.mxu1 %v1220_v12 }
  0x5e   : > { %808 = vmatprep.subr.bf16.mxu0 %v1184_v5  ;;  %v893_v59 = vrot.slane (!%p1100_p13), %v888_v54, %v892_v55  ;;  %v897_v60 = vrot.slane (!%p1100_p13), %v888_v54, %v896_v56 }
  0x60   : > { %848 = vmatpush1.bf16.msra.mxu1 %v1222_v14 }
  0x61   : > { %809 = vmatpush1.bf16.msra.mxu0 %v1186_v7  ;;  %849 = vmatprep.subr.bf16.mxu1 %v1226_v16 }
  0x62   : > { %810 = vmatprep.subr.bf16.mxu0 %v1187_v9 }
  0x64   : > { %850 = vmatpush1.bf16.msra.mxu1 %v1228_v20 }
  0x65   : > { %811 = vmatpush1.bf16.msra.mxu0 %v1189_v11  ;;  %851 = vmatprep.subr.bf16.mxu1 %v1232_v22 }
  0x66   : > { %812 = vmatprep.subr.bf16.mxu0 %v1193_v13 }
  0x68   : > { %852 = vmatpush1.bf16.msra.mxu1 %v1234_v24 }
  0x69   : > { %813 = vmatpush1.bf16.msra.mxu0 %v1195_v15 }
  0x6a   : > { %814 = vmatprep.subr.bf16.mxu0 %v1199_v17 }
  0x6b   : > { %870 = vmatmul.mubr.bf16.vlgmr.msra.gmra.mrb[0].mxu1 %v1238_v27 }
  0x6d   : > { %815 = vmatpush1.bf16.msra.mxu0 %v1201_v21 }
  0x6e   : > { %816 = vmatprep.subr.bf16.mxu0 %v1205_v23 }
  0x71   : > { %817 = vmatpush1.bf16.msra.mxu0 %v1207_v25 }
  0x72   : > { %818 = vmatprep.subr.bf16.mxu0 %v1211_v26 }
  0x75   : > { %819 = vmatpush1.bf16.msra.mxu0 %v1213_v28 }
  0x76   : > { %820 = vmatprep.subr.bf16.mxu0 %v1217_v29 }
  0x79   : > { %821 = vmatpush1.bf16.msra.mxu0 %v1219_v30 }
  0x7a   : > { %822 = vmatprep.subr.bf16.mxu0 %v1223_v31 }
  0x7d   : > { %823 = vmatpush1.bf16.msra.mxu0 %v1225_v32 }
  0x7e   : > { %824 = vmatprep.subr.bf16.mxu0 %v1229_v33 }
  0x81   : > { %825 = vmatpush1.bf16.msra.mxu0 %v1231_v34 }
  0x82   : > { %826 = vmatprep.subr.bf16.mxu0 %v1235_v35 }
  0x85   : > { %827 = vmatpush1.bf16.msra.mxu0 %v1237_v36 }
  0x88   : > { %829 = vmatmul.mubr.bf16.vlgmr.msra.gmra.mrb[0].mxu0 %v1049_v37 }
 0x13e   : > { %v871_v38 = vpop.f32.mrb[0].mxu1 }
 0x13f   : > { %v873_v39 = vpop.f32.mrb[1].mxu1 }
 0x140   : > { %v875_v40 = vpop.f32.mrb[2].mxu1 }
 0x141   : > { %v876_v41 = vpop.f32.mrb[3].mxu1 }
 0x15b   : > { %v830_v43 = vpop.f32.mrb[0].mxu0  ;;  %885 = sbr.rel (%p1100_p13) target bundleno = 368 (0x170), region = 78 }
 0x15c   : > { %v872_v44 = vadd.f32 %v871_v38, %v830_v43  ;;  %v832_v46 = vpop.f32.mrb[1].mxu0 }
 0x15d   : > { %v874_v47 = vadd.f32 %v873_v39, %v832_v46  ;;  %v834_v48 = vpop.f32.mrb[2].mxu0 }
 0x15e   : > { %v878_v49 = vadd.f32 %v872_v44, %v493_v42  ;;  %v835_v50 = vpop.f32.mrb[3].mxu0 }
 0x15f   : > { %v879_v51 = vadd.f32 %v874_v47, %v494_v45 }
 0x160   : > { %880 = vst [vmem:[#allocation2] sm:$0xff] %v878_v49 }
 0x161   : > { %881 = vst [vmem:[#allocation2 + $0x8] sm:$0xff] %v879_v51 }
 0x167   : > { %v886_v57 = vld [vmem:[#allocation2] sm:$0xff] }
 0x168   : > { %v887_v58 = vld [vmem:[#allocation2 + $0x8] sm:$0xff]  ;;  %v900_v61 = vadd.f32 %v893_v59, %v886_v57 }
 0x169   : > { %v901_v62 = vadd.f32 %v897_v60, %v887_v58 }
 0x16a   : > { %v902_v63 = vmax.f32 %v900_v61, 0.0 }
 0x16b   : > { %v903_v0 = vmax.f32 %v901_v62, 0.0 }
 0x16d   : > { %v1105_v1 = vpack.c.bf16 %v903_v0, %v902_v63 }
 0x16f   : > { %912 = vst [vmem:[%s1499_s4] sm:$0xff] %v1105_v1 }
 0x170 PF: > { %s13_s18 = sadd.s32 1, %s1295_s18   ;;  %s1586_s12 = smov %s1275_s13 }
 0x171   : > { %p10_p0 = scmp.ge.s32.totalorder %s13_s18, 14   ;;  %s1587_s13 = smov %s1370_s25 }
 0x172   : > { %s1588_s14 = smov %s1287_s16  ;;  %s1589_s15 = smov %s1291_s17 }
 0x173   : > { %s1590_s16 = smov %s1593_s19  ;;  %s1591_s17 = smov %s1597_s20 }
 0x174   :  { %12 = sbr.rel (!%p10_p0) target bundleno = 4 (0x4), region = 119 }

// kernel: embedder_forward.37
= control target key start
LH: loop header
LB: loop body
LE: loop exit
PB: predicated region body
PF: predicated region fallthrough
CT: control target
= control target key end

     0   :  { %s854_s12 = smov 0   ;;  %s856_s13 = smov 0   ;;  %s1003_s0 = inlined_call_operand.vmem [shape: bf16[8,256], index: 0, kind: input, shape index: {}]   ;;  %s1004_s1 = inlined_call_operand.vmem [shape: bf16[256,512], index: 1, kind: input, shape index: {}]   ;;  %s1005_s2 = inlined_call_operand.vmem [shape: f32[1,512], index: 2, kind: input, shape index: {}]   ;;  %s1006_s3 = inlined_call_operand.vmem [shape: bf16[8,512], index: 3, kind: output, shape index: {}]  }
   0x1   :  { %s858_s14 = smov 0   ;;  %s860_s15 = smov 0  }
   0x2   :  { %s862_s16 = smov 0   ;;  %s864_s17 = smov 0  }
   0x3   :  { %s866_s18 = smov 0  }
   0x4 LB: > { %s25_s19 = sadd.s32 1, %s822_s16  ;;  %s28_s20 = sadd.s32 1, %s826_s17  ;;  %s830_s18 = sphi %s866_s18, %s13_s18   ;;  %s826_s17 = sphi %s864_s17, %s1012_s17   ;;  %s822_s16 = sphi %s862_s16, %s1011_s16   ;;  %s818_s15 = sphi %s860_s15, %s1010_s15   ;;  %s814_s14 = sphi %s858_s14, %s1009_s14   ;;  %s810_s13 = sphi %s856_s13, %s1008_s13   ;;  %s806_s12 = sphi %s854_s12, %s1007_s12  }
   0x5   : > { %p26_p0 = scmp.ge.s32.totalorder %s25_s19, 2  ;;  %p76_p1 = scmp.ne.s32.totalorder %s810_s13, %s806_s12 }
   0x6   : > { %p77_p2 = scmp.eq.s32.totalorder %s830_s18, 0  ;;  %s69_s24 = sadd.s32 1, %s810_s13 }
   0x7   : > { %s1014_s19 = smov (%p26_p0, %s25_s19), 0  ;;  %s1016_s20 = smov (!%p26_p0, %s28_s20), %s826_s17 }
   0x8   : > { %p78_p3 = por %p77_p2, %p76_p1  ;;  %p30_p4 = scmp.ge.s32.totalorder %s1016_s20, 2 }
   0x9   : > { %s64_s21 = ssub.s32 %s822_s16, %s1014_s19  ;;  %p659_p6 = scmp.ge.s32.totalorder %s830_s18, 4 }
   0xa   : > { %s1018_s20 = smov (%p30_p4, %s1016_s20), 0 }
   0xb   : > { %s65_s22 = ssub.s32 %s826_s17, %s1018_s20  ;;  %156 = sbr.rel (%p659_p6) target bundleno = 33 (0x21), region = 16 }
   0xc   : > { %s66_s23 = sor.u32 %s65_s22, %s64_s21 }
   0xd   : > { %p67_p5 = scmp.eq.s32.totalorder %s66_s23, 0 }
   0xf   : > { %s905_s25 = scalar_select %p67_p5, %s810_s13, %s69_s24  }
  0x12   : > { %170 = sbr.rel (!%p78_p3) target bundleno = 33 (0x21), region = 24  ;;  %s172_s26 = sand.u32 (%p78_p3), 1, %s810_s13  }
  0x13   : > { %s662_s27 = sshll.u32 (%p78_p3), %s826_s17, 1  ;;  %s660_s28 = sshll.u32 (%p78_p3), %s172_s26, 7 }
  0x14   : > { %s692_s29 = sshll.u32 (%p78_p3), %s822_s16, 6  ;;  %s174_s8 = scalar_lea.vmem (%p78_p3), [#allocation3], %s660_s28 }
  0x15   : > { %s178_s30 = sadd.s32 (%p78_p3), %s692_s29, %s662_s27 }
  0x16   : > { %s664_s4 = sshll.u32 (%p78_p3), %s178_s30, 2 }
  0x17   : > { %s914_s7 = scalar_lea.vmem (%p78_p3), %s1004_s1, %s664_s4 }
  0x18   : > { %v238_v0 = vld [vmem:[%s914_s7] sm:$0xff] (%p78_p3)  ;;  %v240_v1 = vld [vmem:[%s914_s7 + $0x10] sm:$0xff] (%p78_p3) }
  0x19   : > { %v242_v2 = vld [vmem:[%s914_s7 + $0x20] sm:$0xff]  ;;  %239 = vst [vmem:[%s174_s8] sm:$0xff] %v238_v0  ;;  %241 = vst [vmem:[%s174_s8 + $0x8] sm:$0xff] %v240_v1  ;;  %v244_v3 = vld [vmem:[%s914_s7 + $0x30] sm:$0xff] }
  0x1a   : > { %243 = vst [vmem:[%s174_s8 + $0x10] sm:$0xff] %v242_v2  ;;  %v246_v4 = vld [vmem:[%s914_s7 + $0x40] sm:$0xff]  ;;  %v248_v5 = vld [vmem:[%s914_s7 + $0x50] sm:$0xff]  ;;  %245 = vst [vmem:[%s174_s8 + $0x18] sm:$0xff] %v244_v3 }
  0x1b   : > { %247 = vst [vmem:[%s174_s8 + $0x20] sm:$0xff] %v246_v4  ;;  %249 = vst [vmem:[%s174_s8 + $0x28] sm:$0xff] %v248_v5  ;;  %v250_v6 = vld [vmem:[%s914_s7 + $0x60] sm:$0xff]  ;;  %v252_v7 = vld [vmem:[%s914_s7 + $0x70] sm:$0xff] }
  0x1c   : > { %v254_v8 = vld [vmem:[%s914_s7 + $0x80] sm:$0xff]  ;;  %251 = vst [vmem:[%s174_s8 + $0x30] sm:$0xff] %v250_v6  ;;  %253 = vst [vmem:[%s174_s8 + $0x38] sm:$0xff] %v252_v7  ;;  %v256_v9 = vld [vmem:[%s914_s7 + $0x90] sm:$0xff] }
  0x1d   : > { %255 = vst [vmem:[%s174_s8 + $0x40] sm:$0xff] %v254_v8  ;;  %v258_v10 = vld [vmem:[%s914_s7 + $0xa0] sm:$0xff]  ;;  %v260_v11 = vld [vmem:[%s914_s7 + $0xb0] sm:$0xff]  ;;  %257 = vst [vmem:[%s174_s8 + $0x48] sm:$0xff] %v256_v9 }
  0x1e   : > { %259 = vst [vmem:[%s174_s8 + $0x50] sm:$0xff] %v258_v10  ;;  %261 = vst [vmem:[%s174_s8 + $0x58] sm:$0xff] %v260_v11  ;;  %v262_v12 = vld [vmem:[%s914_s7 + $0xc0] sm:$0xff]  ;;  %v264_v13 = vld [vmem:[%s914_s7 + $0xd0] sm:$0xff] }
  0x1f   : > { %v266_v14 = vld [vmem:[%s914_s7 + $0xe0] sm:$0xff]  ;;  %263 = vst [vmem:[%s174_s8 + $0x60] sm:$0xff] %v262_v12  ;;  %265 = vst [vmem:[%s174_s8 + $0x68] sm:$0xff] %v264_v13  ;;  %v268_v15 = vld [vmem:[%s914_s7 + $0xf0] sm:$0xff] }
  0x20   : > { %267 = vst [vmem:[%s174_s8 + $0x70] sm:$0xff] %v266_v14  ;;  %269 = vst [vmem:[%s174_s8 + $0x78] sm:$0xff] %v268_v15 }
  0x21 PF: > { %p665_p7 = scmp.ge.s32.totalorder %s830_s18, 1  ;;  %p282_p8 = scmp.lt.s32.totalorder %s830_s18, 5 }
  0x23   : > { %p283_p9 = pnand %p665_p7, %p282_p8 }
  0x24   : > { %s289_s9 = sand.u32 (!%p283_p9), 1, %s806_s12   ;;  %p330_p10 = scmp.lt.s32.totalorder (!%p283_p9), %s814_s14, 1 }
  0x25   : > { %286 = sbr.rel (%p283_p9) target bundleno = 313 (0x139), region = 66  ;;  %s666_s10 = sshll.u32 (!%p283_p9), %s289_s9, 7 }
  0x26   : > { %s668_s11 = sshll.u32 (!%p283_p9), %s818_s15, 1  ;;  %s955_s5 = scalar_lea.vmem (!%p283_p9), [#allocation3], %s666_s10 }
  0x27   : > { %p339_p11 = scmp.lt.s32.totalorder (!%p283_p9), %s668_s11, 3  ;;  %p671_p12 = scmp.ne.s32.totalorder (!%p283_p9), %s814_s14, 0 }
  0x2c   : > { %s331_s21 = scalar_select %p330_p10, %s814_s14, 1 }
  0x2d   : > { %s1020_s11 = smov (!%p339_p11, %s668_s11), 3  ;;  %357 = sbr.rel (%p671_p12) target bundleno = 52 (0x34), region = 74 }
  0x2e   : > { %s667_s22 = sshll.u32 %s331_s21, 2  ;;  %s341_s29 = scalar_lea.vmem %s1005_s2, %s1020_s11  ;;  %v832_v16 = vmov (!%p671_p12), 0.0  }
  0x2f   : > { %s943_s26 = scalar_lea.vmem %s1003_s0, %s667_s22  ;;  %s670_s12 = sshll.u32 %s1020_s11, 2  ;;  %358 = vst [vmem:[#allocation2] sm:$0xff] (!%p671_p12), %v832_v16  ;;  %359 = vst [vmem:[#allocation2 + $0x8] sm:$0xff] (!%p671_p12), %v832_v16 }
  0x30   : > { %s953_s15 = scalar_lea.vmem %s1006_s3, %s670_s12 }
  0x34 PF: > { %v752_v17 = vld [vmem:[%s955_s5 + $0x4] ss:$8 sps:$4 sm:$0xff]   ;;  %v754_v18 = vld [vmem:[%s955_s5] ss:$8 sps:$4 sm:$0xff]   ;;  %v833_v19 = vmov 0   ;;  %p688_p13 = scmp.ne.s32.totalorder %s814_s14, 1 }
  0x35   : > { %491 = vmatprep.mubr.bf16.mxu0 %v833_v19  ;;  %459 = vmatprep.subr.bf16.mxu0 %v752_v17  ;;  %v755_v20 = vld [vmem:[%s955_s5 + $0x14] ss:$8 sps:$4 sm:$0xff]   ;;  %v757_v21 = vld [vmem:[%s955_s5 + $0x10] ss:$8 sps:$4 sm:$0xff]   ;;  %v758_v22 = vld [vmem:[%s955_s5 + $0x24] ss:$8 sps:$4 sm:$0xff]   ;;  %v512_v43 = vlaneseq (!%p688_p13) }
  0x36   : > { %460 = vmatpush1.bf16.msra.mxu0 %v754_v18  ;;  %v760_v23 = vld [vmem:[%s955_s5 + $0x20] ss:$8 sps:$4 sm:$0xff]   ;;  %v761_v24 = vld [vmem:[%s955_s5 + $0x34] ss:$8 sps:$4 sm:$0xff]   ;;  %v763_v25 = vld [vmem:[%s955_s5 + $0x30] ss:$8 sps:$4 sm:$0xff]  }
  0x37   : > { %461 = vmatprep.subr.bf16.mxu0 %v755_v20  ;;  %v764_v26 = vld [vmem:[%s955_s5 + $0x44] ss:$8 sps:$4 sm:$0xff]   ;;  %v766_v27 = vld [vmem:[%s955_s5 + $0x40] ss:$8 sps:$4 sm:$0xff]   ;;  %v767_v28 = vld [vmem:[%s955_s5 + $0x54] ss:$8 sps:$4 sm:$0xff]  }
  0x38   : > { %v769_v29 = vld [vmem:[%s955_s5 + $0x50] ss:$8 sps:$4 sm:$0xff]   ;;  %v770_v30 = vld [vmem:[%s955_s5 + $0x64] ss:$8 sps:$4 sm:$0xff]   ;;  %v772_v31 = vld [vmem:[%s955_s5 + $0x60] ss:$8 sps:$4 sm:$0xff]  }
  0x39   : > { %v773_v32 = vld [vmem:[%s955_s5 + $0x74] ss:$8 sps:$4 sm:$0xff]   ;;  %v775_v33 = vld [vmem:[%s955_s5 + $0x70] ss:$8 sps:$4 sm:$0xff]   ;;  %v513_v44 = vshrl.u32 (!%p688_p13), %v512_v43, 7 }
  0x3a   : > { %462 = vmatpush1.bf16.msra.mxu0 %v757_v21  ;;  %v362_v34 = vld [vmem:[%s943_s26] sm:$0xf]  ;;  %v361_v36 = vld [vmem:[#allocation2 + $0x8] sm:$0xff] }
  0x3b   : > { %463 = vmatprep.subr.bf16.mxu0 %v758_v22  ;;  %v360_v35 = vld [vmem:[#allocation2] sm:$0xff]  ;;  %v514_v46 = vsub.s32 (!%p688_p13), 0, %v513_v44  ;;  %v518_v47 = vsub.s32 (!%p688_p13), 1, %v513_v44 }
  0x3c   : > { %v510_v45 = vld [vmem:[%s341_s29] sm:$0x3] (!%p688_p13) }
  0x3d   : > { %v515_v50 = vrot.slane (!%p688_p13), %v510_v45, %v514_v46  ;;  %v519_v51 = vrot.slane (!%p688_p13), %v510_v45, %v518_v47 }
  0x3e   : > { %464 = vmatpush1.bf16.msra.mxu0 %v760_v23 }
  0x3f   : > { %465 = vmatprep.subr.bf16.mxu0 %v761_v24 }
  0x42   : > { %466 = vmatpush1.bf16.msra.mxu0 %v763_v25 }
  0x43   : > { %467 = vmatprep.subr.bf16.mxu0 %v764_v26 }
  0x46   : > { %468 = vmatpush1.bf16.msra.mxu0 %v766_v27 }
  0x47   : > { %469 = vmatprep.subr.bf16.mxu0 %v767_v28 }
  0x4a   : > { %470 = vmatpush1.bf16.msra.mxu0 %v769_v29 }
  0x4b   : > { %471 = vmatprep.subr.bf16.mxu0 %v770_v30 }
  0x4e   : > { %472 = vmatpush1.bf16.msra.mxu0 %v772_v31 }
  0x4f   : > { %473 = vmatprep.subr.bf16.mxu0 %v773_v32 }
  0x52   : > { %474 = vmatpush1.bf16.msra.mxu0 %v775_v33 }
  0x55   : > { %492 = vmatmul.mubr.bf16.vlgmr.msra.gmra.mrb[0].mxu0 %v362_v34 }
 0x126   : > { %507 = sbr.rel (%p688_p13) target bundleno = 313 (0x139), region = 78 }
 0x128   : > { %v493_v37 = vpop.f32.mrb[0].mxu0 }
 0x129   : > { %v500_v38 = vadd.f32 %v493_v37, %v360_v35  ;;  %v495_v39 = vpop.f32.mrb[1].mxu0 }
 0x12a   : > { %v501_v40 = vadd.f32 %v495_v39, %v361_v36  ;;  %v497_v41 = vpop.f32.mrb[2].mxu0 }
 0x12b   : > { %502 = vst [vmem:[#allocation2] sm:$0xff] %v500_v38  ;;  %v498_v42 = vpop.f32.mrb[3].mxu0 }
 0x12c   : > { %503 = vst [vmem:[#allocation2 + $0x8] sm:$0xff] %v501_v40 }
 0x132   : > { %v508_v48 = vld [vmem:[#allocation2] sm:$0xff] }
 0x133   : > { %v509_v49 = vld [vmem:[#allocation2 + $0x8] sm:$0xff]  ;;  %v522_v52 = vadd.f32 %v515_v50, %v508_v48 }
 0x134   : > { %v523_v53 = vadd.f32 %v519_v51, %v509_v49 }
 0x136   : > { %v693_v54 = vpack.c.bf16 %v523_v53, %v522_v52 }
 0x138   : > { %532 = vst [vmem:[%s953_s15] sm:$0xff] %v693_v54 }
 0x139 PF: > { %s13_s18 = sadd.s32 1, %s830_s18   ;;  %s1007_s12 = smov %s810_s13 }
 0x13a   : > { %p10_p0 = scmp.ge.s32.totalorder %s13_s18, 6   ;;  %s1008_s13 = smov %s905_s25 }
 0x13b   : > { %s1009_s14 = smov %s822_s16  ;;  %s1010_s15 = smov %s826_s17 }
 0x13c   : > { %s1011_s16 = smov %s1014_s19  ;;  %s1012_s17 = smov %s1018_s20 }
 0x13d   :  { %12 = sbr.rel (!%p10_p0) target bundleno = 4 (0x4), region = 119 }

// kernel: embedder_forward.38
= control target key start
LH: loop header
LB: loop body
LE: loop exit
PB: predicated region body
PF: predicated region fallthrough
CT: control target
= control target key end

     0   :  { %s1616_s15 = smov 0   ;;  %s1618_s16 = smov 0   ;;  %s1933_s0 = inlined_call_operand.vmem [shape: bf16[8,4608], index: 0, kind: input, shape index: {}]   ;;  %s1934_s1 = inlined_call_operand.vmem [shape: bf16[4608,512], index: 1, kind: input, shape index: {}]   ;;  %s1935_s2 = inlined_call_operand.vmem [shape: f32[1,512], index: 2, kind: input, shape index: {}]   ;;  %s1936_s3 = inlined_call_operand.vmem [shape: bf16[8,512], index: 3, kind: input, shape index: {}]   ;;  %s1937_s4 = inlined_call_operand.vmem [shape: bf16[8,512], index: 4, kind: output, shape index: {}]  }
   0x1   :  { %s1620_s17 = smov 0   ;;  %s1622_s18 = smov 0  }
   0x2   :  { %s1624_s19 = smov 0   ;;  %s1626_s20 = smov 0  }
   0x3   :  { %s1628_s21 = smov 0  }
   0x4 LB: > { %s26_s22 = sadd.s32 1, %s1580_s19  ;;  %s29_s23 = sadd.s32 1, %s1584_s20  ;;  %s1588_s21 = sphi %s1628_s21, %s14_s21   ;;  %s1584_s20 = sphi %s1626_s20, %s1943_s20   ;;  %s1580_s19 = sphi %s1624_s19, %s1942_s19   ;;  %s1576_s18 = sphi %s1622_s18, %s1941_s18   ;;  %s1572_s17 = sphi %s1620_s17, %s1940_s17   ;;  %s1568_s16 = sphi %s1618_s16, %s1939_s16   ;;  %s1564_s15 = sphi %s1616_s15, %s1938_s15  }
   0x5   : > { %p27_p0 = scmp.ge.s32.totalorder %s26_s22, 9  ;;  %p77_p1 = scmp.ne.s32.totalorder %s1568_s16, %s1564_s15 }
   0x6   : > { %p78_p2 = scmp.eq.s32.totalorder %s1588_s21, 0  ;;  %s70_s27 = sadd.s32 1, %s1568_s16 }
   0x7   : > { %s1945_s22 = smov (%p27_p0, %s26_s22), 0  ;;  %s1947_s23 = smov (!%p27_p0, %s29_s23), %s1584_s20 }
   0x8   : > { %p79_p3 = por %p78_p2, %p77_p1  ;;  %p31_p4 = scmp.ge.s32.totalorder %s1947_s23, 2 }
   0x9   : > { %s65_s24 = ssub.s32 %s1580_s19, %s1945_s22  ;;  %p1287_p6 = scmp.ge.s32.totalorder %s1588_s21, 18 }
   0xa   : > { %s1949_s23 = smov (%p31_p4, %s1947_s23), 0 }
   0xb   : > { %s66_s25 = ssub.s32 %s1584_s20, %s1949_s23  ;;  %185 = sbr.rel (%p1287_p6) target bundleno = 57 (0x39), region = 16 }
   0xc   : > { %s67_s26 = sor.u32 %s66_s25, %s65_s24 }
   0xd   : > { %p68_p5 = scmp.eq.s32.totalorder %s67_s26, 0 }
   0xf   : > { %s1667_s28 = scalar_select %p68_p5, %s1568_s16, %s70_s27  }
  0x12   : > { %201 = sbr.rel (!%p79_p3) target bundleno = 57 (0x39), region = 24  ;;  %s203_s29 = sand.u32 (%p79_p3), 1, %s1568_s16  }
  0x13   : > { %s1290_s30 = sshll.u32 (%p79_p3), %s1584_s20, 1  ;;  %s1288_s5 = sshll.u32 (%p79_p3), %s203_s29, 9 }
  0x14   : > { %s1375_s6 = sshll.u32 (%p79_p3), %s1580_s19, 8  ;;  %s1681_s12 = scalar_lea.vmem (%p79_p3), [#allocation3], %s1288_s5 }
  0x15   : > { %s209_s7 = sadd.s32 (%p79_p3), %s1375_s6, %s1290_s30 }
  0x16   : > { %s1292_s8 = sshll.u32 (%p79_p3), %s209_s7, 2 }
  0x17   : > { %s1676_s11 = scalar_lea.vmem (%p79_p3), %s1934_s1, %s1292_s8 }
  0x18   : > { %v365_v0 = vld [vmem:[%s1676_s11] sm:$0xff] (%p79_p3)  ;;  %v367_v1 = vld [vmem:[%s1676_s11 + $0x10] sm:$0xff] (%p79_p3) }
  0x19   : > { %v369_v2 = vld [vmem:[%s1676_s11 + $0x20] sm:$0xff]  ;;  %366 = vst [vmem:[%s1681_s12] sm:$0xff] %v365_v0  ;;  %368 = vst [vmem:[%s1681_s12 + $0x8] sm:$0xff] %v367_v1  ;;  %v371_v3 = vld [vmem:[%s1676_s11 + $0x30] sm:$0xff] }
  0x1a   : > { %370 = vst [vmem:[%s1681_s12 + $0x10] sm:$0xff] %v369_v2  ;;  %v373_v4 = vld [vmem:[%s1676_s11 + $0x40] sm:$0xff]  ;;  %v375_v5 = vld [vmem:[%s1676_s11 + $0x50] sm:$0xff]  ;;  %372 = vst [vmem:[%s1681_s12 + $0x18] sm:$0xff] %v371_v3 }
  0x1b   : > { %374 = vst [vmem:[%s1681_s12 + $0x20] sm:$0xff] %v373_v4  ;;  %376 = vst [vmem:[%s1681_s12 + $0x28] sm:$0xff] %v375_v5  ;;  %v377_v6 = vld [vmem:[%s1676_s11 + $0x60] sm:$0xff]  ;;  %v379_v7 = vld [vmem:[%s1676_s11 + $0x70] sm:$0xff] }
  0x1c   : > { %v381_v8 = vld [vmem:[%s1676_s11 + $0x80] sm:$0xff]  ;;  %378 = vst [vmem:[%s1681_s12 + $0x30] sm:$0xff] %v377_v6  ;;  %380 = vst [vmem:[%s1681_s12 + $0x38] sm:$0xff] %v379_v7  ;;  %v383_v9 = vld [vmem:[%s1676_s11 + $0x90] sm:$0xff] }
  0x1d   : > { %382 = vst [vmem:[%s1681_s12 + $0x40] sm:$0xff] %v381_v8  ;;  %v385_v10 = vld [vmem:[%s1676_s11 + $0xa0] sm:$0xff]  ;;  %v387_v11 = vld [vmem:[%s1676_s11 + $0xb0] sm:$0xff]  ;;  %384 = vst [vmem:[%s1681_s12 + $0x48] sm:$0xff] %v383_v9 }
  0x1e   : > { %386 = vst [vmem:[%s1681_s12 + $0x50] sm:$0xff] %v385_v10  ;;  %388 = vst [vmem:[%s1681_s12 + $0x58] sm:$0xff] %v387_v11  ;;  %v389_v12 = vld [vmem:[%s1676_s11 + $0xc0] sm:$0xff]  ;;  %v391_v13 = vld [vmem:[%s1676_s11 + $0xd0] sm:$0xff] }
  0x1f   : > { %v393_v14 = vld [vmem:[%s1676_s11 + $0xe0] sm:$0xff]  ;;  %390 = vst [vmem:[%s1681_s12 + $0x60] sm:$0xff] %v389_v12  ;;  %392 = vst [vmem:[%s1681_s12 + $0x68] sm:$0xff] %v391_v13  ;;  %v395_v15 = vld [vmem:[%s1676_s11 + $0xf0] sm:$0xff] }
  0x20   : > { %394 = vst [vmem:[%s1681_s12 + $0x70] sm:$0xff] %v393_v14  ;;  %v397_v16 = vld [vmem:[%s1676_s11 + $0x100] sm:$0xff]  ;;  %v399_v17 = vld [vmem:[%s1676_s11 + $0x110] sm:$0xff]  ;;  %396 = vst [vmem:[%s1681_s12 + $0x78] sm:$0xff] %v395_v15 }
  0x21   : > { %398 = vst [vmem:[%s1681_s12 + $0x80] sm:$0xff] %v397_v16  ;;  %400 = vst [vmem:[%s1681_s12 + $0x88] sm:$0xff] %v399_v17  ;;  %v401_v18 = vld [vmem:[%s1676_s11 + $0x120] sm:$0xff]  ;;  %v403_v19 = vld [vmem:[%s1676_s11 + $0x130] sm:$0xff] }
  0x22   : > { %v405_v20 = vld [vmem:[%s1676_s11 + $0x140] sm:$0xff]  ;;  %402 = vst [vmem:[%s1681_s12 + $0x90] sm:$0xff] %v401_v18  ;;  %404 = vst [vmem:[%s1681_s12 + $0x98] sm:$0xff] %v403_v19  ;;  %v407_v21 = vld [vmem:[%s1676_s11 + $0x150] sm:$0xff] }
  0x23   : > { %406 = vst [vmem:[%s1681_s12 + $0xa0] sm:$0xff] %v405_v20  ;;  %v409_v22 = vld [vmem:[%s1676_s11 + $0x160] sm:$0xff]  ;;  %v411_v23 = vld [vmem:[%s1676_s11 + $0x170] sm:$0xff]  ;;  %408 = vst [vmem:[%s1681_s12 + $0xa8] sm:$0xff] %v407_v21 }
  0x24   : > { %410 = vst [vmem:[%s1681_s12 + $0xb0] sm:$0xff] %v409_v22  ;;  %412 = vst [vmem:[%s1681_s12 + $0xb8] sm:$0xff] %v411_v23  ;;  %v413_v24 = vld [vmem:[%s1676_s11 + $0x180] sm:$0xff]  ;;  %v415_v25 = vld [vmem:[%s1676_s11 + $0x190] sm:$0xff] }
  0x25   : > { %v417_v26 = vld [vmem:[%s1676_s11 + $0x1a0] sm:$0xff]  ;;  %414 = vst [vmem:[%s1681_s12 + $0xc0] sm:$0xff] %v413_v24  ;;  %416 = vst [vmem:[%s1681_s12 + $0xc8] sm:$0xff] %v415_v25  ;;  %v419_v27 = vld [vmem:[%s1676_s11 + $0x1b0] sm:$0xff] }
  0x26   : > { %418 = vst [vmem:[%s1681_s12 + $0xd0] sm:$0xff] %v417_v26  ;;  %v421_v28 = vld [vmem:[%s1676_s11 + $0x1c0] sm:$0xff]  ;;  %v423_v29 = vld [vmem:[%s1676_s11 + $0x1d0] sm:$0xff]  ;;  %420 = vst [vmem:[%s1681_s12 + $0xd8] sm:$0xff] %v419_v27 }
  0x27   : > { %422 = vst [vmem:[%s1681_s12 + $0xe0] sm:$0xff] %v421_v28  ;;  %424 = vst [vmem:[%s1681_s12 + $0xe8] sm:$0xff] %v423_v29  ;;  %v425_v30 = vld [vmem:[%s1676_s11 + $0x1e0] sm:$0xff]  ;;  %v427_v31 = vld [vmem:[%s1676_s11 + $0x1f0] sm:$0xff] }
  0x28   : > { %v429_v32 = vld [vmem:[%s1676_s11 + $0x200] sm:$0xff]  ;;  %426 = vst [vmem:[%s1681_s12 + $0xf0] sm:$0xff] %v425_v30  ;;  %428 = vst [vmem:[%s1681_s12 + $0xf8] sm:$0xff] %v427_v31  ;;  %v431_v33 = vld [vmem:[%s1676_s11 + $0x210] sm:$0xff] }
  0x29   : > { %430 = vst [vmem:[%s1681_s12 + $0x100] sm:$0xff] %v429_v32  ;;  %v433_v34 = vld [vmem:[%s1676_s11 + $0x220] sm:$0xff]  ;;  %v435_v35 = vld [vmem:[%s1676_s11 + $0x230] sm:$0xff]  ;;  %432 = vst [vmem:[%s1681_s12 + $0x108] sm:$0xff] %v431_v33 }
  0x2a   : > { %434 = vst [vmem:[%s1681_s12 + $0x110] sm:$0xff] %v433_v34  ;;  %436 = vst [vmem:[%s1681_s12 + $0x118] sm:$0xff] %v435_v35  ;;  %v437_v36 = vld [vmem:[%s1676_s11 + $0x240] sm:$0xff]  ;;  %v439_v37 = vld [vmem:[%s1676_s11 + $0x250] sm:$0xff] }
  0x2b   : > { %v441_v38 = vld [vmem:[%s1676_s11 + $0x260] sm:$0xff]  ;;  %438 = vst [vmem:[%s1681_s12 + $0x120] sm:$0xff] %v437_v36  ;;  %440 = vst [vmem:[%s1681_s12 + $0x128] sm:$0xff] %v439_v37  ;;  %v443_v39 = vld [vmem:[%s1676_s11 + $0x270] sm:$0xff] }
  0x2c   : > { %442 = vst [vmem:[%s1681_s12 + $0x130] sm:$0xff] %v441_v38  ;;  %v445_v40 = vld [vmem:[%s1676_s11 + $0x280] sm:$0xff]  ;;  %v447_v41 = vld [vmem:[%s1676_s11 + $0x290] sm:$0xff]  ;;  %444 = vst [vmem:[%s1681_s12 + $0x138] sm:$0xff] %v443_v39 }
  0x2d   : > { %446 = vst [vmem:[%s1681_s12 + $0x140] sm:$0xff] %v445_v40  ;;  %448 = vst [vmem:[%s1681_s12 + $0x148] sm:$0xff] %v447_v41  ;;  %v449_v42 = vld [vmem:[%s1676_s11 + $0x2a0] sm:$0xff]  ;;  %v451_v43 = vld [vmem:[%s1676_s11 + $0x2b0] sm:$0xff] }
  0x2e   : > { %v453_v44 = vld [vmem:[%s1676_s11 + $0x2c0] sm:$0xff]  ;;  %450 = vst [vmem:[%s1681_s12 + $0x150] sm:$0xff] %v449_v42  ;;  %452 = vst [vmem:[%s1681_s12 + $0x158] sm:$0xff] %v451_v43  ;;  %v455_v45 = vld [vmem:[%s1676_s11 + $0x2d0] sm:$0xff] }
  0x2f   : > { %454 = vst [vmem:[%s1681_s12 + $0x160] sm:$0xff] %v453_v44  ;;  %v457_v46 = vld [vmem:[%s1676_s11 + $0x2e0] sm:$0xff]  ;;  %v459_v47 = vld [vmem:[%s1676_s11 + $0x2f0] sm:$0xff]  ;;  %456 = vst [vmem:[%s1681_s12 + $0x168] sm:$0xff] %v455_v45 }
  0x30   : > { %458 = vst [vmem:[%s1681_s12 + $0x170] sm:$0xff] %v457_v46  ;;  %460 = vst [vmem:[%s1681_s12 + $0x178] sm:$0xff] %v459_v47  ;;  %v461_v48 = vld [vmem:[%s1676_s11 + $0x300] sm:$0xff]  ;;  %v463_v49 = vld [vmem:[%s1676_s11 + $0x310] sm:$0xff] }
  0x31   : > { %v465_v50 = vld [vmem:[%s1676_s11 + $0x320] sm:$0xff]  ;;  %462 = vst [vmem:[%s1681_s12 + $0x180] sm:$0xff] %v461_v48  ;;  %464 = vst [vmem:[%s1681_s12 + $0x188] sm:$0xff] %v463_v49  ;;  %v467_v51 = vld [vmem:[%s1676_s11 + $0x330] sm:$0xff] }
  0x32   : > { %466 = vst [vmem:[%s1681_s12 + $0x190] sm:$0xff] %v465_v50  ;;  %v469_v52 = vld [vmem:[%s1676_s11 + $0x340] sm:$0xff]  ;;  %v471_v53 = vld [vmem:[%s1676_s11 + $0x350] sm:$0xff]  ;;  %468 = vst [vmem:[%s1681_s12 + $0x198] sm:$0xff] %v467_v51 }
  0x33   : > { %470 = vst [vmem:[%s1681_s12 + $0x1a0] sm:$0xff] %v469_v52  ;;  %472 = vst [vmem:[%s1681_s12 + $0x1a8] sm:$0xff] %v471_v53  ;;  %v473_v54 = vld [vmem:[%s1676_s11 + $0x360] sm:$0xff]  ;;  %v475_v55 = vld [vmem:[%s1676_s11 + $0x370] sm:$0xff] }
  0x34   : > { %v477_v56 = vld [vmem:[%s1676_s11 + $0x380] sm:$0xff]  ;;  %474 = vst [vmem:[%s1681_s12 + $0x1b0] sm:$0xff] %v473_v54  ;;  %476 = vst [vmem:[%s1681_s12 + $0x1b8] sm:$0xff] %v475_v55  ;;  %v479_v57 = vld [vmem:[%s1676_s11 + $0x390] sm:$0xff] }
  0x35   : > { %478 = vst [vmem:[%s1681_s12 + $0x1c0] sm:$0xff] %v477_v56  ;;  %v481_v58 = vld [vmem:[%s1676_s11 + $0x3a0] sm:$0xff]  ;;  %v483_v59 = vld [vmem:[%s1676_s11 + $0x3b0] sm:$0xff]  ;;  %480 = vst [vmem:[%s1681_s12 + $0x1c8] sm:$0xff] %v479_v57 }
  0x36   : > { %482 = vst [vmem:[%s1681_s12 + $0x1d0] sm:$0xff] %v481_v58  ;;  %484 = vst [vmem:[%s1681_s12 + $0x1d8] sm:$0xff] %v483_v59  ;;  %v485_v60 = vld [vmem:[%s1676_s11 + $0x3c0] sm:$0xff]  ;;  %v487_v61 = vld [vmem:[%s1676_s11 + $0x3d0] sm:$0xff] }
  0x37   : > { %v489_v62 = vld [vmem:[%s1676_s11 + $0x3e0] sm:$0xff]  ;;  %486 = vst [vmem:[%s1681_s12 + $0x1e0] sm:$0xff] %v485_v60  ;;  %488 = vst [vmem:[%s1681_s12 + $0x1e8] sm:$0xff] %v487_v61  ;;  %v491_v63 = vld [vmem:[%s1676_s11 + $0x3f0] sm:$0xff] }
  0x38   : > { %490 = vst [vmem:[%s1681_s12 + $0x1f0] sm:$0xff] %v489_v62  ;;  %492 = vst [vmem:[%s1681_s12 + $0x1f8] sm:$0xff] %v491_v63 }
  0x39 PF: > { %p1293_p7 = scmp.ge.s32.totalorder %s1588_s21, 1  ;;  %p518_p8 = scmp.lt.s32.totalorder %s1588_s21, 19 }
  0x3b   : > { %p519_p9 = pnand %p1293_p7, %p518_p8 }
  0x3c   : > { %s525_s13 = sand.u32 (!%p519_p9), 1, %s1564_s15   ;;  %s1295_s14 = sshll.u32 (!%p519_p9), %s1572_s17, 2 }
  0x3d   : > { %522 = sbr.rel (%p519_p9) target bundleno = 379 (0x17b), region = 70  ;;  %s1294_s24 = sshll.u32 (!%p519_p9), %s525_s13, 9 }
  0x3e   : > { %p579_p10 = scmp.lt.s32.totalorder (!%p519_p9), %s1295_s14, 35  ;;  %s1297_s25 = sshll.u32 (!%p519_p9), %s1576_s18, 1 }
  0x3f   : > { %p589_p11 = scmp.lt.s32.totalorder (!%p519_p9), %s1297_s25, 3  ;;  %s1835_s13 = scalar_lea.vmem (!%p519_p9), [#allocation3], %s1294_s24 }
  0x40   : > { %p1302_p12 = scmp.ne.s32.totalorder (!%p519_p9), %s1572_s17, 0 }
  0x44   : > { %s1951_s14 = smov (!%p579_p10, %s1295_s14), 35  ;;  %s1953_s25 = smov (!%p589_p11, %s1297_s25), 3 }
  0x45   : > { %s1296_s26 = sshll.u32 %s1951_s14, 2  ;;  %s591_s15 = scalar_lea.vmem %s1935_s2, %s1953_s25  ;;  %v1590_v0 = vmov (!%p1302_p12), 0.0  }
  0x46   : > { %s1816_s30 = scalar_lea.vmem %s1933_s0, %s1296_s26  ;;  %s1299_s7 = sshll.u32 %s1953_s25, 2  ;;  %617 = vst [vmem:[#allocation2] sm:$0xff] (!%p1302_p12), %v1590_v0  ;;  %618 = vst [vmem:[#allocation2 + $0x8] sm:$0xff] (!%p1302_p12), %v1590_v0 }
  0x47   : > { %s1828_s18 = scalar_lea.vmem %s1936_s3, %s1299_s7  ;;  %s1833_s12 = scalar_lea.vmem %s1937_s4, %s1299_s7 }
  0x48   : > { %616 = sbr.rel (%p1302_p12) target bundleno = 79 (0x4f), region = 78 }
  0x4f PF: > { %v1434_v1 = vld [vmem:[%s1835_s13 + $0x4] ss:$8 sps:$4 sm:$0xff]   ;;  %v1438_v3 = vld [vmem:[%s1835_s13] ss:$8 sps:$4 sm:$0xff]   ;;  %v1440_v5 = vld [vmem:[%s1835_s13 + $0x14] ss:$8 sps:$4 sm:$0xff]  }
  0x50   : > { %v1436_v2 = vld [vmem:[%s1835_s13 + $0x104] ss:$8 sps:$4 sm:$0xff]   ;;  %1021 = vmatprep.subr.bf16.mxu0 %v1434_v1  ;;  %v1439_v4 = vld [vmem:[%s1835_s13 + $0x100] ss:$8 sps:$4 sm:$0xff]   ;;  %v1442_v6 = vld [vmem:[%s1835_s13 + $0x114] ss:$8 sps:$4 sm:$0xff]  }
  0x51   : > { %1062 = vmatprep.subr.bf16.mxu1 %v1436_v2  ;;  %1022 = vmatpush1.bf16.msra.mxu0 %v1438_v3  ;;  %v1444_v7 = vld [vmem:[%s1835_s13 + $0x10] ss:$8 sps:$4 sm:$0xff]   ;;  %v1446_v9 = vld [vmem:[%s1835_s13 + $0x24] ss:$8 sps:$4 sm:$0xff]   ;;  %v1450_v11 = vld [vmem:[%s1835_s13 + $0x20] ss:$8 sps:$4 sm:$0xff]  }
  0x52   : > { %1063 = vmatpush1.bf16.msra.mxu1 %v1439_v4  ;;  %1023 = vmatprep.subr.bf16.mxu0 %v1440_v5  ;;  %v1445_v8 = vld [vmem:[%s1835_s13 + $0x110] ss:$8 sps:$4 sm:$0xff]   ;;  %v1448_v10 = vld [vmem:[%s1835_s13 + $0x124] ss:$8 sps:$4 sm:$0xff]   ;;  %v1451_v12 = vld [vmem:[%s1835_s13 + $0x120] ss:$8 sps:$4 sm:$0xff]  }
  0x53   : > { %1064 = vmatprep.subr.bf16.mxu1 %v1442_v6  ;;  %v1452_v13 = vld [vmem:[%s1835_s13 + $0x34] ss:$8 sps:$4 sm:$0xff]   ;;  %v1456_v15 = vld [vmem:[%s1835_s13 + $0x30] ss:$8 sps:$4 sm:$0xff]   ;;  %v1458_v17 = vld [vmem:[%s1835_s13 + $0x44] ss:$8 sps:$4 sm:$0xff]  }
  0x54   : > { %v1454_v14 = vld [vmem:[%s1835_s13 + $0x134] ss:$8 sps:$4 sm:$0xff]   ;;  %v1457_v16 = vld [vmem:[%s1835_s13 + $0x130] ss:$8 sps:$4 sm:$0xff]   ;;  %v1460_v18 = vld [vmem:[%s1835_s13 + $0x144] ss:$8 sps:$4 sm:$0xff]  }
  0x55   : > { %1024 = vmatpush1.bf16.msra.mxu0 %v1444_v7  ;;  %v1462_v19 = vld [vmem:[%s1835_s13 + $0x40] ss:$8 sps:$4 sm:$0xff]   ;;  %v1464_v21 = vld [vmem:[%s1835_s13 + $0x54] ss:$8 sps:$4 sm:$0xff]   ;;  %v1468_v23 = vld [vmem:[%s1835_s13 + $0x50] ss:$8 sps:$4 sm:$0xff]  }
  0x56   : > { %1065 = vmatpush1.bf16.msra.mxu1 %v1445_v8  ;;  %1025 = vmatprep.subr.bf16.mxu0 %v1446_v9  ;;  %v1463_v20 = vld [vmem:[%s1835_s13 + $0x140] ss:$8 sps:$4 sm:$0xff]   ;;  %v1466_v22 = vld [vmem:[%s1835_s13 + $0x154] ss:$8 sps:$4 sm:$0xff]   ;;  %v1469_v24 = vld [vmem:[%s1835_s13 + $0x150] ss:$8 sps:$4 sm:$0xff]  }
  0x57   : > { %1066 = vmatprep.subr.bf16.mxu1 %v1448_v10  ;;  %v1470_v25 = vld [vmem:[%s1835_s13 + $0x64] ss:$8 sps:$4 sm:$0xff]   ;;  %v1474_v27 = vld [vmem:[%s1835_s13 + $0x60] ss:$8 sps:$4 sm:$0xff]   ;;  %v1476_v29 = vld [vmem:[%s1835_s13 + $0x74] ss:$8 sps:$4 sm:$0xff]  }
  0x58   : > { %v1472_v26 = vld [vmem:[%s1835_s13 + $0x164] ss:$8 sps:$4 sm:$0xff]   ;;  %v1475_v28 = vld [vmem:[%s1835_s13 + $0x160] ss:$8 sps:$4 sm:$0xff]   ;;  %v1478_v30 = vld [vmem:[%s1835_s13 + $0x174] ss:$8 sps:$4 sm:$0xff]  }
  0x59   : > { %1026 = vmatpush1.bf16.msra.mxu0 %v1450_v11  ;;  %v1480_v31 = vld [vmem:[%s1835_s13 + $0x70] ss:$8 sps:$4 sm:$0xff]   ;;  %v1482_v33 = vld [vmem:[%s1835_s13 + $0x84] ss:$8 sps:$4 sm:$0xff]   ;;  %v1486_v35 = vld [vmem:[%s1835_s13 + $0x80] ss:$8 sps:$4 sm:$0xff]  }
  0x5a   : > { %1067 = vmatpush1.bf16.msra.mxu1 %v1451_v12  ;;  %1027 = vmatprep.subr.bf16.mxu0 %v1452_v13  ;;  %v1481_v32 = vld [vmem:[%s1835_s13 + $0x170] ss:$8 sps:$4 sm:$0xff]   ;;  %v1484_v34 = vld [vmem:[%s1835_s13 + $0x184] ss:$8 sps:$4 sm:$0xff]   ;;  %v1487_v36 = vld [vmem:[%s1835_s13 + $0x180] ss:$8 sps:$4 sm:$0xff]  }
  0x5b   : > { %1068 = vmatprep.subr.bf16.mxu1 %v1454_v14  ;;  %v1488_v37 = vld [vmem:[%s1835_s13 + $0x94] ss:$8 sps:$4 sm:$0xff]   ;;  %v1492_v39 = vld [vmem:[%s1835_s13 + $0x90] ss:$8 sps:$4 sm:$0xff]   ;;  %v1494_v41 = vld [vmem:[%s1835_s13 + $0xa4] ss:$8 sps:$4 sm:$0xff]  }
  0x5c   : > { %v1490_v38 = vld [vmem:[%s1835_s13 + $0x194] ss:$8 sps:$4 sm:$0xff]   ;;  %v1493_v40 = vld [vmem:[%s1835_s13 + $0x190] ss:$8 sps:$4 sm:$0xff]   ;;  %v1496_v42 = vld [vmem:[%s1835_s13 + $0x1a4] ss:$8 sps:$4 sm:$0xff]  }
  0x5d   : > { %1028 = vmatpush1.bf16.msra.mxu0 %v1456_v15  ;;  %v1498_v43 = vld [vmem:[%s1835_s13 + $0xa0] ss:$8 sps:$4 sm:$0xff]   ;;  %v1500_v45 = vld [vmem:[%s1835_s13 + $0xb4] ss:$8 sps:$4 sm:$0xff]   ;;  %v1504_v50 = vld [vmem:[%s1835_s13 + $0xb0] ss:$8 sps:$4 sm:$0xff]  }
  0x5e   : > { %1069 = vmatpush1.bf16.msra.mxu1 %v1457_v16  ;;  %1029 = vmatprep.subr.bf16.mxu0 %v1458_v17  ;;  %v1499_v44 = vld [vmem:[%s1835_s13 + $0x1a0] ss:$8 sps:$4 sm:$0xff]   ;;  %v1502_v46 = vld [vmem:[%s1835_s13 + $0x1b4] ss:$8 sps:$4 sm:$0xff]   ;;  %v1505_v51 = vld [vmem:[%s1835_s13 + $0x1b0] ss:$8 sps:$4 sm:$0xff]  }
  0x5f   : > { %1070 = vmatprep.subr.bf16.mxu1 %v1460_v18  ;;  %v621_v47 = vld [vmem:[%s1816_s30] sm:$0xff]  ;;  %v622_v49 = vld [vmem:[%s1816_s30 + $0x8] sm:$0xff]  ;;  %v1506_v53 = vld [vmem:[%s1835_s13 + $0xc4] ss:$8 sps:$4 sm:$0xff]   ;;  %p1371_p13 = scmp.ne.s32.totalorder %s1572_s17, 8 }
  0x60   : > { %v1304_v48 = vcombine.high %v621_v47, %v621_v47  ;;  %v1306_v52 = vcombine.high %v622_v49, %v622_v49  ;;  %v1508_v54 = vld [vmem:[%s1835_s13 + $0x1c4] ss:$8 sps:$4 sm:$0xff]   ;;  %v1510_v55 = vld [vmem:[%s1835_s13 + $0xc0] ss:$8 sps:$4 sm:$0xff]   ;;  %v1512_v57 = vld [vmem:[%s1835_s13 + $0xd4] ss:$8 sps:$4 sm:$0xff]   ;;  %v1303_v5 = vcombine.low %v621_v47, %v621_v47  ;;  %v1305_v6 = vcombine.low %v622_v49, %v622_v49 }
  0x61   : > { %1030 = vmatpush1.bf16.msra.mxu0 %v1462_v19  ;;  %v1511_v56 = vld [vmem:[%s1835_s13 + $0x1c0] ss:$8 sps:$4 sm:$0xff]   ;;  %v1514_v58 = vld [vmem:[%s1835_s13 + $0x1d4] ss:$8 sps:$4 sm:$0xff]   ;;  %v1516_v59 = vld [vmem:[%s1835_s13 + $0xd0] ss:$8 sps:$4 sm:$0xff]  }
  0x62   : > { %1071 = vmatpush1.bf16.msra.mxu1 %v1463_v20  ;;  %1031 = vmatprep.subr.bf16.mxu0 %v1464_v21  ;;  %v1517_v60 = vld [vmem:[%s1835_s13 + $0x1d0] ss:$8 sps:$4 sm:$0xff]   ;;  %v1518_v61 = vld [vmem:[%s1835_s13 + $0xe4] ss:$8 sps:$4 sm:$0xff]   ;;  %v1522_v63 = vld [vmem:[%s1835_s13 + $0xe0] ss:$8 sps:$4 sm:$0xff]   ;;  %v1115_v21 = vlaneseq (!%p1371_p13) }
  0x63   : > { %1072 = vmatprep.subr.bf16.mxu1 %v1466_v22  ;;  %1053 = vmatprep.mubr.bf16.mxu0 %v1304_v48  ;;  %v1520_v62 = vld [vmem:[%s1835_s13 + $0x1e4] ss:$8 sps:$4 sm:$0xff]   ;;  %v1523_v0 = vld [vmem:[%s1835_s13 + $0x1e0] ss:$8 sps:$4 sm:$0xff]   ;;  %v1524_v1 = vld [vmem:[%s1835_s13 + $0xf4] ss:$8 sps:$4 sm:$0xff]  }
  0x64   : > { %1094 = vmatprep.mubr.bf16.mxu1 %v1306_v52  ;;  %v1526_v2 = vld [vmem:[%s1835_s13 + $0x1f4] ss:$8 sps:$4 sm:$0xff]   ;;  %v1528_v3 = vld [vmem:[%s1835_s13 + $0xf0] ss:$8 sps:$4 sm:$0xff]   ;;  %v1116_v22 = vshrl.u32 (!%p1371_p13), %v1115_v21, 7 }
  0x65   : > { %1032 = vmatpush1.bf16.msra.mxu0 %v1468_v23  ;;  %v1529_v4 = vld [vmem:[%s1835_s13 + $0x1f0] ss:$8 sps:$4 sm:$0xff]  }
  0x66   : > { %1073 = vmatpush1.bf16.msra.mxu1 %v1469_v24  ;;  %1033 = vmatprep.subr.bf16.mxu0 %v1470_v25  ;;  %v619_v8 = vld [vmem:[#allocation2] sm:$0xff]  ;;  %v620_v12 = vld [vmem:[#allocation2 + $0x8] sm:$0xff]  ;;  %v1117_v25 = vsub.s32 (!%p1371_p13), 0, %v1116_v22 }
  0x67   : > { %1074 = vmatprep.subr.bf16.mxu1 %v1472_v26  ;;  %v1113_v23 = vld [vmem:[%s591_s15] sm:$0x3] (!%p1371_p13)  ;;  %v1121_v26 = vsub.s32 (!%p1371_p13), 1, %v1116_v22 }
  0x68   : > { %v1127_v24 = vld [vmem:[%s1828_s18] sm:$0xff] (!%p1371_p13) }
  0x69   : > { %1034 = vmatpush1.bf16.msra.mxu0 %v1474_v27 }
  0x6a   : > { %1075 = vmatpush1.bf16.msra.mxu1 %v1475_v28  ;;  %1035 = vmatprep.subr.bf16.mxu0 %v1476_v29  ;;  %v1118_v29 = vrot.slane (!%p1371_p13), %v1113_v23, %v1117_v25 }
  0x6b   : > { %1076 = vmatprep.subr.bf16.mxu1 %v1478_v30  ;;  %v1122_v30 = vrot.slane (!%p1371_p13), %v1113_v23, %v1121_v26 }
  0x6d   : > { %1036 = vmatpush1.bf16.msra.mxu0 %v1480_v31  ;;  %v1128_v31 = vunpack.c.l.bf16 (!%p1371_p13), %v1127_v24 }
  0x6e   : > { %1077 = vmatpush1.bf16.msra.mxu1 %v1481_v32  ;;  %1037 = vmatprep.subr.bf16.mxu0 %v1482_v33  ;;  %v1129_v32 = vunpack.c.h.bf16 (!%p1371_p13), %v1127_v24 }
  0x6f   : > { %1078 = vmatprep.subr.bf16.mxu1 %v1484_v34 }
  0x71   : > { %1038 = vmatpush1.bf16.msra.mxu0 %v1486_v35 }
  0x72   : > { %1079 = vmatpush1.bf16.msra.mxu1 %v1487_v36  ;;  %1039 = vmatprep.subr.bf16.mxu0 %v1488_v37 }
  0x73   : > { %1080 = vmatprep.subr.bf16.mxu1 %v1490_v38 }
  0x75   : > { %1040 = vmatpush1.bf16.msra.mxu0 %v1492_v39 }
  0x76   : > { %1081 = vmatpush1.bf16.msra.mxu1 %v1493_v40  ;;  %1041 = vmatprep.subr.bf16.mxu0 %v1494_v41 }
  0x77   : > { %1082 = vmatprep.subr.bf16.mxu1 %v1496_v42 }
  0x79   : > { %1042 = vmatpush1.bf16.msra.mxu0 %v1498_v43 }
  0x7a   : > { %1083 = vmatpush1.bf16.msra.mxu1 %v1499_v44  ;;  %1043 = vmatprep.subr.bf16.mxu0 %v1500_v45 }
  0x7b   : > { %1084 = vmatprep.subr.bf16.mxu1 %v1502_v46 }
  0x7d   : > { %1044 = vmatpush1.bf16.msra.mxu0 %v1504_v50 }
  0x7e   : > { %1085 = vmatpush1.bf16.msra.mxu1 %v1505_v51  ;;  %1045 = vmatprep.subr.bf16.mxu0 %v1506_v53 }
  0x7f   : > { %1086 = vmatprep.subr.bf16.mxu1 %v1508_v54 }
  0x81   : > { %1046 = vmatpush1.bf16.msra.mxu0 %v1510_v55 }
  0x82   : > { %1087 = vmatpush1.bf16.msra.mxu1 %v1511_v56  ;;  %1047 = vmatprep.subr.bf16.mxu0 %v1512_v57 }
  0x83   : > { %1088 = vmatprep.subr.bf16.mxu1 %v1514_v58 }
  0x85   : > { %1048 = vmatpush1.bf16.msra.mxu0 %v1516_v59 }
  0x86   : > { %1089 = vmatpush1.bf16.msra.mxu1 %v1517_v60  ;;  %1049 = vmatprep.subr.bf16.mxu0 %v1518_v61 }
  0x87   : > { %1090 = vmatprep.subr.bf16.mxu1 %v1520_v62 }
  0x89   : > { %1050 = vmatpush1.bf16.msra.mxu0 %v1522_v63 }
  0x8a   : > { %1091 = vmatpush1.bf16.msra.mxu1 %v1523_v0  ;;  %1051 = vmatprep.subr.bf16.mxu0 %v1524_v1 }
  0x8b   : > { %1092 = vmatprep.subr.bf16.mxu1 %v1526_v2 }
  0x8d   : > { %1052 = vmatpush1.bf16.msra.mxu0 %v1528_v3 }
  0x8e   : > { %1093 = vmatpush1.bf16.msra.mxu1 %v1529_v4 }
  0x90   : > { %1054 = vmatmul.mubr.bf16.vlgmr.msra.gmra.mrb[0].mxu0 %v1303_v5 }
  0x91   : > { %1095 = vmatmul.mubr.bf16.vlgmr.msra.gmra.mrb[0].mxu1 %v1305_v6 }
 0x163   : > { %v1055_v7 = vpop.f32.mrb[0].mxu0 }
 0x164   : > { %v1096_v9 = vpop.f32.mrb[0].mxu1  ;;  %v1057_v11 = vpop.f32.mrb[1].mxu0  ;;  %1110 = sbr.rel (%p1371_p13) target bundleno = 379 (0x17b), region = 82 }
 0x165   : > { %v1097_v10 = vadd.f32 %v1096_v9, %v1055_v7  ;;  %v1098_v13 = vpop.f32.mrb[1].mxu1  ;;  %v1059_v15 = vpop.f32.mrb[2].mxu0 }
 0x166   : > { %v1099_v14 = vadd.f32 %v1098_v13, %v1057_v11  ;;  %v1100_v16 = vpop.f32.mrb[2].mxu1  ;;  %v1060_v18 = vpop.f32.mrb[3].mxu0 }
 0x167   : > { %v1103_v17 = vadd.f32 %v1097_v10, %v619_v8  ;;  %v1101_v19 = vpop.f32.mrb[3].mxu1 }
 0x168   : > { %v1104_v20 = vadd.f32 %v1099_v14, %v620_v12 }
 0x169   : > { %1105 = vst [vmem:[#allocation2] sm:$0xff] %v1103_v17 }
 0x16a   : > { %1106 = vst [vmem:[#allocation2 + $0x8] sm:$0xff] %v1104_v20 }
 0x170   : > { %v1111_v27 = vld [vmem:[#allocation2] sm:$0xff] }
 0x171   : > { %v1112_v28 = vld [vmem:[#allocation2 + $0x8] sm:$0xff]  ;;  %v1125_v33 = vadd.f32 %v1118_v29, %v1111_v27 }
 0x172   : > { %v1126_v34 = vadd.f32 %v1122_v30, %v1112_v28 }
 0x173   : > { %v1130_v35 = vadd.f32 %v1128_v31, %v1125_v33 }
 0x174   : > { %v1131_v36 = vadd.f32 %v1129_v32, %v1126_v34 }
 0x175   : > { %v1132_v37 = vmax.f32 %v1130_v35, 0.0 }
 0x176   : > { %v1133_v38 = vmax.f32 %v1131_v36, 0.0 }
 0x178   : > { %v1376_v39 = vpack.c.bf16 %v1133_v38, %v1132_v37 }
 0x17a   : > { %1142 = vst [vmem:[%s1833_s12] sm:$0xff] %v1376_v39 }
 0x17b PF: > { %s14_s21 = sadd.s32 1, %s1588_s21   ;;  %s1938_s15 = smov %s1568_s16 }
 0x17c   : > { %p11_p0 = scmp.ge.s32.totalorder %s14_s21, 20   ;;  %s1939_s16 = smov %s1667_s28 }
 0x17d   : > { %s1940_s17 = smov %s1580_s19  ;;  %s1941_s18 = smov %s1584_s20 }
 0x17e   : > { %s1942_s19 = smov %s1945_s22  ;;  %s1943_s20 = smov %s1949_s23 }
 0x17f   :  { %13 = sbr.rel (!%p11_p0) target bundleno = 4 (0x4), region = 126 }

// kernel: embedder_forward.39
= control target key start
LH: loop header
LB: loop body
LE: loop exit
PB: predicated region body
PF: predicated region fallthrough
CT: control target
= control target key end

     0   :  { %s1523_s12 = smov 0   ;;  %s1525_s13 = smov 0   ;;  %s1834_s0 = inlined_call_operand.vmem [shape: bf16[8,4608], index: 0, kind: input, shape index: {}]   ;;  %s1835_s1 = inlined_call_operand.vmem [shape: bf16[4608,512], index: 1, kind: input, shape index: {}]   ;;  %s1836_s2 = inlined_call_operand.vmem [shape: f32[1,512], index: 2, kind: input, shape index: {}]   ;;  %s1837_s3 = inlined_call_operand.vmem [shape: bf16[8,512], index: 3, kind: output, shape index: {}]  }
   0x1   :  { %s1527_s14 = smov 0   ;;  %s1529_s15 = smov 0  }
   0x2   :  { %s1531_s16 = smov 0   ;;  %s1533_s17 = smov 0  }
   0x3   :  { %s1535_s18 = smov 0  }
   0x4 LB: > { %s25_s19 = sadd.s32 1, %s1492_s16  ;;  %s28_s20 = sadd.s32 1, %s1496_s17  ;;  %s1500_s18 = sphi %s1535_s18, %s13_s18   ;;  %s1496_s17 = sphi %s1533_s17, %s1843_s17   ;;  %s1492_s16 = sphi %s1531_s16, %s1842_s16   ;;  %s1488_s15 = sphi %s1529_s15, %s1841_s15   ;;  %s1484_s14 = sphi %s1527_s14, %s1840_s14   ;;  %s1480_s13 = sphi %s1525_s13, %s1839_s13   ;;  %s1476_s12 = sphi %s1523_s12, %s1838_s12  }
   0x5   : > { %p26_p0 = scmp.ge.s32.totalorder %s25_s19, 9  ;;  %p76_p1 = scmp.ne.s32.totalorder %s1480_s13, %s1476_s12 }
   0x6   : > { %p77_p2 = scmp.eq.s32.totalorder %s1500_s18, 0  ;;  %s69_s24 = sadd.s32 1, %s1480_s13 }
   0x7   : > { %s1845_s19 = smov (%p26_p0, %s25_s19), 0  ;;  %s1847_s20 = smov (!%p26_p0, %s28_s20), %s1496_s17 }
   0x8   : > { %p78_p3 = por %p77_p2, %p76_p1  ;;  %p30_p4 = scmp.ge.s32.totalorder %s1847_s20, 2 }
   0x9   : > { %s64_s21 = ssub.s32 %s1492_s16, %s1845_s19  ;;  %p1201_p6 = scmp.ge.s32.totalorder %s1500_s18, 18 }
   0xa   : > { %s1849_s20 = smov (%p30_p4, %s1847_s20), 0 }
   0xb   : > { %s65_s22 = ssub.s32 %s1496_s17, %s1849_s20  ;;  %156 = sbr.rel (%p1201_p6) target bundleno = 57 (0x39), region = 16 }
   0xc   : > { %s66_s23 = sor.u32 %s65_s22, %s64_s21 }
   0xd   : > { %p67_p5 = scmp.eq.s32.totalorder %s66_s23, 0 }
   0xf   : > { %s1574_s25 = scalar_select %p67_p5, %s1480_s13, %s69_s24  }
  0x12   : > { %172 = sbr.rel (!%p78_p3) target bundleno = 57 (0x39), region = 24  ;;  %s174_s26 = sand.u32 (%p78_p3), 1, %s1480_s13  }
  0x13   : > { %s1204_s27 = sshll.u32 (%p78_p3), %s1496_s17, 1  ;;  %s1202_s28 = sshll.u32 (%p78_p3), %s174_s26, 9 }
  0x14   : > { %s1287_s29 = sshll.u32 (%p78_p3), %s1492_s16, 8  ;;  %s1588_s8 = scalar_lea.vmem (%p78_p3), [#allocation3], %s1202_s28 }
  0x15   : > { %s180_s30 = sadd.s32 (%p78_p3), %s1287_s29, %s1204_s27 }
  0x16   : > { %s1206_s4 = sshll.u32 (%p78_p3), %s180_s30, 2 }
  0x17   : > { %s1583_s7 = scalar_lea.vmem (%p78_p3), %s1835_s1, %s1206_s4 }
  0x18   : > { %v336_v0 = vld [vmem:[%s1583_s7] sm:$0xff] (%p78_p3)  ;;  %v338_v1 = vld [vmem:[%s1583_s7 + $0x10] sm:$0xff] (%p78_p3) }
  0x19   : > { %v340_v2 = vld [vmem:[%s1583_s7 + $0x20] sm:$0xff]  ;;  %337 = vst [vmem:[%s1588_s8] sm:$0xff] %v336_v0  ;;  %339 = vst [vmem:[%s1588_s8 + $0x8] sm:$0xff] %v338_v1  ;;  %v342_v3 = vld [vmem:[%s1583_s7 + $0x30] sm:$0xff] }
  0x1a   : > { %341 = vst [vmem:[%s1588_s8 + $0x10] sm:$0xff] %v340_v2  ;;  %v344_v4 = vld [vmem:[%s1583_s7 + $0x40] sm:$0xff]  ;;  %v346_v5 = vld [vmem:[%s1583_s7 + $0x50] sm:$0xff]  ;;  %343 = vst [vmem:[%s1588_s8 + $0x18] sm:$0xff] %v342_v3 }
  0x1b   : > { %345 = vst [vmem:[%s1588_s8 + $0x20] sm:$0xff] %v344_v4  ;;  %347 = vst [vmem:[%s1588_s8 + $0x28] sm:$0xff] %v346_v5  ;;  %v348_v6 = vld [vmem:[%s1583_s7 + $0x60] sm:$0xff]  ;;  %v350_v7 = vld [vmem:[%s1583_s7 + $0x70] sm:$0xff] }
  0x1c   : > { %v352_v8 = vld [vmem:[%s1583_s7 + $0x80] sm:$0xff]  ;;  %349 = vst [vmem:[%s1588_s8 + $0x30] sm:$0xff] %v348_v6  ;;  %351 = vst [vmem:[%s1588_s8 + $0x38] sm:$0xff] %v350_v7  ;;  %v354_v9 = vld [vmem:[%s1583_s7 + $0x90] sm:$0xff] }
  0x1d   : > { %353 = vst [vmem:[%s1588_s8 + $0x40] sm:$0xff] %v352_v8  ;;  %v356_v10 = vld [vmem:[%s1583_s7 + $0xa0] sm:$0xff]  ;;  %v358_v11 = vld [vmem:[%s1583_s7 + $0xb0] sm:$0xff]  ;;  %355 = vst [vmem:[%s1588_s8 + $0x48] sm:$0xff] %v354_v9 }
  0x1e   : > { %357 = vst [vmem:[%s1588_s8 + $0x50] sm:$0xff] %v356_v10  ;;  %359 = vst [vmem:[%s1588_s8 + $0x58] sm:$0xff] %v358_v11  ;;  %v360_v12 = vld [vmem:[%s1583_s7 + $0xc0] sm:$0xff]  ;;  %v362_v13 = vld [vmem:[%s1583_s7 + $0xd0] sm:$0xff] }
  0x1f   : > { %v364_v14 = vld [vmem:[%s1583_s7 + $0xe0] sm:$0xff]  ;;  %361 = vst [vmem:[%s1588_s8 + $0x60] sm:$0xff] %v360_v12  ;;  %363 = vst [vmem:[%s1588_s8 + $0x68] sm:$0xff] %v362_v13  ;;  %v366_v15 = vld [vmem:[%s1583_s7 + $0xf0] sm:$0xff] }
  0x20   : > { %365 = vst [vmem:[%s1588_s8 + $0x70] sm:$0xff] %v364_v14  ;;  %v368_v16 = vld [vmem:[%s1583_s7 + $0x100] sm:$0xff]  ;;  %v370_v17 = vld [vmem:[%s1583_s7 + $0x110] sm:$0xff]  ;;  %367 = vst [vmem:[%s1588_s8 + $0x78] sm:$0xff] %v366_v15 }
  0x21   : > { %369 = vst [vmem:[%s1588_s8 + $0x80] sm:$0xff] %v368_v16  ;;  %371 = vst [vmem:[%s1588_s8 + $0x88] sm:$0xff] %v370_v17  ;;  %v372_v18 = vld [vmem:[%s1583_s7 + $0x120] sm:$0xff]  ;;  %v374_v19 = vld [vmem:[%s1583_s7 + $0x130] sm:$0xff] }
  0x22   : > { %v376_v20 = vld [vmem:[%s1583_s7 + $0x140] sm:$0xff]  ;;  %373 = vst [vmem:[%s1588_s8 + $0x90] sm:$0xff] %v372_v18  ;;  %375 = vst [vmem:[%s1588_s8 + $0x98] sm:$0xff] %v374_v19  ;;  %v378_v21 = vld [vmem:[%s1583_s7 + $0x150] sm:$0xff] }
  0x23   : > { %377 = vst [vmem:[%s1588_s8 + $0xa0] sm:$0xff] %v376_v20  ;;  %v380_v22 = vld [vmem:[%s1583_s7 + $0x160] sm:$0xff]  ;;  %v382_v23 = vld [vmem:[%s1583_s7 + $0x170] sm:$0xff]  ;;  %379 = vst [vmem:[%s1588_s8 + $0xa8] sm:$0xff] %v378_v21 }
  0x24   : > { %381 = vst [vmem:[%s1588_s8 + $0xb0] sm:$0xff] %v380_v22  ;;  %383 = vst [vmem:[%s1588_s8 + $0xb8] sm:$0xff] %v382_v23  ;;  %v384_v24 = vld [vmem:[%s1583_s7 + $0x180] sm:$0xff]  ;;  %v386_v25 = vld [vmem:[%s1583_s7 + $0x190] sm:$0xff] }
  0x25   : > { %v388_v26 = vld [vmem:[%s1583_s7 + $0x1a0] sm:$0xff]  ;;  %385 = vst [vmem:[%s1588_s8 + $0xc0] sm:$0xff] %v384_v24  ;;  %387 = vst [vmem:[%s1588_s8 + $0xc8] sm:$0xff] %v386_v25  ;;  %v390_v27 = vld [vmem:[%s1583_s7 + $0x1b0] sm:$0xff] }
  0x26   : > { %389 = vst [vmem:[%s1588_s8 + $0xd0] sm:$0xff] %v388_v26  ;;  %v392_v28 = vld [vmem:[%s1583_s7 + $0x1c0] sm:$0xff]  ;;  %v394_v29 = vld [vmem:[%s1583_s7 + $0x1d0] sm:$0xff]  ;;  %391 = vst [vmem:[%s1588_s8 + $0xd8] sm:$0xff] %v390_v27 }
  0x27   : > { %393 = vst [vmem:[%s1588_s8 + $0xe0] sm:$0xff] %v392_v28  ;;  %395 = vst [vmem:[%s1588_s8 + $0xe8] sm:$0xff] %v394_v29  ;;  %v396_v30 = vld [vmem:[%s1583_s7 + $0x1e0] sm:$0xff]  ;;  %v398_v31 = vld [vmem:[%s1583_s7 + $0x1f0] sm:$0xff] }
  0x28   : > { %v400_v32 = vld [vmem:[%s1583_s7 + $0x200] sm:$0xff]  ;;  %397 = vst [vmem:[%s1588_s8 + $0xf0] sm:$0xff] %v396_v30  ;;  %399 = vst [vmem:[%s1588_s8 + $0xf8] sm:$0xff] %v398_v31  ;;  %v402_v33 = vld [vmem:[%s1583_s7 + $0x210] sm:$0xff] }
  0x29   : > { %401 = vst [vmem:[%s1588_s8 + $0x100] sm:$0xff] %v400_v32  ;;  %v404_v34 = vld [vmem:[%s1583_s7 + $0x220] sm:$0xff]  ;;  %v406_v35 = vld [vmem:[%s1583_s7 + $0x230] sm:$0xff]  ;;  %403 = vst [vmem:[%s1588_s8 + $0x108] sm:$0xff] %v402_v33 }
  0x2a   : > { %405 = vst [vmem:[%s1588_s8 + $0x110] sm:$0xff] %v404_v34  ;;  %407 = vst [vmem:[%s1588_s8 + $0x118] sm:$0xff] %v406_v35  ;;  %v408_v36 = vld [vmem:[%s1583_s7 + $0x240] sm:$0xff]  ;;  %v410_v37 = vld [vmem:[%s1583_s7 + $0x250] sm:$0xff] }
  0x2b   : > { %v412_v38 = vld [vmem:[%s1583_s7 + $0x260] sm:$0xff]  ;;  %409 = vst [vmem:[%s1588_s8 + $0x120] sm:$0xff] %v408_v36  ;;  %411 = vst [vmem:[%s1588_s8 + $0x128] sm:$0xff] %v410_v37  ;;  %v414_v39 = vld [vmem:[%s1583_s7 + $0x270] sm:$0xff] }
  0x2c   : > { %413 = vst [vmem:[%s1588_s8 + $0x130] sm:$0xff] %v412_v38  ;;  %v416_v40 = vld [vmem:[%s1583_s7 + $0x280] sm:$0xff]  ;;  %v418_v41 = vld [vmem:[%s1583_s7 + $0x290] sm:$0xff]  ;;  %415 = vst [vmem:[%s1588_s8 + $0x138] sm:$0xff] %v414_v39 }
  0x2d   : > { %417 = vst [vmem:[%s1588_s8 + $0x140] sm:$0xff] %v416_v40  ;;  %419 = vst [vmem:[%s1588_s8 + $0x148] sm:$0xff] %v418_v41  ;;  %v420_v42 = vld [vmem:[%s1583_s7 + $0x2a0] sm:$0xff]  ;;  %v422_v43 = vld [vmem:[%s1583_s7 + $0x2b0] sm:$0xff] }
  0x2e   : > { %v424_v44 = vld [vmem:[%s1583_s7 + $0x2c0] sm:$0xff]  ;;  %421 = vst [vmem:[%s1588_s8 + $0x150] sm:$0xff] %v420_v42  ;;  %423 = vst [vmem:[%s1588_s8 + $0x158] sm:$0xff] %v422_v43  ;;  %v426_v45 = vld [vmem:[%s1583_s7 + $0x2d0] sm:$0xff] }
  0x2f   : > { %425 = vst [vmem:[%s1588_s8 + $0x160] sm:$0xff] %v424_v44  ;;  %v428_v46 = vld [vmem:[%s1583_s7 + $0x2e0] sm:$0xff]  ;;  %v430_v47 = vld [vmem:[%s1583_s7 + $0x2f0] sm:$0xff]  ;;  %427 = vst [vmem:[%s1588_s8 + $0x168] sm:$0xff] %v426_v45 }
  0x30   : > { %429 = vst [vmem:[%s1588_s8 + $0x170] sm:$0xff] %v428_v46  ;;  %431 = vst [vmem:[%s1588_s8 + $0x178] sm:$0xff] %v430_v47  ;;  %v432_v48 = vld [vmem:[%s1583_s7 + $0x300] sm:$0xff]  ;;  %v434_v49 = vld [vmem:[%s1583_s7 + $0x310] sm:$0xff] }
  0x31   : > { %v436_v50 = vld [vmem:[%s1583_s7 + $0x320] sm:$0xff]  ;;  %433 = vst [vmem:[%s1588_s8 + $0x180] sm:$0xff] %v432_v48  ;;  %435 = vst [vmem:[%s1588_s8 + $0x188] sm:$0xff] %v434_v49  ;;  %v438_v51 = vld [vmem:[%s1583_s7 + $0x330] sm:$0xff] }
  0x32   : > { %437 = vst [vmem:[%s1588_s8 + $0x190] sm:$0xff] %v436_v50  ;;  %v440_v52 = vld [vmem:[%s1583_s7 + $0x340] sm:$0xff]  ;;  %v442_v53 = vld [vmem:[%s1583_s7 + $0x350] sm:$0xff]  ;;  %439 = vst [vmem:[%s1588_s8 + $0x198] sm:$0xff] %v438_v51 }
  0x33   : > { %441 = vst [vmem:[%s1588_s8 + $0x1a0] sm:$0xff] %v440_v52  ;;  %443 = vst [vmem:[%s1588_s8 + $0x1a8] sm:$0xff] %v442_v53  ;;  %v444_v54 = vld [vmem:[%s1583_s7 + $0x360] sm:$0xff]  ;;  %v446_v55 = vld [vmem:[%s1583_s7 + $0x370] sm:$0xff] }
  0x34   : > { %v448_v56 = vld [vmem:[%s1583_s7 + $0x380] sm:$0xff]  ;;  %445 = vst [vmem:[%s1588_s8 + $0x1b0] sm:$0xff] %v444_v54  ;;  %447 = vst [vmem:[%s1588_s8 + $0x1b8] sm:$0xff] %v446_v55  ;;  %v450_v57 = vld [vmem:[%s1583_s7 + $0x390] sm:$0xff] }
  0x35   : > { %449 = vst [vmem:[%s1588_s8 + $0x1c0] sm:$0xff] %v448_v56  ;;  %v452_v58 = vld [vmem:[%s1583_s7 + $0x3a0] sm:$0xff]  ;;  %v454_v59 = vld [vmem:[%s1583_s7 + $0x3b0] sm:$0xff]  ;;  %451 = vst [vmem:[%s1588_s8 + $0x1c8] sm:$0xff] %v450_v57 }
  0x36   : > { %453 = vst [vmem:[%s1588_s8 + $0x1d0] sm:$0xff] %v452_v58  ;;  %455 = vst [vmem:[%s1588_s8 + $0x1d8] sm:$0xff] %v454_v59  ;;  %v456_v60 = vld [vmem:[%s1583_s7 + $0x3c0] sm:$0xff]  ;;  %v458_v61 = vld [vmem:[%s1583_s7 + $0x3d0] sm:$0xff] }
  0x37   : > { %v460_v62 = vld [vmem:[%s1583_s7 + $0x3e0] sm:$0xff]  ;;  %457 = vst [vmem:[%s1588_s8 + $0x1e0] sm:$0xff] %v456_v60  ;;  %459 = vst [vmem:[%s1588_s8 + $0x1e8] sm:$0xff] %v458_v61  ;;  %v462_v63 = vld [vmem:[%s1583_s7 + $0x3f0] sm:$0xff] }
  0x38   : > { %461 = vst [vmem:[%s1588_s8 + $0x1f0] sm:$0xff] %v460_v62  ;;  %463 = vst [vmem:[%s1588_s8 + $0x1f8] sm:$0xff] %v462_v63 }
  0x39 PF: > { %p1207_p7 = scmp.ge.s32.totalorder %s1500_s18, 1  ;;  %p476_p8 = scmp.lt.s32.totalorder %s1500_s18, 19 }
  0x3b   : > { %p477_p9 = pnand %p1207_p7, %p476_p8 }
  0x3c   : > { %s483_s9 = sand.u32 (!%p477_p9), 1, %s1476_s12   ;;  %s1209_s10 = sshll.u32 (!%p477_p9), %s1484_s14, 2 }
  0x3d   : > { %480 = sbr.rel (%p477_p9) target bundleno = 376 (0x178), region = 66  ;;  %s1208_s11 = sshll.u32 (!%p477_p9), %s483_s9, 9 }
  0x3e   : > { %p526_p10 = scmp.lt.s32.totalorder (!%p477_p9), %s1209_s10, 35  ;;  %s1211_s21 = sshll.u32 (!%p477_p9), %s1488_s15, 1 }
  0x3f   : > { %p536_p11 = scmp.lt.s32.totalorder (!%p477_p9), %s1211_s21, 3  ;;  %s1737_s5 = scalar_lea.vmem (!%p477_p9), [#allocation3], %s1208_s11 }
  0x40   : > { %p1214_p12 = scmp.ne.s32.totalorder (!%p477_p9), %s1484_s14, 0 }
  0x44   : > { %s1851_s10 = smov (!%p526_p10, %s1209_s10), 35  ;;  %s1853_s21 = smov (!%p536_p11, %s1211_s21), 3 }
  0x45   : > { %s1210_s22 = sshll.u32 %s1851_s10, 2  ;;  %s538_s12 = scalar_lea.vmem %s1836_s2, %s1853_s21  ;;  %v1502_v0 = vmov (!%p1214_p12), 0.0  }
  0x46   : > { %s1723_s26 = scalar_lea.vmem %s1834_s0, %s1210_s22  ;;  %s1213_s29 = sshll.u32 %s1853_s21, 2  ;;  %554 = vst [vmem:[#allocation2] sm:$0xff] (!%p1214_p12), %v1502_v0  ;;  %555 = vst [vmem:[#allocation2 + $0x8] sm:$0xff] (!%p1214_p12), %v1502_v0 }
  0x47   : > { %s1735_s15 = scalar_lea.vmem %s1837_s3, %s1213_s29  ;;  %553 = sbr.rel (%p1214_p12) target bundleno = 78 (0x4e), region = 74 }
  0x4e PF: > { %v1346_v1 = vld [vmem:[%s1737_s5 + $0x4] ss:$8 sps:$4 sm:$0xff]   ;;  %v1350_v3 = vld [vmem:[%s1737_s5] ss:$8 sps:$4 sm:$0xff]   ;;  %v1352_v5 = vld [vmem:[%s1737_s5 + $0x14] ss:$8 sps:$4 sm:$0xff]  }
  0x4f   : > { %v1348_v2 = vld [vmem:[%s1737_s5 + $0x104] ss:$8 sps:$4 sm:$0xff]   ;;  %958 = vmatprep.subr.bf16.mxu0 %v1346_v1  ;;  %v1351_v4 = vld [vmem:[%s1737_s5 + $0x100] ss:$8 sps:$4 sm:$0xff]   ;;  %v1354_v6 = vld [vmem:[%s1737_s5 + $0x114] ss:$8 sps:$4 sm:$0xff]  }
  0x50   : > { %999 = vmatprep.subr.bf16.mxu1 %v1348_v2  ;;  %959 = vmatpush1.bf16.msra.mxu0 %v1350_v3  ;;  %v1356_v7 = vld [vmem:[%s1737_s5 + $0x10] ss:$8 sps:$4 sm:$0xff]   ;;  %v1358_v9 = vld [vmem:[%s1737_s5 + $0x24] ss:$8 sps:$4 sm:$0xff]   ;;  %v1362_v11 = vld [vmem:[%s1737_s5 + $0x20] ss:$8 sps:$4 sm:$0xff]  }
  0x51   : > { %1000 = vmatpush1.bf16.msra.mxu1 %v1351_v4  ;;  %960 = vmatprep.subr.bf16.mxu0 %v1352_v5  ;;  %v1357_v8 = vld [vmem:[%s1737_s5 + $0x110] ss:$8 sps:$4 sm:$0xff]   ;;  %v1360_v10 = vld [vmem:[%s1737_s5 + $0x124] ss:$8 sps:$4 sm:$0xff]   ;;  %v1363_v12 = vld [vmem:[%s1737_s5 + $0x120] ss:$8 sps:$4 sm:$0xff]  }
  0x52   : > { %1001 = vmatprep.subr.bf16.mxu1 %v1354_v6  ;;  %v1364_v13 = vld [vmem:[%s1737_s5 + $0x34] ss:$8 sps:$4 sm:$0xff]   ;;  %v1368_v15 = vld [vmem:[%s1737_s5 + $0x30] ss:$8 sps:$4 sm:$0xff]   ;;  %v1370_v17 = vld [vmem:[%s1737_s5 + $0x44] ss:$8 sps:$4 sm:$0xff]  }
  0x53   : > { %v1366_v14 = vld [vmem:[%s1737_s5 + $0x134] ss:$8 sps:$4 sm:$0xff]   ;;  %v1369_v16 = vld [vmem:[%s1737_s5 + $0x130] ss:$8 sps:$4 sm:$0xff]   ;;  %v1372_v18 = vld [vmem:[%s1737_s5 + $0x144] ss:$8 sps:$4 sm:$0xff]  }
  0x54   : > { %961 = vmatpush1.bf16.msra.mxu0 %v1356_v7  ;;  %v1374_v19 = vld [vmem:[%s1737_s5 + $0x40] ss:$8 sps:$4 sm:$0xff]   ;;  %v1376_v21 = vld [vmem:[%s1737_s5 + $0x54] ss:$8 sps:$4 sm:$0xff]   ;;  %v1380_v23 = vld [vmem:[%s1737_s5 + $0x50] ss:$8 sps:$4 sm:$0xff]  }
  0x55   : > { %1002 = vmatpush1.bf16.msra.mxu1 %v1357_v8  ;;  %962 = vmatprep.subr.bf16.mxu0 %v1358_v9  ;;  %v1375_v20 = vld [vmem:[%s1737_s5 + $0x140] ss:$8 sps:$4 sm:$0xff]   ;;  %v1378_v22 = vld [vmem:[%s1737_s5 + $0x154] ss:$8 sps:$4 sm:$0xff]   ;;  %v1381_v24 = vld [vmem:[%s1737_s5 + $0x150] ss:$8 sps:$4 sm:$0xff]  }
  0x56   : > { %1003 = vmatprep.subr.bf16.mxu1 %v1360_v10  ;;  %v1382_v25 = vld [vmem:[%s1737_s5 + $0x64] ss:$8 sps:$4 sm:$0xff]   ;;  %v1386_v27 = vld [vmem:[%s1737_s5 + $0x60] ss:$8 sps:$4 sm:$0xff]   ;;  %v1388_v29 = vld [vmem:[%s1737_s5 + $0x74] ss:$8 sps:$4 sm:$0xff]  }
  0x57   : > { %v1384_v26 = vld [vmem:[%s1737_s5 + $0x164] ss:$8 sps:$4 sm:$0xff]   ;;  %v1387_v28 = vld [vmem:[%s1737_s5 + $0x160] ss:$8 sps:$4 sm:$0xff]   ;;  %v1390_v30 = vld [vmem:[%s1737_s5 + $0x174] ss:$8 sps:$4 sm:$0xff]  }
  0x58   : > { %963 = vmatpush1.bf16.msra.mxu0 %v1362_v11  ;;  %v1392_v31 = vld [vmem:[%s1737_s5 + $0x70] ss:$8 sps:$4 sm:$0xff]   ;;  %v1394_v33 = vld [vmem:[%s1737_s5 + $0x84] ss:$8 sps:$4 sm:$0xff]   ;;  %v1398_v35 = vld [vmem:[%s1737_s5 + $0x80] ss:$8 sps:$4 sm:$0xff]  }
  0x59   : > { %1004 = vmatpush1.bf16.msra.mxu1 %v1363_v12  ;;  %964 = vmatprep.subr.bf16.mxu0 %v1364_v13  ;;  %v1393_v32 = vld [vmem:[%s1737_s5 + $0x170] ss:$8 sps:$4 sm:$0xff]   ;;  %v1396_v34 = vld [vmem:[%s1737_s5 + $0x184] ss:$8 sps:$4 sm:$0xff]   ;;  %v1399_v36 = vld [vmem:[%s1737_s5 + $0x180] ss:$8 sps:$4 sm:$0xff]  }
  0x5a   : > { %1005 = vmatprep.subr.bf16.mxu1 %v1366_v14  ;;  %v1400_v37 = vld [vmem:[%s1737_s5 + $0x94] ss:$8 sps:$4 sm:$0xff]   ;;  %v1404_v39 = vld [vmem:[%s1737_s5 + $0x90] ss:$8 sps:$4 sm:$0xff]   ;;  %v1406_v41 = vld [vmem:[%s1737_s5 + $0xa4] ss:$8 sps:$4 sm:$0xff]  }
  0x5b   : > { %v1402_v38 = vld [vmem:[%s1737_s5 + $0x194] ss:$8 sps:$4 sm:$0xff]   ;;  %v1405_v40 = vld [vmem:[%s1737_s5 + $0x190] ss:$8 sps:$4 sm:$0xff]   ;;  %v1408_v42 = vld [vmem:[%s1737_s5 + $0x1a4] ss:$8 sps:$4 sm:$0xff]  }
  0x5c   : > { %965 = vmatpush1.bf16.msra.mxu0 %v1368_v15  ;;  %v1410_v43 = vld [vmem:[%s1737_s5 + $0xa0] ss:$8 sps:$4 sm:$0xff]   ;;  %v1412_v45 = vld [vmem:[%s1737_s5 + $0xb4] ss:$8 sps:$4 sm:$0xff]   ;;  %v1416_v50 = vld [vmem:[%s1737_s5 + $0xb0] ss:$8 sps:$4 sm:$0xff]  }
  0x5d   : > { %1006 = vmatpush1.bf16.msra.mxu1 %v1369_v16  ;;  %966 = vmatprep.subr.bf16.mxu0 %v1370_v17  ;;  %v1411_v44 = vld [vmem:[%s1737_s5 + $0x1a0] ss:$8 sps:$4 sm:$0xff]   ;;  %v1414_v46 = vld [vmem:[%s1737_s5 + $0x1b4] ss:$8 sps:$4 sm:$0xff]   ;;  %v1417_v51 = vld [vmem:[%s1737_s5 + $0x1b0] ss:$8 sps:$4 sm:$0xff]  }
  0x5e   : > { %1007 = vmatprep.subr.bf16.mxu1 %v1372_v18  ;;  %v558_v47 = vld [vmem:[%s1723_s26] sm:$0xff]  ;;  %v559_v49 = vld [vmem:[%s1723_s26 + $0x8] sm:$0xff]  ;;  %v1418_v53 = vld [vmem:[%s1737_s5 + $0xc4] ss:$8 sps:$4 sm:$0xff]   ;;  %p1283_p13 = scmp.ne.s32.totalorder %s1484_s14, 8 }
  0x5f   : > { %v1216_v48 = vcombine.high %v558_v47, %v558_v47  ;;  %v1218_v52 = vcombine.high %v559_v49, %v559_v49  ;;  %v1420_v54 = vld [vmem:[%s1737_s5 + $0x1c4] ss:$8 sps:$4 sm:$0xff]   ;;  %v1422_v55 = vld [vmem:[%s1737_s5 + $0xc0] ss:$8 sps:$4 sm:$0xff]   ;;  %v1424_v57 = vld [vmem:[%s1737_s5 + $0xd4] ss:$8 sps:$4 sm:$0xff]   ;;  %v1215_v5 = vcombine.low %v558_v47, %v558_v47  ;;  %v1217_v6 = vcombine.low %v559_v49, %v559_v49 }
  0x60   : > { %967 = vmatpush1.bf16.msra.mxu0 %v1374_v19  ;;  %v1423_v56 = vld [vmem:[%s1737_s5 + $0x1c0] ss:$8 sps:$4 sm:$0xff]   ;;  %v1426_v58 = vld [vmem:[%s1737_s5 + $0x1d4] ss:$8 sps:$4 sm:$0xff]   ;;  %v1428_v59 = vld [vmem:[%s1737_s5 + $0xd0] ss:$8 sps:$4 sm:$0xff]  }
  0x61   : > { %1008 = vmatpush1.bf16.msra.mxu1 %v1375_v20  ;;  %968 = vmatprep.subr.bf16.mxu0 %v1376_v21  ;;  %v1429_v60 = vld [vmem:[%s1737_s5 + $0x1d0] ss:$8 sps:$4 sm:$0xff]   ;;  %v1430_v61 = vld [vmem:[%s1737_s5 + $0xe4] ss:$8 sps:$4 sm:$0xff]   ;;  %v1434_v63 = vld [vmem:[%s1737_s5 + $0xe0] ss:$8 sps:$4 sm:$0xff]   ;;  %v1052_v21 = vlaneseq (!%p1283_p13) }
  0x62   : > { %1009 = vmatprep.subr.bf16.mxu1 %v1378_v22  ;;  %990 = vmatprep.mubr.bf16.mxu0 %v1216_v48  ;;  %v1432_v62 = vld [vmem:[%s1737_s5 + $0x1e4] ss:$8 sps:$4 sm:$0xff]   ;;  %v1435_v0 = vld [vmem:[%s1737_s5 + $0x1e0] ss:$8 sps:$4 sm:$0xff]   ;;  %v1436_v1 = vld [vmem:[%s1737_s5 + $0xf4] ss:$8 sps:$4 sm:$0xff]  }
  0x63   : > { %1031 = vmatprep.mubr.bf16.mxu1 %v1218_v52  ;;  %v1438_v2 = vld [vmem:[%s1737_s5 + $0x1f4] ss:$8 sps:$4 sm:$0xff]   ;;  %v1440_v3 = vld [vmem:[%s1737_s5 + $0xf0] ss:$8 sps:$4 sm:$0xff]   ;;  %v1053_v22 = vshrl.u32 (!%p1283_p13), %v1052_v21, 7 }
  0x64   : > { %969 = vmatpush1.bf16.msra.mxu0 %v1380_v23  ;;  %v1441_v4 = vld [vmem:[%s1737_s5 + $0x1f0] ss:$8 sps:$4 sm:$0xff]  }
  0x65   : > { %1010 = vmatpush1.bf16.msra.mxu1 %v1381_v24  ;;  %970 = vmatprep.subr.bf16.mxu0 %v1382_v25  ;;  %v556_v8 = vld [vmem:[#allocation2] sm:$0xff]  ;;  %v557_v12 = vld [vmem:[#allocation2 + $0x8] sm:$0xff]  ;;  %v1054_v24 = vsub.s32 (!%p1283_p13), 0, %v1053_v22  ;;  %v1058_v25 = vsub.s32 (!%p1283_p13), 1, %v1053_v22 }
  0x66   : > { %1011 = vmatprep.subr.bf16.mxu1 %v1384_v26  ;;  %v1050_v23 = vld [vmem:[%s538_s12] sm:$0x3] (!%p1283_p13) }
  0x68   : > { %971 = vmatpush1.bf16.msra.mxu0 %v1386_v27 }
  0x69   : > { %1012 = vmatpush1.bf16.msra.mxu1 %v1387_v28  ;;  %972 = vmatprep.subr.bf16.mxu0 %v1388_v29  ;;  %v1055_v28 = vrot.slane (!%p1283_p13), %v1050_v23, %v1054_v24  ;;  %v1059_v29 = vrot.slane (!%p1283_p13), %v1050_v23, %v1058_v25 }
  0x6a   : > { %1013 = vmatprep.subr.bf16.mxu1 %v1390_v30 }
  0x6c   : > { %973 = vmatpush1.bf16.msra.mxu0 %v1392_v31 }
  0x6d   : > { %1014 = vmatpush1.bf16.msra.mxu1 %v1393_v32  ;;  %974 = vmatprep.subr.bf16.mxu0 %v1394_v33 }
  0x6e   : > { %1015 = vmatprep.subr.bf16.mxu1 %v1396_v34 }
  0x70   : > { %975 = vmatpush1.bf16.msra.mxu0 %v1398_v35 }
  0x71   : > { %1016 = vmatpush1.bf16.msra.mxu1 %v1399_v36  ;;  %976 = vmatprep.subr.bf16.mxu0 %v1400_v37 }
  0x72   : > { %1017 = vmatprep.subr.bf16.mxu1 %v1402_v38 }
  0x74   : > { %977 = vmatpush1.bf16.msra.mxu0 %v1404_v39 }
  0x75   : > { %1018 = vmatpush1.bf16.msra.mxu1 %v1405_v40  ;;  %978 = vmatprep.subr.bf16.mxu0 %v1406_v41 }
  0x76   : > { %1019 = vmatprep.subr.bf16.mxu1 %v1408_v42 }
  0x78   : > { %979 = vmatpush1.bf16.msra.mxu0 %v1410_v43 }
  0x79   : > { %1020 = vmatpush1.bf16.msra.mxu1 %v1411_v44  ;;  %980 = vmatprep.subr.bf16.mxu0 %v1412_v45 }
  0x7a   : > { %1021 = vmatprep.subr.bf16.mxu1 %v1414_v46 }
  0x7c   : > { %981 = vmatpush1.bf16.msra.mxu0 %v1416_v50 }
  0x7d   : > { %1022 = vmatpush1.bf16.msra.mxu1 %v1417_v51  ;;  %982 = vmatprep.subr.bf16.mxu0 %v1418_v53 }
  0x7e   : > { %1023 = vmatprep.subr.bf16.mxu1 %v1420_v54 }
  0x80   : > { %983 = vmatpush1.bf16.msra.mxu0 %v1422_v55 }
  0x81   : > { %1024 = vmatpush1.bf16.msra.mxu1 %v1423_v56  ;;  %984 = vmatprep.subr.bf16.mxu0 %v1424_v57 }
  0x82   : > { %1025 = vmatprep.subr.bf16.mxu1 %v1426_v58 }
  0x84   : > { %985 = vmatpush1.bf16.msra.mxu0 %v1428_v59 }
  0x85   : > { %1026 = vmatpush1.bf16.msra.mxu1 %v1429_v60  ;;  %986 = vmatprep.subr.bf16.mxu0 %v1430_v61 }
  0x86   : > { %1027 = vmatprep.subr.bf16.mxu1 %v1432_v62 }
  0x88   : > { %987 = vmatpush1.bf16.msra.mxu0 %v1434_v63 }
  0x89   : > { %1028 = vmatpush1.bf16.msra.mxu1 %v1435_v0  ;;  %988 = vmatprep.subr.bf16.mxu0 %v1436_v1 }
  0x8a   : > { %1029 = vmatprep.subr.bf16.mxu1 %v1438_v2 }
  0x8c   : > { %989 = vmatpush1.bf16.msra.mxu0 %v1440_v3 }
  0x8d   : > { %1030 = vmatpush1.bf16.msra.mxu1 %v1441_v4 }
  0x8f   : > { %991 = vmatmul.mubr.bf16.vlgmr.msra.gmra.mrb[0].mxu0 %v1215_v5 }
  0x90   : > { %1032 = vmatmul.mubr.bf16.vlgmr.msra.gmra.mrb[0].mxu1 %v1217_v6 }
 0x162   : > { %v992_v7 = vpop.f32.mrb[0].mxu0 }
 0x163   : > { %v1033_v9 = vpop.f32.mrb[0].mxu1  ;;  %v994_v11 = vpop.f32.mrb[1].mxu0  ;;  %1047 = sbr.rel (%p1283_p13) target bundleno = 376 (0x178), region = 78 }
 0x164   : > { %v1034_v10 = vadd.f32 %v1033_v9, %v992_v7  ;;  %v1035_v13 = vpop.f32.mrb[1].mxu1  ;;  %v996_v15 = vpop.f32.mrb[2].mxu0 }
 0x165   : > { %v1036_v14 = vadd.f32 %v1035_v13, %v994_v11  ;;  %v1037_v16 = vpop.f32.mrb[2].mxu1  ;;  %v997_v18 = vpop.f32.mrb[3].mxu0 }
 0x166   : > { %v1040_v17 = vadd.f32 %v1034_v10, %v556_v8  ;;  %v1038_v19 = vpop.f32.mrb[3].mxu1 }
 0x167   : > { %v1041_v20 = vadd.f32 %v1036_v14, %v557_v12 }
 0x168   : > { %1042 = vst [vmem:[#allocation2] sm:$0xff] %v1040_v17 }
 0x169   : > { %1043 = vst [vmem:[#allocation2 + $0x8] sm:$0xff] %v1041_v20 }
 0x16f   : > { %v1048_v26 = vld [vmem:[#allocation2] sm:$0xff] }
 0x170   : > { %v1049_v27 = vld [vmem:[#allocation2 + $0x8] sm:$0xff]  ;;  %v1062_v30 = vadd.f32 %v1055_v28, %v1048_v26 }
 0x171   : > { %v1063_v31 = vadd.f32 %v1059_v29, %v1049_v27 }
 0x172   : > { %v1064_v32 = vmax.f32 %v1062_v30, 0.0 }
 0x173   : > { %v1065_v33 = vmax.f32 %v1063_v31, 0.0 }
 0x175   : > { %v1288_v34 = vpack.c.bf16 %v1065_v33, %v1064_v32 }
 0x177   : > { %1074 = vst [vmem:[%s1735_s15] sm:$0xff] %v1288_v34 }
 0x178 PF: > { %s13_s18 = sadd.s32 1, %s1500_s18   ;;  %s1838_s12 = smov %s1480_s13 }
 0x179   : > { %p10_p0 = scmp.ge.s32.totalorder %s13_s18, 20   ;;  %s1839_s13 = smov %s1574_s25 }
 0x17a   : > { %s1840_s14 = smov %s1492_s16  ;;  %s1841_s15 = smov %s1496_s17 }
 0x17b   : > { %s1842_s16 = smov %s1845_s19  ;;  %s1843_s17 = smov %s1849_s20 }
 0x17c   :  { %12 = sbr.rel (!%p10_p0) target bundleno = 4 (0x4), region = 119 }

// kernel: embedder_forward.41
= control target key start
LH: loop header
LB: loop body
LE: loop exit
PB: predicated region body
PF: predicated region fallthrough
CT: control target
= control target key end

     0   :  { %s1780_s1 = inlined_call_operand.vmem [shape: bf16[512,512], index: 1, kind: input, shape index: {}]   ;;  %s1781_s0 = inlined_call_operand.vmem [shape: bf16[8,512], index: 0, kind: input, shape index: {}]   ;;  %s1782_s2 = inlined_call_operand.vmem [shape: f32[1,512], index: 2, kind: input, shape index: {}]   ;;  %s1783_s3 = inlined_call_operand.vmem [shape: f32[8,512], index: 3, kind: output, shape index: {}]  }
   0x1   :  { %v1151_v0 = vld [vmem:[%s1780_s1 + $0x4] ss:$16 sps:$4 sm:$0xff]   ;;  %v1153_v1 = vld [vmem:[%s1780_s1 + $0xc] ss:$16 sps:$4 sm:$0xff]   ;;  %v1155_v2 = vld [vmem:[%s1780_s1] ss:$16 sps:$4 sm:$0xff]  }
   0x2   :  { %820 = vmatprep.subr.bf16.mxu0 %v1151_v0  ;;  %v1156_v3 = vld [vmem:[%s1780_s1 + $0x8] ss:$16 sps:$4 sm:$0xff]   ;;  %902 = vmatprep.subr.bf16.mxu1 %v1153_v1  ;;  %v1157_v4 = vld [vmem:[%s1780_s1 + $0x24] ss:$16 sps:$4 sm:$0xff]   ;;  %v1159_v5 = vld [vmem:[%s1780_s1 + $0x2c] ss:$16 sps:$4 sm:$0xff]  }
   0x3   :  { %821 = vmatpush1.bf16.msra.mxu0 %v1155_v2  ;;  %903 = vmatpush1.bf16.msra.mxu1 %v1156_v3  ;;  %v1161_v6 = vld [vmem:[%s1780_s1 + $0x20] ss:$16 sps:$4 sm:$0xff]   ;;  %v1162_v7 = vld [vmem:[%s1780_s1 + $0x28] ss:$16 sps:$4 sm:$0xff]   ;;  %v1163_v8 = vld [vmem:[%s1780_s1 + $0x44] ss:$16 sps:$4 sm:$0xff]  }
   0x4   :  { %822 = vmatprep.subr.bf16.mxu0 %v1157_v4  ;;  %904 = vmatprep.subr.bf16.mxu1 %v1159_v5  ;;  %v1165_v9 = vld [vmem:[%s1780_s1 + $0x4c] ss:$16 sps:$4 sm:$0xff]   ;;  %v1167_v10 = vld [vmem:[%s1780_s1 + $0x40] ss:$16 sps:$4 sm:$0xff]   ;;  %v1168_v11 = vld [vmem:[%s1780_s1 + $0x48] ss:$16 sps:$4 sm:$0xff]  }
   0x5   :  { %v1169_v12 = vld [vmem:[%s1780_s1 + $0x64] ss:$16 sps:$4 sm:$0xff]   ;;  %v1171_v13 = vld [vmem:[%s1780_s1 + $0x6c] ss:$16 sps:$4 sm:$0xff]   ;;  %v1173_v14 = vld [vmem:[%s1780_s1 + $0x60] ss:$16 sps:$4 sm:$0xff]  }
   0x6   :  { %v1174_v15 = vld [vmem:[%s1780_s1 + $0x68] ss:$16 sps:$4 sm:$0xff]   ;;  %v1175_v16 = vld [vmem:[%s1780_s1 + $0x84] ss:$16 sps:$4 sm:$0xff]   ;;  %v1177_v17 = vld [vmem:[%s1780_s1 + $0x8c] ss:$16 sps:$4 sm:$0xff]  }
   0x7   :  { %823 = vmatpush1.bf16.msra.mxu0 %v1161_v6  ;;  %905 = vmatpush1.bf16.msra.mxu1 %v1162_v7  ;;  %v1179_v18 = vld [vmem:[%s1780_s1 + $0x80] ss:$16 sps:$4 sm:$0xff]   ;;  %v1180_v19 = vld [vmem:[%s1780_s1 + $0x88] ss:$16 sps:$4 sm:$0xff]   ;;  %v1181_v20 = vld [vmem:[%s1780_s1 + $0xa4] ss:$16 sps:$4 sm:$0xff]  }
   0x8   :  { %824 = vmatprep.subr.bf16.mxu0 %v1163_v8  ;;  %906 = vmatprep.subr.bf16.mxu1 %v1165_v9  ;;  %v1183_v21 = vld [vmem:[%s1780_s1 + $0xac] ss:$16 sps:$4 sm:$0xff]   ;;  %v1185_v22 = vld [vmem:[%s1780_s1 + $0xa0] ss:$16 sps:$4 sm:$0xff]   ;;  %v1186_v23 = vld [vmem:[%s1780_s1 + $0xa8] ss:$16 sps:$4 sm:$0xff]  }
   0x9   :  { %v1187_v24 = vld [vmem:[%s1780_s1 + $0xc4] ss:$16 sps:$4 sm:$0xff]   ;;  %v1189_v25 = vld [vmem:[%s1780_s1 + $0xcc] ss:$16 sps:$4 sm:$0xff]   ;;  %v1191_v26 = vld [vmem:[%s1780_s1 + $0xc0] ss:$16 sps:$4 sm:$0xff]  }
   0xa   :  { %v1192_v27 = vld [vmem:[%s1780_s1 + $0xc8] ss:$16 sps:$4 sm:$0xff]   ;;  %v1193_v28 = vld [vmem:[%s1780_s1 + $0xe4] ss:$16 sps:$4 sm:$0xff]   ;;  %v1195_v29 = vld [vmem:[%s1780_s1 + $0xec] ss:$16 sps:$4 sm:$0xff]  }
   0xb   :  { %825 = vmatpush1.bf16.msra.mxu0 %v1167_v10  ;;  %907 = vmatpush1.bf16.msra.mxu1 %v1168_v11  ;;  %v1197_v30 = vld [vmem:[%s1780_s1 + $0xe0] ss:$16 sps:$4 sm:$0xff]   ;;  %v1198_v31 = vld [vmem:[%s1780_s1 + $0xe8] ss:$16 sps:$4 sm:$0xff]   ;;  %v1199_v32 = vld [vmem:[%s1780_s1 + $0x104] ss:$16 sps:$4 sm:$0xff]  }
   0xc   :  { %826 = vmatprep.subr.bf16.mxu0 %v1169_v12  ;;  %908 = vmatprep.subr.bf16.mxu1 %v1171_v13  ;;  %v1201_v33 = vld [vmem:[%s1780_s1 + $0x10c] ss:$16 sps:$4 sm:$0xff]   ;;  %v1203_v34 = vld [vmem:[%s1780_s1 + $0x100] ss:$16 sps:$4 sm:$0xff]   ;;  %v1204_v35 = vld [vmem:[%s1780_s1 + $0x108] ss:$16 sps:$4 sm:$0xff]  }
   0xd   :  { %v1205_v36 = vld [vmem:[%s1780_s1 + $0x124] ss:$16 sps:$4 sm:$0xff]   ;;  %v1207_v37 = vld [vmem:[%s1780_s1 + $0x12c] ss:$16 sps:$4 sm:$0xff]   ;;  %v1209_v38 = vld [vmem:[%s1780_s1 + $0x120] ss:$16 sps:$4 sm:$0xff]  }
   0xe   :  { %v1210_v39 = vld [vmem:[%s1780_s1 + $0x128] ss:$16 sps:$4 sm:$0xff]   ;;  %v1211_v40 = vld [vmem:[%s1780_s1 + $0x144] ss:$16 sps:$4 sm:$0xff]   ;;  %v1213_v41 = vld [vmem:[%s1780_s1 + $0x14c] ss:$16 sps:$4 sm:$0xff]  }
   0xf   :  { %827 = vmatpush1.bf16.msra.mxu0 %v1173_v14  ;;  %909 = vmatpush1.bf16.msra.mxu1 %v1174_v15  ;;  %v1215_v42 = vld [vmem:[%s1780_s1 + $0x140] ss:$16 sps:$4 sm:$0xff]   ;;  %v1216_v43 = vld [vmem:[%s1780_s1 + $0x148] ss:$16 sps:$4 sm:$0xff]   ;;  %v1217_v44 = vld [vmem:[%s1780_s1 + $0x164] ss:$16 sps:$4 sm:$0xff]  }
  0x10   :  { %828 = vmatprep.subr.bf16.mxu0 %v1175_v16  ;;  %910 = vmatprep.subr.bf16.mxu1 %v1177_v17  ;;  %v1219_v45 = vld [vmem:[%s1780_s1 + $0x16c] ss:$16 sps:$4 sm:$0xff]   ;;  %v14_v46 = vld [vmem:[%s1781_s0] sm:$0xff]  ;;  %v1222_v49 = vld [vmem:[%s1780_s1 + $0x168] ss:$16 sps:$4 sm:$0xff]  }
  0x11   :  { %v1008_v47 = vcombine.high %v14_v46, %v14_v46  ;;  %v1221_v48 = vld [vmem:[%s1780_s1 + $0x160] ss:$16 sps:$4 sm:$0xff]   ;;  %v1223_v50 = vld [vmem:[%s1780_s1 + $0x184] ss:$16 sps:$4 sm:$0xff]   ;;  %v1225_v51 = vld [vmem:[%s1780_s1 + $0x18c] ss:$16 sps:$4 sm:$0xff]   ;;  %v1007_v5 = vcombine.low %v14_v46, %v14_v46 }
  0x12   :  { %v1227_v52 = vld [vmem:[%s1780_s1 + $0x180] ss:$16 sps:$4 sm:$0xff]   ;;  %v1228_v53 = vld [vmem:[%s1780_s1 + $0x188] ss:$16 sps:$4 sm:$0xff]   ;;  %v1229_v54 = vld [vmem:[%s1780_s1 + $0x1a4] ss:$16 sps:$4 sm:$0xff]  }
  0x13   :  { %829 = vmatpush1.bf16.msra.mxu0 %v1179_v18  ;;  %911 = vmatpush1.bf16.msra.mxu1 %v1180_v19  ;;  %v1231_v55 = vld [vmem:[%s1780_s1 + $0x1ac] ss:$16 sps:$4 sm:$0xff]   ;;  %v1233_v56 = vld [vmem:[%s1780_s1 + $0x1a0] ss:$16 sps:$4 sm:$0xff]   ;;  %v1234_v57 = vld [vmem:[%s1780_s1 + $0x1a8] ss:$16 sps:$4 sm:$0xff]  }
  0x14   :  { %830 = vmatprep.subr.bf16.mxu0 %v1181_v20  ;;  %912 = vmatprep.subr.bf16.mxu1 %v1183_v21  ;;  %v1235_v58 = vld [vmem:[%s1780_s1 + $0x1c4] ss:$16 sps:$4 sm:$0xff]   ;;  %v1237_v59 = vld [vmem:[%s1780_s1 + $0x1cc] ss:$16 sps:$4 sm:$0xff]   ;;  %v1239_v60 = vld [vmem:[%s1780_s1 + $0x1c0] ss:$16 sps:$4 sm:$0xff]  }
  0x15   :  { %852 = vmatprep.mubr.bf16.mxu0 %v1008_v47  ;;  %934 = vmatprep.mubr.bf16.mxu1 %v1008_v47  ;;  %v1240_v61 = vld [vmem:[%s1780_s1 + $0x1c8] ss:$16 sps:$4 sm:$0xff]   ;;  %v1241_v62 = vld [vmem:[%s1780_s1 + $0x1e4] ss:$16 sps:$4 sm:$0xff]   ;;  %v1243_v63 = vld [vmem:[%s1780_s1 + $0x1ec] ss:$16 sps:$4 sm:$0xff]  }
  0x16   :  { %v1245_v0 = vld [vmem:[%s1780_s1 + $0x1e0] ss:$16 sps:$4 sm:$0xff]   ;;  %v1246_v1 = vld [vmem:[%s1780_s1 + $0x1e8] ss:$16 sps:$4 sm:$0xff]   ;;  %v1252_v2 = vld [vmem:[%s1780_s1 + $0x204] ss:$16 sps:$4 sm:$0xff]  }
  0x17   :  { %831 = vmatpush1.bf16.msra.mxu0 %v1185_v22  ;;  %913 = vmatpush1.bf16.msra.mxu1 %v1186_v23  ;;  %v1255_v3 = vld [vmem:[%s1780_s1 + $0x20c] ss:$16 sps:$4 sm:$0xff]   ;;  %v1250_v6 = vld [vmem:[%s1780_s1 + $0x200] ss:$16 sps:$4 sm:$0xff]   ;;  %v1253_v7 = vld [vmem:[%s1780_s1 + $0x208] ss:$16 sps:$4 sm:$0xff]  }
  0x18   :  { %832 = vmatprep.subr.bf16.mxu0 %v1187_v24  ;;  %914 = vmatprep.subr.bf16.mxu1 %v1189_v25  ;;  %v1573_v4 = vld [vmem:[%s1781_s0 + $0x8] sm:$0xff]  ;;  %v1258_v8 = vld [vmem:[%s1780_s1 + $0x224] ss:$16 sps:$4 sm:$0xff]   ;;  %v1256_v11 = vld [vmem:[%s1780_s1 + $0x220] ss:$16 sps:$4 sm:$0xff]  }
  0x19   :  { %v1261_v9 = vld [vmem:[%s1780_s1 + $0x22c] ss:$16 sps:$4 sm:$0xff]   ;;  %v1010_v10 = vcombine.high %v1573_v4, %v1573_v4  ;;  %v1259_v12 = vld [vmem:[%s1780_s1 + $0x228] ss:$16 sps:$4 sm:$0xff]   ;;  %v1264_v13 = vld [vmem:[%s1780_s1 + $0x244] ss:$16 sps:$4 sm:$0xff]  }
  0x1a   :  { %v1267_v14 = vld [vmem:[%s1780_s1 + $0x24c] ss:$16 sps:$4 sm:$0xff]   ;;  %v1262_v15 = vld [vmem:[%s1780_s1 + $0x240] ss:$16 sps:$4 sm:$0xff]   ;;  %v1265_v16 = vld [vmem:[%s1780_s1 + $0x248] ss:$16 sps:$4 sm:$0xff]  }
  0x1b   :  { %833 = vmatpush1.bf16.msra.mxu0 %v1191_v26  ;;  %915 = vmatpush1.bf16.msra.mxu1 %v1192_v27  ;;  %v1270_v17 = vld [vmem:[%s1780_s1 + $0x264] ss:$16 sps:$4 sm:$0xff]   ;;  %v1273_v18 = vld [vmem:[%s1780_s1 + $0x26c] ss:$16 sps:$4 sm:$0xff]   ;;  %v1268_v19 = vld [vmem:[%s1780_s1 + $0x260] ss:$16 sps:$4 sm:$0xff]  }
  0x1c   :  { %834 = vmatprep.subr.bf16.mxu0 %v1193_v28  ;;  %916 = vmatprep.subr.bf16.mxu1 %v1195_v29  ;;  %v1271_v20 = vld [vmem:[%s1780_s1 + $0x268] ss:$16 sps:$4 sm:$0xff]   ;;  %v1276_v21 = vld [vmem:[%s1780_s1 + $0x284] ss:$16 sps:$4 sm:$0xff]   ;;  %v1279_v22 = vld [vmem:[%s1780_s1 + $0x28c] ss:$16 sps:$4 sm:$0xff]  }
  0x1d   :  { %v1274_v23 = vld [vmem:[%s1780_s1 + $0x280] ss:$16 sps:$4 sm:$0xff]   ;;  %v1277_v24 = vld [vmem:[%s1780_s1 + $0x288] ss:$16 sps:$4 sm:$0xff]   ;;  %v1282_v25 = vld [vmem:[%s1780_s1 + $0x2a4] ss:$16 sps:$4 sm:$0xff]  }
  0x1e   :  { %v1285_v26 = vld [vmem:[%s1780_s1 + $0x2ac] ss:$16 sps:$4 sm:$0xff]   ;;  %v1280_v27 = vld [vmem:[%s1780_s1 + $0x2a0] ss:$16 sps:$4 sm:$0xff]   ;;  %v1283_v28 = vld [vmem:[%s1780_s1 + $0x2a8] ss:$16 sps:$4 sm:$0xff]  }
  0x1f   :  { %835 = vmatpush1.bf16.msra.mxu0 %v1197_v30  ;;  %917 = vmatpush1.bf16.msra.mxu1 %v1198_v31  ;;  %v1288_v29 = vld [vmem:[%s1780_s1 + $0x2c4] ss:$16 sps:$4 sm:$0xff]   ;;  %v1291_v30 = vld [vmem:[%s1780_s1 + $0x2cc] ss:$16 sps:$4 sm:$0xff]   ;;  %v1286_v31 = vld [vmem:[%s1780_s1 + $0x2c0] ss:$16 sps:$4 sm:$0xff]  }
  0x20   :  { %836 = vmatprep.subr.bf16.mxu0 %v1199_v32  ;;  %918 = vmatprep.subr.bf16.mxu1 %v1201_v33  ;;  %v1289_v32 = vld [vmem:[%s1780_s1 + $0x2c8] ss:$16 sps:$4 sm:$0xff]   ;;  %v1294_v33 = vld [vmem:[%s1780_s1 + $0x2e4] ss:$16 sps:$4 sm:$0xff]   ;;  %v1315_v46 = vld [vmem:[%s1780_s1 + $0x34c] ss:$16 sps:$4 sm:$0xff]  }
  0x21   :  { %v1310_v47 = vld [vmem:[%s1780_s1 + $0x340] ss:$16 sps:$4 sm:$0xff]  }
  0x23   :  { %837 = vmatpush1.bf16.msra.mxu0 %v1203_v34  ;;  %919 = vmatpush1.bf16.msra.mxu1 %v1204_v35  ;;  %v1297_v34 = vld [vmem:[%s1780_s1 + $0x2ec] ss:$16 sps:$4 sm:$0xff]   ;;  %v1292_v35 = vld [vmem:[%s1780_s1 + $0x2e0] ss:$16 sps:$4 sm:$0xff]  }
  0x24   :  { %838 = vmatprep.subr.bf16.mxu0 %v1205_v36  ;;  %920 = vmatprep.subr.bf16.mxu1 %v1207_v37  ;;  %v1295_v36 = vld [vmem:[%s1780_s1 + $0x2e8] ss:$16 sps:$4 sm:$0xff]   ;;  %v1300_v37 = vld [vmem:[%s1780_s1 + $0x304] ss:$16 sps:$4 sm:$0xff]  }
  0x27   :  { %839 = vmatpush1.bf16.msra.mxu0 %v1209_v38  ;;  %921 = vmatpush1.bf16.msra.mxu1 %v1210_v39  ;;  %v1303_v38 = vld [vmem:[%s1780_s1 + $0x30c] ss:$16 sps:$4 sm:$0xff]   ;;  %v1298_v39 = vld [vmem:[%s1780_s1 + $0x300] ss:$16 sps:$4 sm:$0xff]  }
  0x28   :  { %840 = vmatprep.subr.bf16.mxu0 %v1211_v40  ;;  %922 = vmatprep.subr.bf16.mxu1 %v1213_v41  ;;  %v1301_v40 = vld [vmem:[%s1780_s1 + $0x308] ss:$16 sps:$4 sm:$0xff]   ;;  %v1306_v41 = vld [vmem:[%s1780_s1 + $0x324] ss:$16 sps:$4 sm:$0xff]  }
  0x2b   :  { %841 = vmatpush1.bf16.msra.mxu0 %v1215_v42  ;;  %923 = vmatpush1.bf16.msra.mxu1 %v1216_v43  ;;  %v1309_v42 = vld [vmem:[%s1780_s1 + $0x32c] ss:$16 sps:$4 sm:$0xff]   ;;  %v1304_v43 = vld [vmem:[%s1780_s1 + $0x320] ss:$16 sps:$4 sm:$0xff]  }
  0x2c   :  { %842 = vmatprep.subr.bf16.mxu0 %v1217_v44  ;;  %924 = vmatprep.subr.bf16.mxu1 %v1219_v45  ;;  %v1307_v44 = vld [vmem:[%s1780_s1 + $0x328] ss:$16 sps:$4 sm:$0xff]   ;;  %v1312_v45 = vld [vmem:[%s1780_s1 + $0x344] ss:$16 sps:$4 sm:$0xff]  }
  0x2f   :  { %843 = vmatpush1.bf16.msra.mxu0 %v1221_v48  ;;  %925 = vmatpush1.bf16.msra.mxu1 %v1222_v49  ;;  %v1313_v48 = vld [vmem:[%s1780_s1 + $0x348] ss:$16 sps:$4 sm:$0xff]   ;;  %v1318_v49 = vld [vmem:[%s1780_s1 + $0x364] ss:$16 sps:$4 sm:$0xff]  }
  0x30   :  { %844 = vmatprep.subr.bf16.mxu0 %v1223_v50  ;;  %926 = vmatprep.subr.bf16.mxu1 %v1225_v51  ;;  %v1321_v50 = vld [vmem:[%s1780_s1 + $0x36c] ss:$16 sps:$4 sm:$0xff]   ;;  %v1316_v51 = vld [vmem:[%s1780_s1 + $0x360] ss:$16 sps:$4 sm:$0xff]  }
  0x33   :  { %845 = vmatpush1.bf16.msra.mxu0 %v1227_v52  ;;  %927 = vmatpush1.bf16.msra.mxu1 %v1228_v53  ;;  %v1319_v52 = vld [vmem:[%s1780_s1 + $0x368] ss:$16 sps:$4 sm:$0xff]   ;;  %v1324_v53 = vld [vmem:[%s1780_s1 + $0x384] ss:$16 sps:$4 sm:$0xff]  }
  0x34   :  { %846 = vmatprep.subr.bf16.mxu0 %v1229_v54  ;;  %928 = vmatprep.subr.bf16.mxu1 %v1231_v55  ;;  %v1327_v54 = vld [vmem:[%s1780_s1 + $0x38c] ss:$16 sps:$4 sm:$0xff]   ;;  %v1322_v55 = vld [vmem:[%s1780_s1 + $0x380] ss:$16 sps:$4 sm:$0xff]  }
  0x37   :  { %847 = vmatpush1.bf16.msra.mxu0 %v1233_v56  ;;  %929 = vmatpush1.bf16.msra.mxu1 %v1234_v57  ;;  %v1325_v56 = vld [vmem:[%s1780_s1 + $0x388] ss:$16 sps:$4 sm:$0xff]   ;;  %v1330_v57 = vld [vmem:[%s1780_s1 + $0x3a4] ss:$16 sps:$4 sm:$0xff]  }
  0x38   :  { %848 = vmatprep.subr.bf16.mxu0 %v1235_v58  ;;  %930 = vmatprep.subr.bf16.mxu1 %v1237_v59  ;;  %v1333_v58 = vld [vmem:[%s1780_s1 + $0x3ac] ss:$16 sps:$4 sm:$0xff]   ;;  %v1328_v59 = vld [vmem:[%s1780_s1 + $0x3a0] ss:$16 sps:$4 sm:$0xff]  }
  0x3b   :  { %849 = vmatpush1.bf16.msra.mxu0 %v1239_v60  ;;  %931 = vmatpush1.bf16.msra.mxu1 %v1240_v61  ;;  %v1331_v60 = vld [vmem:[%s1780_s1 + $0x3a8] ss:$16 sps:$4 sm:$0xff]   ;;  %v1336_v61 = vld [vmem:[%s1780_s1 + $0x3c4] ss:$16 sps:$4 sm:$0xff]  }
  0x3c   :  { %850 = vmatprep.subr.bf16.mxu0 %v1241_v62  ;;  %932 = vmatprep.subr.bf16.mxu1 %v1243_v63  ;;  %v1339_v62 = vld [vmem:[%s1780_s1 + $0x3cc] ss:$16 sps:$4 sm:$0xff]   ;;  %v1334_v63 = vld [vmem:[%s1780_s1 + $0x3c0] ss:$16 sps:$4 sm:$0xff]  }
  0x3f   :  { %851 = vmatpush1.bf16.msra.mxu0 %v1245_v0  ;;  %933 = vmatpush1.bf16.msra.mxu1 %v1246_v1  ;;  %v1337_v0 = vld [vmem:[%s1780_s1 + $0x3c8] ss:$16 sps:$4 sm:$0xff]   ;;  %v1342_v1 = vld [vmem:[%s1780_s1 + $0x3e4] ss:$16 sps:$4 sm:$0xff]  }
  0x40   :  { %861 = vmatprep.subr.bf16.mxu0 %v1252_v2  ;;  %943 = vmatprep.subr.bf16.mxu1 %v1255_v3  ;;  %v1345_v2 = vld [vmem:[%s1780_s1 + $0x3ec] ss:$16 sps:$4 sm:$0xff]   ;;  %v1340_v3 = vld [vmem:[%s1780_s1 + $0x3e0] ss:$16 sps:$4 sm:$0xff]  }
  0x42   :  { %853 = vmatmul.mubr.bf16.vlgmr.msra.gmra.mrb[0].mxu0 %v1007_v5  ;;  %935 = vmatmul.mubr.bf16.vlgmr.msra.gmra.mrb[0].mxu1 %v1007_v5  ;;  %v1343_v5 = vld [vmem:[%s1780_s1 + $0x3e8] ss:$16 sps:$4 sm:$0xff]  }
  0x43   :  { %862 = vmatpush1.bf16.msra.mxu0 %v1250_v6  ;;  %944 = vmatpush1.bf16.msra.mxu1 %v1253_v7  ;;  %v1009_v6 = vcombine.low %v1573_v4, %v1573_v4  ;;  %v146_v7 = vlaneseq }
  0x44   :  { %863 = vmatprep.subr.bf16.mxu0 %v1258_v8  ;;  %945 = vmatprep.subr.bf16.mxu1 %v1261_v9 }
  0x45   :  { %893 = vmatprep.mubr.bf16.mxu0 %v1010_v10  ;;  %975 = vmatprep.mubr.bf16.mxu1 %v1010_v10  ;;  %v147_v8 = vshrl.u32 %v146_v7, 7  ;;  %v144_v10 = vld [vmem:[%s1782_s2] sm:$0xf] }
  0x47   :  { %864 = vmatpush1.bf16.msra.mxu0 %v1256_v11  ;;  %946 = vmatpush1.bf16.msra.mxu1 %v1259_v12  ;;  %v148_v9 = vsub.s32 0, %v147_v8  ;;  %v156_v11 = vsub.s32 2, %v147_v8  ;;  %v152_v12 = vsub.s32 1, %v147_v8 }
  0x48   :  { %865 = vmatprep.subr.bf16.mxu0 %v1264_v13  ;;  %947 = vmatprep.subr.bf16.mxu1 %v1267_v14  ;;  %v160_v13 = vsub.s32 3, %v147_v8 }
  0x49   :  { %v149_v14 = vrot.slane %v144_v10, %v148_v9 }
  0x4a   :  { %v161_v4 = vrot.slane %v144_v10, %v160_v13 }
  0x4b   :  { %866 = vmatpush1.bf16.msra.mxu0 %v1262_v15  ;;  %948 = vmatpush1.bf16.msra.mxu1 %v1265_v16  ;;  %v157_v15 = vrot.slane %v144_v10, %v156_v11  ;;  %v153_v16 = vrot.slane %v144_v10, %v152_v12 }
  0x4c   :  { %867 = vmatprep.subr.bf16.mxu0 %v1270_v17  ;;  %949 = vmatprep.subr.bf16.mxu1 %v1273_v18 }
  0x4f   :  { %868 = vmatpush1.bf16.msra.mxu0 %v1268_v19  ;;  %950 = vmatpush1.bf16.msra.mxu1 %v1271_v20 }
  0x50   :  { %869 = vmatprep.subr.bf16.mxu0 %v1276_v21  ;;  %951 = vmatprep.subr.bf16.mxu1 %v1279_v22 }
  0x53   :  { %870 = vmatpush1.bf16.msra.mxu0 %v1274_v23  ;;  %952 = vmatpush1.bf16.msra.mxu1 %v1277_v24 }
  0x54   :  { %871 = vmatprep.subr.bf16.mxu0 %v1282_v25  ;;  %953 = vmatprep.subr.bf16.mxu1 %v1285_v26 }
  0x57   :  { %872 = vmatpush1.bf16.msra.mxu0 %v1280_v27  ;;  %954 = vmatpush1.bf16.msra.mxu1 %v1283_v28 }
  0x58   :  { %873 = vmatprep.subr.bf16.mxu0 %v1288_v29  ;;  %955 = vmatprep.subr.bf16.mxu1 %v1291_v30 }
  0x5b   :  { %874 = vmatpush1.bf16.msra.mxu0 %v1286_v31  ;;  %956 = vmatpush1.bf16.msra.mxu1 %v1289_v32 }
  0x5c   :  { %875 = vmatprep.subr.bf16.mxu0 %v1294_v33  ;;  %957 = vmatprep.subr.bf16.mxu1 %v1297_v34 }
  0x5f   :  { %876 = vmatpush1.bf16.msra.mxu0 %v1292_v35  ;;  %958 = vmatpush1.bf16.msra.mxu1 %v1295_v36 }
  0x60   :  { %877 = vmatprep.subr.bf16.mxu0 %v1300_v37  ;;  %959 = vmatprep.subr.bf16.mxu1 %v1303_v38 }
  0x63   :  { %878 = vmatpush1.bf16.msra.mxu0 %v1298_v39  ;;  %960 = vmatpush1.bf16.msra.mxu1 %v1301_v40 }
  0x64   :  { %879 = vmatprep.subr.bf16.mxu0 %v1306_v41  ;;  %961 = vmatprep.subr.bf16.mxu1 %v1309_v42 }
  0x67   :  { %880 = vmatpush1.bf16.msra.mxu0 %v1304_v43  ;;  %962 = vmatpush1.bf16.msra.mxu1 %v1307_v44 }
  0x68   :  { %881 = vmatprep.subr.bf16.mxu0 %v1312_v45  ;;  %963 = vmatprep.subr.bf16.mxu1 %v1315_v46 }
  0x6b   :  { %882 = vmatpush1.bf16.msra.mxu0 %v1310_v47  ;;  %964 = vmatpush1.bf16.msra.mxu1 %v1313_v48 }
  0x6c   :  { %883 = vmatprep.subr.bf16.mxu0 %v1318_v49  ;;  %965 = vmatprep.subr.bf16.mxu1 %v1321_v50 }
  0x6f   :  { %884 = vmatpush1.bf16.msra.mxu0 %v1316_v51  ;;  %966 = vmatpush1.bf16.msra.mxu1 %v1319_v52 }
  0x70   :  { %885 = vmatprep.subr.bf16.mxu0 %v1324_v53  ;;  %967 = vmatprep.subr.bf16.mxu1 %v1327_v54 }
  0x73   :  { %886 = vmatpush1.bf16.msra.mxu0 %v1322_v55  ;;  %968 = vmatpush1.bf16.msra.mxu1 %v1325_v56 }
  0x74   :  { %887 = vmatprep.subr.bf16.mxu0 %v1330_v57  ;;  %969 = vmatprep.subr.bf16.mxu1 %v1333_v58 }
  0x77   :  { %888 = vmatpush1.bf16.msra.mxu0 %v1328_v59  ;;  %970 = vmatpush1.bf16.msra.mxu1 %v1331_v60 }
  0x78   :  { %889 = vmatprep.subr.bf16.mxu0 %v1336_v61  ;;  %971 = vmatprep.subr.bf16.mxu1 %v1339_v62 }
  0x7b   :  { %890 = vmatpush1.bf16.msra.mxu0 %v1334_v63  ;;  %972 = vmatpush1.bf16.msra.mxu1 %v1337_v0 }
  0x7c   :  { %891 = vmatprep.subr.bf16.mxu0 %v1342_v1  ;;  %973 = vmatprep.subr.bf16.mxu1 %v1345_v2 }
  0x7f   :  { %892 = vmatpush1.bf16.msra.mxu0 %v1340_v3  ;;  %974 = vmatpush1.bf16.msra.mxu1 %v1343_v5 }
  0x82   :  { %894 = vmatmul.mubr.bf16.vlgmr.msra.gmra.mrb[0].mxu0 %v1009_v6  ;;  %976 = vmatmul.mubr.bf16.vlgmr.msra.gmra.mrb[0].mxu1 %v1009_v6 }
 0x155   :  { %v895_v17 = vpop.f32.mrb[0].mxu0  ;;  %v977_v18 = vpop.f32.mrb[0].mxu1 }
 0x156   :  { %v1139_v19 = vadd.f32 %v895_v17, %v149_v14  ;;  %v897_v20 = vpop.f32.mrb[1].mxu0  ;;  %v979_v21 = vpop.f32.mrb[1].mxu1  ;;  %v1141_v22 = vadd.f32 %v977_v18, %v157_v15 }
 0x157   :  { %v1140_v23 = vadd.f32 %v897_v20, %v153_v16  ;;  %v899_v24 = vpop.f32.mrb[2].mxu0  ;;  %v981_v25 = vpop.f32.mrb[2].mxu1  ;;  %v1142_v30 = vadd.f32 %v979_v21, %v161_v4 }
 0x158   :  { %v984_v26 = vmul.f32 %v1139_v19, %v1139_v19  ;;  %v900_v27 = vpop.f32.mrb[3].mxu0  ;;  %v982_v28 = vpop.f32.mrb[3].mxu1  ;;  %v986_v31 = vmul.f32 %v1141_v22, %v1141_v22 }
 0x159   :  { %v985_v29 = vmul.f32 %v1140_v23, %v1140_v23  ;;  %v987_v33 = vmul.f32 %v1142_v30, %v1142_v30 }
 0x15b   :  { %v988_v32 = vadd.f32 %v985_v29, %v984_v26 }
 0x15d   :  { %v989_v34 = vadd.f32 %v988_v32, %v986_v31 }
 0x15f   :  { %v990_v35 = vadd.f32 %v989_v34, %v987_v33 }
 0x161   :  { %991 = vadd.xlane.f32.xlu0 %v990_v35 }
 0x1ee   :  { %v992_v36 = vpop.xlane.xlu0 %991 }
 0x1ef   :  { %v993_v37 = vmax.f32 %v992_v36, 1e-24 }
 0x1f1   :  { %1347 = vrsqrt.f32 %v993_v37 }
 0x1fb   :  { %v1348_v38 = vpop.eup %1347 }
 0x1fc   :  { %v995_v39 = vmul.f32 %v1348_v38, %v1139_v19  ;;  %v996_v40 = vmul.f32 %v1348_v38, %v1140_v23  ;;  %v997_v41 = vmul.f32 %v1348_v38, %v1141_v22  ;;  %v998_v42 = vmul.f32 %v1348_v38, %v1142_v30 }
 0x1fe   :  { %999 = vst [vmem:[%s1783_s3] sm:$0xff] %v995_v39  ;;  %1000 = vst [vmem:[%s1783_s3 + $0x8] sm:$0xff] %v996_v40 }
 0x1ff   :  { %1001 = vst [vmem:[%s1783_s3 + $0x10] sm:$0xff] %v997_v41  ;;  %1002 = vst [vmem:[%s1783_s3 + $0x18] sm:$0xff] %v998_v42 }

</bundles_post_ra>
